<compile_context>
chip_gen: v5e
topology: v5e:2x2
jax: 0.10.0
libtpu: 0.0.40
codegen_flags: <defaults>
</compile_context>

<pallas_src>
import functools

import jax
import jax.numpy as jnp
from jax.experimental import pallas as pl
from jax.experimental.pallas import tpu as pltpu

N_POINTS = 16    # "H" of the NCHW input (number of points)
K_NEIGH = 8      # "W" of the NCHW input (number of neighbors)
OUT_PAD = 128    # Linear(256, 9) zero-padded to 128 output lanes (lane-dense store)


def _transform_net_kernel(x_ref,
                          w1, b1, w2, b2, w3, b3, w4, b4, w5, b5, w6, b6,
                          out_ref, acc_ref,
                          *, n_points, k_neigh, sub_bt, act_dtype):
    """One grid step == one tile of batch elements, fully resident in VMEM."""
    nk = n_points * k_neigh
    bt = x_ref.shape[0]            # batch elements per grid step (static)
    n_sub = bt // sub_bt           # inner sub-batch loop trip count (static)

    def lrelu(v):                  # LeakyReLU(0.2); slope < 1 so max() is exact
        return jnp.maximum(v, 0.2 * v)

    def dense(h, w_ref, b_ref):    # bf16 x bf16 -> f32 MXU matmul + folded-BN bias
        y = jnp.dot(h.astype(w_ref.dtype), w_ref[...],
                    preferred_element_type=jnp.float32)
        return y + b_ref[...]

    def conv_stage(row0):
        # Channels-last rows for sub_bt batch elements: concatenate the
        # (6, nk) slabs along lanes, then one 2-D XLU transpose.
        if sub_bt == 1:
            xc = x_ref[row0]                                        # (6, nk)
        else:
            xc = jnp.concatenate(
                [x_ref[row0 + i] for i in range(sub_bt)], axis=1)   # (6, sub_bt*nk)
        xt = jnp.transpose(xc)                                      # (sub_bt*nk, 6)

        h = lrelu(dense(xt, w1, b1)).astype(act_dtype)      # conv1 -> (rows, 64)
        h = lrelu(dense(h, w2, b2)).astype(act_dtype)       # conv2 -> (rows, 128)
        # max over the K neighbours of each point (sublane-group reduce)
        h = jnp.max(h.reshape(sub_bt * n_points, k_neigh, h.shape[-1]), axis=1)
        h = lrelu(dense(h, w3, b3))                          # conv3 -> (sub_bt*N, 1024)
        # max over the N points -> per-element global feature
        h = jnp.max(h.reshape(sub_bt, n_points, h.shape[-1]), axis=1)
        acc_ref[pl.ds(row0, sub_bt), :] = h                  # (sub_bt, 1024) f32

    if n_sub == 1:
        conv_stage(0)
    else:
        def body(i, carry):
            conv_stage(pl.multiple_of(i * sub_bt, sub_bt))
            return carry
        jax.lax.fori_loop(0, n_sub, body, 0)

    feat = acc_ref[...]                                      # (bt, 1024)
    h4 = lrelu(dense(feat, w4, b4))                          # linear1 + bn3 -> (bt, 512)
    h5 = lrelu(dense(h4, w5, b5))                            # linear2 + bn4 -> (bt, 256)
    out_ref[...] = dense(h5, w6, b6)                         # transform    -> (bt, 128)


def _tpu_vmem_and_kind():
    kind = ""
    try:
        kind = jax.devices()[0].device_kind.lower()
    except Exception:
        pass
    vmem = 128 << 20 if ("v5" in kind or "v6" in kind) else 64 << 20
    try:
        vmem = int(pltpu.get_tpu_info().vmem_capacity_bytes)
    except Exception:
        pass
    return vmem, kind


def _pick_tiles(batch, nk, vmem_bytes):
    """Return (b_tile, sub_bt): batch elems per grid step / per inner conv step."""
    # sub-batch per inner step: keep roughly <= 2048 matmul rows live at once
    sub = 8
    while sub > 1 and sub * nk > 2048:
        sub //= 2
    if batch <= 8:
        s = min(sub, batch)
        while batch % s:
            s -= 1
        return batch, s
    # generation-dependent cap (v7x ~64 MiB VMEM -> 64; v5e/v6e 128 MiB -> 128),
    # and aim for >= 2 grid steps (v7x megacore sharding + pipelining).
    cap = 64 if vmem_bytes < (100 << 20) else 128
    bt = min(cap, max(8, pl.cdiv(batch, 2)))
    bt = max(8, (bt // 8) * 8)     # multiple of 8 (and of sub, since sub | 8)
    return bt, sub


@jax.jit
def transform_net(x_nchw, params):
    """x_nchw: (B, 6, N, K) float32  ->  (B, 3, 3) float32."""
    B, C, N, K = x_nchw.shape
    nk = N * K
    x = x_nchw.reshape(B, C, nk)            # free reshape; no HBM transpose pass

    vmem_bytes, kind = _tpu_vmem_and_kind()
    # v5e has no bf16 VPU: keep elementwise math in f32 there, bf16 elsewhere.
    act_dtype = jnp.float32 if "v5" in kind else jnp.bfloat16
    b_tile, sub_bt = _pick_tiles(B, nk, vmem_bytes)
    n_steps = pl.cdiv(B, b_tile)            # ragged last tile handled by Pallas

    kernel = functools.partial(_transform_net_kernel, n_points=N, k_neigh=K,
                               sub_bt=sub_bt, act_dtype=act_dtype)

    # VMEM budget: double-buffered I/O blocks + resident weights + scratch +
    # in-kernel intermediates, plus scheduling headroom.
    act_bytes = jnp.dtype(act_dtype).itemsize
    rows = sub_bt * nk
    w_bytes = sum(int(p.size) * p.dtype.itemsize for p in params)
    per_step = (2 * b_tile * C * nk * 4             # input blocks (double-buffered)
                + 2 * b_tile * OUT_PAD * 4          # output blocks
                + 2 * w_bytes                       # resident weights
                + b_tile * 1024 * 4                 # pooled-feature scratch
                + rows * 128 * 4                    # lane-padded transposed input
                + 2 * rows * (64 + 128) * act_bytes     # conv1/conv2 activations
                + 2 * sub_bt * N * 1024 * 4)            # conv3 activations
    vmem_hi = max(32 << 20, min(100 << 20, vmem_bytes - (8 << 20)))
    vmem_limit = int(max(32 << 20, min(per_step + (16 << 20), vmem_hi)))

    def resident_spec(a):
        nd = a.ndim  # constant block index -> fetched once, resident across steps
        return pl.BlockSpec(a.shape, lambda b, _nd=nd: (0,) * _nd)

    out = pl.pallas_call(
        kernel,
        out_shape=jax.ShapeDtypeStruct((B, OUT_PAD), jnp.float32),
        grid=(n_steps,),
        in_specs=[pl.BlockSpec((b_tile, C, nk), lambda b: (b, 0, 0))]
                 + [resident_spec(p) for p in params],
        out_specs=pl.BlockSpec((b_tile, OUT_PAD), lambda b: (b, 0)),
        scratch_shapes=[pltpu.VMEM((b_tile, 1024), jnp.float32)],
        compiler_params=pltpu.CompilerParams(
            dimension_semantics=("parallel",),      # megacore-shardable on v7x
            vmem_limit_bytes=vmem_limit),
    )(x, *params)

    return out[:, :9].reshape(B, 3, 3)


def _fold_bn(w, gamma, beta, mean, var, eps=1e-5):
    """Fold inference-mode BatchNorm into a (Cin, Cout) weight + (1, Cout) bias."""
    scale = gamma / jnp.sqrt(var + eps)
    shift = beta - mean * scale
    return w * scale[None, :], shift[None, :]


def init_params(key):
    ks = jax.random.split(key, 10)

    def bn_params(k, c):
        k1, k2, k3, k4 = jax.random.split(k, 4)
        gamma = 1.0 + 0.1 * jax.random.normal(k1, (c,), jnp.float32)
        beta = 0.1 * jax.random.normal(k2, (c,), jnp.float32)
        mean = 0.1 * jax.random.normal(k3, (c,), jnp.float32)
        var = jnp.abs(jax.random.normal(k4, (c,), jnp.float32)) + 0.5
        return gamma, beta, mean, var

    def dense(k, cin, cout):   # (Cin, Cout); PyTorch conv/linear weights transposed
        return jax.random.normal(k, (cin, cout), jnp.float32) / jnp.sqrt(float(cin))

    w1, b1 = _fold_bn(dense(ks[0], 6, 64), *bn_params(ks[1], 64))        # conv1+bn1
    w2, b2 = _fold_bn(dense(ks[2], 64, 128), *bn_params(ks[3], 128))     # conv2+bn2
    w3, b3 = _fold_bn(dense(ks[4], 128, 1024), *bn_params(ks[5], 1024))  # conv3+bn(1024)
    w4, b4 = _fold_bn(dense(ks[6], 1024, 512), *bn_params(ks[7], 512))   # linear1+bn3
    w5, b5 = _fold_bn(dense(ks[8], 512, 256), *bn_params(ks[9], 256))    # linear2+bn4

    # transform: init.constant_(weight, 0) / init.eye_(bias.view(3, 3)),
    # zero-padded from 9 to OUT_PAD output lanes for a lane-dense store.
    w6 = jnp.zeros((256, OUT_PAD), jnp.float32)
    b6 = jnp.zeros((1, OUT_PAD), jnp.float32)
    b6 = b6.at[0, :9].set(jnp.eye(3, dtype=jnp.float32).reshape(9))

    bf16 = lambda w: w.astype(jnp.bfloat16)   # bf16 weights; biases stay f32
    return (bf16(w1), b1, bf16(w2), b2, bf16(w3), b3,
            bf16(w4), b4, bf16(w5), b5, bf16(w6), b6)


def transform_net_reference(x_nchw, params):
    """Pure-JAX (non-Pallas) forward with the same folded parameters, f32 math."""
    w1, b1, w2, b2, w3, b3, w4, b4, w5, b5, w6, b6 = params
    f32 = lambda w: w.astype(jnp.float32)
    lrelu = lambda v: jnp.maximum(v, 0.2 * v)
    B = x_nchw.shape[0]
    h = jnp.transpose(x_nchw, (0, 2, 3, 1)).astype(jnp.float32)   # (B, N, K, 6)
    h = lrelu(jnp.dot(h, f32(w1)) + b1)                           # (B, N, K, 64)
    h = lrelu(jnp.dot(h, f32(w2)) + b2)                           # (B, N, K, 128)
    h = jnp.max(h, axis=2)                                        # (B, N, 128)
    h = lrelu(jnp.dot(h, f32(w3)) + b3)                           # (B, N, 1024)
    h = jnp.max(h, axis=1)                                        # (B, 1024)
    h = lrelu(jnp.dot(h, f32(w4)) + b4)                           # (B, 512)
    h = lrelu(jnp.dot(h, f32(w5)) + b5)                           # (B, 256)
    h = jnp.dot(h, f32(w6)) + b6                                  # (B, 128)
    return h[:, :9].reshape(B, 3, 3)


if __name__ == "__main__":
    key = jax.random.PRNGKey(0)
    kx, kp, kw = jax.random.split(key, 3)

    B = 16
    x = jax.random.normal(kx, (B, 6, N_POINTS, K_NEIGH), jnp.float32)
    params = init_params(kp)

    # 1) Spec init (transform weight == 0, bias == eye(3)): output must be the
    #    identity transform for every batch element.
    out = jax.block_until_ready(transform_net(x, params))
    assert out.shape == (B, 3, 3) and out.dtype == jnp.float32
    eye = jnp.broadcast_to(jnp.eye(3, dtype=jnp.float32), (B, 3, 3))
    assert jnp.allclose(out, eye, atol=1e-5)

    # 2) Non-trivial final layer: exercise the whole conv/linear chain against
    #    a pure-JAX reference (same bf16 weights) at bf16-activation tolerance.
    w6 = jnp.zeros((256, OUT_PAD), jnp.float32).at[:, :9].set(
        jax.random.normal(kw, (256, 9), jnp.float32) / 16.0)
    params2 = params[:10] + (w6.astype(jnp.bfloat16), params[11])
    out2 = jax.block_until_ready(transform_net(x, params2))
    ref2 = transform_net_reference(x, params2)
    err = float(jnp.max(jnp.abs(out2 - ref2)))
    tol = 0.1 * float(jnp.max(jnp.abs(ref2))) + 1e-3
    assert err <= tol, (err, tol)

    print("KERNEL_OK")
</pallas_src>

<mosaic_0001>
module attributes {stable_mosaic.version = 11 : i64} {
  func.func @_transform_net_kernel(%arg0: i32, %arg1: memref<8x6x128xf32, #tpu.memory_space<vmem>>, %arg2: memref<6x64xbf16, #tpu.memory_space<vmem>>, %arg3: memref<1x64xf32, #tpu.memory_space<vmem>>, %arg4: memref<64x128xbf16, #tpu.memory_space<vmem>>, %arg5: memref<1x128xf32, #tpu.memory_space<vmem>>, %arg6: memref<128x1024xbf16, #tpu.memory_space<vmem>>, %arg7: memref<1x1024xf32, #tpu.memory_space<vmem>>, %arg8: memref<1024x512xbf16, #tpu.memory_space<vmem>>, %arg9: memref<1x512xf32, #tpu.memory_space<vmem>>, %arg10: memref<512x256xbf16, #tpu.memory_space<vmem>>, %arg11: memref<1x256xf32, #tpu.memory_space<vmem>>, %arg12: memref<256x128xbf16, #tpu.memory_space<vmem>>, %arg13: memref<1x128xf32, #tpu.memory_space<vmem>>, %arg14: memref<8x128xf32, #tpu.memory_space<vmem>>, %arg15: memref<8x1024xf32, #tpu.memory_space<vmem>>) attributes {dimension_semantics = [#tpu.dimension_semantics<parallel>], iteration_bounds = array<i64: 2>, scalar_prefetch = 0 : i64, scratch_operands = 1 : i64, tpu.core_type = #tpu.core_type<tc>, window_params = [{transform_indices = @transform_0, window_bounds = array<i64: 8, 6, 128>}, {pipeline_mode = #tpu.pipeline_mode<synchronous>, transform_indices = @transform_1, window_bounds = array<i64: 6, 64>}, {pipeline_mode = #tpu.pipeline_mode<synchronous>, transform_indices = @transform_2, window_bounds = array<i64: 1, 64>}, {pipeline_mode = #tpu.pipeline_mode<synchronous>, transform_indices = @transform_3, window_bounds = array<i64: 64, 128>}, {pipeline_mode = #tpu.pipeline_mode<synchronous>, transform_indices = @transform_4, window_bounds = array<i64: 1, 128>}, {pipeline_mode = #tpu.pipeline_mode<synchronous>, transform_indices = @transform_5, window_bounds = array<i64: 128, 1024>}, {pipeline_mode = #tpu.pipeline_mode<synchronous>, transform_indices = @transform_6, window_bounds = array<i64: 1, 1024>}, {pipeline_mode = #tpu.pipeline_mode<synchronous>, transform_indices = @transform_7, window_bounds = array<i64: 1024, 512>}, {pipeline_mode = #tpu.pipeline_mode<synchronous>, transform_indices = @transform_8, window_bounds = array<i64: 1, 512>}, {pipeline_mode = #tpu.pipeline_mode<synchronous>, transform_indices = @transform_9, window_bounds = array<i64: 512, 256>}, {pipeline_mode = #tpu.pipeline_mode<synchronous>, transform_indices = @transform_10, window_bounds = array<i64: 1, 256>}, {pipeline_mode = #tpu.pipeline_mode<synchronous>, transform_indices = @transform_11, window_bounds = array<i64: 256, 128>}, {pipeline_mode = #tpu.pipeline_mode<synchronous>, transform_indices = @transform_12, window_bounds = array<i64: 1, 128>}, {transform_indices = @transform_13, window_bounds = array<i64: 8, 128>}]} {
    %c0 = arith.constant 0 : index
    %c0_0 = arith.constant 0 : index
    %c0_1 = arith.constant 0 : index
    %0 = vector.load %arg1[%c0, %c0_0, %c0_1] : memref<8x6x128xf32, #tpu.memory_space<vmem>>, vector<1x6x128xf32>
    %1 = vector.shape_cast %0 : vector<1x6x128xf32> to vector<6x128xf32>
    %c1 = arith.constant 1 : index
    %c0_2 = arith.constant 0 : index
    %c0_3 = arith.constant 0 : index
    %2 = vector.load %arg1[%c1, %c0_2, %c0_3] : memref<8x6x128xf32, #tpu.memory_space<vmem>>, vector<1x6x128xf32>
    %3 = vector.shape_cast %2 : vector<1x6x128xf32> to vector<6x128xf32>
    %c2 = arith.constant 2 : index
    %c0_4 = arith.constant 0 : index
    %c0_5 = arith.constant 0 : index
    %4 = vector.load %arg1[%c2, %c0_4, %c0_5] : memref<8x6x128xf32, #tpu.memory_space<vmem>>, vector<1x6x128xf32>
    %5 = vector.shape_cast %4 : vector<1x6x128xf32> to vector<6x128xf32>
    %c3 = arith.constant 3 : index
    %c0_6 = arith.constant 0 : index
    %c0_7 = arith.constant 0 : index
    %6 = vector.load %arg1[%c3, %c0_6, %c0_7] : memref<8x6x128xf32, #tpu.memory_space<vmem>>, vector<1x6x128xf32>
    %7 = vector.shape_cast %6 : vector<1x6x128xf32> to vector<6x128xf32>
    %c4 = arith.constant 4 : index
    %c0_8 = arith.constant 0 : index
    %c0_9 = arith.constant 0 : index
    %8 = vector.load %arg1[%c4, %c0_8, %c0_9] : memref<8x6x128xf32, #tpu.memory_space<vmem>>, vector<1x6x128xf32>
    %9 = vector.shape_cast %8 : vector<1x6x128xf32> to vector<6x128xf32>
    %c5 = arith.constant 5 : index
    %c0_10 = arith.constant 0 : index
    %c0_11 = arith.constant 0 : index
    %10 = vector.load %arg1[%c5, %c0_10, %c0_11] : memref<8x6x128xf32, #tpu.memory_space<vmem>>, vector<1x6x128xf32>
    %11 = vector.shape_cast %10 : vector<1x6x128xf32> to vector<6x128xf32>
    %c6 = arith.constant 6 : index
    %c0_12 = arith.constant 0 : index
    %c0_13 = arith.constant 0 : index
    %12 = vector.load %arg1[%c6, %c0_12, %c0_13] : memref<8x6x128xf32, #tpu.memory_space<vmem>>, vector<1x6x128xf32>
    %13 = vector.shape_cast %12 : vector<1x6x128xf32> to vector<6x128xf32>
    %c7 = arith.constant 7 : index
    %c0_14 = arith.constant 0 : index
    %c0_15 = arith.constant 0 : index
    %14 = vector.load %arg1[%c7, %c0_14, %c0_15] : memref<8x6x128xf32, #tpu.memory_space<vmem>>, vector<1x6x128xf32>
    %15 = vector.shape_cast %14 : vector<1x6x128xf32> to vector<6x128xf32>
    %16 = tpu.concatenate %1, %3, %5, %7, %9, %11, %13, %15 in 1 : vector<6x128xf32>, vector<6x128xf32>, vector<6x128xf32>, vector<6x128xf32>, vector<6x128xf32>, vector<6x128xf32>, vector<6x128xf32>, vector<6x128xf32> -> vector<6x1024xf32>
    %17 = tpu.transpose %16, [1, 0] : vector<6x1024xf32> -> vector<1024x6xf32>
    %18 = arith.truncf %17 : vector<1024x6xf32> to vector<1024x6xbf16>
    %c0_16 = arith.constant 0 : index
    %c0_17 = arith.constant 0 : index
    %19 = vector.load %arg2[%c0_16, %c0_17] : memref<6x64xbf16, #tpu.memory_space<vmem>>, vector<6x64xbf16>
    %cst = arith.constant dense<0.000000e+00> : vector<1024x64xf32>
    %20 = tpu.matmul %18, %19, %cst {dimension_numbers = #tpu.dot_dimension_numbers<[1], [0], [0], [1], [0, 0, 1, 1], [], []>} : vector<1024x6xbf16>, vector<6x64xbf16>, vector<1024x64xf32> -> vector<1024x64xf32>
    %c0_18 = arith.constant 0 : index
    %c0_19 = arith.constant 0 : index
    %21 = vector.load %arg3[%c0_18, %c0_19] : memref<1x64xf32, #tpu.memory_space<vmem>>, vector<1x64xf32>
    %22 = vector.broadcast %21 : vector<1x64xf32> to vector<1024x64xf32>
    %23 = arith.addf %20, %22 : vector<1024x64xf32>
    %cst_20 = arith.constant 2.000000e-01 : f32
    %24 = vector.broadcast %cst_20 : f32 to vector<1024x64xf32>
    %25 = arith.mulf %24, %23 : vector<1024x64xf32>
    %26 = arith.maximumf %23, %25 : vector<1024x64xf32>
    %27 = arith.truncf %26 : vector<1024x64xf32> to vector<1024x64xbf16>
    %c0_21 = arith.constant 0 : index
    %c0_22 = arith.constant 0 : index
    %28 = vector.load %arg4[%c0_21, %c0_22] : memref<64x128xbf16, #tpu.memory_space<vmem>>, vector<64x128xbf16>
    %cst_23 = arith.constant dense<0.000000e+00> : vector<1024x128xf32>
    %29 = tpu.matmul %27, %28, %cst_23 {dimension_numbers = #tpu.dot_dimension_numbers<[1], [0], [0], [1], [0, 0, 1, 1], [], []>} : vector<1024x64xbf16>, vector<64x128xbf16>, vector<1024x128xf32> -> vector<1024x128xf32>
    %c0_24 = arith.constant 0 : index
    %c0_25 = arith.constant 0 : index
    %30 = vector.load %arg5[%c0_24, %c0_25] : memref<1x128xf32, #tpu.memory_space<vmem>>, vector<1x128xf32>
    %31 = vector.broadcast %30 : vector<1x128xf32> to vector<1024x128xf32>
    %32 = arith.addf %29, %31 : vector<1024x128xf32>
    %cst_26 = arith.constant 2.000000e-01 : f32
    %33 = vector.broadcast %cst_26 : f32 to vector<1024x128xf32>
    %34 = arith.mulf %33, %32 : vector<1024x128xf32>
    %35 = arith.maximumf %32, %34 : vector<1024x128xf32>
    %36 = arith.truncf %35 : vector<1024x128xf32> to vector<1024x128xbf16>
    %37 = vector.shape_cast %36 : vector<1024x128xbf16> to vector<128x8x128xbf16>
    %cst_27 = arith.constant dense<0xFF80> : vector<128x128xbf16>
    %38 = vector.multi_reduction <maximumf>, %37, %cst_27 [1] : vector<128x8x128xbf16> to vector<128x128xbf16>
    %c0_28 = arith.constant 0 : index
    %c0_29 = arith.constant 0 : index
    %39 = vector.load %arg6[%c0_28, %c0_29] : memref<128x1024xbf16, #tpu.memory_space<vmem>>, vector<128x1024xbf16>
    %cst_30 = arith.constant dense<0.000000e+00> : vector<128x1024xf32>
    %40 = tpu.matmul %38, %39, %cst_30 {dimension_numbers = #tpu.dot_dimension_numbers<[1], [0], [0], [1], [0, 0, 1, 1], [], []>} : vector<128x128xbf16>, vector<128x1024xbf16>, vector<128x1024xf32> -> vector<128x1024xf32>
    %c0_31 = arith.constant 0 : index
    %c0_32 = arith.constant 0 : index
    %41 = vector.load %arg7[%c0_31, %c0_32] : memref<1x1024xf32, #tpu.memory_space<vmem>>, vector<1x1024xf32>
    %42 = vector.broadcast %41 : vector<1x1024xf32> to vector<128x1024xf32>
    %43 = arith.addf %40, %42 : vector<128x1024xf32>
    %cst_33 = arith.constant 2.000000e-01 : f32
    %44 = vector.broadcast %cst_33 : f32 to vector<128x1024xf32>
    %45 = arith.mulf %44, %43 : vector<128x1024xf32>
    %46 = arith.maximumf %43, %45 : vector<128x1024xf32>
    %47 = vector.shape_cast %46 : vector<128x1024xf32> to vector<8x16x1024xf32>
    %cst_34 = arith.constant dense<0xFF800000> : vector<8x1024xf32>
    %48 = vector.multi_reduction <maximumf>, %47, %cst_34 [1] : vector<8x16x1024xf32> to vector<8x1024xf32>
    %c0_35 = arith.constant 0 : index
    %c0_36 = arith.constant 0 : index
    %49 = vector.load %arg15[%c0_35, %c0_36] : memref<8x1024xf32, #tpu.memory_space<vmem>>, vector<8x1024xf32>
    tpu.vector_store %arg15[%c0_35, %c0_36], %48 {strides = array<i32>} : memref<8x1024xf32, #tpu.memory_space<vmem>>, vector<8x1024xf32>,
    %c0_37 = arith.constant 0 : index
    %c0_38 = arith.constant 0 : index
    %50 = vector.load %arg15[%c0_37, %c0_38] : memref<8x1024xf32, #tpu.memory_space<vmem>>, vector<8x1024xf32>
    %51 = arith.truncf %50 : vector<8x1024xf32> to vector<8x1024xbf16>
    %c0_39 = arith.constant 0 : index
    %c0_40 = arith.constant 0 : index
    %52 = vector.load %arg8[%c0_39, %c0_40] : memref<1024x512xbf16, #tpu.memory_space<vmem>>, vector<1024x512xbf16>
    %cst_41 = arith.constant dense<0.000000e+00> : vector<8x512xf32>
    %53 = tpu.matmul %51, %52, %cst_41 {dimension_numbers = #tpu.dot_dimension_numbers<[1], [0], [0], [1], [0, 0, 1, 1], [], []>} : vector<8x1024xbf16>, vector<1024x512xbf16>, vector<8x512xf32> -> vector<8x512xf32>
    %c0_42 = arith.constant 0 : index
    %c0_43 = arith.constant 0 : index
    %54 = vector.load %arg9[%c0_42, %c0_43] : memref<1x512xf32, #tpu.memory_space<vmem>>, vector<1x512xf32>
    %55 = vector.broadcast %54 : vector<1x512xf32> to vector<8x512xf32>
    %56 = arith.addf %53, %55 : vector<8x512xf32>
    %cst_44 = arith.constant 2.000000e-01 : f32
    %57 = vector.broadcast %cst_44 : f32 to vector<8x512xf32>
    %58 = arith.mulf %57, %56 : vector<8x512xf32>
    %59 = arith.maximumf %56, %58 : vector<8x512xf32>
    %60 = arith.truncf %59 : vector<8x512xf32> to vector<8x512xbf16>
    %c0_45 = arith.constant 0 : index
    %c0_46 = arith.constant 0 : index
    %61 = vector.load %arg10[%c0_45, %c0_46] : memref<512x256xbf16, #tpu.memory_space<vmem>>, vector<512x256xbf16>
    %cst_47 = arith.constant dense<0.000000e+00> : vector<8x256xf32>
    %62 = tpu.matmul %60, %61, %cst_47 {dimension_numbers = #tpu.dot_dimension_numbers<[1], [0], [0], [1], [0, 0, 1, 1], [], []>} : vector<8x512xbf16>, vector<512x256xbf16>, vector<8x256xf32> -> vector<8x256xf32>
    %c0_48 = arith.constant 0 : index
    %c0_49 = arith.constant 0 : index
    %63 = vector.load %arg11[%c0_48, %c0_49] : memref<1x256xf32, #tpu.memory_space<vmem>>, vector<1x256xf32>
    %64 = vector.broadcast %63 : vector<1x256xf32> to vector<8x256xf32>
    %65 = arith.addf %62, %64 : vector<8x256xf32>
    %cst_50 = arith.constant 2.000000e-01 : f32
    %66 = vector.broadcast %cst_50 : f32 to vector<8x256xf32>
    %67 = arith.mulf %66, %65 : vector<8x256xf32>
    %68 = arith.maximumf %65, %67 : vector<8x256xf32>
    %69 = arith.truncf %68 : vector<8x256xf32> to vector<8x256xbf16>
    %c0_51 = arith.constant 0 : index
    %c0_52 = arith.constant 0 : index
    %70 = vector.load %arg12[%c0_51, %c0_52] : memref<256x128xbf16, #tpu.memory_space<vmem>>, vector<256x128xbf16>
    %cst_53 = arith.constant dense<0.000000e+00> : vector<8x128xf32>
    %71 = tpu.matmul %69, %70, %cst_53 {dimension_numbers = #tpu.dot_dimension_numbers<[1], [0], [0], [1], [0, 0, 1, 1], [], []>} : vector<8x256xbf16>, vector<256x128xbf16>, vector<8x128xf32> -> vector<8x128xf32>
    %c0_54 = arith.constant 0 : index
    %c0_55 = arith.constant 0 : index
    %72 = vector.load %arg13[%c0_54, %c0_55] : memref<1x128xf32, #tpu.memory_space<vmem>>, vector<1x128xf32>
    %73 = vector.broadcast %72 : vector<1x128xf32> to vector<8x128xf32>
    %74 = arith.addf %71, %73 : vector<8x128xf32>
    %c0_56 = arith.constant 0 : index
    %c0_57 = arith.constant 0 : index
    %75 = vector.load %arg14[%c0_56, %c0_57] : memref<8x128xf32, #tpu.memory_space<vmem>>, vector<8x128xf32>
    tpu.vector_store %arg14[%c0_56, %c0_57], %74 {strides = array<i32>} : memref<8x128xf32, #tpu.memory_space<vmem>>, vector<8x128xf32>,
    return
  }
  func.func @transform_0(%arg0: i32) -> (i32, i32, i32) {
    %c0_i32 = arith.constant 0 : i32
    %c0_i32_0 = arith.constant 0 : i32
    %c0_i32_1 = arith.constant 0 : i32
    return %arg0, %c0_i32, %c0_i32_0 : i32, i32, i32
  }
  func.func @transform_1(%arg0: i32) -> (i32, i32) {
    %c0_i32 = arith.constant 0 : i32
    %c0_i32_0 = arith.constant 0 : i32
    %c0_i32_1 = arith.constant 0 : i32
    return %c0_i32, %c0_i32_0 : i32, i32
  }
  func.func @transform_2(%arg0: i32) -> (i32, i32) {
    %c0_i32 = arith.constant 0 : i32
    %c0_i32_0 = arith.constant 0 : i32
    %c0_i32_1 = arith.constant 0 : i32
    return %c0_i32, %c0_i32_0 : i32, i32
  }
  func.func @transform_3(%arg0: i32) -> (i32, i32) {
    %c0_i32 = arith.constant 0 : i32
    %c0_i32_0 = arith.constant 0 : i32
    %c0_i32_1 = arith.constant 0 : i32
    return %c0_i32, %c0_i32_0 : i32, i32
  }
  func.func @transform_4(%arg0: i32) -> (i32, i32) {
    %c0_i32 = arith.constant 0 : i32
    %c0_i32_0 = arith.constant 0 : i32
    %c0_i32_1 = arith.constant 0 : i32
    return %c0_i32, %c0_i32_0 : i32, i32
  }
  func.func @transform_5(%arg0: i32) -> (i32, i32) {
    %c0_i32 = arith.constant 0 : i32
    %c0_i32_0 = arith.constant 0 : i32
    %c0_i32_1 = arith.constant 0 : i32
    return %c0_i32, %c0_i32_0 : i32, i32
  }
  func.func @transform_6(%arg0: i32) -> (i32, i32) {
    %c0_i32 = arith.constant 0 : i32
    %c0_i32_0 = arith.constant 0 : i32
    %c0_i32_1 = arith.constant 0 : i32
    return %c0_i32, %c0_i32_0 : i32, i32
  }
  func.func @transform_7(%arg0: i32) -> (i32, i32) {
    %c0_i32 = arith.constant 0 : i32
    %c0_i32_0 = arith.constant 0 : i32
    %c0_i32_1 = arith.constant 0 : i32
    return %c0_i32, %c0_i32_0 : i32, i32
  }
  func.func @transform_8(%arg0: i32) -> (i32, i32) {
    %c0_i32 = arith.constant 0 : i32
    %c0_i32_0 = arith.constant 0 : i32
    %c0_i32_1 = arith.constant 0 : i32
    return %c0_i32, %c0_i32_0 : i32, i32
  }
  func.func @transform_9(%arg0: i32) -> (i32, i32) {
    %c0_i32 = arith.constant 0 : i32
    %c0_i32_0 = arith.constant 0 : i32
    %c0_i32_1 = arith.constant 0 : i32
    return %c0_i32, %c0_i32_0 : i32, i32
  }
  func.func @transform_10(%arg0: i32) -> (i32, i32) {
    %c0_i32 = arith.constant 0 : i32
    %c0_i32_0 = arith.constant 0 : i32
    %c0_i32_1 = arith.constant 0 : i32
    return %c0_i32, %c0_i32_0 : i32, i32
  }
  func.func @transform_11(%arg0: i32) -> (i32, i32) {
    %c0_i32 = arith.constant 0 : i32
    %c0_i32_0 = arith.constant 0 : i32
    %c0_i32_1 = arith.constant 0 : i32
    return %c0_i32, %c0_i32_0 : i32, i32
  }
  func.func @transform_12(%arg0: i32) -> (i32, i32) {
    %c0_i32 = arith.constant 0 : i32
    %c0_i32_0 = arith.constant 0 : i32
    %c0_i32_1 = arith.constant 0 : i32
    return %c0_i32, %c0_i32_0 : i32, i32
  }
  func.func @transform_13(%arg0: i32) -> (i32, i32) {
    %c0_i32 = arith.constant 0 : i32
    %c0_i32_0 = arith.constant 0 : i32
    return %arg0, %c0_i32 : i32, i32
  }
}

</mosaic_0001>

<bundles_post_ra>
// kernel: transform_net.1
= control target key start
LH: loop header
LB: loop body
LE: loop exit
PB: predicated region body
PF: predicated region fallthrough
CT: control target
= control target key end

     0   :  { %18 = vsyncpa [#allocation4], 0  ;;  %s13723_s0 = inlined_call_operand.vmem [shape: f32[16,6,128], index: 0, kind: input, shape index: {}]   ;;  %s13724_s1 = inlined_call_operand.vmem [shape: bf16[6,64], index: 1, kind: input, shape index: {}]   ;;  %s13725_s2 = inlined_call_operand.vmem [shape: f32[1,64], index: 2, kind: input, shape index: {}]   ;;  %s13726_s3 = inlined_call_operand.vmem [shape: bf16[64,128], index: 3, kind: input, shape index: {}]   ;;  %s13727_s4 = inlined_call_operand.vmem [shape: f32[1,128], index: 4, kind: input, shape index: {}]   ;;  %s13728_s5 = inlined_call_operand.hbm [shape: bf16[128,1024], index: 5, kind: input, shape index: {}]   ;;  %s13729_s6 = inlined_call_operand.vmem [shape: f32[1,1024], index: 6, kind: input, shape index: {}]   ;;  %s13730_s7 = inlined_call_operand.vmem [shape: bf16[1024,512], index: 7, kind: input, shape index: {}]   ;;  %s13731_s8 = inlined_call_operand.vmem [shape: f32[1,512], index: 8, kind: input, shape index: {}]   ;;  %s13732_s9 = inlined_call_operand.hbm [shape: bf16[512,256], index: 9, kind: input, shape index: {}]   ;;  %s13733_s10 = inlined_call_operand.vmem [shape: f32[1,256], index: 10, kind: input, shape index: {}]   ;;  %s13734_s11 = inlined_call_operand.vmem [shape: bf16[256,128], index: 11, kind: input, shape index: {}]   ;;  %s13735_s12 = inlined_call_operand.vmem [shape: f32[1,128], index: 12, kind: input, shape index: {}]   ;;  %s13736_s13 = inlined_call_operand.vmem [shape: f32[16,128], index: 13, kind: output, shape index: {}]  }
   0x1   :  { %19 = vsyncpa [#allocation6], 0  ;;  %s10748_s25 = smov 0  }
   0x2 LB: > { %s357_s28 = sshll.u32 %s13728_s5, 4  ;;  %s10757_s29 = sadd.s32 4294967295, %s10670_s25   ;;  %s10670_s25 = sphi %s10748_s25, %s25_s25   ;;  %s358_s28 = int_to_ptr.hbm [resolvable:$true] %s357_s28 }
   0x3   : > { %p8379_p0 = scmp.ge.s32.totalorder %s10670_s25, 1  ;;  %p334_p1 = scmp.lt.s32.totalorder %s10670_s25, 3 }
   0x4   : > { %p10561_p2 = scmp.eq.s32.totalorder %s10757_s29, 0  ;;  %s10672_s14 = smov [#allocation3]  }
   0x5   : > { %p10762_p3 = pnand %p8379_p0, %p334_p1  ;;  %s359_s15 = sshll.u32 %s10672_s14, 4  ;;  %s360_s15 = int_to_ptr.vmem [resolvable:$true] %s359_s15 }
   0x6   : > { %s380_s18 = sshll.u32 %s13732_s9, 4  ;;  %s10673_s19 = smov [#allocation5]   ;;  %s381_s18 = int_to_ptr.hbm [resolvable:$true] %s380_s18 }
   0x7   : > { %p10554_p4 = pneg %p10762_p3  ;;  %s382_s20 = sshll.u32 %s10673_s19, 4  ;;  %s383_s20 = int_to_ptr.vmem [resolvable:$true] %s382_s20 }
   0x8   : > { %s10674_s21 = smov 512   ;;  %s10675_s22 = smov 32  }
   0x9   : > { %p10555_p5 = pnand %p10561_p2, %p10554_p4  ;;  %s10676_s23 = smov 128  }
   0xa   : > { %s10677_s24 = smov 8   ;;  %416 = sbr.rel (%p10762_p3) target bundleno = 2845 (0xb1d), region = 72 }
   0xb   : > { %10557 = dma.hbm_to_vmem [thread:$0]  (!%p10555_p5), %s358_s28, 8192, %s360_s15, [#allocation4], %s10674_s21, %s10674_s21, %s10675_s22  }
   0xc   : > { %10560 = dma.hbm_to_vmem [thread:$0]  (!%p10555_p5), %s381_s18, 8192, %s383_s20, [#allocation6], %s10676_s23, %s10676_s23, %s10677_s24  }
   0xf   : > { %10661 = dma.done.wait (%p10561_p2), [#allocation4], 8192  }
  0x10   : > { %10663 = vsyncadd (%p10561_p2), [#allocation4], 4294959104 }
  0x11   : > { %10665 = dma.done.wait (%p10561_p2), [#allocation6], 8192  }
  0x12   : > { %10667 = vsyncadd (%p10561_p2), [#allocation6], 4294959104  ;;  %s8386_s26 = sshll.u32 %s10757_s29, 3  ;;  %v811_v2 = vld [vmem:[%s13724_s1] sm:$0x7]  ;;  %vm1009_vm0 = vcmask 1042432  }
  0x13   : > { %p466_p6 = scmp.lt.s32.totalorder %s8386_s26, 15  ;;  %v1011_v3 = vsel %vm1009_vm0, %v811_v2, 0  ;;  %vm816_vm1 = vcmask 48128   ;;  %v10145_v25 = vld [vmem:[%s13726_s3 + $0x18] sm:$0xff]  ;;  %v10144_v27 = vld [vmem:[%s13726_s3 + $0x10] sm:$0xff]  ;;  %v10143_v29 = vld [vmem:[%s13726_s3 + $0x8] sm:$0xff] }
  0x14   : > { %1020 = vmatpush.bf16.msra.mxu0 %v1011_v3  ;;  %1895 = vmatpush.bf16.msra.mxu1 %v10145_v25  ;;  %v10142_v30 = vld [vmem:[%s13726_s3] sm:$0xff]  ;;  %vm1698_vm2 = vcmask 523264   ;;  %vm3966_vm3 = vcmask 1041409   ;;  %vm3968_vm4 = vcmask 1042434   ;;  %vm3970_vm5 = vcmask 1043459   ;;  %p471_p7 = scmp.lt.s32.totalorder %s10757_s29, 1 }
  0x15   : > { %s13739_s26 = smov (!%p466_p6, %s8386_s26), 15  ;;  %v10818_v36 = vld [vmem:[%s13725_s2] ss:$0 sm:$0xff]  ;;  %vm3972_vm6 = vcmask 1044484   ;;  %vm3974_vm7 = vcmask 1045509   ;;  %vm3976_vm8 = vcmask 1046534  }
  0x16   : > { %s8387_s27 = sshll.u32 %s13739_s26, 3  ;;  %vm3978_vm9 = vcmask 1047559   ;;  %s13741_s29 = smov (!%p471_p7, %s10757_s29), 1 }
  0x17   : > { %s10787_s14 = scalar_lea.vmem %s13723_s0, %s8387_s27 }
  0x18   : > { %v476_v0 = vld [vmem:[%s10787_s14] sm:$0x3f]  ;;  %v8389_v1 = vld [vmem:[%s10787_s14 + $0x8] sm:$0x3f]  ;;  %v8390_v14 = vld [vmem:[%s10787_s14 + $0x10] sm:$0x3f]  ;;  %1896 = vmatpush.bf16.msra.mxu1 %v10144_v27 }
  0x19   : > { %491 = vxpose.xlu0.b32.start.end [1/1] (short) %v476_v0, 128  ;;  %555 = vxpose.xlu1.b32.start.end [1/1] (short) %v8390_v14, 128 }
  0x1c   : > { %1897 = vmatpush.bf16.msra.mxu1 %v10143_v29 }
  0x20   : > { %1898 = vmatpush.bf16.msra.mxu1 %v10142_v30 }
  0x99   : > { %523 = vxpose.xlu0.b32.start.end [1/1] (short) %v8389_v1, 128 }
  0xbd   : > { %v507_v4 = vpop.trf.xlu0 }
  0xc5   : > { %v508_v5 = vpop.trf.xlu0 }
  0xc6   : > { %v747_v6 = vpack.c.bf16 %v508_v5, %v507_v4  ;;  %v8391_v4 = vld [vmem:[%s10787_s14 + $0x18] sm:$0x3f] }
  0xc7   : > { %587 = vxpose.xlu1.b32.start.end [1/1] (short) %v8391_v4, 128 }
  0xc8   : > { %8396 = vmatmul.msk.bf16.vlgmr.msra.gmra.mxu0 %vm816_vm1, %v747_v6 }
  0xcd   : > { %v509_v7 = vpop.trf.xlu0 }
  0xd5   : > { %v510_v8 = vpop.trf.xlu0 }
  0xd6   : > { %v748_v9 = vpack.c.bf16 %v510_v8, %v509_v7 }
  0xd8   : > { %8397 = vmatmul.msk.bf16.gmra.mxu0 %vm816_vm1, %v748_v9 }
  0xdd   : > { %v511_v10 = vpop.trf.xlu0 }
  0xe5   : > { %v512_v11 = vpop.trf.xlu0 }
  0xe6   : > { %v749_v12 = vpack.c.bf16 %v512_v11, %v511_v10 }
  0xe8   : > { %8398 = vmatmul.msk.bf16.gmra.mxu0 %vm816_vm1, %v749_v12 }
  0xed   : > { %v513_v13 = vpop.trf.xlu0 }
  0xf5   : > { %v514_v15 = vpop.trf.xlu0 }
  0xf6   : > { %v750_v16 = vpack.c.bf16 %v514_v15, %v513_v13 }
  0xf8   : > { %8399 = vmatmul.msk.bf16.gmra.mxu0 %vm816_vm1, %v750_v16 }
  0xfd   : > { %v515_v17 = vpop.trf.xlu0 }
 0x105   : > { %v516_v18 = vpop.trf.xlu0 }
 0x106   : > { %v751_v19 = vpack.c.bf16 %v516_v18, %v515_v17 }
 0x108   : > { %8400 = vmatmul.msk.bf16.gmra.mxu0 %vm816_vm1, %v751_v19 }
 0x10d   : > { %v517_v20 = vpop.trf.xlu0 }
 0x115   : > { %v518_v21 = vpop.trf.xlu0 }
 0x116   : > { %v752_v22 = vpack.c.bf16 %v518_v21, %v517_v20 }
 0x118   : > { %8401 = vmatmul.msk.bf16.gmra.mxu0 %vm816_vm1, %v752_v22 }
 0x11d   : > { %v519_v23 = vpop.trf.xlu0 }
 0x125   : > { %v520_v24 = vpop.trf.xlu0 }
 0x126   : > { %v753_v26 = vpack.c.bf16 %v520_v24, %v519_v23 }
 0x128   : > { %8402 = vmatmul.msk.bf16.gmra.mxu0 %vm816_vm1, %v753_v26 }
 0x12d   : > { %v521_v28 = vpop.trf.xlu0 }
 0x135   : > { %v522_v31 = vpop.trf.xlu0 }
 0x136   : > { %v754_v32 = vpack.c.bf16 %v522_v31, %v521_v28  ;;  %v571_v31 = vpop.trf.xlu1 }
 0x138   : > { %8403 = vmatmul.msk.bf16.gmra.mxu0 %vm816_vm1, %v754_v32 }
 0x13d   : > { %v539_v33 = vpop.trf.xlu0 }
 0x145   : > { %v1022_v34 = vpop.f32.mrf.mxu0  ;;  %v540_v35 = vpop.trf.xlu0 }
 0x146   : > { %v755_v37 = vpack.c.bf16 %v540_v35, %v539_v33  ;;  %v1023_v38 = vadd.f32 %v10818_v36, %v1022_v34 }
 0x148   : > { %8404 = vmatmul.msk.bf16.gmra.mxu0 %vm816_vm1, %v755_v37  ;;  %v1342_v41 = vmul.f32 0.2, %v1023_v38 }
 0x14a   : > { %v1470_v44 = vmax.f32 %v1023_v38, %v1342_v41  ;;  %v572_v38 = vpop.trf.xlu1 }
 0x14d   : > { %v1024_v39 = vpop.f32.mrf.mxu0  ;;  %v541_v40 = vpop.trf.xlu0 }
 0x14e   : > { %v1025_v42 = vadd.f32 %v10818_v36, %v1024_v39 }
 0x150   : > { %v1343_v43 = vmul.f32 0.2, %v1025_v42 }
 0x152   : > { %v1471_v45 = vmax.f32 %v1025_v42, %v1343_v43 }
 0x154   : > { %v1598_v46 = vpack.c.bf16 %v1471_v45, %v1470_v44 }
 0x155   : > { %v1027_v47 = vpop.f32.mrf.mxu0  ;;  %v542_v48 = vpop.trf.xlu0 }
 0x156   : > { %v756_v49 = vpack.c.bf16 %v542_v48, %v541_v40  ;;  %8476 = vmatmul.msk.bf16.vlgmr.msra.gmra.mxu1 %vm1698_vm2, %v1598_v46  ;;  %v1028_v50 = vadd.f32 %v10818_v36, %v1027_v47  ;;  %v573_v46 = vpop.trf.xlu1 }
 0x158   : > { %8405 = vmatmul.msk.bf16.gmra.mxu0 %vm816_vm1, %v756_v49  ;;  %v1344_v53 = vmul.f32 0.2, %v1028_v50 }
 0x15a   : > { %v1472_v56 = vmax.f32 %v1028_v50, %v1344_v53 }
 0x15d   : > { %v1029_v51 = vpop.f32.mrf.mxu0  ;;  %v543_v52 = vpop.trf.xlu0 }
 0x15e   : > { %v1030_v54 = vadd.f32 %v10818_v36, %v1029_v51 }
 0x160   : > { %v1345_v55 = vmul.f32 0.2, %v1030_v54 }
 0x162   : > { %v1473_v57 = vmax.f32 %v1030_v54, %v1345_v55 }
 0x164   : > { %v1599_v58 = vpack.c.bf16 %v1473_v57, %v1472_v56 }
 0x165   : > { %v1032_v59 = vpop.f32.mrf.mxu0  ;;  %v544_v60 = vpop.trf.xlu0 }
 0x166   : > { %v757_v61 = vpack.c.bf16 %v544_v60, %v543_v52  ;;  %8477 = vmatmul.msk.bf16.gmra.mxu1 %vm1698_vm2, %v1599_v58  ;;  %v1033_v62 = vadd.f32 %v10818_v36, %v1032_v59  ;;  %v574_v52 = vpop.trf.xlu1 }
 0x168   : > { %8406 = vmatmul.msk.bf16.gmra.mxu0 %vm816_vm1, %v757_v61  ;;  %v1346_v1 = vmul.f32 0.2, %v1033_v62 }
 0x16a   : > { %v1474_v5 = vmax.f32 %v1033_v62, %v1346_v1 }
 0x16d   : > { %v1034_v63 = vpop.f32.mrf.mxu0  ;;  %v545_v0 = vpop.trf.xlu0 }
 0x16e   : > { %v1035_v2 = vadd.f32 %v10818_v36, %v1034_v63 }
 0x170   : > { %v1347_v3 = vmul.f32 0.2, %v1035_v2 }
 0x172   : > { %v1475_v6 = vmax.f32 %v1035_v2, %v1347_v3 }
 0x174   : > { %v1600_v7 = vpack.c.bf16 %v1475_v6, %v1474_v5 }
 0x175   : > { %v1037_v8 = vpop.f32.mrf.mxu0  ;;  %v546_v9 = vpop.trf.xlu0 }
 0x176   : > { %v758_v10 = vpack.c.bf16 %v546_v9, %v545_v0  ;;  %8478 = vmatmul.msk.bf16.gmra.mxu1 %vm1698_vm2, %v1600_v7  ;;  %v1038_v11 = vadd.f32 %v10818_v36, %v1037_v8  ;;  %v10849_v0 = vpop.trf.xlu1 }
 0x178   : > { %8407 = vmatmul.msk.bf16.gmra.mxu0 %vm816_vm1, %v758_v10  ;;  %v1348_v14 = vmul.f32 0.2, %v1038_v11 }
 0x17a   : > { %v1476_v17 = vmax.f32 %v1038_v11, %v1348_v14  ;;  %v763_v11 = vpack.c.bf16 %v572_v38, %v571_v31 }
 0x17d   : > { %v1039_v12 = vpop.f32.mrf.mxu0  ;;  %v547_v13 = vpop.trf.xlu0 }
 0x17e   : > { %v1040_v15 = vadd.f32 %v10818_v36, %v1039_v12  ;;  %v576_v5 = vpop.trf.xlu1 }
 0x180   : > { %v1349_v16 = vmul.f32 0.2, %v1040_v15 }
 0x182   : > { %v1477_v18 = vmax.f32 %v1040_v15, %v1349_v16 }
 0x184   : > { %v1601_v19 = vpack.c.bf16 %v1477_v18, %v1476_v17 }
 0x185   : > { %v1042_v20 = vpop.f32.mrf.mxu0  ;;  %v548_v21 = vpop.trf.xlu0 }
 0x186   : > { %v759_v22 = vpack.c.bf16 %v548_v21, %v547_v13  ;;  %8479 = vmatmul.msk.bf16.gmra.mxu1 %vm1698_vm2, %v1601_v19  ;;  %v1043_v23 = vadd.f32 %v10818_v36, %v1042_v20  ;;  %v10855_v12 = vpop.trf.xlu1  ;;  %v10865_v19 = vld [vmem:[%s13727_s4] ss:$0 sm:$0xff] }
 0x188   : > { %8408 = vmatmul.msk.bf16.gmra.mxu0 %vm816_vm1, %v759_v22  ;;  %v1350_v26 = vmul.f32 0.2, %v1043_v23 }
 0x18a   : > { %v1478_v29 = vmax.f32 %v1043_v23, %v1350_v26  ;;  %v764_v26 = vpack.c.bf16 %v574_v52, %v573_v46 }
 0x18d   : > { %v1044_v24 = vpop.f32.mrf.mxu0  ;;  %v549_v25 = vpop.trf.xlu0 }
 0x18e   : > { %v1045_v27 = vadd.f32 %v10818_v36, %v1044_v24  ;;  %v10860_v17 = vpop.trf.xlu1 }
 0x190   : > { %v1351_v28 = vmul.f32 0.2, %v1045_v27 }
 0x192   : > { %v1479_v30 = vmax.f32 %v1045_v27, %v1351_v28 }
 0x194   : > { %v1602_v32 = vpack.c.bf16 %v1479_v30, %v1478_v29 }
 0x195   : > { %v1047_v33 = vpop.f32.mrf.mxu0  ;;  %v550_v34 = vpop.trf.xlu0 }
 0x196   : > { %v760_v35 = vpack.c.bf16 %v550_v34, %v549_v25  ;;  %8480 = vmatmul.msk.bf16.gmra.mxu1 %vm1698_vm2, %v1602_v32  ;;  %v1048_v37 = vadd.f32 %v10818_v36, %v1047_v33  ;;  %v10869_v28 = vpop.trf.xlu1 }
 0x198   : > { %8409 = vmatmul.msk.bf16.gmra.mxu0 %vm816_vm1, %v760_v35  ;;  %v1352_v41 = vmul.f32 0.2, %v1048_v37 }
 0x19a   : > { %v1480_v44 = vmax.f32 %v1048_v37, %v1352_v41 }
 0x19d   : > { %v1049_v39 = vpop.f32.mrf.mxu0  ;;  %v551_v40 = vpop.trf.xlu0 }
 0x19e   : > { %v1050_v42 = vadd.f32 %v10818_v36, %v1049_v39  ;;  %v10875_v41 = vpop.trf.xlu1 }
 0x1a0   : > { %v1353_v43 = vmul.f32 0.2, %v1050_v42 }
 0x1a2   : > { %v1481_v45 = vmax.f32 %v1050_v42, %v1353_v43 }
 0x1a4   : > { %v1603_v47 = vpack.c.bf16 %v1481_v45, %v1480_v44 }
 0x1a5   : > { %v1052_v48 = vpop.f32.mrf.mxu0  ;;  %v552_v49 = vpop.trf.xlu0 }
 0x1a6   : > { %v761_v50 = vpack.c.bf16 %v552_v49, %v551_v40  ;;  %8481 = vmatmul.msk.bf16.gmra.mxu1 %vm1698_vm2, %v1603_v47  ;;  %v1053_v51 = vadd.f32 %v10818_v36, %v1052_v48 }
 0x1a8   : > { %8410 = vmatmul.msk.bf16.gmra.mxu0 %vm816_vm1, %v761_v50  ;;  %v1354_v55 = vmul.f32 0.2, %v1053_v51 }
 0x1aa   : > { %v1482_v58 = vmax.f32 %v1053_v51, %v1354_v55 }
 0x1ad   : > { %v1054_v53 = vpop.f32.mrf.mxu0  ;;  %v553_v54 = vpop.trf.xlu0 }
 0x1ae   : > { %v1055_v56 = vadd.f32 %v10818_v36, %v1054_v53 }
 0x1b0   : > { %v1355_v57 = vmul.f32 0.2, %v1055_v56 }
 0x1b2   : > { %v1483_v59 = vmax.f32 %v1055_v56, %v1355_v57  ;;  %v765_v56 = vpack.c.bf16 %v576_v5, %v10849_v0 }
 0x1b4   : > { %v1604_v60 = vpack.c.bf16 %v1483_v59, %v1482_v58  ;;  %v10880_v58 = vpop.trf.xlu1 }
 0x1b5   : > { %v1057_v61 = vpop.f32.mrf.mxu0  ;;  %v554_v62 = vpop.trf.xlu0 }
 0x1b6   : > { %v762_v63 = vpack.c.bf16 %v554_v62, %v553_v54  ;;  %8482 = vmatmul.msk.bf16.gmra.mxu1 %vm1698_vm2, %v1604_v60  ;;  %v1058_v1 = vadd.f32 %v10818_v36, %v1057_v61 }
 0x1b8   : > { %8411 = vmatmul.msk.bf16.gmra.mxu0 %vm816_vm1, %v762_v63  ;;  %v1356_v3 = vmul.f32 0.2, %v1058_v1 }
 0x1ba   : > { %v1484_v7 = vmax.f32 %v1058_v1, %v1356_v3 }
 0x1bd   : > { %v1059_v2 = vpop.f32.mrf.mxu0 }
 0x1be   : > { %v1060_v4 = vadd.f32 %v10818_v36, %v1059_v2 }
 0x1c0   : > { %v1357_v6 = vmul.f32 0.2, %v1060_v4 }
 0x1c2   : > { %v1485_v8 = vmax.f32 %v1060_v4, %v1357_v6 }
 0x1c4   : > { %v1605_v9 = vpack.c.bf16 %v1485_v8, %v1484_v7 }
 0x1c5   : > { %v1062_v10 = vpop.f32.mrf.mxu0 }
 0x1c6   : > { %8483 = vmatmul.msk.bf16.gmra.mxu1 %vm1698_vm2, %v1605_v9  ;;  %v1063_v13 = vadd.f32 %v10818_v36, %v1062_v10 }
 0x1c8   : > { %8412 = vmatmul.msk.bf16.gmra.mxu0 %vm816_vm1, %v763_v11  ;;  %v1358_v15 = vmul.f32 0.2, %v1063_v13  ;;  %v10886_v11 = vpop.trf.xlu1 }
 0x1ca   : > { %v1486_v20 = vmax.f32 %v1063_v13, %v1358_v15 }
 0x1cd   : > { %v1064_v14 = vpop.f32.mrf.mxu0 }
 0x1ce   : > { %v1065_v16 = vadd.f32 %v10818_v36, %v1064_v14 }
 0x1d0   : > { %v1359_v18 = vmul.f32 0.2, %v1065_v16 }
 0x1d2   : > { %v1487_v21 = vmax.f32 %v1065_v16, %v1359_v18 }
 0x1d3   : > { %v1900_v22 = vpop.f32.mrf.mxu1 }
 0x1d4   : > { %v1901_v23 = vadd.f32 %v10865_v19, %v1900_v22  ;;  %v1606_v24 = vpack.c.bf16 %v1487_v21, %v1486_v20 }
 0x1d5   : > { %v1067_v25 = vpop.f32.mrf.mxu0 }
 0x1d6   : > { %v2220_v27 = vmul.f32 0.2, %v1901_v23  ;;  %8484 = vmatmul.msk.bf16.gmra.mxu1 %vm1698_vm2, %v1606_v24  ;;  %v1068_v31 = vadd.f32 %v10818_v36, %v1067_v25 }
 0x1d8   : > { %v2348_v29 = vmax.f32 %v1901_v23, %v2220_v27  ;;  %8413 = vmatmul.msk.bf16.gmra.mxu0 %vm816_vm1, %v764_v26  ;;  %v1360_v38 = vmul.f32 0.2, %v1068_v31 }
 0x1da   : > { %v2476_v30 = vpack.c.bf16 %v2348_v29, %v2348_v29  ;;  %v1488_v46 = vmax.f32 %v1068_v31, %v1360_v38 }
 0x1db   : > { %v1902_v32 = vpop.f32.mrf.mxu1 }
 0x1dc   : > { %v2604_v33 = vunpack.c.l.bf16 %v2476_v30  ;;  %v1903_v34 = vadd.f32 %v10865_v19, %v1902_v32 }
 0x1dd   : > { %v1069_v35 = vpop.f32.mrf.mxu0 }
 0x1de   : > { %v2732_v37 = vrot.slane %v2604_v33, 4  ;;  %v2221_v39 = vmul.f32 0.2, %v1903_v34  ;;  %v1070_v40 = vadd.f32 %v10818_v36, %v1069_v35 }
 0x1e0   : > { %v2733_v42 = vmax.f32 %v2604_v33, %v2732_v37  ;;  %v2349_v43 = vmax.f32 %v1903_v34, %v2221_v39  ;;  %v1361_v44 = vmul.f32 0.2, %v1070_v40  ;;  %v766_v33 = vpack.c.bf16 %v10860_v17, %v10855_v12 }
 0x1e2   : > { %v2734_v45 = vrot.slane %v2733_v42, 2  ;;  %v2477_v47 = vpack.c.bf16 %v2349_v43, %v2349_v43  ;;  %v1489_v48 = vmax.f32 %v1070_v40, %v1361_v44 }
 0x1e3   : > { %v1905_v49 = vpop.f32.mrf.mxu1 }
 0x1e4   : > { %v2735_v50 = vmax.f32 %v2733_v42, %v2734_v45  ;;  %v2605_v51 = vunpack.c.l.bf16 %v2477_v47  ;;  %v1906_v52 = vadd.f32 %v10865_v19, %v1905_v49  ;;  %v1607_v53 = vpack.c.bf16 %v1489_v48, %v1488_v46  ;;  %v10892_v42 = vpop.trf.xlu1 }
 0x1e5   : > { %v1072_v54 = vpop.f32.mrf.mxu0 }
 0x1e6   : > { %v2738_v55 = vrot.slane %v2605_v51, 4  ;;  %v2222_v57 = vmul.f32 0.2, %v1906_v52  ;;  %8485 = vmatmul.msk.bf16.gmra.mxu1 %vm1698_vm2, %v1607_v53  ;;  %v2736_v59 = vrot.slane %v2735_v50, 1  ;;  %v1073_v2 = vadd.f32 %v10818_v36, %v1072_v54  ;;  %v8392_v53 = vld [vmem:[%s10787_s14 + $0x20] sm:$0x3f] }
 0x1e7   : > { %619 = vxpose.xlu2.b32.start.end [1/1] (short) %v8392_v53, 128 }
 0x1e8   : > { %v2739_v60 = vmax.f32 %v2605_v51, %v2738_v55  ;;  %v2350_v61 = vmax.f32 %v1906_v52, %v2222_v57  ;;  %8414 = vmatmul.msk.bf16.gmra.mxu0 %vm816_vm1, %v765_v56  ;;  %v2737_v1 = vmax.f32 %v2735_v50, %v2736_v59  ;;  %v1362_v14 = vmul.f32 0.2, %v1073_v2 }
 0x1ea   : > { %v2740_v62 = vrot.slane %v2739_v60, 2  ;;  %v2478_v63 = vpack.c.bf16 %v2350_v61, %v2350_v61  ;;  %v3500_v13 = vpack.c.bf16 %v2737_v1, %v2737_v1  ;;  %v1490_v26 = vmax.f32 %v1073_v2, %v1362_v14 }
 0x1eb   : > { %v1907_v3 = vpop.f32.mrf.mxu1 }
 0x1ec   : > { %v2741_v4 = vmax.f32 %v2739_v60, %v2740_v62  ;;  %v2606_v6 = vunpack.c.l.bf16 %v2478_v63  ;;  %v1908_v0 = vadd.f32 %v10865_v19, %v1907_v3  ;;  %v3838_v25 = vunpack.c.l.b16 %v3500_v13  ;;  %v10901_v62 = vpop.trf.xlu1 }
 0x1ed   : > { %v1074_v5 = vpop.f32.mrf.mxu0 }
 0x1ee   : > { %v2742_v7 = vrot.slane %v2741_v4, 1  ;;  %v2744_v8 = vrot.slane %v2606_v6, 4  ;;  %v2223_v9 = vmul.f32 0.2, %v1908_v0  ;;  %v1075_v10 = vadd.f32 %v10818_v36, %v1074_v5 }
 0x1f0   : > { %v2743_v15 = vmax.f32 %v2741_v4, %v2742_v7  ;;  %v2745_v16 = vmax.f32 %v2606_v6, %v2744_v8  ;;  %v2351_v18 = vmax.f32 %v1908_v0, %v2223_v9  ;;  %v1363_v20 = vmul.f32 0.2, %v1075_v10 }
 0x1f2   : > { %v3501_v21 = vpack.c.bf16 %v2743_v15, %v2743_v15  ;;  %v2746_v22 = vrot.slane %v2745_v16, 2  ;;  %v2479_v23 = vpack.c.bf16 %v2351_v18, %v2351_v18  ;;  %v1491_v24 = vmax.f32 %v1075_v10, %v1363_v20 }
 0x1f3   : > { %v1910_v27 = vpop.f32.mrf.mxu1  ;;  %v767_v15 = vpack.c.bf16 %v10875_v41, %v10869_v28 }
 0x1f4   : > { %v3839_v29 = vunpack.c.l.b16 %v3501_v21  ;;  %v2747_v30 = vmax.f32 %v2745_v16, %v2746_v22  ;;  %v2607_v31 = vunpack.c.l.bf16 %v2479_v23  ;;  %v1911_v32 = vadd.f32 %v10865_v19, %v1910_v27  ;;  %v10909_v27 = vpop.trf.xlu1 }
 0x1f5   : > { %v1077_v34 = vpop.f32.mrf.mxu0  ;;  %v1608_v35 = vpack.c.bf16 %v1491_v24, %v1490_v26 }
 0x1f6   : > { %v3967_v37 = vsel %vm3966_vm3, %v3839_v29, %v3838_v25  ;;  %v2748_v38 = vrot.slane %v2747_v30, 1  ;;  %v2750_v39 = vrot.slane %v2607_v31, 4  ;;  %v2224_v40 = vmul.f32 0.2, %v1911_v32 }
 0x1f7   : > { %8486 = vmatmul.msk.bf16.gmra.mxu1 %vm1698_vm2, %v1608_v35  ;;  %v1078_v17 = vadd.f32 %v10818_v36, %v1077_v34 }
 0x1f8   : > { %v2749_v43 = vmax.f32 %v2747_v30, %v2748_v38  ;;  %v2751_v44 = vmax.f32 %v2607_v31, %v2750_v39  ;;  %v2352_v45 = vmax.f32 %v1911_v32, %v2224_v40  ;;  %8415 = vmatmul.msk.bf16.gmra.mxu0 %vm816_vm1, %v766_v33 }
 0x1f9   : > { %v1364_v60 = vmul.f32 0.2, %v1078_v17 }
 0x1fa   : > { %v3502_v46 = vpack.c.bf16 %v2749_v43, %v2749_v43  ;;  %v2752_v47 = vrot.slane %v2751_v44, 2  ;;  %v2480_v12 = vpack.c.bf16 %v2352_v45, %v2352_v45 }
 0x1fb   : > { %v1912_v48 = vpop.f32.mrf.mxu1  ;;  %v1492_v5 = vmax.f32 %v1078_v17, %v1364_v60 }
 0x1fc   : > { %v3840_v49 = vunpack.c.l.b16 %v3502_v46  ;;  %v2753_v50 = vmax.f32 %v2751_v44, %v2752_v47  ;;  %v2608_v51 = vunpack.c.l.bf16 %v2480_v12  ;;  %v1913_v52 = vadd.f32 %v10865_v19, %v1912_v48 }
 0x1fd   : > { %v1079_v54 = vpop.f32.mrf.mxu0 }
 0x1fe   : > { %v3969_v55 = vsel %vm3968_vm4, %v3840_v49, %v3967_v37  ;;  %v2754_v56 = vrot.slane %v2753_v50, 1  ;;  %v2756_v57 = vrot.slane %v2608_v51, 4  ;;  %v2225_v59 = vmul.f32 0.2, %v1913_v52 }
 0x1ff   : > { %v1080_v61 = vadd.f32 %v10818_v36, %v1079_v54  ;;  %v10915_v54 = vpop.trf.xlu1 }
 0x200   : > { %v2755_v63 = vmax.f32 %v2753_v50, %v2754_v56  ;;  %v2757_v1 = vmax.f32 %v2608_v51, %v2756_v57  ;;  %v2353_v2 = vmax.f32 %v1913_v52, %v2225_v59 }
 0x201   : > { %v1365_v3 = vmul.f32 0.2, %v1080_v61 }
 0x202   : > { %v3503_v4 = vpack.c.bf16 %v2755_v63, %v2755_v63  ;;  %v2758_v6 = vrot.slane %v2757_v1, 2  ;;  %v2481_v0 = vpack.c.bf16 %v2353_v2, %v2353_v2  ;;  %v768_v2 = vpack.c.bf16 %v10886_v11, %v10880_v58 }
 0x203   : > { %v1493_v7 = vmax.f32 %v1080_v61, %v1365_v3  ;;  %v1915_v8 = vpop.f32.mrf.mxu1 }
 0x204   : > { %v3841_v9 = vunpack.c.l.b16 %v3503_v4  ;;  %v2759_v10 = vmax.f32 %v2757_v1, %v2758_v6  ;;  %v2609_v13 = vunpack.c.l.bf16 %v2481_v0  ;;  %v1916_v14 = vadd.f32 %v10865_v19, %v1915_v8 }
 0x205   : > { %v1082_v16 = vpop.f32.mrf.mxu0  ;;  %v1609_v18 = vpack.c.bf16 %v1493_v7, %v1492_v5 }
 0x206   : > { %v3971_v20 = vsel %vm3970_vm5, %v3841_v9, %v3969_v55  ;;  %v2760_v21 = vrot.slane %v2759_v10, 1  ;;  %v2762_v22 = vrot.slane %v2609_v13, 4  ;;  %v2226_v23 = vmul.f32 0.2, %v1916_v14 }
 0x207   : > { %8487 = vmatmul.msk.bf16.gmra.mxu1 %vm1698_vm2, %v1609_v18  ;;  %v1083_v28 = vadd.f32 %v10818_v36, %v1082_v16 }
 0x208   : > { %v2761_v24 = vmax.f32 %v2759_v10, %v2760_v21  ;;  %v2763_v25 = vmax.f32 %v2609_v13, %v2762_v22  ;;  %v2354_v26 = vmax.f32 %v1916_v14, %v2226_v23  ;;  %8416 = vmatmul.msk.bf16.gmra.mxu0 %vm816_vm1, %v767_v15  ;;  %v10923_v13 = vpop.trf.xlu1 }
 0x209   : > { %v1366_v44 = vmul.f32 0.2, %v1083_v28 }
 0x20a   : > { %v3504_v29 = vpack.c.bf16 %v2761_v24, %v2761_v24  ;;  %v2764_v30 = vrot.slane %v2763_v25, 2  ;;  %v2482_v31 = vpack.c.bf16 %v2354_v26, %v2354_v26 }
 0x20b   : > { %v1917_v41 = vpop.f32.mrf.mxu1  ;;  %v1494_v51 = vmax.f32 %v1083_v28, %v1366_v44  ;;  %v8766_v28 = vld [vmem:[#allocation3 + $0x1c0] sm:$0xf] }
 0x20c   : > { %v3842_v32 = vunpack.c.l.b16 %v3504_v29  ;;  %v2765_v33 = vmax.f32 %v2763_v25, %v2764_v30  ;;  %v2610_v34 = vunpack.c.l.bf16 %v2482_v31  ;;  %v1918_v35 = vadd.f32 %v10865_v19, %v1917_v41  ;;  %v10206_v41 = vld [vmem:[#allocation3 + $0x1dc] sm:$0xf0] }
 0x20d   : > { %v1084_v37 = vpop.f32.mrf.mxu0  ;;  %v769_v30 = vpack.c.bf16 %v10901_v62, %v10892_v42  ;;  %v10198_v44 = vld [vmem:[#allocation3 + $0x19c] sm:$0xf0] }
 0x20e   : > { %v3973_v38 = vsel %vm3972_vm6, %v3842_v32, %v3971_v20  ;;  %v2766_v39 = vrot.slane %v2765_v33, 1  ;;  %v2768_v40 = vrot.slane %v2610_v34, 4  ;;  %v2227_v43 = vmul.f32 0.2, %v1918_v35  ;;  %v10202_v32 = vld [vmem:[#allocation3 + $0x1c4] sm:$0xf] }
 0x20f   : > { %v1085_v45 = vadd.f32 %v10818_v36, %v1084_v37 }
 0x210   : > { %v2767_v46 = vmax.f32 %v2765_v33, %v2766_v39  ;;  %v2769_v47 = vmax.f32 %v2610_v34, %v2768_v40  ;;  %v2355_v12 = vmax.f32 %v1918_v35, %v2227_v43  ;;  %v10933_v31 = vpop.trf.xlu1  ;;  %v8767_v34 = vor.u32 %v10206_v41, %v8766_v28  ;;  %v8768_v35 = vld [vmem:[#allocation3 + $0x1e0] sm:$0xf0]  ;;  %v8734_v43 = vld [vmem:[#allocation3 + $0x180] sm:$0xf] }
 0x211   : > { %v1367_v17 = vmul.f32 0.2, %v1085_v45  ;;  %v8771_v39 = vor.u32 %v10202_v32, %v8768_v35 }
 0x212   : > { %v3505_v48 = vpack.c.bf16 %v2767_v46, %v2767_v46  ;;  %v2770_v49 = vrot.slane %v2769_v47, 2  ;;  %v2483_v50 = vpack.c.bf16 %v2355_v12, %v2355_v12  ;;  %4421 = vmatpush.bf16.msra.mxu2 %v8767_v34  ;;  %v8735_v12 = vor.u32 %v10198_v44, %v8734_v43  ;;  %v8640_v34 = vld [vmem:[#allocation3 + $0xe0] sm:$0xf0]  ;;  %v8606_v43 = vld [vmem:[#allocation3 + $0x80] sm:$0xf] }
 0x213   : > { %v1495_v52 = vmax.f32 %v1085_v45, %v1367_v17  ;;  %v1920_v53 = vpop.f32.mrf.mxu1  ;;  %4470 = vmatpush.bf16.msra.mxu3 %v8771_v39  ;;  %v10194_v45 = vld [vmem:[#allocation3 + $0x184] sm:$0xf]  ;;  %v10166_v44 = vld [vmem:[#allocation3 + $0x9c] sm:$0xf0] }
 0x214   : > { %v3843_v55 = vunpack.c.l.b16 %v3505_v48  ;;  %v2771_v56 = vmax.f32 %v2769_v47, %v2770_v49  ;;  %v2611_v57 = vunpack.c.l.bf16 %v2483_v50  ;;  %v1921_v37 = vadd.f32 %v10865_v19, %v1920_v53  ;;  %v8736_v17 = vld [vmem:[#allocation3 + $0x1a0] sm:$0xf0] }
 0x215   : > { %v1610_v59 = vpack.c.bf16 %v1495_v52, %v1494_v51  ;;  %v1087_v60 = vpop.f32.mrf.mxu0  ;;  %v8739_v53 = vor.u32 %v10194_v45, %v8736_v17  ;;  %v10162_v45 = vld [vmem:[#allocation3 + $0x84] sm:$0xf]  ;;  %v8607_v17 = vor.u32 %v10166_v44, %v8606_v43 }
 0x216   : > { %v3975_v61 = vsel %vm3974_vm7, %v3843_v55, %v3973_v38  ;;  %v2772_v63 = vrot.slane %v2771_v56, 1  ;;  %v2774_v1 = vrot.slane %v2611_v57, 4  ;;  %v1088_v5 = vadd.f32 %v10818_v36, %v1087_v60  ;;  %4422 = vmatpush.bf16.msra.mxu2 %v8735_v12 }
 0x217   : > { %8488 = vmatmul.msk.bf16.gmra.mxu1 %vm1698_vm2, %v1610_v59  ;;  %v2228_v48 = vmul.f32 0.2, %v1921_v37  ;;  %4471 = vmatpush.bf16.msra.mxu3 %v8739_v53 }
 0x218   : > { %v2773_v3 = vmax.f32 %v2771_v56, %v2772_v63  ;;  %v2775_v4 = vmax.f32 %v2611_v57, %v2774_v1  ;;  %8417 = vmatmul.msk.bf16.gmra.mxu0 %vm816_vm1, %v768_v2  ;;  %v1368_v11 = vmul.f32 0.2, %v1088_v5  ;;  %v8702_v56 = vld [vmem:[#allocation3 + $0x140] sm:$0xf]  ;;  %v10942_v60 = vpop.trf.xlu1  ;;  %v10186_v63 = vld [vmem:[#allocation3 + $0x144] sm:$0xf] }
 0x219   : > { %v10190_v57 = vld [vmem:[#allocation3 + $0x15c] sm:$0xf0]  ;;  %v8704_v1 = vld [vmem:[#allocation3 + $0x160] sm:$0xf0]  ;;  %v2356_v2 = vmax.f32 %v1921_v37, %v2228_v48 }
 0x21a   : > { %v3506_v6 = vpack.c.bf16 %v2773_v3, %v2773_v3  ;;  %v2776_v0 = vrot.slane %v2775_v4, 2  ;;  %v1496_v21 = vmax.f32 %v1088_v5, %v1368_v11  ;;  %v8608_v48 = vld [vmem:[#allocation3 + $0xa0] sm:$0xf0] }
 0x21b   : > { %v1922_v7 = vpop.f32.mrf.mxu1 }
 0x21c   : > { %v3844_v8 = vunpack.c.l.b16 %v3506_v6  ;;  %v2777_v9 = vmax.f32 %v2775_v4, %v2776_v0  ;;  %v1923_v33 = vadd.f32 %v10865_v19, %v1922_v7  ;;  %v8707_v7 = vor.u32 %v10186_v63, %v8704_v1  ;;  %v10158_v63 = vld [vmem:[#allocation3 + $0x5c] sm:$0xf0] }
 0x21d   : > { %v1089_v10 = vpop.f32.mrf.mxu0 }
 0x21e   : > { %v3977_v14 = vsel %vm3976_vm8, %v3844_v8, %v3975_v61  ;;  %v2778_v58 = vrot.slane %v2777_v9, 1  ;;  %v1090_v15 = vadd.f32 %v10818_v36, %v1089_v10  ;;  %v2229_v46 = vmul.f32 0.2, %v1923_v33  ;;  %v10182_v10 = vld [vmem:[#allocation3 + $0x11c] sm:$0xf0]  ;;  %4472 = vmatpush.bf16.msra.mxu3 %v8707_v7 }
 0x21f   : > { %v8703_v61 = vor.u32 %v10190_v57, %v8702_v56  ;;  %v8611_v56 = vor.u32 %v10162_v45, %v8608_v48 }
 0x220   : > { %v2779_v16 = vmax.f32 %v2777_v9, %v2778_v58  ;;  %v1369_v18 = vmul.f32 0.2, %v1090_v15  ;;  %v2357_v59 = vmax.f32 %v1923_v33, %v2229_v46  ;;  %v8670_v9 = vld [vmem:[#allocation3 + $0x100] sm:$0xf]  ;;  %v10170_v33 = vld [vmem:[#allocation3 + $0xc4] sm:$0xf] }
 0x221   : > { %4423 = vmatpush.bf16.msra.mxu2 %v8703_v61  ;;  %v8574_v61 = vld [vmem:[#allocation3 + $0x40] sm:$0xf] }
 0x222   : > { %v3507_v20 = vpack.c.bf16 %v2779_v16, %v2779_v16  ;;  %v1497_v22 = vmax.f32 %v1090_v15, %v1369_v18  ;;  %v2485_v58 = vpack.c.bf16 %v2357_v59, %v2357_v59  ;;  %v8671_v16 = vor.u32 %v10182_v10, %v8670_v9  ;;  %v8672_v18 = vld [vmem:[#allocation3 + $0x120] sm:$0xf0] }
 0x223   : > { %v1925_v23 = vpop.f32.mrf.mxu1 }
 0x224   : > { %v3845_v24 = vunpack.c.l.b16 %v3507_v20  ;;  %v1611_v25 = vpack.c.bf16 %v1497_v22, %v1496_v21  ;;  %v1926_v42 = vadd.f32 %v10865_v19, %v1925_v23  ;;  %v2484_v20 = vpack.c.bf16 %v2356_v2, %v2356_v2 }
 0x225   : > { %v1092_v26 = vpop.f32.mrf.mxu0  ;;  %v770_v21 = vpack.c.bf16 %v10915_v54, %v10909_v27  ;;  %4424 = vmatpush.bf16.msra.mxu2 %v8671_v16  ;;  %v2613_v28 = vunpack.c.l.bf16 %v2485_v58  ;;  %v8643_v27 = vor.u32 %v10170_v33, %v8640_v34 }
 0x226   : > { %v10928_v29 = vsel %vm3978_vm9, %v3845_v24, %v3977_v14  ;;  %v1093_v38 = vadd.f32 %v10818_v36, %v1092_v26  ;;  %v2230_v51 = vmul.f32 0.2, %v1926_v42  ;;  %v10178_v14 = vld [vmem:[#allocation3 + $0x104] sm:$0xf]  ;;  %v8638_v26 = vld [vmem:[#allocation3 + $0xc0] sm:$0xf]  ;;  %v2612_v54 = vunpack.c.l.bf16 %v2484_v20 }
 0x227   : > { %8489 = vmatmul.msk.bf16.gmra.mxu1 %vm1698_vm2, %v1611_v25  ;;  %v8675_v25 = vor.u32 %v10178_v14, %v8672_v18  ;;  %v2786_v46 = vrot.slane %v2613_v28, 4  ;;  %v8542_v18 = vld [vmem:[#allocation3] sm:$0xf] }
 0x228   : > { %8418 = vmatmul.msk.bf16.gmra.mxu0 %vm816_vm1, %v769_v30  ;;  %v1370_v49 = vmul.f32 0.2, %v1093_v38  ;;  %v2358_v6 = vmax.f32 %v1926_v42, %v2230_v51  ;;  %v10174_v30 = vld [vmem:[#allocation3 + $0xdc] sm:$0xf0] }
 0x229   : > { %4473 = vmatpush.bf16.msra.mxu3 %v8675_v25  ;;  %v8639_v32 = vor.u32 %v10174_v30, %v8638_v26  ;;  %v2787_v1 = vmax.f32 %v2613_v28, %v2786_v46  ;;  %v10150_v20 = vld [vmem:[#allocation3 + $0x1c] sm:$0xf0]  ;;  %v8544_v30 = vld [vmem:[#allocation3 + $0x20] sm:$0xf0] }
 0x22a   : > { %v1498_v3 = vmax.f32 %v1093_v38, %v1370_v49  ;;  %v2486_v22 = vpack.c.bf16 %v2358_v6, %v2358_v6  ;;  %v8576_v6 = vld [vmem:[#allocation3 + $0x60] sm:$0xf0]  ;;  %v8543_v26 = vor.u32 %v10150_v20, %v8542_v18 }
 0x22b   : > { %v1927_v62 = vpop.f32.mrf.mxu1  ;;  %4425 = vmatpush.bf16.msra.mxu2 %v8639_v32 }
 0x22c   : > { %v1928_v40 = vadd.f32 %v10865_v19, %v1927_v62  ;;  %v2614_v37 = vunpack.c.l.bf16 %v2486_v22  ;;  %v10950_v62 = vpop.trf.xlu1  ;;  %v2788_v22 = vrot.slane %v2787_v1, 2 }
 0x22d   : > { %v1094_v47 = vpop.f32.mrf.mxu0  ;;  %4474 = vmatpush.bf16.msra.mxu3 %v8643_v27 }
 0x22e   : > { %v1095_v50 = vadd.f32 %v10818_v36, %v1094_v47  ;;  %v2231_v52 = vmul.f32 0.2, %v1928_v40  ;;  %v2792_v53 = vrot.slane %v2614_v37, 4 }
 0x22f   : > { %4426 = vmatpush.bf16.msra.mxu2 %v8607_v17 }
 0x230   : > { %v1371_v55 = vmul.f32 0.2, %v1095_v50  ;;  %v2359_v0 = vmax.f32 %v1928_v40, %v2231_v52  ;;  %v2780_v52 = vrot.slane %v2612_v54, 4  ;;  %v2793_v10 = vmax.f32 %v2614_v37, %v2792_v53 }
 0x231   : > { %4475 = vmatpush.bf16.msra.mxu3 %v8611_v56 }
 0x232   : > { %v1499_v4 = vmax.f32 %v1095_v50, %v1371_v55  ;;  %v2487_v23 = vpack.c.bf16 %v2359_v0, %v2359_v0  ;;  %v2781_v9 = vmax.f32 %v2612_v54, %v2780_v52  ;;  %v2794_v34 = vrot.slane %v2793_v10, 2 }
 0x233   : > { %v1930_v5 = vpop.f32.mrf.mxu1 }
 0x234   : > { %v1612_v8 = vpack.c.bf16 %v1499_v4, %v1498_v3  ;;  %v1931_v11 = vadd.f32 %v10865_v19, %v1930_v5  ;;  %v2615_v38 = vunpack.c.l.bf16 %v2487_v23  ;;  %v8575_v3 = vor.u32 %v10158_v63, %v8574_v61  ;;  %v10154_v4 = vld [vmem:[#allocation3 + $0x44] sm:$0xf]  ;;  %v10955_v25 = vpop.trf.xlu1 }
 0x235   : > { %v1097_v15 = vpop.f32.mrf.mxu0  ;;  %v2782_v33 = vrot.slane %v2781_v9, 2 }
 0x236   : > { %v2232_v24 = vmul.f32 0.2, %v1931_v11  ;;  %v1098_v35 = vadd.f32 %v10818_v36, %v1097_v15  ;;  %v2798_v55 = vrot.slane %v2615_v38, 4  ;;  %4427 = vmatpush.bf16.msra.mxu2 %v8575_v3 }
 0x237   : > { %8490 = vmatmul.msk.bf16.gmra.mxu1 %vm1698_vm2, %v1612_v8  ;;  %v8579_v8 = vor.u32 %v10154_v4, %v8576_v6  ;;  %v2783_v43 = vmax.f32 %v2781_v9, %v2782_v33 }
 0x238   : > { %8419 = vmatmul.msk.bf16.gmra.mxu0 %vm816_vm1, %v770_v21  ;;  %v2360_v41 = vmax.f32 %v1931_v11, %v2232_v24  ;;  %v1372_v49 = vmul.f32 0.2, %v1098_v35  ;;  %v2799_v58 = vmax.f32 %v2615_v38, %v2798_v55  ;;  %v10146_v21 = vld [vmem:[#allocation3 + $0x4] sm:$0xf]  ;;  %v2789_v38 = vmax.f32 %v2787_v1, %v2788_v22 }
 0x239   : > { %4476 = vmatpush.bf16.msra.mxu3 %v8579_v8  ;;  %v2784_v53 = vrot.slane %v2783_v43, 1 }
 0x23a   : > { %v2488_v39 = vpack.c.bf16 %v2360_v41, %v2360_v41  ;;  %v1500_v0 = vmax.f32 %v1098_v35, %v1372_v49  ;;  %v771_v41 = vpack.c.bf16 %v10933_v31, %v10923_v13  ;;  %4428 = vmatpush.bf16.msra.mxu2 %v8543_v26  ;;  %v8547_v35 = vor.u32 %v10146_v21, %v8544_v30 }
 0x23b   : > { %v1932_v42 = vpop.f32.mrf.mxu1  ;;  %v2800_v27 = vrot.slane %v2799_v58, 2  ;;  %v2795_v13 = vmax.f32 %v2793_v10, %v2794_v34 }
 0x23c   : > { %v1933_v40 = vadd.f32 %v10865_v19, %v1932_v42  ;;  %v2616_v47 = vunpack.c.l.bf16 %v2488_v39 }
 0x23d   : > { %v1099_v12 = vpop.f32.mrf.mxu0  ;;  %4477 = vmatpush.bf16.msra.mxu3 %v8547_v35  ;;  %v2801_v45 = vmax.f32 %v2799_v58, %v2800_v27  ;;  %v2796_v55 = vrot.slane %v2795_v13, 1 }
 0x23e   : > { %v2233_v50 = vmul.f32 0.2, %v1933_v40  ;;  %v1100_v51 = vadd.f32 %v10818_v36, %v1099_v12  ;;  %v2804_v2 = vrot.slane %v2616_v47, 4  ;;  %v2790_v12 = vrot.slane %v2789_v38, 1 }
 0x23f   : > { %v2797_v8 = vmax.f32 %v2795_v13, %v2796_v55 }
 0x240   : > { %v2361_v57 = vmax.f32 %v1933_v40, %v2233_v50  ;;  %v1373_v59 = vmul.f32 0.2, %v1100_v51  ;;  %v2805_v23 = vmax.f32 %v2616_v47, %v2804_v2  ;;  %v2791_v2 = vmax.f32 %v2789_v38, %v2790_v12 }
 0x241   : > { %v3510_v26 = vpack.c.bf16 %v2797_v8, %v2797_v8 }
 0x242   : > { %v2489_v5 = vpack.c.bf16 %v2361_v57, %v2361_v57  ;;  %v1501_v7 = vmax.f32 %v1100_v51, %v1373_v59  ;;  %v2806_v39 = vrot.slane %v2805_v23, 2  ;;  %v10964_v57 = vpop.trf.xlu1  ;;  %v2802_v59 = vrot.slane %v2801_v45, 1 }
 0x243   : > { %v1935_v14 = vpop.f32.mrf.mxu1 }
 0x244   : > { %v2617_v11 = vunpack.c.l.bf16 %v2489_v5  ;;  %v1613_v15 = vpack.c.bf16 %v1501_v7, %v1500_v0  ;;  %v1936_v16 = vadd.f32 %v10865_v19, %v1935_v14  ;;  %v2807_v17 = vmax.f32 %v2805_v23, %v2806_v39 }
 0x245   : > { %v1102_v24 = vpop.f32.mrf.mxu0  ;;  %v2785_v7 = vmax.f32 %v2783_v43, %v2784_v53  ;;  %v772_v23 = vpack.c.bf16 %v10950_v62, %v10942_v60  ;;  %v10976_v60 = vld [vmem:[%s13725_s2] ss:$0 sm:$0xff]  ;;  %v3848_v39 = vunpack.c.l.b16 %v3510_v26 }
 0x246   : > { %v2810_v28 = vrot.slane %v2617_v11, 4  ;;  %v2234_v32 = vmul.f32 0.2, %v1936_v16  ;;  %v1103_v40 = vadd.f32 %v10818_v36, %v1102_v24  ;;  %v2808_v3 = vrot.slane %v2807_v17, 1 }
 0x247   : > { %8491 = vmatmul.msk.bf16.gmra.mxu1 %vm1698_vm2, %v1613_v15  ;;  %v3509_v15 = vpack.c.bf16 %v2791_v2, %v2791_v2  ;;  %v3508_v24 = vpack.c.bf16 %v2785_v7, %v2785_v7 }
 0x248   : > { %v2811_v54 = vmax.f32 %v2617_v11, %v2810_v28  ;;  %v2362_v37 = vmax.f32 %v1936_v16, %v2234_v32  ;;  %8420 = vmatmul.msk.bf16.gmra.mxu0 %vm816_vm1, %v771_v41  ;;  %v1374_v50 = vmul.f32 0.2, %v1103_v40  ;;  %v2809_v16 = vmax.f32 %v2807_v17, %v2808_v3 }
 0x249   : > { %v3847_v33 = vunpack.c.l.b16 %v3509_v15  ;;  %v3846_v38 = vunpack.c.l.b16 %v3508_v24 }
 0x24a   : > { %v2490_v42 = vpack.c.bf16 %v2362_v37, %v2362_v37  ;;  %v2812_v31 = vrot.slane %v2811_v54, 2  ;;  %v1502_v6 = vmax.f32 %v1103_v40, %v1374_v50  ;;  %v3512_v34 = vpack.c.bf16 %v2809_v16, %v2809_v16 }
 0x24b   : > { %v1937_v44 = vpop.f32.mrf.mxu1 }
 0x24c   : > { %v2618_v46 = vunpack.c.l.bf16 %v2490_v42  ;;  %v1938_v47 = vadd.f32 %v10865_v19, %v1937_v44  ;;  %v2813_v56 = vmax.f32 %v2811_v54, %v2812_v31  ;;  %v10971_v54 = vpop.trf.xlu1 }
 0x24d   : > { %v1104_v48 = vpop.f32.mrf.mxu0 }
 0x24e   : > { %v2816_v49 = vrot.slane %v2618_v46, 4  ;;  %v2235_v51 = vmul.f32 0.2, %v1938_v47  ;;  %v1105_v52 = vadd.f32 %v10818_v36, %v1104_v48  ;;  %v2814_v9 = vrot.slane %v2813_v56, 1 }
 0x24f   : > { %v2803_v36 = vmax.f32 %v2801_v45, %v2802_v59  ;;  %v3980_v45 = vsel %vm3966_vm3, %v3847_v33, %v3846_v38 }
 0x250   : > { %v2817_v61 = vmax.f32 %v2618_v46, %v2816_v49  ;;  %v2363_v63 = vmax.f32 %v1938_v47, %v2235_v51  ;;  %v1375_v1 = vmul.f32 0.2, %v1105_v52  ;;  %v2815_v30 = vmax.f32 %v2813_v56, %v2814_v9 }
 0x251   : > { %v3511_v41 = vpack.c.bf16 %v2803_v36, %v2803_v36  ;;  %v3850_v46 = vunpack.c.l.b16 %v3512_v34 }
 0x252   : > { %v2818_v4 = vrot.slane %v2817_v61, 2  ;;  %v2491_v0 = vpack.c.bf16 %v2363_v63, %v2363_v63  ;;  %v1503_v5 = vmax.f32 %v1105_v52, %v1375_v1  ;;  %v3513_v42 = vpack.c.bf16 %v2815_v30, %v2815_v30 }
 0x253   : > { %v1940_v10 = vpop.f32.mrf.mxu1  ;;  %v3849_v13 = vunpack.c.l.b16 %v3511_v41  ;;  %v3981_v52 = vsel %vm3968_vm4, %v3848_v39, %v3980_v45 }
 0x254   : > { %v2819_v14 = vmax.f32 %v2817_v61, %v2818_v4  ;;  %v2619_v58 = vunpack.c.l.bf16 %v2491_v0  ;;  %v1614_v11 = vpack.c.bf16 %v1503_v5, %v1502_v6  ;;  %v1941_v18 = vadd.f32 %v10865_v19, %v1940_v10  ;;  %v10986_v10 = vpop.trf.xlu1 }
 0x255   : > { %v1107_v20 = vpop.f32.mrf.mxu0  ;;  %v3851_v53 = vunpack.c.l.b16 %v3513_v42  ;;  %v3982_v56 = vsel %vm3970_vm5, %v3849_v13, %v3981_v52 }
 0x256   : > { %v2820_v21 = vrot.slane %v2819_v14, 1  ;;  %v2822_v22 = vrot.slane %v2619_v58, 4  ;;  %v2236_v28 = vmul.f32 0.2, %v1941_v18  ;;  %v1108_v62 = vadd.f32 %v10976_v60, %v1107_v20 }
 0x257   : > { %8492 = vmatmul.msk.bf16.gmra.mxu1 %vm1698_vm2, %v1614_v11  ;;  %v3983_v1 = vsel %vm3972_vm6, %v3850_v46, %v3982_v56 }
 0x258   : > { %v2823_v32 = vmax.f32 %v2619_v58, %v2822_v22  ;;  %8421 = vmatmul.msk.bf16.gmra.mxu0 %vm816_vm1, %v772_v23  ;;  %v2821_v35 = vmax.f32 %v2819_v14, %v2820_v21  ;;  %v2364_v27 = vmax.f32 %v1941_v18, %v2236_v28  ;;  %v1376_v49 = vmul.f32 0.2, %v1108_v62 }
 0x259   : > { %v3984_v7 = vsel %vm3974_vm7, %v3851_v53, %v3983_v1  ;;  %v773_v22 = vpack.c.bf16 %v10964_v57, %v10955_v25 }
 0x25a   : > { %v2824_v37 = vrot.slane %v2823_v32, 2  ;;  %v2492_v40 = vpack.c.bf16 %v2364_v27, %v2364_v27  ;;  %v3514_v47 = vpack.c.bf16 %v2821_v35, %v2821_v35  ;;  %v1504_v6 = vmax.f32 %v1108_v62, %v1376_v49 }
 0x25b   : > { %v1942_v43 = vpop.f32.mrf.mxu1 }
 0x25c   : > { %v2825_v31 = vmax.f32 %v2823_v32, %v2824_v37  ;;  %v1943_v44 = vadd.f32 %v10865_v19, %v1942_v43  ;;  %v2620_v12 = vunpack.c.l.bf16 %v2492_v40  ;;  %v3852_v2 = vunpack.c.l.b16 %v3514_v47  ;;  %v11002_v62 = vpop.trf.xlu1 }
 0x25d   : > { %v1109_v17 = vpop.f32.mrf.mxu0 }
 0x25e   : > { %v2826_v48 = vrot.slane %v2825_v31, 1  ;;  %v2237_v50 = vmul.f32 0.2, %v1943_v44  ;;  %v1110_v51 = vadd.f32 %v10976_v60, %v1109_v17  ;;  %v2828_v55 = vrot.slane %v2620_v12, 4 }
 0x25f   : > { %v3985_v15 = vsel %vm3976_vm8, %v3852_v2, %v3984_v7  ;;  %v774_v2 = vpack.c.bf16 %v10986_v10, %v10971_v54  ;;  %v11016_v54 = vld [vmem:[%s13727_s4] ss:$0 sm:$0xff] }
 0x260   : > { %v2827_v59 = vmax.f32 %v2825_v31, %v2826_v48  ;;  %v2365_v61 = vmax.f32 %v1943_v44, %v2237_v50  ;;  %v1377_v63 = vmul.f32 0.2, %v1110_v51  ;;  %v2829_v3 = vmax.f32 %v2620_v12, %v2828_v55 }
 0x262   : > { %v3515_v4 = vpack.c.bf16 %v2827_v59, %v2827_v59  ;;  %v2493_v0 = vpack.c.bf16 %v2365_v61, %v2365_v61  ;;  %v1505_v5 = vmax.f32 %v1110_v51, %v1377_v63  ;;  %v2830_v8 = vrot.slane %v2829_v3, 2 }
 0x263   : > { %v1945_v9 = vpop.f32.mrf.mxu1 }
 0x264   : > { %v3853_v36 = vunpack.c.l.b16 %v3515_v4  ;;  %v2621_v14 = vunpack.c.l.bf16 %v2493_v0  ;;  %v1615_v58 = vpack.c.bf16 %v1505_v5, %v1504_v6  ;;  %v1946_v11 = vadd.f32 %v10865_v19, %v1945_v9  ;;  %v612_v4 = vpop.trf.xlu1 }
 0x265   : > { %v2831_v16 = vmax.f32 %v2829_v3, %v2830_v8  ;;  %v1112_v18 = vpop.f32.mrf.mxu0 }
 0x266   : > { %v3986_v20 = vsel %vm3978_vm9, %v3853_v36, %v3985_v15  ;;  %v2834_v21 = vrot.slane %v2621_v14, 4  ;;  %v2238_v23 = vmul.f32 0.2, %v1946_v11  ;;  %v1113_v41 = vadd.f32 %v10976_v60, %v1112_v18 }
 0x267   : > { %v10994_v24 = vpack.c.b16 %v3986_v20, %v10928_v29  ;;  %v2832_v26 = vrot.slane %v2831_v16, 1  ;;  %8493 = vmatmul.msk.bf16.gmra.mxu1 %vm1698_vm2, %v1615_v58 }
 0x268   : > { %v2835_v30 = vmax.f32 %v2621_v14, %v2834_v21  ;;  %v2366_v28 = vmax.f32 %v1946_v11, %v2238_v23  ;;  %8422 = vmatmul.msk.bf16.gmra.mxu0 %vm816_vm1, %v773_v22  ;;  %v1378_v27 = vmul.f32 0.2, %v1113_v41  ;;  %v8393_v11 = vld [vmem:[%s10787_s14 + $0x28] sm:$0x3f] }
 0x269   : > { %4429 = vmatmul.bf16.vlgmr.msra.gmra.mxu2 %v10994_v24  ;;  %4478 = vmatmul.bf16.vlgmr.msra.gmra.mxu3 %v10994_v24  ;;  %v2833_v25 = vmax.f32 %v2831_v16, %v2832_v26 }
 0x26a   : > { %v2836_v32 = vrot.slane %v2835_v30, 2  ;;  %v2494_v33 = vpack.c.bf16 %v2366_v28, %v2366_v28  ;;  %v1506_v46 = vmax.f32 %v1113_v41, %v1378_v27  ;;  %651 = vxpose.xlu2.b32.start.end [1/1] (short) %v8393_v11, 128 }
 0x26b   : > { %v1947_v57 = vpop.f32.mrf.mxu1  ;;  %v3516_v43 = vpack.c.bf16 %v2833_v25, %v2833_v25 }
 0x26c   : > { %v2837_v34 = vmax.f32 %v2835_v30, %v2836_v32  ;;  %v2622_v29 = vunpack.c.l.bf16 %v2494_v33  ;;  %v1948_v35 = vadd.f32 %v10865_v19, %v1947_v57  ;;  %v11021_v33 = vpop.trf.xlu1 }
 0x26d   : > { %v1114_v37 = vpop.f32.mrf.mxu0  ;;  %v3854_v49 = vunpack.c.l.b16 %v3516_v43 }
 0x26e   : > { %v2838_v38 = vrot.slane %v2837_v34, 1  ;;  %v2840_v39 = vrot.slane %v2622_v29, 4  ;;  %v2239_v42 = vmul.f32 0.2, %v1948_v35  ;;  %v1115_v40 = vadd.f32 %v10976_v60, %v1114_v37 }
 0x270   : > { %v2839_v13 = vmax.f32 %v2837_v34, %v2838_v38  ;;  %v2841_v31 = vmax.f32 %v2622_v29, %v2840_v39  ;;  %v2367_v44 = vmax.f32 %v1948_v35, %v2239_v42  ;;  %v1379_v45 = vmul.f32 0.2, %v1115_v40 }
 0x272   : > { %v3517_v47 = vpack.c.bf16 %v2839_v13, %v2839_v13  ;;  %v2842_v12 = vrot.slane %v2841_v31, 2  ;;  %v2495_v17 = vpack.c.bf16 %v2367_v44, %v2367_v44  ;;  %v1507_v48 = vmax.f32 %v1115_v40, %v1379_v45 }
 0x274   : > { %v3855_v50 = vunpack.c.l.b16 %v3517_v47  ;;  %v2843_v51 = vmax.f32 %v2841_v31, %v2842_v12  ;;  %v2623_v52 = vunpack.c.l.bf16 %v2495_v17  ;;  %v1616_v53 = vpack.c.bf16 %v1507_v48, %v1506_v46  ;;  %v1950_v55 = vpop.f32.mrf.mxu1 }
 0x275   : > { %v1951_v56 = vadd.f32 %v10865_v19, %v1950_v55  ;;  %v1117_v59 = vpop.f32.mrf.mxu0  ;;  %v775_v31 = vpack.c.bf16 %v612_v4, %v11002_v62 }
 0x276   : > { %v3987_v61 = vsel %vm3966_vm3, %v3855_v50, %v3854_v49  ;;  %v2844_v63 = vrot.slane %v2843_v51, 1  ;;  %v2846_v1 = vrot.slane %v2623_v52, 4  ;;  %v1118_v8 = vadd.f32 %v10976_v60, %v1117_v59 }
 0x277   : > { %v2240_v3 = vmul.f32 0.2, %v1951_v56  ;;  %8494 = vmatmul.msk.bf16.gmra.mxu1 %vm1698_vm2, %v1616_v53 }
 0x278   : > { %v2845_v6 = vmax.f32 %v2843_v51, %v2844_v63  ;;  %v2847_v0 = vmax.f32 %v2623_v52, %v2846_v1  ;;  %8423 = vmatmul.msk.bf16.gmra.mxu0 %vm816_vm1, %v774_v2  ;;  %v1380_v21 = vmul.f32 0.2, %v1118_v8  ;;  %v614_v52 = vpop.trf.xlu1 }
 0x279   : > { %v2368_v5 = vmax.f32 %v1951_v56, %v2240_v3 }
 0x27a   : > { %v3518_v7 = vpack.c.bf16 %v2845_v6, %v2845_v6  ;;  %v2848_v19 = vrot.slane %v2847_v0, 2  ;;  %v1508_v57 = vmax.f32 %v1118_v8, %v1380_v21 }
 0x27b   : > { %v2496_v9 = vpack.c.bf16 %v2368_v5, %v2368_v5 }
 0x27c   : > { %v3856_v36 = vunpack.c.l.b16 %v3518_v7  ;;  %v2849_v14 = vmax.f32 %v2847_v0, %v2848_v19  ;;  %v1952_v58 = vpop.f32.mrf.mxu1 }
 0x27d   : > { %v2624_v15 = vunpack.c.l.bf16 %v2496_v9  ;;  %v1953_v10 = vadd.f32 %v11016_v54, %v1952_v58  ;;  %v1119_v16 = vpop.f32.mrf.mxu0 }
 0x27e   : > { %v3988_v18 = vsel %vm3968_vm4, %v3856_v36, %v3987_v61  ;;  %v2850_v20 = vrot.slane %v2849_v14, 1  ;;  %v1120_v22 = vadd.f32 %v10976_v60, %v1119_v16 }
 0x27f   : > { %v2852_v23 = vrot.slane %v2624_v15, 4  ;;  %v2241_v26 = vmul.f32 0.2, %v1953_v10 }
 0x280   : > { %v2851_v30 = vmax.f32 %v2849_v14, %v2850_v20  ;;  %v1381_v28 = vmul.f32 0.2, %v1120_v22  ;;  %v615_v20 = vpop.trf.xlu1 }
 0x281   : > { %v2853_v41 = vmax.f32 %v2624_v15, %v2852_v23  ;;  %v2369_v32 = vmax.f32 %v1953_v10, %v2241_v26  ;;  %v11033_v23 = vpop.trf.xlu2 }
 0x282   : > { %v3519_v25 = vpack.c.bf16 %v2851_v30, %v2851_v30  ;;  %v1509_v34 = vmax.f32 %v1120_v22, %v1381_v28  ;;  %v776_v22 = vpack.c.bf16 %v614_v52, %v11021_v33 }
 0x283   : > { %v2854_v29 = vrot.slane %v2853_v41, 2  ;;  %v2497_v35 = vpack.c.bf16 %v2369_v32, %v2369_v32 }
 0x284   : > { %v3857_v27 = vunpack.c.l.b16 %v3519_v25  ;;  %v1617_v37 = vpack.c.bf16 %v1509_v34, %v1508_v57  ;;  %v1955_v38 = vpop.f32.mrf.mxu1 }
 0x285   : > { %v2855_v39 = vmax.f32 %v2853_v41, %v2854_v29  ;;  %v2625_v42 = vunpack.c.l.bf16 %v2497_v35  ;;  %v1956_v40 = vadd.f32 %v11016_v54, %v1955_v38  ;;  %v1122_v43 = vpop.f32.mrf.mxu0 }
 0x286   : > { %v3989_v13 = vsel %vm3970_vm5, %v3857_v27, %v3988_v18  ;;  %v1123_v48 = vadd.f32 %v10976_v60, %v1122_v43 }
 0x287   : > { %v2856_v44 = vrot.slane %v2855_v39, 1  ;;  %v2858_v45 = vrot.slane %v2625_v42, 4  ;;  %v2242_v46 = vmul.f32 0.2, %v1956_v40  ;;  %8495 = vmatmul.msk.bf16.gmra.mxu1 %vm1698_vm2, %v1617_v37 }
 0x288   : > { %8424 = vmatmul.msk.bf16.gmra.mxu0 %vm816_vm1, %v775_v31  ;;  %v1382_v63 = vmul.f32 0.2, %v1123_v48  ;;  %v616_v43 = vpop.trf.xlu1 }
 0x289   : > { %v2857_v47 = vmax.f32 %v2855_v39, %v2856_v44  ;;  %v2859_v12 = vmax.f32 %v2625_v42, %v2858_v45  ;;  %v2370_v17 = vmax.f32 %v1956_v40, %v2242_v46  ;;  %v11040_v39 = vpop.trf.xlu2 }
 0x28a   : > { %v1510_v8 = vmax.f32 %v1123_v48, %v1382_v63 }
 0x28b   : > { %v3520_v49 = vpack.c.bf16 %v2857_v47, %v2857_v47  ;;  %v2860_v50 = vrot.slane %v2859_v12, 2  ;;  %v2498_v51 = vpack.c.bf16 %v2370_v17, %v2370_v17 }
 0x28c   : > { %v1957_v53 = vpop.f32.mrf.mxu1 }
 0x28d   : > { %v3858_v55 = vunpack.c.l.b16 %v3520_v49  ;;  %v2861_v56 = vmax.f32 %v2859_v12, %v2860_v50  ;;  %v2626_v62 = vunpack.c.l.bf16 %v2498_v51  ;;  %v1958_v59 = vadd.f32 %v11016_v54, %v1957_v53  ;;  %v1124_v61 = vpop.f32.mrf.mxu0 }
 0x28e   : > { %v1125_v1 = vadd.f32 %v10976_v60, %v1124_v61  ;;  %v777_v49 = vpack.c.bf16 %v616_v43, %v615_v20 }
 0x28f   : > { %v3990_v2 = vsel %vm3972_vm6, %v3858_v55, %v3989_v13  ;;  %v2862_v3 = vrot.slane %v2861_v56, 1  ;;  %v2864_v4 = vrot.slane %v2626_v62, 4  ;;  %v2243_v6 = vmul.f32 0.2, %v1958_v59 }
 0x290   : > { %v1383_v0 = vmul.f32 0.2, %v1125_v1  ;;  %v617_v52 = vpop.trf.xlu1 }
 0x291   : > { %v2863_v5 = vmax.f32 %v2861_v56, %v2862_v3  ;;  %v2865_v7 = vmax.f32 %v2626_v62, %v2864_v4  ;;  %v2371_v19 = vmax.f32 %v1958_v59, %v2243_v6  ;;  %v11043_v50 = vpop.trf.xlu2 }
 0x292   : > { %v1511_v9 = vmax.f32 %v1125_v1, %v1383_v0 }
 0x293   : > { %v3521_v36 = vpack.c.bf16 %v2863_v5, %v2863_v5  ;;  %v2866_v14 = vrot.slane %v2865_v7, 2  ;;  %v2499_v58 = vpack.c.bf16 %v2371_v19, %v2371_v19 }
 0x294   : > { %v1618_v11 = vpack.c.bf16 %v1511_v9, %v1510_v8  ;;  %v1960_v15 = vpop.f32.mrf.mxu1 }
 0x295   : > { %v3859_v10 = vunpack.c.l.b16 %v3521_v36  ;;  %v2867_v16 = vmax.f32 %v2865_v7, %v2866_v14  ;;  %v2627_v18 = vunpack.c.l.bf16 %v2499_v58  ;;  %v1127_v21 = vpop.f32.mrf.mxu0  ;;  %v1961_v55 = vadd.f32 %v11016_v54, %v1960_v15 }
 0x296   : > { %v1128_v25 = vadd.f32 %v10976_v60, %v1127_v21 }
 0x297   : > { %v3991_v26 = vsel %vm3974_vm7, %v3859_v10, %v3990_v2  ;;  %v2868_v30 = vrot.slane %v2867_v16, 1  ;;  %v2870_v28 = vrot.slane %v2627_v18, 4  ;;  %8496 = vmatmul.msk.bf16.gmra.mxu1 %vm1698_vm2, %v1618_v11  ;;  %v2244_v4 = vmul.f32 0.2, %v1961_v55 }
 0x298   : > { %8425 = vmatmul.msk.bf16.gmra.mxu0 %vm816_vm1, %v776_v22  ;;  %v1384_v37 = vmul.f32 0.2, %v1128_v25  ;;  %v618_v9 = vpop.trf.xlu1 }
 0x299   : > { %v2869_v41 = vmax.f32 %v2867_v16, %v2868_v30  ;;  %v2871_v32 = vmax.f32 %v2627_v18, %v2870_v28  ;;  %v11056_v3 = vpop.trf.xlu2  ;;  %v2372_v36 = vmax.f32 %v1961_v55, %v2244_v4  ;;  %v778_v20 = vpack.c.bf16 %v618_v9, %v617_v52 }
 0x29a   : > { %v1512_v44 = vmax.f32 %v1128_v25, %v1384_v37 }
 0x29b   : > { %v3522_v57 = vpack.c.bf16 %v2869_v41, %v2869_v41  ;;  %v2872_v34 = vrot.slane %v2871_v32, 2 }
 0x29c   : > { %v1962_v29 = vpop.f32.mrf.mxu1 }
 0x29d   : > { %v3860_v35 = vunpack.c.l.b16 %v3522_v57  ;;  %v2873_v27 = vmax.f32 %v2871_v32, %v2872_v34  ;;  %v1129_v33 = vpop.f32.mrf.mxu0  ;;  %v1963_v56 = vadd.f32 %v11016_v54, %v1962_v29 }
 0x29e   : > { %v1130_v38 = vadd.f32 %v10976_v60, %v1129_v33 }
 0x29f   : > { %v3992_v42 = vsel %vm3976_vm8, %v3860_v35, %v3991_v26  ;;  %v2874_v40 = vrot.slane %v2873_v27, 1  ;;  %v2245_v6 = vmul.f32 0.2, %v1963_v56  ;;  %v2500_v26 = vpack.c.bf16 %v2372_v36, %v2372_v36 }
 0x2a0   : > { %v1385_v13 = vmul.f32 0.2, %v1130_v38 }
 0x2a1   : > { %v2875_v31 = vmax.f32 %v2873_v27, %v2874_v40  ;;  %v2373_v14 = vmax.f32 %v1963_v56, %v2245_v6  ;;  %v11059_v21 = vpop.trf.xlu2  ;;  %v2628_v34 = vunpack.c.l.bf16 %v2500_v26  ;;  %v779_v6 = vpack.c.bf16 %v11040_v39, %v11033_v23 }
 0x2a2   : > { %v1513_v45 = vmax.f32 %v1130_v38, %v1385_v13 }
 0x2a3   : > { %v3523_v46 = vpack.c.bf16 %v2875_v31, %v2875_v31  ;;  %v2501_v30 = vpack.c.bf16 %v2373_v14, %v2373_v14 }
 0x2a4   : > { %v1619_v47 = vpack.c.bf16 %v1513_v45, %v1512_v44  ;;  %v1965_v12 = vpop.f32.mrf.mxu1  ;;  %v2876_v44 = vrot.slane %v2628_v34, 4 }
 0x2a5   : > { %v3861_v17 = vunpack.c.l.b16 %v3523_v46  ;;  %v1132_v48 = vpop.f32.mrf.mxu0  ;;  %v1966_v59 = vadd.f32 %v11016_v54, %v1965_v12  ;;  %v2629_v29 = vunpack.c.l.bf16 %v2501_v30 }
 0x2a6   : > { %v1133_v53 = vadd.f32 %v10976_v60, %v1132_v48  ;;  %v2877_v55 = vmax.f32 %v2628_v34, %v2876_v44 }
 0x2a7   : > { %v11046_v51 = vsel %vm3978_vm9, %v3861_v17, %v3992_v42  ;;  %8497 = vmatmul.msk.bf16.gmra.mxu1 %vm1698_vm2, %v1619_v47  ;;  %v2246_v5 = vmul.f32 0.2, %v1966_v59  ;;  %v2882_v45 = vrot.slane %v2629_v29, 4 }
 0x2a8   : > { %8426 = vmatmul.msk.bf16.gmra.mxu0 %vm816_vm1, %v777_v49  ;;  %v1386_v63 = vmul.f32 0.2, %v1133_v53 }
 0x2a9   : > { %v2374_v15 = vmax.f32 %v1966_v59, %v2246_v5  ;;  %v11066_v43 = vpop.trf.xlu2  ;;  %v2883_v56 = vmax.f32 %v2629_v29, %v2882_v45 }
 0x2aa   : > { %v1514_v7 = vmax.f32 %v1133_v53, %v1386_v63 }
 0x2ab   : > { %v2502_v28 = vpack.c.bf16 %v2374_v15, %v2374_v15  ;;  %v2884_v9 = vrot.slane %v2883_v56, 2 }
 0x2ac   : > { %v1967_v62 = vpop.f32.mrf.mxu1 }
 0x2ad   : > { %v1134_v61 = vpop.f32.mrf.mxu0  ;;  %v1968_v1 = vadd.f32 %v11016_v54, %v1967_v62  ;;  %v2630_v27 = vunpack.c.l.bf16 %v2502_v28  ;;  %v2885_v39 = vmax.f32 %v2883_v56, %v2884_v9 }
 0x2ae   : > { %v1135_v2 = vadd.f32 %v10976_v60, %v1134_v61 }
 0x2af   : > { %v2247_v19 = vmul.f32 0.2, %v1968_v1  ;;  %v2888_v47 = vrot.slane %v2630_v27, 4 }
 0x2b0   : > { %v1387_v0 = vmul.f32 0.2, %v1135_v2 }
 0x2b1   : > { %v2375_v18 = vmax.f32 %v1968_v1, %v2247_v19  ;;  %v2889_v61 = vmax.f32 %v2630_v27, %v2888_v47 }
 0x2b2   : > { %v1515_v8 = vmax.f32 %v1135_v2, %v1387_v0  ;;  %v11071_v0 = vpop.trf.xlu2 }
 0x2b3   : > { %v2503_v32 = vpack.c.bf16 %v2375_v18, %v2375_v18  ;;  %v2890_v36 = vrot.slane %v2889_v61, 2 }
 0x2b4   : > { %v1620_v58 = vpack.c.bf16 %v1515_v8, %v1514_v7  ;;  %v1970_v11 = vpop.f32.mrf.mxu1  ;;  %v2878_v8 = vrot.slane %v2877_v55, 2 }
 0x2b5   : > { %v1971_v10 = vadd.f32 %v11016_v54, %v1970_v11  ;;  %v1137_v16 = vpop.f32.mrf.mxu0  ;;  %v2631_v38 = vunpack.c.l.bf16 %v2503_v32 }
 0x2b6   : > { %v1138_v25 = vadd.f32 %v10976_v60, %v1137_v16  ;;  %v2879_v23 = vmax.f32 %v2877_v55, %v2878_v8 }
 0x2b7   : > { %v2248_v22 = vmul.f32 0.2, %v1971_v10  ;;  %8498 = vmatmul.msk.bf16.gmra.mxu1 %vm1698_vm2, %v1620_v58  ;;  %v2894_v17 = vrot.slane %v2631_v38, 4 }
 0x2b8   : > { %8427 = vmatmul.msk.bf16.gmra.mxu0 %vm816_vm1, %v778_v20  ;;  %v1388_v42 = vmul.f32 0.2, %v1138_v25  ;;  %v2880_v27 = vrot.slane %v2879_v23, 1 }
 0x2b9   : > { %v2376_v41 = vmax.f32 %v1971_v10, %v2248_v22  ;;  %v2895_v4 = vmax.f32 %v2631_v38, %v2894_v17  ;;  %v2891_v22 = vmax.f32 %v2889_v61, %v2890_v36 }
 0x2ba   : > { %v1516_v48 = vmax.f32 %v1138_v25, %v1388_v42  ;;  %v2881_v17 = vmax.f32 %v2879_v23, %v2880_v27 }
 0x2bb   : > { %v2504_v57 = vpack.c.bf16 %v2376_v41, %v2376_v41  ;;  %v2896_v11 = vrot.slane %v2895_v4, 2  ;;  %v2892_v42 = vrot.slane %v2891_v22, 1 }
 0x2bc   : > { %v1972_v35 = vpop.f32.mrf.mxu1 }
 0x2bd   : > { %v1973_v33 = vadd.f32 %v11016_v54, %v1972_v35  ;;  %v1139_v37 = vpop.f32.mrf.mxu0  ;;  %v2632_v13 = vunpack.c.l.bf16 %v2504_v57  ;;  %v2897_v41 = vmax.f32 %v2895_v4, %v2896_v11  ;;  %v11078_v57 = vpop.trf.xlu2  ;;  %v2893_v55 = vmax.f32 %v2891_v22, %v2892_v42 }
 0x2be   : > { %v1140_v40 = vadd.f32 %v10976_v60, %v1139_v37 }
 0x2bf   : > { %v2249_v31 = vmul.f32 0.2, %v1973_v33  ;;  %v2900_v52 = vrot.slane %v2632_v13, 4  ;;  %v3526_v36 = vpack.c.bf16 %v2893_v55, %v2893_v55 }
 0x2c0   : > { %v1389_v46 = vmul.f32 0.2, %v1140_v40 }
 0x2c1   : > { %v2377_v12 = vmax.f32 %v1973_v33, %v2249_v31  ;;  %v2901_v5 = vmax.f32 %v2632_v13, %v2900_v52  ;;  %v2886_v33 = vrot.slane %v2885_v39, 1  ;;  %v2898_v31 = vrot.slane %v2897_v41, 1 }
 0x2c2   : > { %v1517_v49 = vmax.f32 %v1140_v40, %v1389_v46  ;;  %v3864_v22 = vunpack.c.l.b16 %v3526_v36 }
 0x2c3   : > { %v2505_v53 = vpack.c.bf16 %v2377_v12, %v2377_v12  ;;  %v2902_v10 = vrot.slane %v2901_v5, 2 }
 0x2c4   : > { %v1621_v62 = vpack.c.bf16 %v1517_v49, %v1516_v48  ;;  %v1975_v59 = vpop.f32.mrf.mxu1  ;;  %v2887_v48 = vmax.f32 %v2885_v39, %v2886_v33 }
 0x2c5   : > { %v2633_v63 = vunpack.c.l.bf16 %v2505_v53  ;;  %v1976_v1 = vadd.f32 %v11016_v54, %v1975_v59  ;;  %v1142_v2 = vpop.f32.mrf.mxu0  ;;  %v2903_v34 = vmax.f32 %v2901_v5, %v2902_v10 }
 0x2c6   : > { %v1143_v15 = vadd.f32 %v10976_v60, %v1142_v2  ;;  %v11083_v2 = vpop.trf.xlu2  ;;  %v3525_v8 = vpack.c.bf16 %v2887_v48, %v2887_v48 }
 0x2c7   : > { %v2906_v7 = vrot.slane %v2633_v63, 4  ;;  %v2250_v19 = vmul.f32 0.2, %v1976_v1  ;;  %8499 = vmatmul.msk.bf16.gmra.mxu1 %vm1698_vm2, %v1621_v62  ;;  %v2904_v46 = vrot.slane %v2903_v34, 1 }
 0x2c8   : > { %8428 = vmatmul.msk.bf16.gmra.mxu0 %vm816_vm1, %v779_v6  ;;  %v1390_v32 = vmul.f32 0.2, %v1143_v15  ;;  %v3863_v39 = vunpack.c.l.b16 %v3525_v8 }
 0x2c9   : > { %v2907_v14 = vmax.f32 %v2633_v63, %v2906_v7  ;;  %v2378_v58 = vmax.f32 %v1976_v1, %v2250_v19  ;;  %v2899_v63 = vmax.f32 %v2897_v41, %v2898_v31  ;;  %v780_v1 = vpack.c.bf16 %v11056_v3, %v11043_v50 }
 0x2ca   : > { %v1518_v44 = vmax.f32 %v1143_v15, %v1390_v32  ;;  %v2905_v4 = vmax.f32 %v2903_v34, %v2904_v46  ;;  %v3524_v19 = vpack.c.bf16 %v2881_v17, %v2881_v17 }
 0x2cb   : > { %v2506_v16 = vpack.c.bf16 %v2378_v58, %v2378_v58  ;;  %v2908_v18 = vrot.slane %v2907_v14, 2  ;;  %v3527_v11 = vpack.c.bf16 %v2899_v63, %v2899_v63 }
 0x2cc   : > { %v1977_v20 = vpop.f32.mrf.mxu1  ;;  %v3528_v3 = vpack.c.bf16 %v2905_v4, %v2905_v4  ;;  %v3862_v23 = vunpack.c.l.b16 %v3524_v19 }
 0x2cd   : > { %v2634_v26 = vunpack.c.l.bf16 %v2506_v16  ;;  %v1978_v30 = vadd.f32 %v11016_v54, %v1977_v20  ;;  %v1144_v28 = vpop.f32.mrf.mxu0  ;;  %v2909_v37 = vmax.f32 %v2907_v14, %v2908_v18  ;;  %v3865_v32 = vunpack.c.l.b16 %v3527_v11 }
 0x2ce   : > { %v1145_v25 = vadd.f32 %v10976_v60, %v1144_v28  ;;  %v3866_v27 = vunpack.c.l.b16 %v3528_v3  ;;  %v3994_v42 = vsel %vm3966_vm3, %v3863_v39, %v3862_v23 }
 0x2cf   : > { %v2912_v29 = vrot.slane %v2634_v26, 4  ;;  %v2251_v35 = vmul.f32 0.2, %v1978_v30  ;;  %v2910_v49 = vrot.slane %v2909_v37, 1  ;;  %v3995_v31 = vsel %vm3968_vm4, %v3864_v22, %v3994_v42 }
 0x2d0   : > { %v1391_v38 = vmul.f32 0.2, %v1145_v25 }
 0x2d1   : > { %v2913_v40 = vmax.f32 %v2634_v26, %v2912_v29  ;;  %v2379_v13 = vmax.f32 %v1978_v30, %v2251_v35  ;;  %v2911_v9 = vmax.f32 %v2909_v37, %v2910_v49  ;;  %v11090_v35 = vpop.trf.xlu2 }
 0x2d2   : > { %v1519_v45 = vmax.f32 %v1145_v25, %v1391_v38 }
 0x2d3   : > { %v2914_v47 = vrot.slane %v2913_v40, 2  ;;  %v2507_v12 = vpack.c.bf16 %v2379_v13, %v2379_v13  ;;  %v3529_v18 = vpack.c.bf16 %v2911_v9, %v2911_v9 }
 0x2d4   : > { %v1622_v52 = vpack.c.bf16 %v1519_v45, %v1518_v44  ;;  %v1980_v53 = vpop.f32.mrf.mxu1 }
 0x2d5   : > { %v2915_v56 = vmax.f32 %v2913_v40, %v2914_v47  ;;  %v2635_v62 = vunpack.c.l.bf16 %v2507_v12  ;;  %v1981_v59 = vadd.f32 %v11016_v54, %v1980_v53  ;;  %v1147_v61 = vpop.f32.mrf.mxu0  ;;  %v3867_v40 = vunpack.c.l.b16 %v3529_v18 }
 0x2d6   : > { %v1148_v50 = vadd.f32 %v10976_v60, %v1147_v61  ;;  %v3996_v47 = vsel %vm3970_vm5, %v3865_v32, %v3995_v31 }
 0x2d7   : > { %v2916_v6 = vrot.slane %v2915_v56, 1  ;;  %v2918_v5 = vrot.slane %v2635_v62, 4  ;;  %v2252_v7 = vmul.f32 0.2, %v1981_v59  ;;  %8500 = vmatmul.msk.bf16.gmra.mxu1 %vm1698_vm2, %v1622_v52  ;;  %v3997_v49 = vsel %vm3972_vm6, %v3866_v27, %v3996_v47  ;;  %v8394_v27 = vld [vmem:[%s10787_s14 + $0x30] sm:$0x3f] }
 0x2d8   : > { %8429 = vmatmul.msk.bf16.gmra.mxu0 %vm816_vm1, %v780_v1  ;;  %v1392_v34 = vmul.f32 0.2, %v1148_v50  ;;  %683 = vxpose.xlu0.b32.start.end [1/1] (short) %v8394_v27, 128  ;;  %v783_v27 = vpack.c.bf16 %v11090_v35, %v11083_v2 }
 0x2d9   : > { %v2919_v14 = vmax.f32 %v2635_v62, %v2918_v5  ;;  %v2380_v58 = vmax.f32 %v1981_v59, %v2252_v7  ;;  %v2917_v15 = vmax.f32 %v2915_v56, %v2916_v6  ;;  %v3998_v56 = vsel %vm3974_vm7, %v3867_v40, %v3997_v49  ;;  %v11101_v19 = vpop.trf.xlu2 }
 0x2da   : > { %v1520_v17 = vmax.f32 %v1148_v50, %v1392_v34  ;;  %v781_v7 = vpack.c.bf16 %v11066_v43, %v11059_v21 }
 0x2db   : > { %v2920_v10 = vrot.slane %v2919_v14, 2  ;;  %v2508_v16 = vpack.c.bf16 %v2380_v58, %v2380_v58  ;;  %v3530_v25 = vpack.c.bf16 %v2917_v15, %v2917_v15 }
 0x2dc   : > { %v1982_v20 = vpop.f32.mrf.mxu1 }
 0x2dd   : > { %v2921_v26 = vmax.f32 %v2919_v14, %v2920_v10  ;;  %v2636_v30 = vunpack.c.l.bf16 %v2508_v16  ;;  %v1983_v28 = vadd.f32 %v11016_v54, %v1982_v20  ;;  %v1149_v41 = vpop.f32.mrf.mxu0  ;;  %v3868_v12 = vunpack.c.l.b16 %v3530_v25 }
 0x2de   : > { %v1150_v29 = vadd.f32 %v10976_v60, %v1149_v41 }
 0x2df   : > { %v2922_v33 = vrot.slane %v2921_v26, 1  ;;  %v2924_v37 = vrot.slane %v2636_v30, 4  ;;  %v2253_v38 = vmul.f32 0.2, %v1983_v28  ;;  %v3999_v5 = vsel %vm3976_vm8, %v3868_v12, %v3998_v56 }
 0x2e0   : > { %v1393_v13 = vmul.f32 0.2, %v1150_v29 }
 0x2e1   : > { %v2923_v44 = vmax.f32 %v2921_v26, %v2922_v33  ;;  %v2925_v45 = vmax.f32 %v2636_v30, %v2924_v37  ;;  %v2381_v46 = vmax.f32 %v1983_v28, %v2253_v38  ;;  %v11114_v22 = vpop.trf.xlu2 }
 0x2e2   : > { %v1521_v48 = vmax.f32 %v1150_v29, %v1393_v13 }
 0x2e3   : > { %v3531_v52 = vpack.c.bf16 %v2923_v44, %v2923_v44  ;;  %v2926_v53 = vrot.slane %v2925_v45, 2  ;;  %v2509_v55 = vpack.c.bf16 %v2381_v46, %v2381_v46 }
 0x2e4   : > { %v1623_v62 = vpack.c.bf16 %v1521_v48, %v1520_v17  ;;  %v1985_v59 = vpop.f32.mrf.mxu1  ;;  %v782_v48 = vpack.c.bf16 %v11078_v57, %v11071_v0 }
 0x2e5   : > { %v3869_v61 = vunpack.c.l.b16 %v3531_v52  ;;  %v2927_v63 = vmax.f32 %v2925_v45, %v2926_v53  ;;  %v2637_v1 = vunpack.c.l.bf16 %v2509_v55  ;;  %v1986_v4 = vadd.f32 %v11016_v54, %v1985_v59  ;;  %v1152_v6 = vpop.f32.mrf.mxu0 }
 0x2e6   : > { %v1153_v50 = vadd.f32 %v10976_v60, %v1152_v6 }
 0x2e7   : > { %v4000_v8 = vsel %vm3978_vm9, %v3869_v61, %v3999_v5  ;;  %v2930_v9 = vrot.slane %v2637_v1, 4  ;;  %v2254_v36 = vmul.f32 0.2, %v1986_v4  ;;  %8501 = vmatmul.msk.bf16.gmra.mxu1 %vm1698_vm2, %v1623_v62  ;;  %v2928_v58 = vrot.slane %v2927_v63, 1 }
 0x2e8   : > { %v11106_v14 = vpack.c.b16 %v4000_v8, %v11046_v51  ;;  %8430 = vmatmul.msk.bf16.gmra.mxu0 %vm816_vm1, %v781_v7  ;;  %v1394_v18 = vmul.f32 0.2, %v1153_v50 }
 0x2e9   : > { %v2931_v11 = vmax.f32 %v2637_v1, %v2930_v9  ;;  %v2382_v15 = vmax.f32 %v1986_v4, %v2254_v36  ;;  %v2929_v3 = vmax.f32 %v2927_v63, %v2928_v58  ;;  %v11120_v49 = vpop.trf.xlu2 }
 0x2ea   : > { %4434 = vmatmul.bf16.gmra.mxu2 %v11106_v14  ;;  %4483 = vmatmul.bf16.gmra.mxu3 %v11106_v14  ;;  %v1522_v33 = vmax.f32 %v1153_v50, %v1394_v18 }
 0x2eb   : > { %v2932_v21 = vrot.slane %v2931_v11, 2  ;;  %v2510_v43 = vpack.c.bf16 %v2382_v15, %v2382_v15  ;;  %v3532_v41 = vpack.c.bf16 %v2929_v3, %v2929_v3 }
 0x2ec   : > { %v1987_v10 = vpop.f32.mrf.mxu1 }
 0x2ed   : > { %v2933_v16 = vmax.f32 %v2931_v11, %v2932_v21  ;;  %v2638_v23 = vunpack.c.l.bf16 %v2510_v43  ;;  %v1988_v51 = vadd.f32 %v11016_v54, %v1987_v10  ;;  %v1154_v39 = vpop.f32.mrf.mxu0  ;;  %v3870_v13 = vunpack.c.l.b16 %v3532_v41 }
 0x2ee   : > { %v1155_v20 = vadd.f32 %v10976_v60, %v1154_v39 }
 0x2ef   : > { %v2934_v26 = vrot.slane %v2933_v16, 1  ;;  %v2936_v30 = vrot.slane %v2638_v23, 4  ;;  %v2255_v28 = vmul.f32 0.2, %v1988_v51 }
 0x2f0   : > { %v1395_v32 = vmul.f32 0.2, %v1155_v20 }
 0x2f1   : > { %v2935_v25 = vmax.f32 %v2933_v16, %v2934_v26  ;;  %v2937_v34 = vmax.f32 %v2638_v23, %v2936_v30  ;;  %v2383_v29 = vmax.f32 %v1988_v51, %v2255_v28  ;;  %v11128_v11 = vpop.trf.xlu2 }
 0x2f2   : > { %v1523_v37 = vmax.f32 %v1155_v20, %v1395_v32 }
 0x2f3   : > { %v3533_v38 = vpack.c.bf16 %v2935_v25, %v2935_v25  ;;  %v2938_v42 = vrot.slane %v2937_v34, 2  ;;  %v2511_v40 = vpack.c.bf16 %v2383_v29, %v2383_v29 }
 0x2f4   : > { %v1624_v31 = vpack.c.bf16 %v1523_v37, %v1522_v33  ;;  %v1990_v44 = vpop.f32.mrf.mxu1 }
 0x2f5   : > { %v3871_v45 = vunpack.c.l.b16 %v3533_v38  ;;  %v2939_v46 = vmax.f32 %v2937_v34, %v2938_v42  ;;  %v2639_v47 = vunpack.c.l.bf16 %v2511_v40  ;;  %v1991_v12 = vadd.f32 %v11016_v54, %v1990_v44  ;;  %v1157_v17 = vpop.f32.mrf.mxu0 }
 0x2f6   : > { %v1158_v63 = vadd.f32 %v10976_v60, %v1157_v17 }
 0x2f7   : > { %v4001_v52 = vsel %vm3966_vm3, %v3871_v45, %v3870_v13  ;;  %v2940_v53 = vrot.slane %v2939_v46, 1  ;;  %v2942_v55 = vrot.slane %v2639_v47, 4  ;;  %v2256_v56 = vmul.f32 0.2, %v1991_v12  ;;  %8502 = vmatmul.msk.bf16.gmra.mxu1 %vm1698_vm2, %v1624_v31 }
 0x2f8   : > { %8431 = vmatmul.msk.bf16.gmra.mxu0 %vm816_vm1, %v782_v48  ;;  %v1396_v36 = vmul.f32 0.2, %v1158_v63 }
 0x2f9   : > { %v2941_v62 = vmax.f32 %v2939_v46, %v2940_v53  ;;  %v2943_v59 = vmax.f32 %v2639_v47, %v2942_v55  ;;  %v2384_v61 = vmax.f32 %v1991_v12, %v2256_v56  ;;  %v11137_v40 = vpop.trf.xlu2  ;;  %v11144_v56 = vld [vmem:[%s13725_s2] ss:$0 sm:$0xff] }
 0x2fa   : > { %v1524_v51 = vmax.f32 %v1158_v63, %v1396_v36 }
 0x2fb   : > { %v3534_v1 = vpack.c.bf16 %v2941_v62, %v2941_v62  ;;  %v2944_v4 = vrot.slane %v2943_v59, 2  ;;  %v2512_v6 = vpack.c.bf16 %v2384_v61, %v2384_v61 }
 0x2fc   : > { %v1992_v0 = vpop.f32.mrf.mxu1 }
 0x2fd   : > { %v3872_v57 = vunpack.c.l.b16 %v3534_v1  ;;  %v2945_v5 = vmax.f32 %v2943_v59, %v2944_v4  ;;  %v2640_v7 = vunpack.c.l.bf16 %v2512_v6  ;;  %v1993_v8 = vadd.f32 %v11016_v54, %v1992_v0  ;;  %v1159_v9 = vpop.f32.mrf.mxu0 }
 0x2fe   : > { %v1160_v58 = vadd.f32 %v10976_v60, %v1159_v9 }
 0x2ff   : > { %v4002_v15 = vsel %vm3968_vm4, %v3872_v57, %v4001_v52  ;;  %v2946_v50 = vrot.slane %v2945_v5, 1  ;;  %v2948_v21 = vrot.slane %v2640_v7, 4  ;;  %v2257_v43 = vmul.f32 0.2, %v1993_v8 }
 0x300   : > { %v1397_v3 = vmul.f32 0.2, %v1160_v58 }
 0x301   : > { %v2947_v10 = vmax.f32 %v2945_v5, %v2946_v50  ;;  %v2949_v16 = vmax.f32 %v2640_v7, %v2948_v21  ;;  %v2385_v23 = vmax.f32 %v1993_v8, %v2257_v43  ;;  %v11148_v7 = vpop.trf.xlu2 }
 0x302   : > { %v1525_v39 = vmax.f32 %v1160_v58, %v1397_v3 }
 0x303   : > { %v3535_v18 = vpack.c.bf16 %v2947_v10, %v2947_v10  ;;  %v2950_v20 = vrot.slane %v2949_v16, 2  ;;  %v2513_v26 = vpack.c.bf16 %v2385_v23, %v2385_v23  ;;  %v784_v10 = vpack.c.bf16 %v11114_v22, %v11101_v19 }
 0x304   : > { %v1625_v30 = vpack.c.bf16 %v1525_v39, %v1524_v51  ;;  %v1995_v28 = vpop.f32.mrf.mxu1 }
 0x305   : > { %v3873_v41 = vunpack.c.l.b16 %v3535_v18  ;;  %v2951_v32 = vmax.f32 %v2949_v16, %v2950_v20  ;;  %v2641_v25 = vunpack.c.l.bf16 %v2513_v26  ;;  %v1996_v34 = vadd.f32 %v11016_v54, %v1995_v28  ;;  %v1162_v29 = vpop.f32.mrf.mxu0 }
 0x306   : > { %v1163_v45 = vadd.f32 %v10976_v60, %v1162_v29 }
 0x307   : > { %v4003_v33 = vsel %vm3970_vm5, %v3873_v41, %v4002_v15  ;;  %v2952_v37 = vrot.slane %v2951_v32, 1  ;;  %v2954_v38 = vrot.slane %v2641_v25, 4  ;;  %v2258_v42 = vmul.f32 0.2, %v1996_v34  ;;  %8503 = vmatmul.msk.bf16.gmra.mxu1 %vm1698_vm2, %v1625_v30 }
 0x308   : > { %8432 = vmatmul.msk.bf16.gmra.mxu0 %vm816_vm1, %v783_v27  ;;  %v1398_v55 = vmul.f32 0.2, %v1163_v45 }
 0x309   : > { %v2953_v13 = vmax.f32 %v2951_v32, %v2952_v37  ;;  %v2955_v31 = vmax.f32 %v2641_v25, %v2954_v38  ;;  %v2386_v44 = vmax.f32 %v1996_v34, %v2258_v42  ;;  %v11156_v41 = vpop.trf.xlu2 }
 0x30a   : > { %v1526_v57 = vmax.f32 %v1163_v45, %v1398_v55 }
 0x30b   : > { %v3536_v46 = vpack.c.bf16 %v2953_v13, %v2953_v13  ;;  %v2956_v47 = vrot.slane %v2955_v31, 2  ;;  %v2514_v12 = vpack.c.bf16 %v2386_v44, %v2386_v44 }
 0x30c   : > { %v1997_v2 = vpop.f32.mrf.mxu1 }
 0x30d   : > { %v3874_v35 = vunpack.c.l.b16 %v3536_v46  ;;  %v2957_v17 = vmax.f32 %v2955_v31, %v2956_v47  ;;  %v2642_v48 = vunpack.c.l.bf16 %v2514_v12  ;;  %v1998_v52 = vadd.f32 %v11016_v54, %v1997_v2  ;;  %v1164_v53 = vpop.f32.mrf.mxu0 }
 0x30e   : > { %v1165_v62 = vadd.f32 %v11144_v56, %v1164_v53  ;;  %v785_v47 = vpack.c.bf16 %v11128_v11, %v11120_v49 }
 0x30f   : > { %v4004_v60 = vsel %vm3972_vm6, %v3874_v35, %v4003_v33  ;;  %v2958_v59 = vrot.slane %v2957_v17, 1  ;;  %v2960_v61 = vrot.slane %v2642_v48, 4  ;;  %v2259_v63 = vmul.f32 0.2, %v1998_v52 }
 0x310   : > { %v1399_v1 = vmul.f32 0.2, %v1165_v62 }
 0x311   : > { %v2959_v4 = vmax.f32 %v2957_v17, %v2958_v59  ;;  %v2961_v6 = vmax.f32 %v2642_v48, %v2960_v61  ;;  %v2387_v0 = vmax.f32 %v1998_v52, %v2259_v63  ;;  %v11162_v12 = vpop.trf.xlu2 }
 0x312   : > { %v1527_v5 = vmax.f32 %v1165_v62, %v1399_v1 }
 0x313   : > { %v3537_v8 = vpack.c.bf16 %v2959_v4, %v2959_v4  ;;  %v2962_v9 = vrot.slane %v2961_v6, 2  ;;  %v2515_v36 = vpack.c.bf16 %v2387_v0, %v2387_v0 }
 0x314   : > { %v1626_v58 = vpack.c.bf16 %v1527_v5, %v1526_v57  ;;  %v2000_v15 = vpop.f32.mrf.mxu1 }
 0x315   : > { %v3875_v50 = vunpack.c.l.b16 %v3537_v8  ;;  %v2963_v21 = vmax.f32 %v2961_v6, %v2962_v9  ;;  %v2643_v43 = vunpack.c.l.bf16 %v2515_v36  ;;  %v1167_v3 = vpop.f32.mrf.mxu0  ;;  %v2001_v17 = vadd.f32 %v11016_v54, %v2000_v15 }
 0x316   : > { %v1168_v20 = vadd.f32 %v11144_v56, %v1167_v3 }
 0x317   : > { %v4005_v16 = vsel %vm3974_vm7, %v3875_v50, %v4004_v60  ;;  %v2964_v23 = vrot.slane %v2963_v21, 1  ;;  %v2966_v51 = vrot.slane %v2643_v43, 4  ;;  %8504 = vmatmul.msk.bf16.gmra.mxu1 %vm1698_vm2, %v1626_v58  ;;  %v2260_v60 = vmul.f32 0.2, %v2001_v17 }
 0x318   : > { %8433 = vmatmul.msk.bf16.gmra.mxu0 %vm816_vm1, %v784_v10  ;;  %v1400_v22 = vmul.f32 0.2, %v1168_v20 }
 0x319   : > { %v2965_v39 = vmax.f32 %v2963_v21, %v2964_v23  ;;  %v2967_v18 = vmax.f32 %v2643_v43, %v2966_v51  ;;  %v11175_v63 = vpop.trf.xlu2  ;;  %v2388_v57 = vmax.f32 %v2001_v17, %v2260_v60  ;;  %v786_v21 = vpack.c.bf16 %v11148_v7, %v11137_v40 }
 0x31a   : > { %v1528_v38 = vmax.f32 %v1168_v20, %v1400_v22  ;;  %v787_v60 = vpack.c.bf16 %v11162_v12, %v11156_v41 }
 0x31b   : > { %v3538_v26 = vpack.c.bf16 %v2965_v39, %v2965_v39  ;;  %v2968_v30 = vrot.slane %v2967_v18, 2  ;;  %v2516_v3 = vpack.c.bf16 %v2388_v57, %v2388_v57 }
 0x31c   : > { %v2002_v28 = vpop.f32.mrf.mxu1 }
 0x31d   : > { %v3876_v32 = vunpack.c.l.b16 %v3538_v26  ;;  %v2969_v25 = vmax.f32 %v2967_v18, %v2968_v30  ;;  %v1169_v19 = vpop.f32.mrf.mxu0  ;;  %v2003_v48 = vadd.f32 %v11016_v54, %v2002_v28  ;;  %v2644_v26 = vunpack.c.l.bf16 %v2516_v3 }
 0x31e   : > { %v1170_v34 = vadd.f32 %v11144_v56, %v1169_v19 }
 0x31f   : > { %v4006_v29 = vsel %vm3976_vm8, %v3876_v32, %v4005_v16  ;;  %v2970_v27 = vrot.slane %v2969_v25, 1  ;;  %v2261_v59 = vmul.f32 0.2, %v2003_v48 }
 0x320   : > { %v1401_v33 = vmul.f32 0.2, %v1170_v34 }
 0x321   : > { %v2971_v37 = vmax.f32 %v2969_v25, %v2970_v27  ;;  %v2389_v5 = vmax.f32 %v2003_v48, %v2261_v59  ;;  %v11183_v18 = vpop.trf.xlu2  ;;  %v2972_v27 = vrot.slane %v2644_v26, 4 }
 0x322   : > { %v1529_v42 = vmax.f32 %v1170_v34, %v1401_v33 }
 0x323   : > { %v3539_v13 = vpack.c.bf16 %v2971_v37, %v2971_v37  ;;  %v2517_v10 = vpack.c.bf16 %v2389_v5, %v2389_v5 }
 0x324   : > { %v1627_v31 = vpack.c.bf16 %v1529_v42, %v1528_v38  ;;  %v2005_v44 = vpop.f32.mrf.mxu1 }
 0x325   : > { %v3877_v45 = vunpack.c.l.b16 %v3539_v13  ;;  %v1172_v46 = vpop.f32.mrf.mxu0  ;;  %v2006_v53 = vadd.f32 %v11016_v54, %v2005_v44  ;;  %v2645_v30 = vunpack.c.l.bf16 %v2517_v10 }
 0x326   : > { %v1173_v35 = vadd.f32 %v11144_v56, %v1172_v46 }
 0x327   : > { %v11165_v2 = vsel %vm3978_vm9, %v3877_v45, %v4006_v29  ;;  %8505 = vmatmul.msk.bf16.gmra.mxu1 %vm1698_vm2, %v1627_v31  ;;  %v2262_v1 = vmul.f32 0.2, %v2006_v53  ;;  %v2978_v33 = vrot.slane %v2645_v30, 4 }
 0x328   : > { %8434 = vmatmul.msk.bf16.gmra.mxu0 %vm816_vm1, %v785_v47  ;;  %v1402_v49 = vmul.f32 0.2, %v1173_v35  ;;  %v2973_v47 = vmax.f32 %v2644_v26, %v2972_v27 }
 0x329   : > { %v2390_v36 = vmax.f32 %v2006_v53, %v2262_v1  ;;  %v11187_v48 = vpop.trf.xlu2 }
 0x32a   : > { %v1530_v4 = vmax.f32 %v1173_v35, %v1402_v49  ;;  %v2979_v35 = vmax.f32 %v2645_v30, %v2978_v33 }
 0x32b   : > { %v2518_v16 = vpack.c.bf16 %v2390_v36, %v2390_v36 }
 0x32c   : > { %v2007_v52 = vpop.f32.mrf.mxu1 }
 0x32d   : > { %v1174_v55 = vpop.f32.mrf.mxu0  ;;  %v2008_v11 = vadd.f32 %v11016_v54, %v2007_v52  ;;  %v2646_v32 = vunpack.c.l.bf16 %v2518_v16 }
 0x32e   : > { %v1175_v62 = vadd.f32 %v11144_v56, %v1174_v55  ;;  %v11192_v55 = vld [vmem:[%s13727_s4] ss:$0 sm:$0xff] }
 0x32f   : > { %v2263_v6 = vmul.f32 0.2, %v2008_v11  ;;  %v2984_v38 = vrot.slane %v2646_v32, 4 }
 0x330   : > { %v1403_v61 = vmul.f32 0.2, %v1175_v62 }
 0x331   : > { %v2391_v50 = vmax.f32 %v2008_v11, %v2263_v6  ;;  %v2985_v52 = vmax.f32 %v2646_v32, %v2984_v38  ;;  %v2980_v6 = vrot.slane %v2979_v35, 2 }
 0x332   : > { %v1531_v0 = vmax.f32 %v1175_v62, %v1403_v61 }
 0x333   : > { %v2519_v51 = vpack.c.bf16 %v2391_v50, %v2391_v50  ;;  %v2981_v50 = vmax.f32 %v2979_v35, %v2980_v6 }
 0x334   : > { %v1628_v8 = vpack.c.bf16 %v1531_v0, %v1530_v4  ;;  %v2010_v9 = vpop.f32.mrf.mxu1  ;;  %v2974_v4 = vrot.slane %v2973_v47, 2  ;;  %v2986_v0 = vrot.slane %v2985_v52, 2 }
 0x335   : > { %v2011_v58 = vadd.f32 %v11016_v54, %v2010_v9  ;;  %v1177_v15 = vpop.f32.mrf.mxu0  ;;  %v2647_v25 = vunpack.c.l.bf16 %v2519_v51 }
 0x336   : > { %v1178_v39 = vadd.f32 %v11144_v56, %v1177_v15  ;;  %v2975_v15 = vmax.f32 %v2973_v47, %v2974_v4 }
 0x337   : > { %v2264_v43 = vmul.f32 0.2, %v2011_v58  ;;  %8506 = vmatmul.msk.bf16.gmra.mxu1 %vm1698_vm2, %v1628_v8  ;;  %v2990_v13 = vrot.slane %v2647_v25, 4 }
 0x338   : > { %8435 = vmatmul.msk.bf16.gmra.mxu0 %vm816_vm1, %v786_v21  ;;  %v1404_v19 = vmul.f32 0.2, %v1178_v39  ;;  %v2987_v21 = vmax.f32 %v2985_v52, %v2986_v0  ;;  %v2976_v32 = vrot.slane %v2975_v15, 1 }
 0x339   : > { %v2392_v23 = vmax.f32 %v2011_v58, %v2264_v43  ;;  %v2991_v62 = vmax.f32 %v2647_v25, %v2990_v13 }
 0x33a   : > { %v1532_v31 = vmax.f32 %v1178_v39, %v1404_v19  ;;  %v11202_v39 = vpop.trf.xlu2  ;;  %v2988_v19 = vrot.slane %v2987_v21, 1 }
 0x33b   : > { %v2520_v20 = vpack.c.bf16 %v2392_v23, %v2392_v23  ;;  %v2992_v8 = vrot.slane %v2991_v62, 2 }
 0x33c   : > { %v2012_v28 = vpop.f32.mrf.mxu1  ;;  %v2989_v35 = vmax.f32 %v2987_v21, %v2988_v19 }
 0x33d   : > { %v2013_v40 = vadd.f32 %v11016_v54, %v2012_v28  ;;  %v1179_v7 = vpop.f32.mrf.mxu0  ;;  %v2648_v34 = vunpack.c.l.bf16 %v2520_v20  ;;  %v2993_v16 = vmax.f32 %v2991_v62, %v2992_v8  ;;  %v4430_v20 = vpop.f32.mrf.mxu2  ;;  %v788_v62 = vpack.c.bf16 %v11183_v18, %v11175_v63 }
 0x33e   : > { %v1180_v22 = vadd.f32 %v11144_v56, %v1179_v7 }
 0x33f   : > { %v2265_v29 = vmul.f32 0.2, %v2013_v40  ;;  %v2996_v45 = vrot.slane %v2648_v34, 4 }
 0x340   : > { %v1405_v37 = vmul.f32 0.2, %v1180_v22 }
 0x341   : > { %v2393_v42 = vmax.f32 %v2013_v40, %v2265_v29  ;;  %v2997_v59 = vmax.f32 %v2648_v34, %v2996_v45  ;;  %v2982_v40 = vrot.slane %v2981_v50, 1  ;;  %v2994_v29 = vrot.slane %v2993_v16, 1 }
 0x342   : > { %v1533_v44 = vmax.f32 %v1180_v22, %v1405_v37  ;;  %v3692_v37 = vld [vmem:[%s13729_s6] sm:$0xff] }
 0x343   : > { %v2521_v46 = vpack.c.bf16 %v2393_v42, %v2393_v42  ;;  %v2998_v36 = vrot.slane %v2997_v59, 2  ;;  %v11218_v63 = vperm.slane %v3692_v37, 1 }
 0x344   : > { %v1629_v54 = vpack.c.bf16 %v1533_v44, %v1532_v31  ;;  %v2015_v17 = vpop.f32.mrf.mxu1  ;;  %v2977_v31 = vmax.f32 %v2975_v15, %v2976_v32  ;;  %v2983_v44 = vmax.f32 %v2981_v50, %v2982_v40 }
 0x345   : > { %v2649_v53 = vunpack.c.l.bf16 %v2521_v46  ;;  %v2016_v49 = vadd.f32 %v11192_v55, %v2015_v17  ;;  %v1182_v11 = vpop.f32.mrf.mxu0  ;;  %v2999_v26 = vmax.f32 %v2997_v59, %v2998_v36  ;;  %v4432_v8 = vpop.f32.mrf.mxu2 }
 0x346   : > { %v1183_v9 = vadd.f32 %v11144_v56, %v1182_v11  ;;  %v2995_v11 = vmax.f32 %v2993_v16, %v2994_v29  ;;  %v3540_v6 = vpack.c.bf16 %v2977_v31, %v2977_v31  ;;  %v3541_v0 = vpack.c.bf16 %v2983_v44, %v2983_v44 }
 0x347   : > { %v3002_v61 = vrot.slane %v2649_v53, 4  ;;  %v2266_v1 = vmul.f32 0.2, %v2016_v49  ;;  %8507 = vmatmul.msk.bf16.gmra.mxu1 %vm1698_vm2, %v1629_v54  ;;  %v3000_v38 = vrot.slane %v2999_v26, 1 }
 0x348   : > { %8436 = vmatmul.msk.bf16.gmra.mxu0 %vm816_vm1, %v787_v60  ;;  %v1406_v23 = vmul.f32 0.2, %v1183_v9  ;;  %v11212_v60 = vpop.f32.mrf.mxu3  ;;  %v3543_v18 = vpack.c.bf16 %v2995_v11, %v2995_v11  ;;  %v3879_v16 = vunpack.c.l.b16 %v3541_v0 }
 0x349   : > { %v3003_v57 = vmax.f32 %v2649_v53, %v3002_v61  ;;  %v2394_v5 = vmax.f32 %v2016_v49, %v2266_v1  ;;  %v11208_v49 = vperm.slane %v3692_v37, 0  ;;  %v3001_v59 = vmax.f32 %v2999_v26, %v3000_v38 }
 0x34a   : > { %v1534_v27 = vmax.f32 %v1183_v9, %v1406_v23  ;;  %v3542_v9 = vpack.c.bf16 %v2989_v35, %v2989_v35 }
 0x34b   : > { %v2522_v58 = vpack.c.bf16 %v2394_v5, %v2394_v5  ;;  %v3004_v41 = vrot.slane %v3003_v57, 2  ;;  %v11216_v5 = vpop.trf.xlu2 }
 0x34c   : > { %v2017_v12 = vpop.f32.mrf.mxu1  ;;  %v3880_v26 = vunpack.c.l.b16 %v3542_v9 }
 0x34d   : > { %v2650_v43 = vunpack.c.l.bf16 %v2522_v58  ;;  %v2018_v3 = vadd.f32 %v11192_v55, %v2017_v12  ;;  %v1184_v10 = vpop.f32.mrf.mxu0  ;;  %v3005_v7 = vmax.f32 %v3003_v57, %v3004_v41  ;;  %v11222_v41 = vadd.f32 %v4430_v20, %v11208_v49 }
 0x34e   : > { %v1185_v51 = vadd.f32 %v11144_v56, %v1184_v10  ;;  %v3544_v12 = vpack.c.bf16 %v3001_v59, %v3001_v59  ;;  %v3878_v10 = vunpack.c.l.b16 %v3540_v6 }
 0x34f   : > { %v3008_v30 = vrot.slane %v2650_v43, 4  ;;  %v2267_v28 = vmul.f32 0.2, %v2018_v3  ;;  %v3006_v45 = vrot.slane %v3005_v7, 1 }
 0x350   : > { %v1407_v25 = vmul.f32 0.2, %v1185_v51  ;;  %v4008_v37 = vsel %vm3966_vm3, %v3879_v16, %v3878_v10 }
 0x351   : > { %v3009_v22 = vmax.f32 %v2650_v43, %v3008_v30  ;;  %v2395_v34 = vmax.f32 %v2018_v3, %v2267_v28  ;;  %v3007_v57 = vmax.f32 %v3005_v7, %v3006_v45  ;;  %v11225_v3 = vadd.f32 %v4432_v8, %v11208_v49 }
 0x352   : > { %v1535_v33 = vmax.f32 %v1185_v51, %v1407_v25  ;;  %v3881_v7 = vunpack.c.l.b16 %v3543_v18  ;;  %v4009_v31 = vsel %vm3968_vm4, %v3880_v26, %v4008_v37  ;;  %v4480_v18 = vadd.f32 %v11212_v60, %v11218_v63 }
 0x353   : > { %v3010_v42 = vrot.slane %v3009_v22, 2  ;;  %v2523_v13 = vpack.c.bf16 %v2395_v34, %v2395_v34  ;;  %v3545_v23 = vpack.c.bf16 %v3007_v57, %v3007_v57 }
 0x354   : > { %v1630_v46 = vpack.c.bf16 %v1535_v33, %v1534_v27  ;;  %v2020_v47 = vpop.f32.mrf.mxu1  ;;  %v4821_v33 = vmul.f32 0.2, %v11225_v3 }
 0x355   : > { %v3011_v54 = vmax.f32 %v3009_v22, %v3010_v42  ;;  %v2651_v17 = vunpack.c.l.bf16 %v2523_v13  ;;  %v2021_v52 = vadd.f32 %v11192_v55, %v2020_v47  ;;  %v1187_v53 = vpop.f32.mrf.mxu0  ;;  %v3882_v22 = vunpack.c.l.b16 %v3544_v12  ;;  %v4481_v13 = vpop.f32.mrf.mxu3 }
 0x356   : > { %v1188_v50 = vadd.f32 %v11144_v56, %v1187_v53  ;;  %v3883_v38 = vunpack.c.l.b16 %v3545_v23  ;;  %v4010_v47 = vsel %vm3970_vm5, %v3881_v7, %v4009_v31  ;;  %v789_v12 = vpack.c.bf16 %v11202_v39, %v11187_v48 }
 0x357   : > { %v3012_v61 = vrot.slane %v3011_v54, 1  ;;  %v3014_v1 = vrot.slane %v2651_v17, 4  ;;  %v2268_v4 = vmul.f32 0.2, %v2021_v52  ;;  %8508 = vmatmul.msk.bf16.gmra.mxu1 %vm1698_vm2, %v1630_v46  ;;  %v4011_v53 = vsel %vm3972_vm6, %v3882_v22, %v4010_v47 }
 0x358   : > { %8437 = vmatmul.msk.bf16.gmra.mxu0 %vm816_vm1, %v788_v62  ;;  %v1408_v20 = vmul.f32 0.2, %v1188_v50 }
 0x359   : > { %v3015_v36 = vmax.f32 %v2651_v17, %v3014_v1  ;;  %v2396_v58 = vmax.f32 %v2021_v52, %v2268_v4  ;;  %v3013_v15 = vmax.f32 %v3011_v54, %v3012_v61  ;;  %v11233_v52 = vpop.trf.xlu2  ;;  %v4813_v61 = vmul.f32 0.2, %v11222_v41 }
 0x35a   : > { %v1536_v54 = vmax.f32 %v1188_v50, %v1408_v20  ;;  %v4482_v1 = vadd.f32 %v4481_v13, %v11218_v63  ;;  %v4012_v4 = vsel %vm3974_vm7, %v3883_v38, %v4011_v53 }
 0x35b   : > { %v3016_v21 = vrot.slane %v3015_v36, 2  ;;  %v2524_v43 = vpack.c.bf16 %v2396_v58, %v2396_v58  ;;  %v3546_v25 = vpack.c.bf16 %v3013_v15, %v3013_v15  ;;  %v4949_v15 = vmax.f32 %v11225_v3, %v4821_v33 }
 0x35c   : > { %v2022_v51 = vpop.f32.mrf.mxu1  ;;  %v4941_v16 = vmax.f32 %v11222_v41, %v4813_v61  ;;  %v4822_v23 = vmul.f32 0.2, %v4482_v1 }
 0x35d   : > { %v3017_v30 = vmax.f32 %v3015_v36, %v3016_v21  ;;  %v2652_v28 = vunpack.c.l.bf16 %v2524_v43  ;;  %v2023_v32 = vadd.f32 %v11192_v55, %v2022_v51  ;;  %v1189_v40 = vpop.f32.mrf.mxu0  ;;  %v3884_v35 = vunpack.c.l.b16 %v3546_v25 }
 0x35e   : > { %v1190_v19 = vadd.f32 %v11144_v56, %v1189_v40  ;;  %v4950_v41 = vmax.f32 %v4482_v1, %v4822_v23 }
 0x35f   : > { %v3018_v34 = vrot.slane %v3017_v30, 1  ;;  %v3020_v29 = vrot.slane %v2652_v28, 4  ;;  %v2269_v27 = vmul.f32 0.2, %v2023_v32  ;;  %v4013_v50 = vsel %vm3976_vm8, %v3884_v35, %v4012_v4 }
 0x360   : > { %v1409_v42 = vmul.f32 0.2, %v1190_v19 }
 0x361   : > { %v3019_v44 = vmax.f32 %v3017_v30, %v3018_v34  ;;  %v3021_v45 = vmax.f32 %v2652_v28, %v3020_v29  ;;  %v2397_v46 = vmax.f32 %v2023_v32, %v2269_v27  ;;  %v4814_v30 = vmul.f32 0.2, %v4480_v18 }
 0x362   : > { %v1537_v17 = vmax.f32 %v1190_v19, %v1409_v42  ;;  %v5069_v28 = vmax.f32 %v4941_v16, %v4949_v15 }
 0x363   : > { %v3547_v11 = vpack.c.bf16 %v3019_v44, %v3019_v44  ;;  %v3022_v62 = vrot.slane %v3021_v45, 2  ;;  %v2525_v59 = vpack.c.bf16 %v2397_v46, %v2397_v46  ;;  %v4942_v29 = vmax.f32 %v4480_v18, %v4814_v30 }
 0x364   : > { %v1631_v6 = vpack.c.bf16 %v1537_v17, %v1536_v54  ;;  %v2025_v0 = vpop.f32.mrf.mxu1  ;;  %v5070_v27 = vrot.slane %v5069_v28, 4 }
 0x365   : > { %v3885_v57 = vunpack.c.l.b16 %v3547_v11  ;;  %v3023_v8 = vmax.f32 %v3021_v45, %v3022_v62  ;;  %v2653_v9 = vunpack.c.l.bf16 %v2525_v59  ;;  %v2026_v36 = vadd.f32 %v11192_v55, %v2025_v0  ;;  %v1192_v58 = vpop.f32.mrf.mxu0  ;;  %v8395_v59 = vld [vmem:[%s10787_s14 + $0x38] sm:$0x3f]  ;;  %s8388_s14 = sshll.u32 %s13741_s29, 3 }
 0x366   : > { %v1193_v48 = vadd.f32 %v11144_v56, %v1192_v58  ;;  %v5076_v44 = vmax.f32 %v4942_v29, %v4950_v41  ;;  %v5071_v11 = vmax.f32 %v5069_v28, %v5070_v27  ;;  %715 = vxpose.xlu1.b32.start.end [1/1] (short) %v8395_v59, 128  ;;  %s474_s28 = scalar_lea.vmem %s13736_s13, %s8388_s14 }
 0x367   : > { %v4014_v21 = vsel %vm3978_vm9, %v3885_v57, %v4013_v50  ;;  %v3026_v43 = vrot.slane %v2653_v9, 4  ;;  %v2270_v10 = vmul.f32 0.2, %v2026_v36  ;;  %8509 = vmatmul.msk.bf16.gmra.mxu1 %vm1698_vm2, %v1631_v6  ;;  %v3024_v60 = vrot.slane %v3023_v8, 1 }
 0x368   : > { %v11250_v51 = vpack.c.b16 %v4014_v21, %v11165_v2  ;;  %8438 = vmatmul.msk.bf16.gmra.mxu0 %vm816_vm1, %v789_v12  ;;  %v11256_v2 = vpop.trf.xlu2  ;;  %v1410_v33 = vmul.f32 0.2, %v1193_v48  ;;  %v5077_v0 = vrot.slane %v5076_v44, 4 }
 0x369   : > { %v3027_v3 = vmax.f32 %v2653_v9, %v3026_v43  ;;  %v2398_v26 = vmax.f32 %v2026_v36, %v2270_v10  ;;  %v3025_v40 = vmax.f32 %v3023_v8, %v3024_v60  ;;  %v790_v43 = vpack.c.bf16 %v11233_v52, %v11216_v5 }
 0x36a   : > { %4439 = vmatmul.bf16.gmra.mxu2 %v11250_v51  ;;  %4488 = vmatmul.bf16.gmra.mxu3 %v11250_v51  ;;  %v1538_v62 = vmax.f32 %v1193_v48, %v1410_v33 }
 0x36b   : > { %v3028_v39 = vrot.slane %v3027_v3, 2  ;;  %v2526_v32 = vpack.c.bf16 %v2398_v26, %v2398_v26  ;;  %v3548_v45 = vpack.c.bf16 %v3025_v40, %v3025_v40 }
 0x36c   : > { %v2027_v7 = vpop.f32.mrf.mxu1 }
 0x36d   : > { %v3029_v25 = vmax.f32 %v3027_v3, %v3028_v39  ;;  %v2654_v20 = vunpack.c.l.bf16 %v2526_v32  ;;  %v2028_v19 = vadd.f32 %v11192_v55, %v2027_v7  ;;  %v4435_v22 = vpop.f32.mrf.mxu2  ;;  %v4484_v34 = vpop.f32.mrf.mxu3  ;;  %v3886_v57 = vunpack.c.l.b16 %v3548_v45 }
 0x36e   : > { %v1194_v37 = vpop.f32.mrf.mxu0  ;;  %v4436_v46 = vadd.f32 %v4435_v22, %v11208_v49  ;;  %v4485_v47 = vadd.f32 %v4484_v34, %v11218_v63  ;;  %v5072_v3 = vrot.slane %v5071_v11, 2  ;;  %v5078_v39 = vmax.f32 %v5076_v44, %v5077_v0 }
 0x36f   : > { %v3030_v38 = vrot.slane %v3029_v25, 1  ;;  %v3032_v42 = vrot.slane %v2654_v20, 4  ;;  %v2271_v13 = vmul.f32 0.2, %v2028_v19  ;;  %v1195_v31 = vadd.f32 %v11144_v56, %v1194_v37 }
 0x370   : > { %v4829_v8 = vmul.f32 0.2, %v4436_v46  ;;  %v4830_v9 = vmul.f32 0.2, %v4485_v47  ;;  %v11270_v48 = vpop.trf.xlu2  ;;  %v5079_v33 = vrot.slane %v5078_v39, 2 }
 0x371   : > { %v3031_v35 = vmax.f32 %v3029_v25, %v3030_v38  ;;  %v3033_v54 = vmax.f32 %v2654_v20, %v3032_v42  ;;  %v2399_v17 = vmax.f32 %v2028_v19, %v2271_v13  ;;  %v1411_v53 = vmul.f32 0.2, %v1195_v31 }
 0x372   : > { %v4957_v7 = vmax.f32 %v4436_v46, %v4829_v8  ;;  %v4958_v25 = vmax.f32 %v4485_v47, %v4830_v9 }
 0x373   : > { %v3549_v61 = vpack.c.bf16 %v3031_v35, %v3031_v35  ;;  %v3034_v1 = vrot.slane %v3033_v54, 2  ;;  %v2527_v4 = vpack.c.bf16 %v2399_v17, %v2399_v17  ;;  %v1539_v6 = vmax.f32 %v1195_v31, %v1411_v53 }
 0x374   : > { %v2030_v36 = vpop.f32.mrf.mxu1  ;;  %v5073_v31 = vmax.f32 %v5071_v11, %v5072_v3 }
 0x375   : > { %v3887_v58 = vunpack.c.l.b16 %v3549_v61  ;;  %v3035_v18 = vmax.f32 %v3033_v54, %v3034_v1  ;;  %v2655_v15 = vunpack.c.l.bf16 %v2527_v4  ;;  %v1632_v50 = vpack.c.bf16 %v1539_v6, %v1538_v62  ;;  %v4437_v12 = vpop.f32.mrf.mxu2  ;;  %v4486_v21 = vpop.f32.mrf.mxu3 }
 0x376   : > { %v2031_v10 = vadd.f32 %v11192_v55, %v2030_v36  ;;  %v4438_v16 = vadd.f32 %v4437_v12, %v11208_v49  ;;  %v4487_v23 = vadd.f32 %v4486_v21, %v11218_v63  ;;  %v1197_v60 = vpop.f32.mrf.mxu0  ;;  %v5080_v4 = vmax.f32 %v5078_v39, %v5079_v33 }
 0x377   : > { %v4015_v26 = vsel %vm3966_vm3, %v3887_v58, %v3886_v57  ;;  %v3036_v30 = vrot.slane %v3035_v18, 1  ;;  %v3038_v28 = vrot.slane %v2655_v15, 4  ;;  %8510 = vmatmul.msk.bf16.gmra.mxu1 %vm1698_vm2, %v1632_v50  ;;  %v1198_v34 = vadd.f32 %v11144_v56, %v1197_v60 }
 0x378   : > { %v2272_v32 = vmul.f32 0.2, %v2031_v10  ;;  %v4837_v41 = vmul.f32 0.2, %v4438_v16  ;;  %v4838_v5 = vmul.f32 0.2, %v4487_v23  ;;  %8439 = vmatmul.msk.bf16.gmra.mxu0 %vm816_vm1, %v790_v43  ;;  %v11277_v36 = vpop.trf.xlu2 }
 0x379   : > { %v3037_v52 = vmax.f32 %v3035_v18, %v3036_v30  ;;  %v3039_v40 = vmax.f32 %v2655_v15, %v3038_v28  ;;  %v1412_v17 = vmul.f32 0.2, %v1198_v34  ;;  %v5074_v58 = vrot.slane %v5073_v31, 1 }
 0x37a   : > { %v2400_v20 = vmax.f32 %v2031_v10, %v2272_v32  ;;  %v4965_v19 = vmax.f32 %v4438_v16, %v4837_v41  ;;  %v4966_v22 = vmax.f32 %v4487_v23, %v4838_v5  ;;  %v5081_v16 = vrot.slane %v5080_v4, 1 }
 0x37b   : > { %v3550_v29 = vpack.c.bf16 %v3037_v52, %v3037_v52  ;;  %v3040_v27 = vrot.slane %v3039_v40, 2  ;;  %v1540_v21 = vmax.f32 %v1198_v34, %v1412_v17 }
 0x37c   : > { %v2528_v37 = vpack.c.bf16 %v2400_v20, %v2400_v20  ;;  %v5125_v38 = vmax.f32 %v4957_v7, %v4965_v19  ;;  %v5132_v42 = vmax.f32 %v4958_v25, %v4966_v22  ;;  %v2032_v13 = vpop.f32.mrf.mxu1  ;;  %v5075_v25 = vmax.f32 %v5073_v31, %v5074_v58 }
 0x37d   : > { %v3888_v44 = vunpack.c.l.b16 %v3550_v29  ;;  %v3041_v45 = vmax.f32 %v3039_v40, %v3040_v27  ;;  %v2033_v35 = vadd.f32 %v11192_v55, %v2032_v13  ;;  %v791_v40 = vpack.c.bf16 %v11270_v48, %v11256_v2 }
 0x37e   : > { %v2656_v54 = vunpack.c.l.bf16 %v2528_v37  ;;  %v5126_v46 = vrot.slane %v5125_v38, 4  ;;  %v5133_v47 = vrot.slane %v5132_v42, 4  ;;  %v1199_v53 = vpop.f32.mrf.mxu0  ;;  %v5082_v34 = vmax.f32 %v5080_v4, %v5081_v16 }
 0x37f   : > { %v4016_v62 = vsel %vm3968_vm4, %v3888_v44, %v4015_v26  ;;  %v3042_v59 = vrot.slane %v3041_v45, 1  ;;  %v2273_v61 = vmul.f32 0.2, %v2033_v35  ;;  %v1200_v1 = vadd.f32 %v11144_v56, %v1199_v53 }
 0x380   : > { %v3044_v6 = vrot.slane %v2656_v54, 4  ;;  %v5127_v0 = vmax.f32 %v5125_v38, %v5126_v46  ;;  %v5134_v57 = vmax.f32 %v5132_v42, %v5133_v47 }
 0x381   : > { %v3043_v11 = vmax.f32 %v3041_v45, %v3042_v59  ;;  %v2401_v8 = vmax.f32 %v2033_v35, %v2273_v61  ;;  %v1413_v9 = vmul.f32 0.2, %v1200_v1  ;;  %v678_v45 = vpop.trf.xlu2 }
 0x382   : > { %v3045_v18 = vmax.f32 %v2656_v54, %v3044_v6  ;;  %v5128_v15 = vrot.slane %v5127_v0, 2  ;;  %v5135_v50 = vrot.slane %v5134_v57, 2 }
 0x383   : > { %v3551_v12 = vpack.c.bf16 %v3043_v11, %v3043_v11  ;;  %v2529_v43 = vpack.c.bf16 %v2401_v8, %v2401_v8  ;;  %v1541_v10 = vmax.f32 %v1200_v1, %v1413_v9 }
 0x384   : > { %v3046_v23 = vrot.slane %v3045_v18, 2  ;;  %v5129_v60 = vmax.f32 %v5127_v0, %v5128_v15  ;;  %v5136_v3 = vmax.f32 %v5134_v57, %v5135_v50  ;;  %v2035_v26 = vpop.f32.mrf.mxu1 }
 0x385   : > { %v3889_v30 = vunpack.c.l.b16 %v3551_v12  ;;  %v2657_v28 = vunpack.c.l.bf16 %v2529_v43  ;;  %v1633_v39 = vpack.c.bf16 %v1541_v10, %v1540_v21  ;;  %v2036_v32 = vadd.f32 %v11192_v55, %v2035_v26 }
 0x386   : > { %v3047_v41 = vmax.f32 %v3045_v18, %v3046_v23  ;;  %v5130_v5 = vrot.slane %v5129_v60, 1  ;;  %v5137_v52 = vrot.slane %v5136_v3, 1  ;;  %v1202_v7 = vpop.f32.mrf.mxu0 }
 0x387   : > { %v4017_v20 = vsel %vm3970_vm5, %v3889_v30, %v4016_v62  ;;  %v3050_v19 = vrot.slane %v2657_v28, 4  ;;  %v2274_v22 = vmul.f32 0.2, %v2036_v32  ;;  %8511 = vmatmul.msk.bf16.gmra.mxu1 %vm1698_vm2, %v1633_v39  ;;  %v1203_v48 = vadd.f32 %v11144_v56, %v1202_v7 }
 0x388   : > { %v3048_v29 = vrot.slane %v3047_v41, 1  ;;  %v5131_v27 = vmax.f32 %v5129_v60, %v5130_v5  ;;  %v5138_v33 = vmax.f32 %v5136_v3, %v5137_v52  ;;  %8440 = vmatmul.msk.bf16.gmra.mxu0 %vm816_vm1, %v791_v40  ;;  %v792_v3 = vpack.c.bf16 %v678_v45, %v11277_v36 }
 0x389   : > { %v3051_v37 = vmax.f32 %v2657_v28, %v3050_v19  ;;  %v2402_v38 = vmax.f32 %v2036_v32, %v2274_v22  ;;  %v1414_v62 = vmul.f32 0.2, %v1203_v48  ;;  %v679_v60 = vpop.trf.xlu2 }
 0x38a   : > { %v3049_v42 = vmax.f32 %v3047_v41, %v3048_v29  ;;  %v11286_v13 = vsel %vm3966_vm3, %v5131_v27, %v5075_v25  ;;  %v11289_v2 = vsel %vm3966_vm3, %v5138_v33, %v5082_v34  ;;  %v11300_v25 = vpop.trf.xlu0 }
 0x38b   : > { %v3052_v31 = vrot.slane %v3051_v37, 2  ;;  %v2530_v44 = vpack.c.bf16 %v2402_v38, %v2402_v38  ;;  %v1542_v58 = vmax.f32 %v1203_v48, %v1414_v62 }
 0x38c   : > { %v3552_v35 = vpack.c.bf16 %v3049_v42, %v3049_v42  ;;  %v2037_v54 = vpop.f32.mrf.mxu1 }
 0x38d   : > { %v3053_v46 = vmax.f32 %v3051_v37, %v3052_v31  ;;  %v2658_v47 = vunpack.c.l.bf16 %v2530_v44  ;;  %v2038_v17 = vadd.f32 %v11192_v55, %v2037_v54 }
 0x38e   : > { %v3890_v53 = vunpack.c.l.b16 %v3552_v35  ;;  %v1204_v59 = vpop.f32.mrf.mxu0 }
 0x38f   : > { %v3054_v61 = vrot.slane %v3053_v46, 1  ;;  %v3056_v1 = vrot.slane %v2658_v47, 4  ;;  %v2275_v4 = vmul.f32 0.2, %v2038_v17  ;;  %v1205_v6 = vadd.f32 %v11144_v56, %v1204_v59 }
 0x390   : > { %v4018_v0 = vsel %vm3972_vm6, %v3890_v53, %v4017_v20 }
 0x391   : > { %v3055_v57 = vmax.f32 %v3053_v46, %v3054_v61  ;;  %v3057_v11 = vmax.f32 %v2658_v47, %v3056_v1  ;;  %v2403_v8 = vmax.f32 %v2038_v17, %v2275_v4  ;;  %v1415_v9 = vmul.f32 0.2, %v1205_v6  ;;  %v680_v27 = vpop.trf.xlu2 }
 0x392   : > { %v793_v54 = vpack.c.bf16 %v680_v27, %v679_v60  ;;  %v11304_v47 = vpop.trf.xlu0 }
 0x393   : > { %v3553_v18 = vpack.c.bf16 %v3055_v57, %v3055_v57  ;;  %v3058_v15 = vrot.slane %v3057_v11, 2  ;;  %v2531_v50 = vpack.c.bf16 %v2403_v8, %v2403_v8  ;;  %v1543_v12 = vmax.f32 %v1205_v6, %v1415_v9 }
 0x394   : > { %v2040_v21 = vpop.f32.mrf.mxu1 }
 0x395   : > { %v3891_v43 = vunpack.c.l.b16 %v3553_v18  ;;  %v3059_v10 = vmax.f32 %v3057_v11, %v3058_v15  ;;  %v2659_v16 = vunpack.c.l.bf16 %v2531_v50  ;;  %v1634_v23 = vpack.c.bf16 %v1543_v12, %v1542_v58 }
 0x396   : > { %v1207_v26 = vpop.f32.mrf.mxu0  ;;  %v2041_v61 = vadd.f32 %v11192_v55, %v2040_v21 }
 0x397   : > { %v4019_v30 = vsel %vm3974_vm7, %v3891_v43, %v4018_v0  ;;  %v3060_v28 = vrot.slane %v3059_v10, 1  ;;  %v3062_v39 = vrot.slane %v2659_v16, 4  ;;  %8512 = vmatmul.msk.bf16.gmra.mxu1 %vm1698_vm2, %v1634_v23  ;;  %v1208_v40 = vadd.f32 %v11144_v56, %v1207_v26 }
 0x398   : > { %8441 = vmatmul.msk.bf16.gmra.mxu0 %vm816_vm1, %v792_v3  ;;  %v2276_v9 = vmul.f32 0.2, %v2041_v61 }
 0x399   : > { %v3061_v32 = vmax.f32 %v3059_v10, %v3060_v28  ;;  %v3063_v41 = vmax.f32 %v2659_v16, %v3062_v39  ;;  %v1416_v29 = vmul.f32 0.2, %v1208_v40  ;;  %v681_v53 = vpop.trf.xlu2 }
 0x39a   : > { %v11317_v18 = vpop.trf.xlu0  ;;  %v2404_v16 = vmax.f32 %v2041_v61, %v2276_v9 }
 0x39b   : > { %v3554_v5 = vpack.c.bf16 %v3061_v32, %v3061_v32  ;;  %v3064_v52 = vrot.slane %v3063_v41, 2  ;;  %v1544_v48 = vmax.f32 %v1208_v40, %v1416_v29 }
 0x39c   : > { %v2042_v7 = vpop.f32.mrf.mxu1 }
 0x39d   : > { %v3892_v20 = vunpack.c.l.b16 %v3554_v5  ;;  %v3065_v36 = vmax.f32 %v3063_v41, %v3064_v52  ;;  %v2043_v62 = vadd.f32 %v11192_v55, %v2042_v7  ;;  %v2532_v41 = vpack.c.bf16 %v2404_v16, %v2404_v16 }
 0x39e   : > { %v1209_v19 = vpop.f32.mrf.mxu0 }
 0x39f   : > { %v4020_v22 = vsel %vm3976_vm8, %v3892_v20, %v4019_v30  ;;  %v3066_v34 = vrot.slane %v3065_v36, 1  ;;  %v1210_v33 = vadd.f32 %v11144_v56, %v1209_v19  ;;  %v2277_v0 = vmul.f32 0.2, %v2043_v62 }
 0x3a1   : > { %v3067_v37 = vmax.f32 %v3065_v36, %v3066_v34  ;;  %v1417_v38 = vmul.f32 0.2, %v1210_v33  ;;  %v2405_v12 = vmax.f32 %v2043_v62, %v2277_v0  ;;  %v682_v10 = vpop.trf.xlu2 }
 0x3a2   : > { %v794_v28 = vpack.c.bf16 %v682_v10, %v681_v53  ;;  %v11322_v36 = vpop.trf.xlu0  ;;  %v795_v10 = vpack.c.bf16 %v11304_v47, %v11300_v25 }
 0x3a3   : > { %v3555_v42 = vpack.c.bf16 %v3067_v37, %v3067_v37  ;;  %v1545_v31 = vmax.f32 %v1210_v33, %v1417_v38  ;;  %v2533_v30 = vpack.c.bf16 %v2405_v12, %v2405_v12 }
 0x3a4   : > { %v2045_v44 = vpop.f32.mrf.mxu1 }
 0x3a5   : > { %v3893_v45 = vunpack.c.l.b16 %v3555_v42  ;;  %v1635_v35 = vpack.c.bf16 %v1545_v31, %v1544_v48  ;;  %v2046_v1 = vadd.f32 %v11192_v55, %v2045_v44  ;;  %v2661_v7 = vunpack.c.l.bf16 %v2533_v30 }
 0x3a6   : > { %v1212_v46 = vpop.f32.mrf.mxu0 }
 0x3a7   : > { %v11307_v17 = vsel %vm3978_vm9, %v3893_v45, %v4020_v22  ;;  %8513 = vmatmul.msk.bf16.gmra.mxu1 %vm1698_vm2, %v1635_v35  ;;  %v1213_v59 = vadd.f32 %v11144_v56, %v1212_v46  ;;  %v2278_v58 = vmul.f32 0.2, %v2046_v1  ;;  %v2660_v22 = vunpack.c.l.bf16 %v2532_v41  ;;  %v11329_v45 = vld [vmem:[%s13725_s2] ss:$0 sm:$0xff] }
 0x3a8   : > { %8442 = vmatmul.msk.bf16.gmra.mxu0 %vm816_vm1, %v793_v54  ;;  %v3074_v38 = vrot.slane %v2661_v7, 4 }
 0x3a9   : > { %v1418_v11 = vmul.f32 0.2, %v1213_v59  ;;  %v2406_v23 = vmax.f32 %v2046_v1, %v2278_v58 }
 0x3ab   : > { %v1546_v43 = vmax.f32 %v1213_v59, %v1418_v11  ;;  %v2534_v5 = vpack.c.bf16 %v2406_v23, %v2406_v23  ;;  %v3075_v59 = vmax.f32 %v2661_v7, %v3074_v38 }
 0x3ac   : > { %v2047_v4 = vpop.f32.mrf.mxu1 }
 0x3ad   : > { %v2048_v6 = vadd.f32 %v11192_v55, %v2047_v4  ;;  %v2662_v34 = vunpack.c.l.bf16 %v2534_v5  ;;  %v3076_v12 = vrot.slane %v3075_v59, 2 }
 0x3ae   : > { %v1214_v57 = vpop.f32.mrf.mxu0 }
 0x3af   : > { %v1215_v8 = vadd.f32 %v11144_v56, %v1214_v57  ;;  %v2279_v15 = vmul.f32 0.2, %v2048_v6  ;;  %v3080_v54 = vrot.slane %v2662_v34, 4 }
 0x3b1   : > { %v1419_v50 = vmul.f32 0.2, %v1215_v8  ;;  %v2407_v3 = vmax.f32 %v2048_v6, %v2279_v15  ;;  %v3081_v57 = vmax.f32 %v2662_v34, %v3080_v54 }
 0x3b3   : > { %v1547_v21 = vmax.f32 %v1215_v8, %v1419_v50  ;;  %v2535_v40 = vpack.c.bf16 %v2407_v3, %v2407_v3  ;;  %v11332_v8 = vpop.trf.xlu0  ;;  %v3082_v3 = vrot.slane %v3081_v57, 2 }
 0x3b4   : > { %v2050_v60 = vpop.f32.mrf.mxu1 }
 0x3b5   : > { %v1636_v26 = vpack.c.bf16 %v1547_v21, %v1546_v43  ;;  %v2051_v39 = vadd.f32 %v11192_v55, %v2050_v60  ;;  %v2663_v33 = vunpack.c.l.bf16 %v2535_v40  ;;  %v3083_v40 = vmax.f32 %v3081_v57, %v3082_v3 }
 0x3b6   : > { %v1217_v32 = vpop.f32.mrf.mxu0 }
 0x3b7   : > { %8514 = vmatmul.msk.bf16.gmra.mxu1 %vm1698_vm2, %v1636_v26  ;;  %v2280_v52 = vmul.f32 0.2, %v2051_v39  ;;  %v1218_v19 = vadd.f32 %v11144_v56, %v1217_v32  ;;  %v3068_v56 = vrot.slane %v2660_v22, 4  ;;  %v3086_v46 = vrot.slane %v2663_v33, 4 }
 0x3b8   : > { %8443 = vmatmul.msk.bf16.gmra.mxu0 %vm816_vm1, %v794_v28 }
 0x3b9   : > { %v2408_v20 = vmax.f32 %v2051_v39, %v2280_v52  ;;  %v1420_v31 = vmul.f32 0.2, %v1218_v19  ;;  %v3069_v0 = vmax.f32 %v2660_v22, %v3068_v56  ;;  %v3087_v9 = vmax.f32 %v2663_v33, %v3086_v46 }
 0x3ba   : > { %v3077_v39 = vmax.f32 %v3075_v59, %v3076_v12 }
 0x3bb   : > { %v2536_v29 = vpack.c.bf16 %v2408_v20, %v2408_v20  ;;  %v1548_v1 = vmax.f32 %v1218_v19, %v1420_v31  ;;  %v3070_v60 = vrot.slane %v3069_v0, 2  ;;  %v3088_v26 = vrot.slane %v3087_v9, 2 }
 0x3bc   : > { %v2052_v27 = vpop.f32.mrf.mxu1  ;;  %v3078_v22 = vrot.slane %v3077_v39, 1  ;;  %v3084_v31 = vrot.slane %v3083_v40, 1 }
 0x3bd   : > { %v2053_v37 = vadd.f32 %v11192_v55, %v2052_v27  ;;  %v2664_v42 = vunpack.c.l.bf16 %v2536_v29  ;;  %v3071_v52 = vmax.f32 %v3069_v0, %v3070_v60  ;;  %v3089_v7 = vmax.f32 %v3087_v9, %v3088_v26  ;;  %v11341_v27 = vpop.trf.xlu0 }
 0x3be   : > { %v1219_v48 = vpop.f32.mrf.mxu0  ;;  %v3085_v0 = vmax.f32 %v3083_v40, %v3084_v31 }
 0x3bf   : > { %v2281_v44 = vmul.f32 0.2, %v2053_v37  ;;  %v1220_v35 = vadd.f32 %v11329_v45, %v1219_v48  ;;  %v3092_v61 = vrot.slane %v2664_v42, 4  ;;  %v3072_v48 = vrot.slane %v3071_v52, 1 }
 0x3c0   : > { %v3558_v26 = vpack.c.bf16 %v3085_v0, %v3085_v0 }
 0x3c1   : > { %v2409_v53 = vmax.f32 %v2053_v37, %v2281_v44  ;;  %v1421_v62 = vmul.f32 0.2, %v1220_v35  ;;  %v3093_v43 = vmax.f32 %v2664_v42, %v3092_v61 }
 0x3c3   : > { %v2537_v4 = vpack.c.bf16 %v2409_v53, %v2409_v53  ;;  %v1549_v6 = vmax.f32 %v1220_v35, %v1421_v62  ;;  %v3094_v32 = vrot.slane %v3093_v43, 2  ;;  %v3090_v35 = vrot.slane %v3089_v7, 1 }
 0x3c4   : > { %v2055_v11 = vpop.f32.mrf.mxu1  ;;  %v3079_v53 = vmax.f32 %v3077_v39, %v3078_v22 }
 0x3c5   : > { %v2665_v58 = vunpack.c.l.bf16 %v2537_v4  ;;  %v1637_v15 = vpack.c.bf16 %v1549_v6, %v1548_v1  ;;  %v2056_v50 = vadd.f32 %v11192_v55, %v2055_v11  ;;  %v3095_v34 = vmax.f32 %v3093_v43, %v3094_v32  ;;  %v11349_v39 = vpop.trf.xlu0 }
 0x3c6   : > { %v1222_v21 = vpop.f32.mrf.mxu0  ;;  %v3073_v6 = vmax.f32 %v3071_v52, %v3072_v48  ;;  %v3091_v9 = vmax.f32 %v3089_v7, %v3090_v35  ;;  %v3557_v12 = vpack.c.bf16 %v3079_v53, %v3079_v53  ;;  %v3896_v7 = vunpack.c.l.b16 %v3558_v26 }
 0x3c7   : > { %v3098_v16 = vrot.slane %v2665_v58, 4  ;;  %v2282_v23 = vmul.f32 0.2, %v2056_v50  ;;  %8515 = vmatmul.msk.bf16.gmra.mxu1 %vm1698_vm2, %v1637_v15  ;;  %v1223_v5 = vadd.f32 %v11329_v45, %v1222_v21  ;;  %v3096_v62 = vrot.slane %v3095_v34, 1 }
 0x3c8   : > { %8444 = vmatmul.msk.bf16.gmra.mxu0 %vm816_vm1, %v795_v10  ;;  %v796_v10 = vpack.c.bf16 %v11322_v36, %v11317_v18  ;;  %v3556_v3 = vpack.c.bf16 %v3073_v6, %v3073_v6  ;;  %v3559_v32 = vpack.c.bf16 %v3091_v9, %v3091_v9 }
 0x3c9   : > { %v3099_v30 = vmax.f32 %v2665_v58, %v3098_v16  ;;  %v2410_v28 = vmax.f32 %v2056_v50, %v2282_v23  ;;  %v1422_v37 = vmul.f32 0.2, %v1223_v5  ;;  %v3097_v43 = vmax.f32 %v3095_v34, %v3096_v62 }
 0x3ca   : > { %v3897_v34 = vunpack.c.l.b16 %v3559_v32 }
 0x3cb   : > { %v2538_v41 = vpack.c.bf16 %v2410_v28, %v2410_v28  ;;  %v3100_v25 = vrot.slane %v3099_v30, 2  ;;  %v1550_v61 = vmax.f32 %v1223_v5, %v1422_v37  ;;  %v3895_v5 = vunpack.c.l.b16 %v3557_v12 }
 0x3cc   : > { %v2057_v47 = vpop.f32.mrf.mxu1  ;;  %v3560_v52 = vpack.c.bf16 %v3097_v43, %v3097_v43 }
 0x3cd   : > { %v2666_v20 = vunpack.c.l.bf16 %v2538_v41  ;;  %v2058_v19 = vadd.f32 %v11192_v55, %v2057_v47  ;;  %v3101_v44 = vmax.f32 %v3099_v30, %v3100_v25  ;;  %v3894_v47 = vunpack.c.l.b16 %v3556_v3 }
 0x3ce   : > { %v1224_v29 = vpop.f32.mrf.mxu0 }
 0x3cf   : > { %v3104_v33 = vrot.slane %v2666_v20, 4  ;;  %v2283_v38 = vmul.f32 0.2, %v2058_v19  ;;  %v1225_v42 = vadd.f32 %v11329_v45, %v1224_v29  ;;  %v3102_v57 = vrot.slane %v3101_v44, 1 }
 0x3d0   : > { %v4022_v37 = vsel %vm3966_vm3, %v3895_v5, %v3894_v47 }
 0x3d1   : > { %v3105_v56 = vmax.f32 %v2666_v20, %v3104_v33  ;;  %v2411_v54 = vmax.f32 %v2058_v19, %v2283_v38  ;;  %v1423_v46 = vmul.f32 0.2, %v1225_v42  ;;  %v3103_v30 = vmax.f32 %v3101_v44, %v3102_v57  ;;  %v11358_v57 = vpop.trf.xlu0 }
 0x3d2   : > { %v3898_v38 = vunpack.c.l.b16 %v3560_v52 }
 0x3d3   : > { %v3106_v59 = vrot.slane %v3105_v56, 2  ;;  %v2539_v1 = vpack.c.bf16 %v2411_v54, %v2411_v54  ;;  %v1551_v4 = vmax.f32 %v1225_v42, %v1423_v46  ;;  %v3561_v20 = vpack.c.bf16 %v3103_v30, %v3103_v30 }
 0x3d4   : > { %v2060_v11 = vpop.f32.mrf.mxu1  ;;  %v4023_v46 = vsel %vm3968_vm4, %v3896_v7, %v4022_v37  ;;  %v797_v30 = vpack.c.bf16 %v11341_v27, %v11332_v8 }
 0x3d5   : > { %v3107_v58 = vmax.f32 %v3105_v56, %v3106_v59  ;;  %v2667_v15 = vunpack.c.l.bf16 %v2539_v1  ;;  %v1638_v50 = vpack.c.bf16 %v1551_v4, %v1550_v61  ;;  %v2061_v21 = vadd.f32 %v11192_v55, %v2060_v11 }
 0x3d6   : > { %v1227_v16 = vpop.f32.mrf.mxu0  ;;  %v3899_v53 = vunpack.c.l.b16 %v3561_v20  ;;  %v4024_v59 = vsel %vm3970_vm5, %v3897_v34, %v4023_v46 }
 0x3d7   : > { %v3108_v23 = vrot.slane %v3107_v58, 1  ;;  %v3110_v60 = vrot.slane %v2667_v15, 4  ;;  %8516 = vmatmul.msk.bf16.gmra.mxu1 %vm1698_vm2, %v1638_v50  ;;  %v2284_v28 = vmul.f32 0.2, %v2061_v21  ;;  %v1228_v25 = vadd.f32 %v11329_v45, %v1227_v16 }
 0x3d8   : > { %8445 = vmatmul.msk.bf16.gmra.mxu0 %vm816_vm1, %v796_v10  ;;  %v4025_v4 = vsel %vm3972_vm6, %v3898_v38, %v4024_v59 }
 0x3d9   : > { %v3111_v41 = vmax.f32 %v2667_v15, %v3110_v60  ;;  %v3109_v18 = vmax.f32 %v3107_v58, %v3108_v23  ;;  %v2412_v36 = vmax.f32 %v2061_v21, %v2284_v28  ;;  %v1424_v35 = vmul.f32 0.2, %v1228_v25  ;;  %v11364_v23 = vld [vmem:[%s13727_s4] ss:$0 sm:$0xff]  ;;  %v11379_v20 = vpop.trf.xlu0 }
 0x3da   : > { %v4026_v50 = vsel %vm3974_vm7, %v3899_v53, %v4025_v4 }
 0x3db   : > { %v3112_v40 = vrot.slane %v3111_v41, 2  ;;  %v2540_v19 = vpack.c.bf16 %v2412_v36, %v2412_v36  ;;  %v3562_v42 = vpack.c.bf16 %v3109_v18, %v3109_v18  ;;  %v1552_v9 = vmax.f32 %v1228_v25, %v1424_v35 }
 0x3dc   : > { %v2062_v22 = vpop.f32.mrf.mxu1 }
 0x3dd   : > { %v3113_v29 = vmax.f32 %v3111_v41, %v3112_v40  ;;  %v2063_v33 = vadd.f32 %v11192_v55, %v2062_v22  ;;  %v2668_v48 = vunpack.c.l.bf16 %v2540_v19  ;;  %v3900_v6 = vunpack.c.l.b16 %v3562_v42 }
 0x3de   : > { %v1229_v31 = vpop.f32.mrf.mxu0 }
 0x3df   : > { %v3114_v44 = vrot.slane %v3113_v29, 1  ;;  %v2285_v56 = vmul.f32 0.2, %v2063_v33  ;;  %v1230_v54 = vadd.f32 %v11329_v45, %v1229_v31  ;;  %v3116_v62 = vrot.slane %v2668_v48, 4 }
 0x3e0   : > { %v4027_v3 = vsel %vm3976_vm8, %v3900_v6, %v4026_v50 }
 0x3e1   : > { %v3115_v61 = vmax.f32 %v3113_v29, %v3114_v44  ;;  %v2413_v1 = vmax.f32 %v2063_v33, %v2285_v56  ;;  %v1425_v55 = vmul.f32 0.2, %v1230_v54  ;;  %v3117_v0 = vmax.f32 %v2668_v48, %v3116_v62 }
 0x3e3   : > { %v3563_v11 = vpack.c.bf16 %v3115_v61, %v3115_v61  ;;  %v2541_v58 = vpack.c.bf16 %v2413_v1, %v2413_v1  ;;  %v1553_v15 = vmax.f32 %v1230_v54, %v1425_v55  ;;  %v3118_v12 = vrot.slane %v3117_v0, 2 }
 0x3e4   : > { %v2065_v43 = vpop.f32.mrf.mxu1 }
 0x3e5   : > { %v3901_v10 = vunpack.c.l.b16 %v3563_v11  ;;  %v2669_v21 = vunpack.c.l.bf16 %v2541_v58  ;;  %v1639_v16 = vpack.c.bf16 %v1553_v15, %v1552_v9  ;;  %v2066_v60 = vadd.f32 %v11364_v23, %v2065_v43 }
 0x3e6   : > { %v3119_v26 = vmax.f32 %v3117_v0, %v3118_v12  ;;  %v1232_v28 = vpop.f32.mrf.mxu0 }
 0x3e7   : > { %v4028_v32 = vsel %vm3978_vm9, %v3901_v10, %v4027_v3  ;;  %v3122_v41 = vrot.slane %v2669_v21, 4  ;;  %v2286_v5 = vmul.f32 0.2, %v2066_v60  ;;  %8517 = vmatmul.msk.bf16.gmra.mxu1 %vm1698_vm2, %v1639_v16  ;;  %v1233_v25 = vadd.f32 %v11329_v45, %v1232_v28 }
 0x3e8   : > { %v11373_v52 = vpack.c.b16 %v4028_v32, %v11307_v17  ;;  %v3120_v18 = vrot.slane %v3119_v26, 1  ;;  %8446 = vmatmul.msk.bf16.gmra.mxu0 %vm816_vm1, %v797_v30 }
 0x3e9   : > { %v3123_v36 = vmax.f32 %v2669_v21, %v3122_v41  ;;  %v2414_v40 = vmax.f32 %v2066_v60, %v2286_v5  ;;  %v1426_v33 = vmul.f32 0.2, %v1233_v25  ;;  %v798_v21 = vpack.c.bf16 %v11358_v57, %v11349_v39  ;;  %v11392_v41 = vpop.trf.xlu0 }
 0x3ea   : > { %4444 = vmatmul.bf16.gmra.mxu2 %v11373_v52  ;;  %4493 = vmatmul.bf16.gmra.mxu3 %v11373_v52  ;;  %v3121_v47 = vmax.f32 %v3119_v26, %v3120_v18 }
 0x3eb   : > { %v3124_v8 = vrot.slane %v3123_v36, 2  ;;  %v2542_v27 = vpack.c.bf16 %v2414_v40, %v2414_v40  ;;  %v1554_v59 = vmax.f32 %v1233_v25, %v1426_v33 }
 0x3ec   : > { %v2067_v7 = vpop.f32.mrf.mxu1  ;;  %v3564_v44 = vpack.c.bf16 %v3121_v47, %v3121_v47 }
 0x3ed   : > { %v3125_v19 = vmax.f32 %v3123_v36, %v3124_v8  ;;  %v2670_v17 = vunpack.c.l.bf16 %v2542_v27  ;;  %v2068_v22 = vadd.f32 %v11364_v23, %v2067_v7  ;;  %v4440_v34 = vpop.f32.mrf.mxu2  ;;  %v4489_v29 = vpop.f32.mrf.mxu3 }
 0x3ee   : > { %v1234_v37 = vpop.f32.mrf.mxu0  ;;  %v4441_v35 = vadd.f32 %v4440_v34, %v11208_v49  ;;  %v4490_v56 = vadd.f32 %v4489_v29, %v11218_v63  ;;  %v3902_v6 = vunpack.c.l.b16 %v3564_v44 }
 0x3ef   : > { %v3126_v38 = vrot.slane %v3125_v19, 1  ;;  %v3128_v42 = vrot.slane %v2670_v17, 4  ;;  %v2287_v48 = vmul.f32 0.2, %v2068_v22  ;;  %v1235_v31 = vadd.f32 %v11329_v45, %v1234_v37 }
 0x3f0   : > { %v4845_v0 = vmul.f32 0.2, %v4441_v35  ;;  %v4846_v11 = vmul.f32 0.2, %v4490_v56 }
 0x3f1   : > { %v3127_v54 = vmax.f32 %v3125_v19, %v3126_v38  ;;  %v3129_v46 = vmax.f32 %v2670_v17, %v3128_v42  ;;  %v2415_v53 = vmax.f32 %v2068_v22, %v2287_v48  ;;  %v1427_v62 = vmul.f32 0.2, %v1235_v31 }
 0x3f2   : > { %v4973_v40 = vmax.f32 %v4441_v35, %v4845_v0  ;;  %v4974_v25 = vmax.f32 %v4490_v56, %v4846_v11  ;;  %v11399_v0 = vpop.trf.xlu0 }
 0x3f3   : > { %v3565_v61 = vpack.c.bf16 %v3127_v54, %v3127_v54  ;;  %v3130_v1 = vrot.slane %v3129_v46, 2  ;;  %v2543_v55 = vpack.c.bf16 %v2415_v53, %v2415_v53  ;;  %v1555_v4 = vmax.f32 %v1235_v31, %v1427_v62 }
 0x3f4   : > { %v2070_v9 = vpop.f32.mrf.mxu1 }
 0x3f5   : > { %v3903_v58 = vunpack.c.l.b16 %v3565_v61  ;;  %v3131_v15 = vmax.f32 %v3129_v46, %v3130_v1  ;;  %v2671_v50 = vunpack.c.l.bf16 %v2543_v55  ;;  %v1640_v12 = vpack.c.bf16 %v1555_v4, %v1554_v59  ;;  %v4442_v43 = vpop.f32.mrf.mxu2  ;;  %v4491_v10 = vpop.f32.mrf.mxu3 }
 0x3f6   : > { %v2071_v16 = vadd.f32 %v11364_v23, %v2070_v9  ;;  %v4443_v60 = vadd.f32 %v4442_v43, %v11208_v49  ;;  %v4492_v3 = vadd.f32 %v4491_v10, %v11218_v63  ;;  %v1237_v26 = vpop.f32.mrf.mxu0 }
 0x3f7   : > { %v4029_v30 = vsel %vm3966_vm3, %v3903_v58, %v3902_v6  ;;  %v3132_v28 = vrot.slane %v3131_v15, 1  ;;  %v3134_v32 = vrot.slane %v2671_v50, 4  ;;  %8518 = vmatmul.msk.bf16.gmra.mxu1 %vm1698_vm2, %v1640_v12  ;;  %v1238_v7 = vadd.f32 %v11329_v45, %v1237_v26 }
 0x3f8   : > { %v2288_v5 = vmul.f32 0.2, %v2071_v16  ;;  %v4853_v18 = vmul.f32 0.2, %v4443_v60  ;;  %v4854_v36 = vmul.f32 0.2, %v4492_v3  ;;  %8447 = vmatmul.msk.bf16.gmra.mxu0 %vm816_vm1, %v798_v21 }
 0x3f9   : > { %v3133_v39 = vmax.f32 %v3131_v15, %v3132_v28  ;;  %v3135_v57 = vmax.f32 %v2671_v50, %v3134_v32  ;;  %v1428_v35 = vmul.f32 0.2, %v1238_v7 }
 0x3fa   : > { %v2416_v8 = vmax.f32 %v2071_v16, %v2288_v5  ;;  %v4981_v27 = vmax.f32 %v4443_v60, %v4853_v18  ;;  %v4982_v47 = vmax.f32 %v4492_v3, %v4854_v36  ;;  %v799_v36 = vpack.c.bf16 %v11392_v41, %v11379_v20 }
 0x3fb   : > { %v3566_v19 = vpack.c.bf16 %v3133_v39, %v3133_v39  ;;  %v3136_v17 = vrot.slane %v3135_v57, 2  ;;  %v1556_v50 = vmax.f32 %v1238_v7, %v1428_v35 }
 0x3fc   : > { %v2544_v22 = vpack.c.bf16 %v2416_v8, %v2416_v8  ;;  %v5181_v34 = vmax.f32 %v4973_v40, %v4981_v27  ;;  %v5188_v29 = vmax.f32 %v4974_v25, %v4982_v47  ;;  %v2072_v33 = vpop.f32.mrf.mxu1 }
 0x3fd   : > { %v3904_v37 = vunpack.c.l.b16 %v3566_v19  ;;  %v3137_v38 = vmax.f32 %v3135_v57, %v3136_v17  ;;  %v2073_v42 = vadd.f32 %v11364_v23, %v2072_v33  ;;  %v710_v33 = vpop.trf.xlu0 }
 0x3fe   : > { %v2672_v48 = vunpack.c.l.bf16 %v2544_v22  ;;  %v5182_v31 = vrot.slane %v5181_v34, 4  ;;  %v5189_v44 = vrot.slane %v5188_v29, 4  ;;  %v1239_v56 = vpop.f32.mrf.mxu0 }
 0x3ff   : > { %v4030_v54 = vsel %vm3968_vm4, %v3904_v37, %v4029_v30  ;;  %v3138_v46 = vrot.slane %v3137_v38, 1  ;;  %v2289_v53 = vmul.f32 0.2, %v2073_v42  ;;  %v1240_v62 = vadd.f32 %v11329_v45, %v1239_v56 }
 0x400   : > { %v3140_v59 = vrot.slane %v2672_v48, 4  ;;  %v5183_v61 = vmax.f32 %v5181_v34, %v5182_v31  ;;  %v5190_v1 = vmax.f32 %v5188_v29, %v5189_v44 }
 0x401   : > { %v3139_v55 = vmax.f32 %v3137_v38, %v3138_v46  ;;  %v2417_v4 = vmax.f32 %v2073_v42, %v2289_v53  ;;  %v1429_v6 = vmul.f32 0.2, %v1240_v62 }
 0x402   : > { %v3141_v11 = vmax.f32 %v2672_v48, %v3140_v59  ;;  %v5184_v9 = vrot.slane %v5183_v61, 2  ;;  %v5191_v58 = vrot.slane %v5190_v1, 2 }
 0x403   : > { %v3567_v15 = vpack.c.bf16 %v3139_v55, %v3139_v55  ;;  %v2545_v12 = vpack.c.bf16 %v2417_v4, %v2417_v4  ;;  %v1557_v43 = vmax.f32 %v1240_v62, %v1429_v6 }
 0x404   : > { %v3142_v10 = vrot.slane %v3141_v11, 2  ;;  %v5185_v21 = vmax.f32 %v5183_v61, %v5184_v9  ;;  %v5192_v16 = vmax.f32 %v5190_v1, %v5191_v58  ;;  %v2075_v60 = vpop.f32.mrf.mxu1 }
 0x405   : > { %v3905_v3 = vunpack.c.l.b16 %v3567_v15  ;;  %v2673_v26 = vunpack.c.l.bf16 %v2545_v12  ;;  %v1641_v30 = vpack.c.bf16 %v1557_v43, %v1556_v50  ;;  %v2076_v28 = vadd.f32 %v11364_v23, %v2075_v60 }
 0x406   : > { %v3143_v32 = vmax.f32 %v3141_v11, %v3142_v10  ;;  %v5186_v5 = vrot.slane %v5185_v21, 1  ;;  %v5193_v18 = vrot.slane %v5192_v16, 1  ;;  %v1242_v39 = vpop.f32.mrf.mxu0  ;;  %v711_v10 = vpop.trf.xlu0 }
 0x407   : > { %v4031_v57 = vsel %vm3970_vm5, %v3905_v3, %v4030_v54  ;;  %v3146_v40 = vrot.slane %v2673_v26, 4  ;;  %v2290_v25 = vmul.f32 0.2, %v2076_v28  ;;  %8519 = vmatmul.msk.bf16.gmra.mxu1 %vm1698_vm2, %v1641_v30  ;;  %v1243_v41 = vadd.f32 %v11329_v45, %v1242_v39 }
 0x408   : > { %v3144_v8 = vrot.slane %v3143_v32, 1  ;;  %v5187_v27 = vmax.f32 %v5185_v21, %v5186_v5  ;;  %v5194_v47 = vmax.f32 %v5192_v16, %v5193_v18  ;;  %8448 = vmatmul.msk.bf16.gmra.mxu0 %vm816_vm1, %v799_v36  ;;  %v800_v21 = vpack.c.bf16 %v710_v33, %v11399_v0 }
 0x409   : > { %v3147_v7 = vmax.f32 %v2673_v26, %v3146_v40  ;;  %v2418_v19 = vmax.f32 %v2076_v28, %v2290_v25  ;;  %v1430_v35 = vmul.f32 0.2, %v1243_v41 }
 0x40a   : > { %v3145_v17 = vmax.f32 %v3143_v32, %v3144_v8  ;;  %v11409_v22 = vsel %vm3968_vm4, %v5187_v27, %v11286_v13  ;;  %v11413_v20 = vsel %vm3968_vm4, %v5194_v47, %v11289_v2  ;;  %v11424_v39 = vpop.trf.xlu1 }
 0x40b   : > { %v3148_v34 = vrot.slane %v3147_v7, 2  ;;  %v2546_v29 = vpack.c.bf16 %v2418_v19, %v2418_v19  ;;  %v1558_v55 = vmax.f32 %v1243_v41, %v1430_v35 }
 0x40c   : > { %v3568_v37 = vpack.c.bf16 %v3145_v17, %v3145_v17  ;;  %v2077_v38 = vpop.f32.mrf.mxu1 }
 0x40d   : > { %v3149_v42 = vmax.f32 %v3147_v7, %v3148_v34  ;;  %v2674_v48 = vunpack.c.l.bf16 %v2546_v29  ;;  %v2078_v31 = vadd.f32 %v11364_v23, %v2077_v38 }
 0x40e   : > { %v3906_v44 = vunpack.c.l.b16 %v3568_v37  ;;  %v1244_v56 = vpop.f32.mrf.mxu0  ;;  %v712_v7 = vpop.trf.xlu0 }
 0x40f   : > { %v3150_v13 = vrot.slane %v3149_v42, 1  ;;  %v3152_v54 = vrot.slane %v2674_v48, 4  ;;  %v2291_v46 = vmul.f32 0.2, %v2078_v31  ;;  %v1245_v2 = vadd.f32 %v11329_v45, %v1244_v56 }
 0x410   : > { %v4032_v53 = vsel %vm3972_vm6, %v3906_v44, %v4031_v57 }
 0x411   : > { %v3151_v62 = vmax.f32 %v3149_v42, %v3150_v13  ;;  %v3153_v59 = vmax.f32 %v2674_v48, %v3152_v54  ;;  %v2419_v61 = vmax.f32 %v2078_v31, %v2291_v46  ;;  %v1431_v1 = vmul.f32 0.2, %v1245_v2 }
 0x412   : > { %v801_v42 = vpack.c.bf16 %v712_v7, %v711_v10  ;;  %v11428_v31 = vpop.trf.xlu1 }
 0x413   : > { %v3569_v4 = vpack.c.bf16 %v3151_v62, %v3151_v62  ;;  %v3154_v6 = vrot.slane %v3153_v59, 2  ;;  %v2547_v11 = vpack.c.bf16 %v2419_v61, %v2419_v61  ;;  %v1559_v9 = vmax.f32 %v1245_v2, %v1431_v1 }
 0x414   : > { %v2080_v58 = vpop.f32.mrf.mxu1 }
 0x415   : > { %v3907_v15 = vunpack.c.l.b16 %v3569_v4  ;;  %v3155_v50 = vmax.f32 %v3153_v59, %v3154_v6  ;;  %v2675_v12 = vunpack.c.l.bf16 %v2547_v11  ;;  %v1642_v43 = vpack.c.bf16 %v1559_v9, %v1558_v55 }
 0x416   : > { %v1247_v16 = vpop.f32.mrf.mxu0  ;;  %v713_v35 = vpop.trf.xlu0  ;;  %v2081_v54 = vadd.f32 %v11364_v23, %v2080_v58 }
 0x417   : > { %v4033_v60 = vsel %vm3974_vm7, %v3907_v15, %v4032_v53  ;;  %v3156_v3 = vrot.slane %v3155_v50, 1  ;;  %v3158_v26 = vrot.slane %v2675_v12, 4  ;;  %8520 = vmatmul.msk.bf16.gmra.mxu1 %vm1698_vm2, %v1642_v43  ;;  %v1248_v18 = vadd.f32 %v11329_v45, %v1247_v16 }
 0x418   : > { %8449 = vmatmul.msk.bf16.gmra.mxu0 %vm816_vm1, %v800_v21  ;;  %v2292_v55 = vmul.f32 0.2, %v2081_v54 }
 0x419   : > { %v3157_v30 = vmax.f32 %v3155_v50, %v3156_v3  ;;  %v3159_v28 = vmax.f32 %v2675_v12, %v3158_v26  ;;  %v1432_v27 = vmul.f32 0.2, %v1248_v18 }
 0x41a   : > { %v11441_v6 = vpop.trf.xlu1  ;;  %v2420_v43 = vmax.f32 %v2081_v54, %v2292_v55 }
 0x41b   : > { %v3570_v32 = vpack.c.bf16 %v3157_v30, %v3157_v30  ;;  %v3160_v5 = vrot.slane %v3159_v28, 2  ;;  %v1560_v34 = vmax.f32 %v1248_v18, %v1432_v27 }
 0x41c   : > { %v2082_v36 = vpop.f32.mrf.mxu1 }
 0x41d   : > { %v3908_v57 = vunpack.c.l.b16 %v3570_v32  ;;  %v3161_v0 = vmax.f32 %v3159_v28, %v3160_v5  ;;  %v2083_v56 = vadd.f32 %v11364_v23, %v2082_v36  ;;  %v2548_v32 = vpack.c.bf16 %v2420_v43, %v2420_v43 }
 0x41e   : > { %v1249_v40 = vpop.f32.mrf.mxu0  ;;  %v714_v58 = vpop.trf.xlu0 }
 0x41f   : > { %v4034_v25 = vsel %vm3976_vm8, %v3908_v57, %v4033_v60  ;;  %v3162_v8 = vrot.slane %v3161_v0, 1  ;;  %v1250_v47 = vadd.f32 %v11329_v45, %v1249_v40  ;;  %v2293_v62 = vmul.f32 0.2, %v2083_v56 }
 0x420   : > { %v802_v26 = vpack.c.bf16 %v714_v58, %v713_v35  ;;  %v803_v58 = vpack.c.bf16 %v11428_v31, %v11424_v39 }
 0x421   : > { %v3163_v19 = vmax.f32 %v3161_v0, %v3162_v8  ;;  %v1433_v17 = vmul.f32 0.2, %v1250_v47  ;;  %v2421_v15 = vmax.f32 %v2083_v56, %v2293_v62  ;;  %v2676_v8 = vunpack.c.l.bf16 %v2548_v32 }
 0x422   : > { %v11446_v40 = vpop.trf.xlu1 }
 0x423   : > { %v3571_v41 = vpack.c.bf16 %v3163_v19, %v3163_v19  ;;  %v1561_v29 = vmax.f32 %v1250_v47, %v1433_v17  ;;  %v2549_v3 = vpack.c.bf16 %v2421_v15, %v2421_v15 }
 0x424   : > { %v2085_v33 = vpop.f32.mrf.mxu1 }
 0x425   : > { %v3909_v37 = vunpack.c.l.b16 %v3571_v41  ;;  %v1643_v38 = vpack.c.bf16 %v1561_v29, %v1560_v34  ;;  %v2086_v46 = vadd.f32 %v11364_v23, %v2085_v33  ;;  %v2677_v57 = vunpack.c.l.bf16 %v2549_v3 }
 0x426   : > { %v1252_v48 = vpop.f32.mrf.mxu0 }
 0x427   : > { %v11431_v44 = vsel %vm3978_vm9, %v3909_v37, %v4034_v25  ;;  %8521 = vmatmul.msk.bf16.gmra.mxu1 %vm1698_vm2, %v1643_v38  ;;  %v1253_v13 = vadd.f32 %v11329_v45, %v1252_v48  ;;  %v2294_v4 = vmul.f32 0.2, %v2086_v46  ;;  %v3170_v41 = vrot.slane %v2677_v57, 4 }
 0x428   : > { %8450 = vmatmul.msk.bf16.gmra.mxu0 %vm816_vm1, %v801_v42  ;;  %v3164_v42 = vrot.slane %v2676_v8, 4 }
 0x429   : > { %v1434_v61 = vmul.f32 0.2, %v1253_v13  ;;  %v2422_v10 = vmax.f32 %v2086_v46, %v2294_v4  ;;  %v3171_v54 = vmax.f32 %v2677_v57, %v3170_v41 }
 0x42a   : > { %v11451_v55 = vpop.trf.xlu1 }
 0x42b   : > { %v1562_v50 = vmax.f32 %v1253_v13, %v1434_v61  ;;  %v2550_v5 = vpack.c.bf16 %v2422_v10, %v2422_v10 }
 0x42c   : > { %v2087_v2 = vpop.f32.mrf.mxu1 }
 0x42d   : > { %v2088_v53 = vadd.f32 %v11364_v23, %v2087_v2  ;;  %v2678_v27 = vunpack.c.l.bf16 %v2550_v5 }
 0x42e   : > { %v1254_v59 = vpop.f32.mrf.mxu0 }
 0x42f   : > { %v1255_v1 = vadd.f32 %v11329_v45, %v1254_v59  ;;  %v2295_v11 = vmul.f32 0.2, %v2088_v53  ;;  %v3176_v48 = vrot.slane %v2678_v27, 4  ;;  %v3165_v59 = vmax.f32 %v2676_v8, %v3164_v42 }
 0x431   : > { %v1435_v9 = vmul.f32 0.2, %v1255_v1  ;;  %v2423_v16 = vmax.f32 %v2088_v53, %v2295_v11  ;;  %v3177_v61 = vmax.f32 %v2678_v27, %v3176_v48 }
 0x433   : > { %v1563_v12 = vmax.f32 %v1255_v1, %v1435_v9  ;;  %v2551_v36 = vpack.c.bf16 %v2423_v16, %v2423_v16  ;;  %v3166_v16 = vrot.slane %v3165_v59, 2 }
 0x434   : > { %v2090_v21 = vpop.f32.mrf.mxu1 }
 0x435   : > { %v1644_v60 = vpack.c.bf16 %v1563_v12, %v1562_v50  ;;  %v2091_v30 = vadd.f32 %v11364_v23, %v2090_v21  ;;  %v2679_v19 = vunpack.c.l.bf16 %v2551_v36  ;;  %v3172_v50 = vrot.slane %v3171_v54, 2 }
 0x436   : > { %v1257_v28 = vpop.f32.mrf.mxu0  ;;  %v3167_v36 = vmax.f32 %v3165_v59, %v3166_v16 }
 0x437   : > { %8522 = vmatmul.msk.bf16.gmra.mxu1 %vm1698_vm2, %v1644_v60  ;;  %v2296_v18 = vmul.f32 0.2, %v2091_v30  ;;  %v1258_v25 = vadd.f32 %v11329_v45, %v1257_v28  ;;  %v3182_v35 = vrot.slane %v2679_v19, 4  ;;  %v3178_v60 = vrot.slane %v3177_v61, 2 }
 0x438   : > { %8451 = vmatmul.msk.bf16.gmra.mxu0 %vm816_vm1, %v802_v26  ;;  %v3173_v28 = vmax.f32 %v3171_v54, %v3172_v50 }
 0x439   : > { %v2424_v0 = vmax.f32 %v2091_v30, %v2296_v18  ;;  %v1436_v33 = vmul.f32 0.2, %v1258_v25  ;;  %v3183_v4 = vmax.f32 %v2679_v19, %v3182_v35  ;;  %v3179_v57 = vmax.f32 %v3177_v61, %v3178_v60  ;;  %v11460_v19 = vpop.trf.xlu1 }
 0x43a   : > { %v3174_v27 = vrot.slane %v3173_v28, 1 }
 0x43b   : > { %v2552_v47 = vpack.c.bf16 %v2424_v0, %v2424_v0  ;;  %v1564_v2 = vmax.f32 %v1258_v25, %v1436_v33  ;;  %v3184_v3 = vrot.slane %v3183_v4, 2  ;;  %v3168_v33 = vrot.slane %v3167_v36, 1 }
 0x43c   : > { %v2092_v7 = vpop.f32.mrf.mxu1 }
 0x43d   : > { %v2093_v17 = vadd.f32 %v11364_v23, %v2092_v7  ;;  %v2680_v34 = vunpack.c.l.bf16 %v2552_v47  ;;  %v3185_v0 = vmax.f32 %v3183_v4, %v3184_v3  ;;  %v3169_v59 = vmax.f32 %v3167_v36, %v3168_v33 }
 0x43e   : > { %v1259_v29 = vpop.f32.mrf.mxu0 }
 0x43f   : > { %v2297_v37 = vmul.f32 0.2, %v2093_v17  ;;  %v1260_v38 = vadd.f32 %v11329_v45, %v1259_v29  ;;  %v3188_v46 = vrot.slane %v2680_v34, 4  ;;  %v3186_v42 = vrot.slane %v3185_v0, 1 }
 0x440   : > { %v3572_v3 = vpack.c.bf16 %v3169_v59, %v3169_v59 }
 0x441   : > { %v2425_v56 = vmax.f32 %v2093_v17, %v2297_v37  ;;  %v1437_v13 = vmul.f32 0.2, %v1260_v38  ;;  %v3189_v12 = vmax.f32 %v2680_v34, %v3188_v46  ;;  %v3180_v37 = vrot.slane %v3179_v57, 1 }
 0x443   : > { %v2553_v53 = vpack.c.bf16 %v2425_v56, %v2425_v56  ;;  %v1565_v62 = vmax.f32 %v1260_v38, %v1437_v13  ;;  %v3190_v32 = vrot.slane %v3189_v12, 2  ;;  %v3175_v13 = vmax.f32 %v3173_v28, %v3174_v27 }
 0x444   : > { %v2095_v1 = vpop.f32.mrf.mxu1  ;;  %v3181_v61 = vmax.f32 %v3179_v57, %v3180_v37 }
 0x445   : > { %v2681_v11 = vunpack.c.l.bf16 %v2553_v53  ;;  %v1645_v9 = vpack.c.bf16 %v1565_v62, %v1564_v2  ;;  %v2096_v15 = vadd.f32 %v11364_v23, %v2095_v1  ;;  %v3191_v47 = vmax.f32 %v3189_v12, %v3190_v32  ;;  %v11468_v32 = vpop.trf.xlu1 }
 0x446   : > { %v1262_v43 = vpop.f32.mrf.mxu0  ;;  %v3573_v12 = vpack.c.bf16 %v3175_v13, %v3175_v13 }
 0x447   : > { %v3194_v10 = vrot.slane %v2681_v11, 4  ;;  %v2298_v21 = vmul.f32 0.2, %v2096_v15  ;;  %8523 = vmatmul.msk.bf16.gmra.mxu1 %vm1698_vm2, %v1645_v9  ;;  %v1263_v18 = vadd.f32 %v11329_v45, %v1262_v43  ;;  %v3192_v54 = vrot.slane %v3191_v47, 1 }
 0x448   : > { %8452 = vmatmul.msk.bf16.gmra.mxu0 %vm816_vm1, %v803_v58  ;;  %v804_v43 = vpack.c.bf16 %v11446_v40, %v11441_v6  ;;  %v3911_v36 = vunpack.c.l.b16 %v3573_v12 }
 0x449   : > { %v3195_v26 = vmax.f32 %v2681_v11, %v3194_v10  ;;  %v2426_v30 = vmax.f32 %v2096_v15, %v2298_v21  ;;  %v1438_v41 = vmul.f32 0.2, %v1263_v18  ;;  %v3187_v11 = vmax.f32 %v3185_v0, %v3186_v42 }
 0x44a   : > { %v3193_v58 = vmax.f32 %v3191_v47, %v3192_v54  ;;  %v3910_v0 = vunpack.c.l.b16 %v3572_v3 }
 0x44b   : > { %v2554_v5 = vpack.c.bf16 %v2426_v30, %v2426_v30  ;;  %v3196_v39 = vrot.slane %v3195_v26, 2  ;;  %v1566_v2 = vmax.f32 %v1263_v18, %v1438_v41 }
 0x44c   : > { %v2097_v31 = vpop.f32.mrf.mxu1  ;;  %v3576_v57 = vpack.c.bf16 %v3193_v58, %v3193_v58 }
 0x44d   : > { %v2682_v25 = vunpack.c.l.bf16 %v2554_v5  ;;  %v2098_v8 = vadd.f32 %v11364_v23, %v2097_v31  ;;  %v3197_v38 = vmax.f32 %v3195_v26, %v3196_v39  ;;  %v3574_v26 = vpack.c.bf16 %v3181_v61, %v3181_v61 }
 0x44e   : > { %v1264_v7 = vpop.f32.mrf.mxu0  ;;  %v3575_v5 = vpack.c.bf16 %v3187_v11, %v3187_v11  ;;  %v11477_v11 = vpop.trf.xlu1 }
 0x44f   : > { %v3200_v17 = vrot.slane %v2682_v25, 4  ;;  %v2299_v34 = vmul.f32 0.2, %v2098_v8  ;;  %v1265_v29 = vadd.f32 %v11329_v45, %v1264_v7  ;;  %v3198_v1 = vrot.slane %v3197_v38, 1 }
 0x450   : > { %v3913_v7 = vunpack.c.l.b16 %v3575_v5 }
 0x451   : > { %v3201_v48 = vmax.f32 %v2682_v25, %v3200_v17  ;;  %v2427_v35 = vmax.f32 %v2098_v8, %v2299_v34  ;;  %v1439_v56 = vmul.f32 0.2, %v1265_v29  ;;  %v3199_v30 = vmax.f32 %v3197_v38, %v3198_v1 }
 0x452   : > { %v3912_v25 = vunpack.c.l.b16 %v3574_v26  ;;  %v4036_v34 = vsel %vm3966_vm3, %v3911_v36, %v3910_v0 }
 0x453   : > { %v3202_v46 = vrot.slane %v3201_v48, 2  ;;  %v2555_v53 = vpack.c.bf16 %v2427_v35, %v2427_v35  ;;  %v1567_v62 = vmax.f32 %v1265_v29, %v1439_v56  ;;  %v3577_v8 = vpack.c.bf16 %v3199_v30, %v3199_v30 }
 0x454   : > { %v2100_v4 = vpop.f32.mrf.mxu1  ;;  %v3914_v29 = vunpack.c.l.b16 %v3576_v57  ;;  %v4037_v13 = vsel %vm3968_vm4, %v3912_v25, %v4036_v34  ;;  %v805_v30 = vpack.c.bf16 %v11460_v19, %v11451_v55 }
 0x455   : > { %v3203_v9 = vmax.f32 %v3201_v48, %v3202_v46  ;;  %v2683_v15 = vunpack.c.l.bf16 %v2555_v53  ;;  %v1646_v50 = vpack.c.bf16 %v1567_v62, %v1566_v2  ;;  %v2101_v10 = vadd.f32 %v11364_v23, %v2100_v4 }
 0x456   : > { %v1267_v21 = vpop.f32.mrf.mxu0  ;;  %v3915_v54 = vunpack.c.l.b16 %v3577_v8  ;;  %v4038_v2 = vsel %vm3970_vm5, %v3913_v7, %v4037_v13  ;;  %v11498_v8 = vpop.trf.xlu1 }
 0x457   : > { %v3204_v16 = vrot.slane %v3203_v9, 1  ;;  %v3206_v60 = vrot.slane %v2683_v15, 4  ;;  %8524 = vmatmul.msk.bf16.gmra.mxu1 %vm1698_vm2, %v1646_v50  ;;  %v2300_v28 = vmul.f32 0.2, %v2101_v10  ;;  %v1268_v31 = vadd.f32 %v11329_v45, %v1267_v21 }
 0x458   : > { %8453 = vmatmul.msk.bf16.gmra.mxu0 %vm816_vm1, %v804_v43  ;;  %v4039_v61 = vsel %vm3972_vm6, %v3914_v29, %v4038_v2 }
 0x459   : > { %v3207_v18 = vmax.f32 %v2683_v15, %v3206_v60  ;;  %v3205_v6 = vmax.f32 %v3203_v9, %v3204_v16  ;;  %v2428_v40 = vmax.f32 %v2101_v10, %v2300_v28  ;;  %v1440_v48 = vmul.f32 0.2, %v1268_v31 }
 0x45b   : > { %v3208_v39 = vrot.slane %v3207_v18, 2  ;;  %v2556_v27 = vpack.c.bf16 %v2428_v40, %v2428_v40  ;;  %v3578_v33 = vpack.c.bf16 %v3205_v6, %v3205_v6  ;;  %v1568_v15 = vmax.f32 %v1268_v31, %v1440_v48  ;;  %v11493_v31 = vld [vmem:[%s13725_s2] ss:$0 sm:$0xff] }
 0x45c   : > { %v2102_v47 = vpop.f32.mrf.mxu1 }
 0x45d   : > { %v3209_v17 = vmax.f32 %v3207_v18, %v3208_v39  ;;  %v2103_v41 = vadd.f32 %v11364_v23, %v2102_v47  ;;  %v2684_v37 = vunpack.c.l.bf16 %v2556_v27  ;;  %v3916_v1 = vunpack.c.l.b16 %v3578_v33 }
 0x45e   : > { %v1269_v38 = vpop.f32.mrf.mxu0 }
 0x45f   : > { %v3210_v42 = vrot.slane %v3209_v17, 1  ;;  %v2301_v35 = vmul.f32 0.2, %v2103_v41  ;;  %v1270_v56 = vadd.f32 %v11329_v45, %v1269_v38  ;;  %v3212_v46 = vrot.slane %v2684_v37, 4 }
 0x460   : > { %v4040_v45 = vsel %vm3974_vm7, %v3915_v54, %v4039_v61 }
 0x461   : > { %v3211_v53 = vmax.f32 %v3209_v17, %v3210_v42  ;;  %v2429_v62 = vmax.f32 %v2103_v41, %v2301_v35  ;;  %v1441_v59 = vmul.f32 0.2, %v1270_v56  ;;  %v3213_v4 = vmax.f32 %v2684_v37, %v3212_v46 }
 0x462   : > { %v4041_v3 = vsel %vm3976_vm8, %v3916_v1, %v4040_v45 }
 0x463   : > { %v3579_v9 = vpack.c.bf16 %v3211_v53, %v3211_v53  ;;  %v2557_v50 = vpack.c.bf16 %v2429_v62, %v2429_v62  ;;  %v1569_v12 = vmax.f32 %v1270_v56, %v1441_v59  ;;  %v3214_v58 = vrot.slane %v3213_v4, 2 }
 0x464   : > { %v2105_v43 = vpop.f32.mrf.mxu1 }
 0x465   : > { %v3917_v10 = vunpack.c.l.b16 %v3579_v9  ;;  %v2685_v21 = vunpack.c.l.bf16 %v2557_v50  ;;  %v1647_v16 = vpack.c.bf16 %v1569_v12, %v1568_v15  ;;  %v2106_v60 = vadd.f32 %v11364_v23, %v2105_v43 }
 0x466   : > { %v3215_v26 = vmax.f32 %v3213_v4, %v3214_v58  ;;  %v1272_v28 = vpop.f32.mrf.mxu0 }
 0x467   : > { %v4042_v5 = vsel %vm3978_vm9, %v3917_v10, %v4041_v3  ;;  %v3218_v18 = vrot.slane %v2685_v21, 4  ;;  %v2302_v36 = vmul.f32 0.2, %v2106_v60  ;;  %8525 = vmatmul.msk.bf16.gmra.mxu1 %vm1698_vm2, %v1647_v16  ;;  %v1273_v55 = vadd.f32 %v11493_v31, %v1272_v28 }
 0x468   : > { %v11487_v57 = vpack.c.b16 %v4042_v5, %v11431_v44  ;;  %v3216_v6 = vrot.slane %v3215_v26, 1  ;;  %8454 = vmatmul.msk.bf16.gmra.mxu0 %vm816_vm1, %v805_v30  ;;  %v806_v16 = vpack.c.bf16 %v11477_v11, %v11468_v32 }
 0x469   : > { %v3219_v40 = vmax.f32 %v2685_v21, %v3218_v18  ;;  %v2430_v39 = vmax.f32 %v2106_v60, %v2302_v36  ;;  %v1442_v34 = vmul.f32 0.2, %v1273_v55  ;;  %v11511_v36 = vpop.trf.xlu1 }
 0x46a   : > { %4449 = vmatmul.bf16.gmra.mxu2 %v11487_v57  ;;  %4498 = vmatmul.bf16.gmra.mxu3 %v11487_v57  ;;  %v3217_v44 = vmax.f32 %v3215_v26, %v3216_v6 }
 0x46b   : > { %v3220_v19 = vrot.slane %v3219_v40, 2  ;;  %v2558_v0 = vpack.c.bf16 %v2430_v39, %v2430_v39  ;;  %v1570_v53 = vmax.f32 %v1273_v55, %v1442_v34 }
 0x46c   : > { %v2107_v25 = vpop.f32.mrf.mxu1  ;;  %v3580_v48 = vpack.c.bf16 %v3217_v44, %v3217_v44 }
 0x46d   : > { %v3221_v27 = vmax.f32 %v3219_v40, %v3220_v19  ;;  %v2686_v47 = vunpack.c.l.bf16 %v2558_v0  ;;  %v2108_v7 = vadd.f32 %v11364_v23, %v2107_v25  ;;  %v4445_v17 = vpop.f32.mrf.mxu2  ;;  %v4494_v41 = vpop.f32.mrf.mxu3 }
 0x46e   : > { %v1274_v29 = vpop.f32.mrf.mxu0  ;;  %v4446_v35 = vadd.f32 %v4445_v17, %v11208_v49  ;;  %v4495_v56 = vadd.f32 %v4494_v41, %v11218_v63  ;;  %v3918_v4 = vunpack.c.l.b16 %v3580_v48 }
 0x46f   : > { %v3222_v33 = vrot.slane %v3221_v27, 1  ;;  %v3224_v37 = vrot.slane %v2686_v47, 4  ;;  %v2303_v38 = vmul.f32 0.2, %v2108_v7  ;;  %v1275_v42 = vadd.f32 %v11493_v31, %v1274_v29 }
 0x470   : > { %v4861_v9 = vmul.f32 0.2, %v4446_v35  ;;  %v4862_v15 = vmul.f32 0.2, %v4495_v56 }
 0x471   : > { %v3223_v13 = vmax.f32 %v3221_v27, %v3222_v33  ;;  %v3225_v54 = vmax.f32 %v2686_v47, %v3224_v37  ;;  %v2431_v46 = vmax.f32 %v2108_v7, %v2303_v38  ;;  %v1443_v2 = vmul.f32 0.2, %v1275_v42 }
 0x472   : > { %v4989_v55 = vmax.f32 %v4446_v35, %v4861_v9  ;;  %v4990_v19 = vmax.f32 %v4495_v56, %v4862_v15  ;;  %v11518_v15 = vpop.trf.xlu1 }
 0x473   : > { %v3581_v62 = vpack.c.bf16 %v3223_v13, %v3223_v13  ;;  %v3226_v59 = vrot.slane %v3225_v54, 2  ;;  %v2559_v61 = vpack.c.bf16 %v2431_v46, %v2431_v46  ;;  %v1571_v1 = vmax.f32 %v1275_v42, %v1443_v2 }
 0x474   : > { %v2110_v50 = vpop.f32.mrf.mxu1 }
 0x475   : > { %v3919_v12 = vunpack.c.l.b16 %v3581_v62  ;;  %v3227_v45 = vmax.f32 %v3225_v54, %v3226_v59  ;;  %v2687_v58 = vunpack.c.l.bf16 %v2559_v61  ;;  %v1648_v43 = vpack.c.bf16 %v1571_v1, %v1570_v53  ;;  %v4447_v10 = vpop.f32.mrf.mxu2  ;;  %v4496_v21 = vpop.f32.mrf.mxu3 }
 0x476   : > { %v2111_v60 = vadd.f32 %v11364_v23, %v2110_v50  ;;  %v4448_v3 = vadd.f32 %v4447_v10, %v11208_v49  ;;  %v4497_v26 = vadd.f32 %v4496_v21, %v11218_v63  ;;  %v1277_v30 = vpop.f32.mrf.mxu0 }
 0x477   : > { %v4043_v28 = vsel %vm3966_vm3, %v3919_v12, %v3918_v4  ;;  %v3228_v5 = vrot.slane %v3227_v45, 1  ;;  %v3230_v18 = vrot.slane %v2687_v58, 4  ;;  %8526 = vmatmul.msk.bf16.gmra.mxu1 %vm1698_vm2, %v1648_v43  ;;  %v1278_v27 = vadd.f32 %v11493_v31, %v1277_v30 }
 0x478   : > { %v2304_v6 = vmul.f32 0.2, %v2111_v60  ;;  %v4869_v40 = vmul.f32 0.2, %v4448_v3  ;;  %v4870_v39 = vmul.f32 0.2, %v4497_v26  ;;  %8455 = vmatmul.msk.bf16.gmra.mxu0 %vm816_vm1, %v806_v16 }
 0x479   : > { %v3229_v32 = vmax.f32 %v3227_v45, %v3228_v5  ;;  %v3231_v11 = vmax.f32 %v2687_v58, %v3230_v18  ;;  %v1444_v35 = vmul.f32 0.2, %v1278_v27 }
 0x47a   : > { %v2432_v0 = vmax.f32 %v2111_v60, %v2304_v6  ;;  %v4997_v44 = vmax.f32 %v4448_v3, %v4869_v40  ;;  %v4998_v25 = vmax.f32 %v4497_v26, %v4870_v39 }
 0x47b   : > { %v3582_v47 = vpack.c.bf16 %v3229_v32, %v3229_v32  ;;  %v3232_v7 = vrot.slane %v3231_v11, 2  ;;  %v1572_v43 = vmax.f32 %v1278_v27, %v1444_v35  ;;  %v807_v32 = vpack.c.bf16 %v11511_v36, %v11498_v8 }
 0x47c   : > { %v2560_v17 = vpack.c.bf16 %v2432_v0, %v2432_v0  ;;  %v5237_v41 = vmax.f32 %v4989_v55, %v4997_v44  ;;  %v5244_v34 = vmax.f32 %v4990_v19, %v4998_v25  ;;  %v2112_v29 = vpop.f32.mrf.mxu1 }
 0x47d   : > { %v3920_v33 = vunpack.c.l.b16 %v3582_v47  ;;  %v3233_v37 = vmax.f32 %v3231_v11, %v3232_v7  ;;  %v2113_v38 = vadd.f32 %v11364_v23, %v2112_v29  ;;  %v742_v29 = vpop.trf.xlu1 }
 0x47e   : > { %v2688_v42 = vunpack.c.l.bf16 %v2560_v17  ;;  %v5238_v48 = vrot.slane %v5237_v41, 4  ;;  %v5245_v13 = vrot.slane %v5244_v34, 4  ;;  %v1279_v56 = vpop.f32.mrf.mxu0 }
 0x47f   : > { %v4044_v54 = vsel %vm3968_vm4, %v3920_v33, %v4043_v28  ;;  %v3234_v46 = vrot.slane %v3233_v37, 1  ;;  %v2305_v2 = vmul.f32 0.2, %v2113_v38  ;;  %v1280_v53 = vadd.f32 %v11493_v31, %v1279_v56 }
 0x480   : > { %v3236_v62 = vrot.slane %v2688_v42, 4  ;;  %v5239_v59 = vmax.f32 %v5237_v41, %v5238_v48  ;;  %v5246_v61 = vmax.f32 %v5244_v34, %v5245_v13  ;;  %v11538_v48 = vld [vmem:[%s13727_s4] ss:$0 sm:$0xff] }
 0x481   : > { %v3235_v1 = vmax.f32 %v3233_v37, %v3234_v46  ;;  %v2433_v4 = vmax.f32 %v2113_v38, %v2305_v2  ;;  %v1445_v9 = vmul.f32 0.2, %v1280_v53 }
 0x482   : > { %v3237_v50 = vmax.f32 %v2688_v42, %v3236_v62  ;;  %v5240_v12 = vrot.slane %v5239_v59, 2  ;;  %v5247_v45 = vrot.slane %v5246_v61, 2 }
 0x483   : > { %v3583_v58 = vpack.c.bf16 %v3235_v1, %v3235_v1  ;;  %v2561_v10 = vpack.c.bf16 %v2433_v4, %v2433_v4  ;;  %v1573_v21 = vmax.f32 %v1280_v53, %v1445_v9 }
 0x484   : > { %v3238_v16 = vrot.slane %v3237_v50, 2  ;;  %v5241_v60 = vmax.f32 %v5239_v59, %v5240_v12  ;;  %v5248_v3 = vmax.f32 %v5246_v61, %v5247_v45  ;;  %v2115_v26 = vpop.f32.mrf.mxu1 }
 0x485   : > { %v3921_v30 = vunpack.c.l.b16 %v3583_v58  ;;  %v2689_v28 = vunpack.c.l.bf16 %v2561_v10  ;;  %v1649_v5 = vpack.c.bf16 %v1573_v21, %v1572_v43  ;;  %v2116_v18 = vadd.f32 %v11364_v23, %v2115_v26 }
 0x486   : > { %v3239_v6 = vmax.f32 %v3237_v50, %v3238_v16  ;;  %v5242_v40 = vrot.slane %v5241_v60, 1  ;;  %v5249_v39 = vrot.slane %v5248_v3, 1  ;;  %v1282_v11 = vpop.f32.mrf.mxu0 }
 0x487   : > { %v4045_v55 = vsel %vm3970_vm5, %v3921_v30, %v4044_v54  ;;  %v3242_v19 = vrot.slane %v2689_v28, 4  ;;  %v2306_v0 = vmul.f32 0.2, %v2116_v18  ;;  %8527 = vmatmul.msk.bf16.gmra.mxu1 %vm1698_vm2, %v1649_v5  ;;  %v1283_v36 = vadd.f32 %v11493_v31, %v1282_v11 }
 0x488   : > { %v3240_v44 = vrot.slane %v3239_v6, 1  ;;  %v5243_v25 = vmax.f32 %v5241_v60, %v5242_v40  ;;  %v5250_v27 = vmax.f32 %v5248_v3, %v5249_v39  ;;  %8456 = vmatmul.msk.bf16.gmra.mxu0 %vm816_vm1, %v807_v32  ;;  %v743_v60 = vpop.trf.xlu1  ;;  %v808_v3 = vpack.c.bf16 %v742_v29, %v11518_v15 }
 0x489   : > { %v3243_v47 = vmax.f32 %v2689_v28, %v3242_v19  ;;  %v2434_v23 = vmax.f32 %v2116_v18, %v2306_v0  ;;  %v1446_v35 = vmul.f32 0.2, %v1283_v36 }
 0x48a   : > { %v3241_v7 = vmax.f32 %v3239_v6, %v3240_v44  ;;  %v11528_v17 = vsel %vm3970_vm5, %v5243_v25, %v11409_v22  ;;  %v11532_v8 = vsel %vm3970_vm5, %v5250_v27, %v11413_v20 }
 0x48b   : > { %v3244_v41 = vrot.slane %v3243_v47, 2  ;;  %v2562_v34 = vpack.c.bf16 %v2434_v23, %v2434_v23  ;;  %v1574_v4 = vmax.f32 %v1283_v36, %v1446_v35 }
 0x48c   : > { %v3584_v33 = vpack.c.bf16 %v3241_v7, %v3241_v7  ;;  %v2117_v37 = vpop.f32.mrf.mxu1 }
 0x48d   : > { %v3245_v38 = vmax.f32 %v3243_v47, %v3244_v41  ;;  %v2690_v42 = vunpack.c.l.bf16 %v2562_v34  ;;  %v2118_v22 = vadd.f32 %v11538_v48, %v2117_v37 }
 0x48e   : > { %v3922_v13 = vunpack.c.l.b16 %v3584_v33  ;;  %v1284_v20 = vpop.f32.mrf.mxu0 }
 0x48f   : > { %v3246_v56 = vrot.slane %v3245_v38, 1  ;;  %v3248_v54 = vrot.slane %v2690_v42, 4  ;;  %v2307_v46 = vmul.f32 0.2, %v2118_v22  ;;  %v1285_v2 = vadd.f32 %v11493_v31, %v1284_v20 }
 0x490   : > { %v4046_v53 = vsel %vm3972_vm6, %v3922_v13, %v4045_v55  ;;  %v744_v27 = vpop.trf.xlu1 }
 0x491   : > { %v3247_v62 = vmax.f32 %v3245_v38, %v3246_v56  ;;  %v3249_v59 = vmax.f32 %v2690_v42, %v3248_v54  ;;  %v2435_v61 = vmax.f32 %v2118_v22, %v2307_v46  ;;  %v1447_v1 = vmul.f32 0.2, %v1285_v2 }
 0x492   : > { %v809_v38 = vpack.c.bf16 %v744_v27, %v743_v60 }
 0x493   : > { %v3585_v9 = vpack.c.bf16 %v3247_v62, %v3247_v62  ;;  %v3250_v50 = vrot.slane %v3249_v59, 2  ;;  %v2563_v12 = vpack.c.bf16 %v2435_v61, %v2435_v61  ;;  %v1575_v45 = vmax.f32 %v1285_v2, %v1447_v1 }
 0x494   : > { %v2120_v58 = vpop.f32.mrf.mxu1 }
 0x495   : > { %v3923_v43 = vunpack.c.l.b16 %v3585_v9  ;;  %v3251_v10 = vmax.f32 %v3249_v59, %v3250_v50  ;;  %v2691_v21 = vunpack.c.l.bf16 %v2563_v12  ;;  %v1650_v16 = vpack.c.bf16 %v1575_v45, %v1574_v4 }
 0x496   : > { %v1287_v26 = vpop.f32.mrf.mxu0  ;;  %v2121_v56 = vadd.f32 %v11538_v48, %v2120_v58 }
 0x497   : > { %v4047_v30 = vsel %vm3974_vm7, %v3923_v43, %v4046_v53  ;;  %v3252_v28 = vrot.slane %v3251_v10, 1  ;;  %v3254_v5 = vrot.slane %v2691_v21, 4  ;;  %8528 = vmatmul.msk.bf16.gmra.mxu1 %vm1698_vm2, %v1650_v16  ;;  %v1288_v32 = vadd.f32 %v11493_v31, %v1287_v26 }
 0x498   : > { %8457 = vmatmul.msk.bf16.gmra.mxu0 %vm816_vm1, %v808_v3  ;;  %v745_v13 = vpop.trf.xlu1  ;;  %v2308_v1 = vmul.f32 0.2, %v2121_v56 }
 0x499   : > { %v3253_v18 = vmax.f32 %v3251_v10, %v3252_v28  ;;  %v3255_v6 = vmax.f32 %v2691_v21, %v3254_v5  ;;  %v1448_v25 = vmul.f32 0.2, %v1288_v32 }
 0x49a   : > { %v2436_v21 = vmax.f32 %v2121_v56, %v2308_v1 }
 0x49b   : > { %v3586_v40 = vpack.c.bf16 %v3253_v18, %v3253_v18  ;;  %v3256_v39 = vrot.slane %v3255_v6, 2  ;;  %v1576_v41 = vmax.f32 %v1288_v32, %v1448_v25 }
 0x49c   : > { %v2122_v11 = vpop.f32.mrf.mxu1  ;;  %v2564_v18 = vpack.c.bf16 %v2436_v21, %v2436_v21 }
 0x49d   : > { %v3924_v55 = vunpack.c.l.b16 %v3586_v40  ;;  %v3257_v19 = vmax.f32 %v3255_v6, %v3256_v39  ;;  %v2123_v35 = vadd.f32 %v11538_v48, %v2122_v11 }
 0x49e   : > { %v1289_v0 = vpop.f32.mrf.mxu0 }
 0x49f   : > { %v4048_v15 = vsel %vm3976_vm8, %v3924_v55, %v4047_v30  ;;  %v3258_v44 = vrot.slane %v3257_v19, 1  ;;  %v1290_v47 = vadd.f32 %v11493_v31, %v1289_v0  ;;  %v2309_v53 = vmul.f32 0.2, %v2123_v35 }
 0x4a0   : > { %v746_v43 = vpop.trf.xlu1 }
 0x4a1   : > { %v3259_v23 = vmax.f32 %v3257_v19, %v3258_v44  ;;  %v1449_v7 = vmul.f32 0.2, %v1290_v47  ;;  %v2437_v12 = vmax.f32 %v2123_v35, %v2309_v53  ;;  %v810_v30 = vpack.c.bf16 %v746_v43, %v745_v13 }
 0x4a2   : > { %v2692_v19 = vunpack.c.l.bf16 %v2564_v18 }
 0x4a3   : > { %v3587_v36 = vpack.c.bf16 %v3259_v23, %v3259_v23  ;;  %v1577_v34 = vmax.f32 %v1290_v47, %v1449_v7  ;;  %v2565_v26 = vpack.c.bf16 %v2437_v12, %v2437_v12 }
 0x4a4   : > { %v2125_v29 = vpop.f32.mrf.mxu1 }
 0x4a5   : > { %v3925_v33 = vunpack.c.l.b16 %v3587_v36  ;;  %v1651_v37 = vpack.c.bf16 %v1577_v34, %v1576_v41  ;;  %v2126_v54 = vadd.f32 %v11538_v48, %v2125_v29  ;;  %v2693_v32 = vunpack.c.l.bf16 %v2565_v26 }
 0x4a6   : > { %v1292_v42 = vpop.f32.mrf.mxu0  ;;  %v3260_v29 = vrot.slane %v2692_v19, 4 }
 0x4a7   : > { %v11551_v22 = vsel %vm3978_vm9, %v3925_v33, %v4048_v15  ;;  %8529 = vmatmul.msk.bf16.gmra.mxu1 %vm1698_vm2, %v1651_v37  ;;  %v1293_v20 = vadd.f32 %v11493_v31, %v1292_v42  ;;  %v2310_v4 = vmul.f32 0.2, %v2126_v54  ;;  %v3266_v47 = vrot.slane %v2693_v32, 4 }
 0x4a8   : > { %8458 = vmatmul.msk.bf16.gmra.mxu0 %vm816_vm1, %v809_v38 }
 0x4a9   : > { %v1450_v59 = vmul.f32 0.2, %v1293_v20  ;;  %v2438_v58 = vmax.f32 %v2126_v54, %v2310_v4  ;;  %v3267_v13 = vmax.f32 %v2693_v32, %v3266_v47 }
 0x4ab   : > { %v1578_v45 = vmax.f32 %v1293_v20, %v1450_v59  ;;  %v2566_v6 = vpack.c.bf16 %v2438_v58, %v2438_v58  ;;  %v3268_v4 = vrot.slane %v3267_v13, 2 }
 0x4ac   : > { %v2127_v46 = vpop.f32.mrf.mxu1 }
 0x4ad   : > { %v2128_v2 = vadd.f32 %v11538_v48, %v2127_v46  ;;  %v2694_v0 = vunpack.c.l.bf16 %v2566_v6  ;;  %v3261_v46 = vmax.f32 %v2692_v19, %v3260_v29 }
 0x4ae   : > { %v1294_v62 = vpop.f32.mrf.mxu0 }
 0x4af   : > { %v1295_v61 = vadd.f32 %v11493_v31, %v1294_v62  ;;  %v2311_v9 = vmul.f32 0.2, %v2128_v2  ;;  %v3272_v33 = vrot.slane %v2694_v0, 4  ;;  %v3262_v43 = vrot.slane %v3261_v46, 2 }
 0x4b1   : > { %v1451_v50 = vmul.f32 0.2, %v1295_v61  ;;  %v2439_v60 = vmax.f32 %v2128_v2, %v2311_v9  ;;  %v3273_v2 = vmax.f32 %v2694_v0, %v3272_v33 }
 0x4b3   : > { %v1579_v10 = vmax.f32 %v1295_v61, %v1451_v50  ;;  %v2567_v39 = vpack.c.bf16 %v2439_v60, %v2439_v60  ;;  %v3269_v60 = vmax.f32 %v3267_v13, %v3268_v4 }
 0x4b4   : > { %v2130_v16 = vpop.f32.mrf.mxu1 }
 0x4b5   : > { %v1652_v3 = vpack.c.bf16 %v1579_v10, %v1578_v45  ;;  %v2131_v28 = vadd.f32 %v11538_v48, %v2130_v16  ;;  %v2695_v25 = vunpack.c.l.bf16 %v2567_v39  ;;  %v3274_v10 = vrot.slane %v3273_v2, 2 }
 0x4b6   : > { %v1297_v5 = vpop.f32.mrf.mxu0 }
 0x4b7   : > { %8530 = vmatmul.msk.bf16.gmra.mxu1 %vm1698_vm2, %v1652_v3  ;;  %v2312_v40 = vmul.f32 0.2, %v2131_v28  ;;  %v1298_v55 = vadd.f32 %v11493_v31, %v1297_v5  ;;  %v3278_v37 = vrot.slane %v2695_v25, 4  ;;  %v3275_v5 = vmax.f32 %v3273_v2, %v3274_v10 }
 0x4b8   : > { %8459 = vmatmul.msk.bf16.gmra.mxu0 %vm816_vm1, %v810_v30 }
 0x4b9   : > { %v2440_v11 = vmax.f32 %v2131_v28, %v2312_v40  ;;  %v1452_v36 = vmul.f32 0.2, %v1298_v55  ;;  %v3279_v62 = vmax.f32 %v2695_v25, %v3278_v37  ;;  %v3263_v28 = vmax.f32 %v3261_v46, %v3262_v43 }
 0x4ba   : > { %v3276_v47 = vrot.slane %v3275_v5, 1 }
 0x4bb   : > { %v2568_v15 = vpack.c.bf16 %v2440_v11, %v2440_v11  ;;  %v1580_v20 = vmax.f32 %v1298_v55, %v1452_v36  ;;  %v3280_v21 = vrot.slane %v3279_v62, 2  ;;  %v3270_v11 = vrot.slane %v3269_v60, 1 }
 0x4bc   : > { %v2132_v44 = vpop.f32.mrf.mxu1 }
 0x4bd   : > { %v2133_v27 = vadd.f32 %v11538_v48, %v2132_v44  ;;  %v2696_v23 = vunpack.c.l.bf16 %v2568_v15  ;;  %v3281_v40 = vmax.f32 %v3279_v62, %v3280_v21  ;;  %v3271_v29 = vmax.f32 %v3269_v60, %v3270_v11 }
 0x4be   : > { %v1299_v7 = vpop.f32.mrf.mxu0 }
 0x4bf   : > { %v2313_v41 = vmul.f32 0.2, %v2133_v27  ;;  %v1300_v34 = vadd.f32 %v11493_v31, %v1299_v7  ;;  %v3284_v35 = vrot.slane %v2696_v23, 4  ;;  %v3282_v7 = vrot.slane %v3281_v40, 1 }
 0x4c1   : > { %v2441_v38 = vmax.f32 %v2133_v27, %v2313_v41  ;;  %v1453_v42 = vmul.f32 0.2, %v1300_v34  ;;  %v3285_v9 = vmax.f32 %v2696_v23, %v3284_v35  ;;  %v3264_v27 = vrot.slane %v3263_v28, 1 }
 0x4c2   : > { %v3283_v46 = vmax.f32 %v3281_v40, %v3282_v7 }
 0x4c3   : > { %v2569_v56 = vpack.c.bf16 %v2441_v38, %v2441_v38  ;;  %v1581_v54 = vmax.f32 %v1300_v34, %v1453_v42  ;;  %v3286_v3 = vrot.slane %v3285_v9, 2  ;;  %v3265_v35 = vmax.f32 %v3263_v28, %v3264_v27 }
 0x4c4   : > { %v2135_v53 = vpop.f32.mrf.mxu1  ;;  %v3591_v21 = vpack.c.bf16 %v3283_v46, %v3283_v46 }
 0x4c5   : > { %v2697_v59 = vunpack.c.l.bf16 %v2569_v56  ;;  %v1653_v61 = vpack.c.bf16 %v1581_v54, %v1580_v20  ;;  %v2136_v1 = vadd.f32 %v11538_v48, %v2135_v53  ;;  %v3287_v55 = vmax.f32 %v3285_v9, %v3286_v3 }
 0x4c6   : > { %v1302_v50 = vpop.f32.mrf.mxu0  ;;  %v3277_v20 = vmax.f32 %v3275_v5, %v3276_v47 }
 0x4c7   : > { %v3290_v12 = vrot.slane %v2697_v59, 4  ;;  %v2314_v45 = vmul.f32 0.2, %v2136_v1  ;;  %8531 = vmatmul.msk.bf16.gmra.mxu1 %vm1698_vm2, %v1653_v61  ;;  %v1303_v30 = vadd.f32 %v11493_v31, %v1302_v50  ;;  %v3288_v33 = vrot.slane %v3287_v55, 1 }
 0x4c9   : > { %v3291_v58 = vmax.f32 %v2697_v59, %v3290_v12  ;;  %v2442_v16 = vmax.f32 %v2136_v1, %v2314_v45  ;;  %v1454_v15 = vmul.f32 0.2, %v1303_v30  ;;  %v3589_v59 = vpack.c.bf16 %v3271_v29, %v3271_v29 }
 0x4ca   : > { %v3289_v61 = vmax.f32 %v3287_v55, %v3288_v33  ;;  %v3588_v12 = vpack.c.bf16 %v3265_v35, %v3265_v35  ;;  %v3590_v45 = vpack.c.bf16 %v3277_v20, %v3277_v20 }
 0x4cb   : > { %v2570_v26 = vpack.c.bf16 %v2442_v16, %v2442_v16  ;;  %v3292_v18 = vrot.slane %v3291_v58, 2  ;;  %v1582_v38 = vmax.f32 %v1303_v30, %v1454_v15  ;;  %v3927_v16 = vunpack.c.l.b16 %v3589_v59 }
 0x4cc   : > { %v2137_v6 = vpop.f32.mrf.mxu1  ;;  %v3592_v60 = vpack.c.bf16 %v3289_v61, %v3289_v61  ;;  %v3926_v5 = vunpack.c.l.b16 %v3588_v12 }
 0x4cd   : > { %v2698_v39 = vunpack.c.l.bf16 %v2570_v26  ;;  %v2138_v32 = vadd.f32 %v11538_v48, %v2137_v6  ;;  %v3293_v23 = vmax.f32 %v3291_v58, %v3292_v18  ;;  %v3928_v18 = vunpack.c.l.b16 %v3590_v45 }
 0x4ce   : > { %v1304_v19 = vpop.f32.mrf.mxu0 }
 0x4cf   : > { %v3296_v0 = vrot.slane %v2698_v39, 4  ;;  %v2315_v44 = vmul.f32 0.2, %v2138_v32  ;;  %v1305_v25 = vadd.f32 %v11493_v31, %v1304_v19  ;;  %v3294_v56 = vrot.slane %v3293_v23, 1 }
 0x4d0   : > { %v4050_v19 = vsel %vm3966_vm3, %v3927_v16, %v3926_v5 }
 0x4d1   : > { %v3297_v36 = vmax.f32 %v2698_v39, %v3296_v0  ;;  %v2443_v41 = vmax.f32 %v2138_v32, %v2315_v44  ;;  %v1455_v34 = vmul.f32 0.2, %v1305_v25  ;;  %v3295_v43 = vmax.f32 %v3293_v23, %v3294_v56 }
 0x4d2   : > { %v3929_v32 = vunpack.c.l.b16 %v3591_v21  ;;  %v3930_v0 = vunpack.c.l.b16 %v3592_v60 }
 0x4d3   : > { %v3298_v37 = vrot.slane %v3297_v36, 2  ;;  %v2571_v42 = vpack.c.bf16 %v2443_v41, %v2443_v41  ;;  %v1583_v13 = vmax.f32 %v1305_v25, %v1455_v34  ;;  %v3593_v6 = vpack.c.bf16 %v3295_v43, %v3295_v43 }
 0x4d4   : > { %v2140_v54 = vpop.f32.mrf.mxu1 }
 0x4d5   : > { %v3299_v2 = vmax.f32 %v3297_v36, %v3298_v37  ;;  %v2699_v53 = vunpack.c.l.bf16 %v2571_v42  ;;  %v1654_v62 = vpack.c.bf16 %v1583_v13, %v1582_v38  ;;  %v2141_v1 = vadd.f32 %v11538_v48, %v2140_v54 }
 0x4d6   : > { %v1307_v4 = vpop.f32.mrf.mxu0  ;;  %v4051_v36 = vsel %vm3968_vm4, %v3928_v18, %v4050_v19  ;;  %v3931_v41 = vunpack.c.l.b16 %v3593_v6 }
 0x4d7   : > { %v3300_v9 = vrot.slane %v3299_v2, 1  ;;  %v3302_v50 = vrot.slane %v2699_v53, 4  ;;  %8532 = vmatmul.msk.bf16.gmra.mxu1 %vm1698_vm2, %v1654_v62  ;;  %v2316_v10 = vmul.f32 0.2, %v2141_v1  ;;  %v1308_v28 = vadd.f32 %v11493_v31, %v1307_v4 }
 0x4d8   : > { %v4052_v29 = vsel %vm3970_vm5, %v3929_v32, %v4051_v36 }
 0x4d9   : > { %v3303_v58 = vmax.f32 %v2699_v53, %v3302_v50  ;;  %v3301_v3 = vmax.f32 %v3299_v2, %v3300_v9  ;;  %v2444_v26 = vmax.f32 %v2141_v1, %v2316_v10  ;;  %v1456_v47 = vmul.f32 0.2, %v1308_v28 }
 0x4da   : > { %v4053_v42 = vsel %vm3972_vm6, %v3930_v0, %v4052_v29 }
 0x4db   : > { %v3304_v30 = vrot.slane %v3303_v58, 2  ;;  %v2572_v40 = vpack.c.bf16 %v2444_v26, %v2444_v26  ;;  %v3594_v15 = vpack.c.bf16 %v3301_v3, %v3301_v3  ;;  %v1584_v56 = vmax.f32 %v1308_v28, %v1456_v47 }
 0x4dc   : > { %v2142_v39 = vpop.f32.mrf.mxu1  ;;  %v4054_v2 = vsel %vm3974_vm7, %v3931_v41, %v4053_v42 }
 0x4dd   : > { %v3305_v11 = vmax.f32 %v3303_v58, %v3304_v30  ;;  %v2143_v55 = vadd.f32 %v11538_v48, %v2142_v39  ;;  %v2700_v44 = vunpack.c.l.bf16 %v2572_v40  ;;  %v3932_v13 = vunpack.c.l.b16 %v3594_v15 }
 0x4de   : > { %v1309_v25 = vpop.f32.mrf.mxu0 }
 0x4df   : > { %v3306_v27 = vrot.slane %v3305_v11, 1  ;;  %v2317_v23 = vmul.f32 0.2, %v2143_v55  ;;  %v1310_v7 = vadd.f32 %v11493_v31, %v1309_v25  ;;  %v3308_v34 = vrot.slane %v2700_v44, 4 }
 0x4e0   : > { %v4055_v9 = vsel %vm3976_vm8, %v3932_v13, %v4054_v2 }
 0x4e1   : > { %v3307_v33 = vmax.f32 %v3305_v11, %v3306_v27  ;;  %v2445_v37 = vmax.f32 %v2143_v55, %v2317_v23  ;;  %v1457_v38 = vmul.f32 0.2, %v1310_v7  ;;  %v3309_v35 = vmax.f32 %v2700_v44, %v3308_v34 }
 0x4e3   : > { %v3595_v20 = vpack.c.bf16 %v3307_v33, %v3307_v33  ;;  %v2573_v54 = vpack.c.bf16 %v2445_v37, %v2445_v37  ;;  %v1585_v46 = vmax.f32 %v1310_v7, %v1457_v38  ;;  %v3310_v53 = vrot.slane %v3309_v35, 2 }
 0x4e4   : > { %v2145_v62 = vpop.f32.mrf.mxu1 }
 0x4e5   : > { %v3933_v59 = vunpack.c.l.b16 %v3595_v20  ;;  %v2701_v61 = vunpack.c.l.bf16 %v2573_v54  ;;  %v1655_v1 = vpack.c.bf16 %v1585_v46, %v1584_v56  ;;  %v2146_v4 = vadd.f32 %v11538_v48, %v2145_v62 }
 0x4e6   : > { %v3311_v50 = vmax.f32 %v3309_v35, %v3310_v53  ;;  %v1312_v12 = vpop.f32.mrf.mxu0 }
 0x4e7   : > { %v4056_v45 = vsel %vm3978_vm9, %v3933_v59, %v4055_v9  ;;  %v3314_v43 = vrot.slane %v2701_v61, 4  ;;  %v2318_v10 = vmul.f32 0.2, %v2146_v4  ;;  %8533 = vmatmul.msk.bf16.gmra.mxu1 %vm1698_vm2, %v1655_v1  ;;  %v1313_v3 = vadd.f32 %v11493_v31, %v1312_v12 }
 0x4e8   : > { %v11587_v21 = vpack.c.b16 %v4056_v45, %v11551_v22  ;;  %v3312_v58 = vrot.slane %v3311_v50, 1 }
 0x4e9   : > { %v3315_v16 = vmax.f32 %v2701_v61, %v3314_v43  ;;  %v2446_v60 = vmax.f32 %v2146_v4, %v2318_v10  ;;  %v1458_v32 = vmul.f32 0.2, %v1313_v3 }
 0x4ea   : > { %4454 = vmatmul.bf16.gmra.mxu2 %v11587_v21  ;;  %4503 = vmatmul.bf16.gmra.mxu3 %v11587_v21  ;;  %v3313_v28 = vmax.f32 %v3311_v50, %v3312_v58 }
 0x4eb   : > { %v3316_v26 = vrot.slane %v3315_v16, 2  ;;  %v2574_v30 = vpack.c.bf16 %v2446_v60, %v2446_v60  ;;  %v1586_v41 = vmax.f32 %v1313_v3, %v1458_v32 }
 0x4ec   : > { %v2147_v5 = vpop.f32.mrf.mxu1  ;;  %v3596_v44 = vpack.c.bf16 %v3313_v28, %v3313_v28 }
 0x4ed   : > { %v3317_v18 = vmax.f32 %v3315_v16, %v3316_v26  ;;  %v2702_v6 = vunpack.c.l.bf16 %v2574_v30  ;;  %v2148_v40 = vadd.f32 %v11538_v48, %v2147_v5  ;;  %v4450_v39 = vpop.f32.mrf.mxu2  ;;  %v4499_v22 = vpop.f32.mrf.mxu3 }
 0x4ee   : > { %v1314_v11 = vpop.f32.mrf.mxu0  ;;  %v4451_v25 = vadd.f32 %v4450_v39, %v11208_v49  ;;  %v4500_v27 = vadd.f32 %v4499_v22, %v11218_v63  ;;  %v3934_v38 = vunpack.c.l.b16 %v3596_v44 }
 0x4ef   : > { %v3318_v55 = vrot.slane %v3317_v18, 1  ;;  %v3320_v19 = vrot.slane %v2702_v6, 4  ;;  %v2319_v0 = vmul.f32 0.2, %v2148_v40  ;;  %v1315_v15 = vadd.f32 %v11493_v31, %v1314_v11 }
 0x4f0   : > { %v4877_v42 = vmul.f32 0.2, %v4451_v25  ;;  %v4878_v13 = vmul.f32 0.2, %v4500_v27 }
 0x4f1   : > { %v3319_v47 = vmax.f32 %v3317_v18, %v3318_v55  ;;  %v3321_v23 = vmax.f32 %v2702_v6, %v3320_v19  ;;  %v2447_v7 = vmax.f32 %v2148_v40, %v2319_v0  ;;  %v1459_v36 = vmul.f32 0.2, %v1315_v15 }
 0x4f2   : > { %v5005_v16 = vmax.f32 %v4451_v25, %v4877_v42  ;;  %v5006_v60 = vmax.f32 %v4500_v27, %v4878_v13 }
 0x4f3   : > { %v3597_v34 = vpack.c.bf16 %v3319_v47, %v3319_v47  ;;  %v3322_v29 = vrot.slane %v3321_v23, 2  ;;  %v2575_v33 = vpack.c.bf16 %v2447_v7, %v2447_v7  ;;  %v1587_v37 = vmax.f32 %v1315_v15, %v1459_v36 }
 0x4f4   : > { %v2150_v35 = vpop.f32.mrf.mxu1 }
 0x4f5   : > { %v3935_v20 = vunpack.c.l.b16 %v3597_v34  ;;  %v3323_v56 = vmax.f32 %v3321_v23, %v3322_v29  ;;  %v2703_v54 = vunpack.c.l.bf16 %v2575_v33  ;;  %v1656_v46 = vpack.c.bf16 %v1587_v37, %v1586_v41  ;;  %v4452_v2 = vpop.f32.mrf.mxu2  ;;  %v4501_v53 = vpop.f32.mrf.mxu3 }
 0x4f6   : > { %v2151_v62 = vadd.f32 %v11538_v48, %v2150_v35  ;;  %v4453_v59 = vadd.f32 %v4452_v2, %v11208_v49  ;;  %v4502_v61 = vadd.f32 %v4501_v53, %v11218_v63  ;;  %v1317_v1 = vpop.f32.mrf.mxu0 }
 0x4f7   : > { %v4057_v4 = vsel %vm3966_vm3, %v3935_v20, %v3934_v38  ;;  %v3324_v9 = vrot.slane %v3323_v56, 1  ;;  %v3326_v50 = vrot.slane %v2703_v54, 4  ;;  %8534 = vmatmul.msk.bf16.gmra.mxu1 %vm1698_vm2, %v1656_v46  ;;  %v1318_v28 = vadd.f32 %v11493_v31, %v1317_v1 }
 0x4f8   : > { %v2320_v12 = vmul.f32 0.2, %v2151_v62  ;;  %v4885_v45 = vmul.f32 0.2, %v4453_v59  ;;  %v4886_v43 = vmul.f32 0.2, %v4502_v61 }
 0x4f9   : > { %v3325_v10 = vmax.f32 %v3323_v56, %v3324_v9  ;;  %v3327_v58 = vmax.f32 %v2703_v54, %v3326_v50  ;;  %v1460_v44 = vmul.f32 0.2, %v1318_v28 }
 0x4fa   : > { %v2448_v3 = vmax.f32 %v2151_v62, %v2320_v12  ;;  %v5013_v26 = vmax.f32 %v4453_v59, %v4885_v45  ;;  %v5014_v30 = vmax.f32 %v4502_v61, %v4886_v43 }
 0x4fb   : > { %v3598_v5 = vpack.c.bf16 %v3325_v10, %v3325_v10  ;;  %v3328_v18 = vrot.slane %v3327_v58, 2  ;;  %v1588_v20 = vmax.f32 %v1318_v28, %v1460_v44 }
 0x4fc   : > { %v2576_v6 = vpack.c.bf16 %v2448_v3, %v2448_v3  ;;  %v5293_v40 = vmax.f32 %v5005_v16, %v5013_v26  ;;  %v5300_v39 = vmax.f32 %v5006_v60, %v5014_v30  ;;  %v2152_v22 = vpop.f32.mrf.mxu1 }
 0x4fd   : > { %v3936_v32 = vunpack.c.l.b16 %v3598_v5  ;;  %v3329_v11 = vmax.f32 %v3327_v58, %v3328_v18  ;;  %v2153_v55 = vadd.f32 %v11538_v48, %v2152_v22 }
 0x4fe   : > { %v2704_v19 = vunpack.c.l.bf16 %v2576_v6  ;;  %v5294_v0 = vrot.slane %v5293_v40, 4  ;;  %v5301_v15 = vrot.slane %v5300_v39, 4  ;;  %v1319_v25 = vpop.f32.mrf.mxu0 }
 0x4ff   : > { %v4058_v27 = vsel %vm3968_vm4, %v3936_v32, %v4057_v4  ;;  %v3330_v47 = vrot.slane %v3329_v11, 1  ;;  %v2321_v23 = vmul.f32 0.2, %v2153_v55  ;;  %v1320_v7 = vadd.f32 %v11493_v31, %v1319_v25 }
 0x500   : > { %v3332_v36 = vrot.slane %v2704_v19, 4  ;;  %v5295_v41 = vmax.f32 %v5293_v40, %v5294_v0  ;;  %v5302_v34 = vmax.f32 %v5300_v39, %v5301_v15 }
 0x501   : > { %v3331_v29 = vmax.f32 %v3329_v11, %v3330_v47  ;;  %v2449_v33 = vmax.f32 %v2153_v55, %v2321_v23  ;;  %v1461_v37 = vmul.f32 0.2, %v1320_v7 }
 0x502   : > { %v3333_v38 = vmax.f32 %v2704_v19, %v3332_v36  ;;  %v5296_v42 = vrot.slane %v5295_v41, 2  ;;  %v5303_v13 = vrot.slane %v5302_v34, 2 }
 0x503   : > { %v3599_v35 = vpack.c.bf16 %v3331_v29, %v3331_v29  ;;  %v2577_v56 = vpack.c.bf16 %v2449_v33, %v2449_v33  ;;  %v1589_v54 = vmax.f32 %v1320_v7, %v1461_v37 }
 0x504   : > { %v3334_v46 = vrot.slane %v3333_v38, 2  ;;  %v5297_v2 = vmax.f32 %v5295_v41, %v5296_v42  ;;  %v5304_v53 = vmax.f32 %v5302_v34, %v5303_v13  ;;  %v2155_v62 = vpop.f32.mrf.mxu1 }
 0x505   : > { %v3937_v59 = vunpack.c.l.b16 %v3599_v35  ;;  %v2705_v61 = vunpack.c.l.bf16 %v2577_v56  ;;  %v1657_v1 = vpack.c.bf16 %v1589_v54, %v1588_v20  ;;  %v2156_v4 = vadd.f32 %v11538_v48, %v2155_v62 }
 0x506   : > { %v3335_v9 = vmax.f32 %v3333_v38, %v3334_v46  ;;  %v5298_v50 = vrot.slane %v5297_v2, 1  ;;  %v5305_v12 = vrot.slane %v5304_v53, 1  ;;  %v1322_v45 = vpop.f32.mrf.mxu0 }
 0x507   : > { %v4059_v43 = vsel %vm3970_vm5, %v3937_v59, %v4058_v27  ;;  %v3338_v10 = vrot.slane %v2705_v61, 4  ;;  %v2322_v58 = vmul.f32 0.2, %v2156_v4  ;;  %8535 = vmatmul.msk.bf16.gmra.mxu1 %vm1698_vm2, %v1657_v1  ;;  %v1323_v6 = vadd.f32 %v11493_v31, %v1322_v45  ;;  %v11625_v1 = vld [vmem:[%s13725_s2] ss:$0 sm:$0xff] }
 0x508   : > { %v3336_v16 = vrot.slane %v3335_v9, 1  ;;  %v5299_v60 = vmax.f32 %v5297_v2, %v5298_v50  ;;  %v5306_v3 = vmax.f32 %v5304_v53, %v5305_v12 }
 0x509   : > { %v3339_v26 = vmax.f32 %v2705_v61, %v3338_v10  ;;  %v2450_v30 = vmax.f32 %v2156_v4, %v2322_v58  ;;  %v1462_v15 = vmul.f32 0.2, %v1323_v6 }
 0x50a   : > { %v3337_v28 = vmax.f32 %v3335_v9, %v3336_v16  ;;  %v11610_v5 = vsel %vm3972_vm6, %v5299_v60, %v11528_v17  ;;  %v11614_v18 = vsel %vm3972_vm6, %v5306_v3, %v11532_v8 }
 0x50b   : > { %v3340_v40 = vrot.slane %v3339_v26, 2  ;;  %v2578_v39 = vpack.c.bf16 %v2450_v30, %v2450_v30  ;;  %v1590_v34 = vmax.f32 %v1323_v6, %v1462_v15 }
 0x50c   : > { %v3600_v22 = vpack.c.bf16 %v3337_v28, %v3337_v28  ;;  %v2157_v32 = vpop.f32.mrf.mxu1 }
 0x50d   : > { %v3341_v11 = vmax.f32 %v3339_v26, %v3340_v40  ;;  %v2706_v55 = vunpack.c.l.bf16 %v2578_v39  ;;  %v2158_v19 = vadd.f32 %v11538_v48, %v2157_v32 }
 0x50e   : > { %v3938_v0 = vunpack.c.l.b16 %v3600_v22  ;;  %v1324_v44 = vpop.f32.mrf.mxu0 }
 0x50f   : > { %v3342_v25 = vrot.slane %v3341_v11, 1  ;;  %v3344_v17 = vrot.slane %v2706_v55, 4  ;;  %v2323_v27 = vmul.f32 0.2, %v2158_v19  ;;  %v1325_v47 = vadd.f32 %v11493_v31, %v1324_v44 }
 0x510   : > { %v4060_v8 = vsel %vm3972_vm6, %v3938_v0, %v4059_v43 }
 0x511   : > { %v3343_v23 = vmax.f32 %v3341_v11, %v3342_v25  ;;  %v3345_v7 = vmax.f32 %v2706_v55, %v3344_v17  ;;  %v2451_v36 = vmax.f32 %v2158_v19, %v2323_v27  ;;  %v1463_v41 = vmul.f32 0.2, %v1325_v47 }
 0x513   : > { %v3601_v29 = vpack.c.bf16 %v3343_v23, %v3343_v23  ;;  %v3346_v33 = vrot.slane %v3345_v7, 2  ;;  %v2579_v37 = vpack.c.bf16 %v2451_v36, %v2451_v36  ;;  %v1591_v38 = vmax.f32 %v1325_v47, %v1463_v41 }
 0x514   : > { %v2160_v42 = vpop.f32.mrf.mxu1 }
 0x515   : > { %v3939_v13 = vunpack.c.l.b16 %v3601_v29  ;;  %v3347_v35 = vmax.f32 %v3345_v7, %v3346_v33  ;;  %v2707_v20 = vunpack.c.l.bf16 %v2579_v37  ;;  %v1658_v56 = vpack.c.bf16 %v1591_v38, %v1590_v34 }
 0x516   : > { %v1327_v54 = vpop.f32.mrf.mxu0  ;;  %v2161_v15 = vadd.f32 %v11538_v48, %v2160_v42 }
 0x517   : > { %v4061_v46 = vsel %vm3974_vm7, %v3939_v13, %v4060_v8  ;;  %v3348_v31 = vrot.slane %v3347_v35, 1  ;;  %v3350_v2 = vrot.slane %v2707_v20, 4  ;;  %8536 = vmatmul.msk.bf16.gmra.mxu1 %vm1698_vm2, %v1658_v56  ;;  %v1328_v4 = vadd.f32 %v11625_v1, %v1327_v54 }
 0x518   : > { %v2324_v7 = vmul.f32 0.2, %v2161_v15 }
 0x519   : > { %v3349_v53 = vmax.f32 %v3347_v35, %v3348_v31  ;;  %v3351_v62 = vmax.f32 %v2707_v20, %v3350_v2  ;;  %v1464_v58 = vmul.f32 0.2, %v1328_v4 }
 0x51a   : > { %v2452_v13 = vmax.f32 %v2161_v15, %v2324_v7 }
 0x51b   : > { %v3602_v59 = vpack.c.bf16 %v3349_v53, %v3349_v53  ;;  %v3352_v61 = vrot.slane %v3351_v62, 2  ;;  %v1592_v30 = vmax.f32 %v1328_v4, %v1464_v58 }
 0x51c   : > { %v2162_v9 = vpop.f32.mrf.mxu1  ;;  %v2580_v31 = vpack.c.bf16 %v2452_v13, %v2452_v13 }
 0x51d   : > { %v3940_v50 = vunpack.c.l.b16 %v3602_v59  ;;  %v3353_v12 = vmax.f32 %v3351_v62, %v3352_v61  ;;  %v2163_v55 = vadd.f32 %v11538_v48, %v2162_v9 }
 0x51e   : > { %v1329_v45 = vpop.f32.mrf.mxu0 }
 0x51f   : > { %v4062_v43 = vsel %vm3976_vm8, %v3940_v50, %v4061_v46  ;;  %v3354_v10 = vrot.slane %v3353_v12, 1  ;;  %v1330_v16 = vadd.f32 %v11625_v1, %v1329_v45  ;;  %v2325_v47 = vmul.f32 0.2, %v2163_v55 }
 0x521   : > { %v3355_v60 = vmax.f32 %v3353_v12, %v3354_v10  ;;  %v1465_v3 = vmul.f32 0.2, %v1330_v16  ;;  %v2453_v29 = vmax.f32 %v2163_v55, %v2325_v47  ;;  %v2708_v12 = vunpack.c.l.bf16 %v2580_v31 }
 0x523   : > { %v3603_v26 = vpack.c.bf16 %v3355_v60, %v3355_v60  ;;  %v1593_v28 = vmax.f32 %v1330_v16, %v1465_v3  ;;  %v2581_v56 = vpack.c.bf16 %v2453_v29, %v2453_v29 }
 0x524   : > { %v2165_v6 = vpop.f32.mrf.mxu1 }
 0x525   : > { %v3941_v40 = vunpack.c.l.b16 %v3603_v26  ;;  %v1659_v39 = vpack.c.bf16 %v1593_v28, %v1592_v30  ;;  %v2166_v0 = vadd.f32 %v11538_v48, %v2165_v6  ;;  %v2709_v59 = vunpack.c.l.bf16 %v2581_v56 }
 0x526   : > { %v1332_v22 = vpop.f32.mrf.mxu0  ;;  %v3356_v6 = vrot.slane %v2708_v12, 4 }
 0x527   : > { %v11631_v32 = vsel %vm3978_vm9, %v3941_v40, %v4062_v43  ;;  %8537 = vmatmul.msk.bf16.gmra.mxu1 %vm1698_vm2, %v1659_v39  ;;  %v1333_v11 = vadd.f32 %v11625_v1, %v1332_v22  ;;  %v2326_v8 = vmul.f32 0.2, %v2166_v0  ;;  %v3362_v3 = vrot.slane %v2709_v59, 4 }
 0x529   : > { %v1466_v17 = vmul.f32 0.2, %v1333_v11  ;;  %v2454_v37 = vmax.f32 %v2166_v0, %v2326_v8 }
 0x52b   : > { %v1594_v41 = vmax.f32 %v1333_v11, %v1466_v17  ;;  %v2582_v46 = vpack.c.bf16 %v2454_v37, %v2454_v37 }
 0x52c   : > { %v2167_v19 = vpop.f32.mrf.mxu1 }
 0x52d   : > { %v2168_v44 = vadd.f32 %v11538_v48, %v2167_v19  ;;  %v2710_v9 = vunpack.c.l.bf16 %v2582_v46  ;;  %v3363_v19 = vmax.f32 %v2709_v59, %v3362_v3 }
 0x52e   : > { %v1334_v25 = vpop.f32.mrf.mxu0 }
 0x52f   : > { %v1335_v27 = vadd.f32 %v11625_v1, %v1334_v25  ;;  %v2327_v36 = vmul.f32 0.2, %v2168_v44  ;;  %v3368_v26 = vrot.slane %v2710_v9, 4  ;;  %v3364_v7 = vrot.slane %v3363_v19, 2 }
 0x531   : > { %v1467_v23 = vmul.f32 0.2, %v1335_v27  ;;  %v2455_v35 = vmax.f32 %v2168_v44, %v2327_v36  ;;  %v3369_v15 = vmax.f32 %v2710_v9, %v3368_v26  ;;  %v3365_v13 = vmax.f32 %v3363_v19, %v3364_v7 }
 0x533   : > { %v1595_v34 = vmax.f32 %v1335_v27, %v1467_v23  ;;  %v2583_v2 = vpack.c.bf16 %v2455_v35, %v2455_v35  ;;  %v3357_v27 = vmax.f32 %v2708_v12, %v3356_v6  ;;  %v3370_v36 = vrot.slane %v3369_v15, 2 }
 0x534   : > { %v2170_v33 = vpop.f32.mrf.mxu1  ;;  %v3366_v59 = vrot.slane %v3365_v13, 1 }
 0x535   : > { %v1660_v38 = vpack.c.bf16 %v1595_v34, %v1594_v41  ;;  %v2171_v42 = vadd.f32 %v11538_v48, %v2170_v33  ;;  %v2711_v45 = vunpack.c.l.bf16 %v2583_v2  ;;  %v3358_v29 = vrot.slane %v3357_v27, 2 }
 0x536   : > { %v1337_v20 = vpop.f32.mrf.mxu0 }
 0x537   : > { %8538 = vmatmul.msk.bf16.gmra.mxu1 %vm1698_vm2, %v1660_v38  ;;  %v2328_v54 = vmul.f32 0.2, %v2171_v42  ;;  %v1338_v62 = vadd.f32 %v11625_v1, %v1337_v20  ;;  %v3374_v40 = vrot.slane %v2711_v45, 4  ;;  %v3371_v20 = vmax.f32 %v3369_v15, %v3370_v36 }
 0x538   : > { %v3359_v46 = vmax.f32 %v3357_v27, %v3358_v29 }
 0x539   : > { %v2456_v53 = vmax.f32 %v2171_v42, %v2328_v54  ;;  %v1468_v58 = vmul.f32 0.2, %v1338_v62  ;;  %v3375_v47 = vmax.f32 %v2711_v45, %v3374_v40 }
 0x53a   : > { %v3360_v12 = vrot.slane %v3359_v46, 1 }
 0x53b   : > { %v2584_v61 = vpack.c.bf16 %v2456_v53, %v2456_v53  ;;  %v1596_v22 = vmax.f32 %v1338_v62, %v1468_v58  ;;  %v3376_v33 = vrot.slane %v3375_v47, 2 }
 0x53c   : > { %v2172_v4 = vpop.f32.mrf.mxu1  ;;  %v3361_v40 = vmax.f32 %v3359_v46, %v3360_v12 }
 0x53d   : > { %v2173_v50 = vadd.f32 %v11538_v48, %v2172_v4  ;;  %v2712_v10 = vunpack.c.l.bf16 %v2584_v61  ;;  %v3377_v31 = vmax.f32 %v3375_v47, %v3376_v33  ;;  %v3372_v4 = vrot.slane %v3371_v20, 1 }
 0x53e   : > { %v1339_v43 = vpop.f32.mrf.mxu0  ;;  %v3604_v27 = vpack.c.bf16 %v3361_v40, %v3361_v40 }
 0x53f   : > { %v2329_v16 = vmul.f32 0.2, %v2173_v50  ;;  %v1340_v60 = vadd.f32 %v11625_v1, %v1339_v43  ;;  %v3380_v39 = vrot.slane %v2712_v10, 4  ;;  %v3378_v45 = vrot.slane %v3377_v31, 1 }
 0x540   : > { %v3373_v26 = vmax.f32 %v3371_v20, %v3372_v4 }
 0x541   : > { %v2457_v30 = vmax.f32 %v2173_v50, %v2329_v16  ;;  %v1469_v28 = vmul.f32 0.2, %v1340_v60  ;;  %v3381_v1 = vmax.f32 %v2712_v10, %v3380_v39  ;;  %v3367_v16 = vmax.f32 %v3365_v13, %v3366_v59 }
 0x542   : > { %v3379_v39 = vmax.f32 %v3377_v31, %v3378_v45  ;;  %v3942_v13 = vunpack.c.l.b16 %v3604_v27 }
 0x543   : > { %v2585_v11 = vpack.c.bf16 %v2457_v30, %v2457_v30  ;;  %v1597_v55 = vmax.f32 %v1340_v60, %v1469_v28  ;;  %v3382_v37 = vrot.slane %v3381_v1, 2  ;;  %v11651_v28 = vld [vmem:[%s13727_s4] ss:$0 sm:$0xff] }
 0x544   : > { %v2175_v0 = vpop.f32.mrf.mxu1  ;;  %v3607_v47 = vpack.c.bf16 %v3379_v39, %v3379_v39 }
 0x545   : > { %v2713_v44 = vunpack.c.l.bf16 %v2585_v11  ;;  %v1661_v25 = vpack.c.bf16 %v1597_v55, %v1596_v22  ;;  %v2176_v17 = vadd.f32 %v11538_v48, %v2175_v0  ;;  %v3383_v2 = vmax.f32 %v3381_v1, %v3382_v37 }
 0x546   : > { %v3605_v0 = vpack.c.bf16 %v3367_v16, %v3367_v16 }
 0x547   : > { %v3386_v8 = vrot.slane %v2713_v44, 4  ;;  %v2330_v23 = vmul.f32 0.2, %v2176_v17  ;;  %8539 = vmatmul.msk.bf16.gmra.mxu1 %vm1698_vm2, %v1661_v25  ;;  %v3384_v43 = vrot.slane %v3383_v2, 1 }
 0x548   : > { %v3943_v36 = vunpack.c.l.b16 %v3605_v0 }
 0x549   : > { %v3387_v41 = vmax.f32 %v2713_v44, %v3386_v8  ;;  %v2458_v34 = vmax.f32 %v2176_v17, %v2330_v23  ;;  %v3385_v22 = vmax.f32 %v3383_v2, %v3384_v43  ;;  %v3606_v44 = vpack.c.bf16 %v3373_v26, %v3373_v26 }
 0x54a   : > { %v4064_v31 = vsel %vm3966_vm3, %v3943_v36, %v3942_v13 }
 0x54b   : > { %v2586_v38 = vpack.c.bf16 %v2458_v34, %v2458_v34  ;;  %v3388_v35 = vrot.slane %v3387_v41, 2  ;;  %v3608_v8 = vpack.c.bf16 %v3385_v22, %v3385_v22  ;;  %v3944_v29 = vunpack.c.l.b16 %v3606_v44 }
 0x54c   : > { %v2177_v42 = vpop.f32.mrf.mxu1 }
 0x54d   : > { %v2714_v56 = vunpack.c.l.bf16 %v2586_v38  ;;  %v2178_v54 = vadd.f32 %v11538_v48, %v2177_v42  ;;  %v3389_v61 = vmax.f32 %v3387_v41, %v3388_v35  ;;  %v3945_v35 = vunpack.c.l.b16 %v3607_v47 }
 0x54e   : > { %v3946_v20 = vunpack.c.l.b16 %v3608_v8 }
 0x54f   : > { %v3392_v53 = vrot.slane %v2714_v56, 4  ;;  %v2331_v62 = vmul.f32 0.2, %v2178_v54  ;;  %v3390_v60 = vrot.slane %v3389_v61, 1 }
 0x551   : > { %v3393_v9 = vmax.f32 %v2714_v56, %v3392_v53  ;;  %v2459_v50 = vmax.f32 %v2178_v54, %v2331_v62  ;;  %v3391_v15 = vmax.f32 %v3389_v61, %v3390_v60  ;;  %v4065_v53 = vsel %vm3968_vm4, %v3944_v29, %v4064_v31 }
 0x552   : > { %v4066_v4 = vsel %vm3970_vm5, %v3945_v35, %v4065_v53 }
 0x553   : > { %v3394_v10 = vrot.slane %v3393_v9, 2  ;;  %v2587_v58 = vpack.c.bf16 %v2459_v50, %v2459_v50  ;;  %v3609_v41 = vpack.c.bf16 %v3391_v15, %v3391_v15  ;;  %v4067_v50 = vsel %vm3972_vm6, %v3946_v20, %v4066_v4 }
 0x554   : > { %v2180_v3 = vpop.f32.mrf.mxu1 }
 0x555   : > { %v3395_v48 = vmax.f32 %v3393_v9, %v3394_v10  ;;  %v2715_v30 = vunpack.c.l.bf16 %v2587_v58  ;;  %v2181_v6 = vadd.f32 %v11651_v28, %v2180_v3  ;;  %v3947_v2 = vunpack.c.l.b16 %v3609_v41 }
 0x557   : > { %v3396_v11 = vrot.slane %v3395_v48, 1  ;;  %v3398_v55 = vrot.slane %v2715_v30, 4  ;;  %v2332_v19 = vmul.f32 0.2, %v2181_v6  ;;  %v4068_v10 = vsel %vm3974_vm7, %v3947_v2, %v4067_v50 }
 0x559   : > { %v3399_v25 = vmax.f32 %v2715_v30, %v3398_v55  ;;  %v2460_v17 = vmax.f32 %v2181_v6, %v2332_v19  ;;  %v3397_v1 = vmax.f32 %v3395_v48, %v3396_v11 }
 0x55b   : > { %v3400_v23 = vrot.slane %v3399_v25, 2  ;;  %v2588_v7 = vpack.c.bf16 %v2460_v17, %v2460_v17  ;;  %v3610_v42 = vpack.c.bf16 %v3397_v1, %v3397_v1 }
 0x55c   : > { %v2182_v34 = vpop.f32.mrf.mxu1 }
 0x55d   : > { %v3401_v33 = vmax.f32 %v3399_v25, %v3400_v23  ;;  %v2716_v37 = vunpack.c.l.bf16 %v2588_v7  ;;  %v2183_v38 = vadd.f32 %v11651_v28, %v2182_v34  ;;  %v3948_v9 = vunpack.c.l.b16 %v3610_v42 }
 0x55f   : > { %v3402_v56 = vrot.slane %v3401_v33, 1  ;;  %v3404_v54 = vrot.slane %v2716_v37, 4  ;;  %v2333_v46 = vmul.f32 0.2, %v2183_v38  ;;  %v4069_v48 = vsel %vm3976_vm8, %v3948_v9, %v4068_v10 }
 0x561   : > { %v3403_v62 = vmax.f32 %v3401_v33, %v3402_v56  ;;  %v3405_v59 = vmax.f32 %v2716_v37, %v3404_v54  ;;  %v2461_v61 = vmax.f32 %v2183_v38, %v2333_v46 }
 0x563   : > { %v3611_v12 = vpack.c.bf16 %v3403_v62, %v3403_v62  ;;  %v3406_v45 = vrot.slane %v3405_v59, 2  ;;  %v2589_v43 = vpack.c.bf16 %v2461_v61, %v2461_v61 }
 0x564   : > { %v2185_v58 = vpop.f32.mrf.mxu1 }
 0x565   : > { %v3949_v16 = vunpack.c.l.b16 %v3611_v12  ;;  %v3407_v60 = vmax.f32 %v3405_v59, %v3406_v45  ;;  %v2717_v3 = vunpack.c.l.bf16 %v2589_v43  ;;  %v2186_v26 = vadd.f32 %v11651_v28, %v2185_v58 }
 0x567   : > { %v4070_v30 = vsel %vm3978_vm9, %v3949_v16, %v4069_v48  ;;  %v3410_v6 = vrot.slane %v2717_v3, 4  ;;  %v2334_v40 = vmul.f32 0.2, %v2186_v26  ;;  %v3408_v22 = vrot.slane %v3407_v60, 1 }
 0x568   : > { %v11664_v39 = vpack.c.b16 %v4070_v30, %v11631_v32 }
 0x569   : > { %v3411_v11 = vmax.f32 %v2717_v3, %v3410_v6  ;;  %v2462_v55 = vmax.f32 %v2186_v26, %v2334_v40  ;;  %v3409_v15 = vmax.f32 %v3407_v60, %v3408_v22 }
 0x56a   : > { %4459 = vmatmul.bf16.gmra.mxu2 %v11664_v39  ;;  %4508 = vmatmul.bf16.gmra.mxu3 %v11664_v39 }
 0x56b   : > { %v3412_v19 = vrot.slane %v3411_v11, 2  ;;  %v2590_v0 = vpack.c.bf16 %v2462_v55, %v2462_v55  ;;  %v3612_v7 = vpack.c.bf16 %v3409_v15, %v3409_v15 }
 0x56c   : > { %v2187_v44 = vpop.f32.mrf.mxu1 }
 0x56d   : > { %v3413_v25 = vmax.f32 %v3411_v11, %v3412_v19  ;;  %v2718_v17 = vunpack.c.l.bf16 %v2590_v0  ;;  %v2188_v27 = vadd.f32 %v11651_v28, %v2187_v44  ;;  %v4455_v47 = vpop.f32.mrf.mxu2  ;;  %v4504_v1 = vpop.f32.mrf.mxu3  ;;  %v3950_v35 = vunpack.c.l.b16 %v3612_v7 }
 0x56e   : > { %v4456_v29 = vadd.f32 %v4455_v47, %v11208_v49  ;;  %v4505_v33 = vadd.f32 %v4504_v1, %v11218_v63 }
 0x56f   : > { %v3414_v8 = vrot.slane %v3413_v25, 1  ;;  %v3416_v32 = vrot.slane %v2718_v17, 4  ;;  %v2335_v23 = vmul.f32 0.2, %v2188_v27 }
 0x570   : > { %v4893_v53 = vmul.f32 0.2, %v4456_v29  ;;  %v4894_v62 = vmul.f32 0.2, %v4505_v33 }
 0x571   : > { %v3415_v36 = vmax.f32 %v3413_v25, %v3414_v8  ;;  %v3417_v41 = vmax.f32 %v2718_v17, %v3416_v32  ;;  %v2463_v34 = vmax.f32 %v2188_v27, %v2335_v23 }
 0x572   : > { %v5021_v60 = vmax.f32 %v4456_v29, %v4893_v53  ;;  %v5022_v3 = vmax.f32 %v4505_v33, %v4894_v62 }
 0x573   : > { %v3613_v37 = vpack.c.bf16 %v3415_v36, %v3415_v36  ;;  %v3418_v38 = vrot.slane %v3417_v41, 2  ;;  %v2591_v13 = vpack.c.bf16 %v2463_v34, %v2463_v34 }
 0x574   : > { %v2190_v42 = vpop.f32.mrf.mxu1 }
 0x575   : > { %v3951_v20 = vunpack.c.l.b16 %v3613_v37  ;;  %v3419_v56 = vmax.f32 %v3417_v41, %v3418_v38  ;;  %v2719_v54 = vunpack.c.l.bf16 %v2591_v13  ;;  %v2191_v46 = vadd.f32 %v11651_v28, %v2190_v42  ;;  %v4457_v31 = vpop.f32.mrf.mxu2  ;;  %v4506_v2 = vpop.f32.mrf.mxu3 }
 0x576   : > { %v4458_v59 = vadd.f32 %v4457_v31, %v11208_v49  ;;  %v4507_v61 = vadd.f32 %v4506_v2, %v11218_v63 }
 0x577   : > { %v4071_v4 = vsel %vm3966_vm3, %v3951_v20, %v3950_v35  ;;  %v3420_v9 = vrot.slane %v3419_v56, 1  ;;  %v3422_v50 = vrot.slane %v2719_v54, 4  ;;  %v2336_v12 = vmul.f32 0.2, %v2191_v46 }
 0x578   : > { %v4901_v45 = vmul.f32 0.2, %v4458_v59  ;;  %v4902_v43 = vmul.f32 0.2, %v4507_v61 }
 0x579   : > { %v3421_v10 = vmax.f32 %v3419_v56, %v3420_v9  ;;  %v3423_v58 = vmax.f32 %v2719_v54, %v3422_v50  ;;  %v2464_v16 = vmax.f32 %v2191_v46, %v2336_v12 }
 0x57a   : > { %v5029_v26 = vmax.f32 %v4458_v59, %v4901_v45  ;;  %v5030_v48 = vmax.f32 %v4507_v61, %v4902_v43 }
 0x57b   : > { %v3614_v30 = vpack.c.bf16 %v3421_v10, %v3421_v10  ;;  %v3424_v6 = vrot.slane %v3423_v58, 2  ;;  %v2592_v40 = vpack.c.bf16 %v2464_v16, %v2464_v16 }
 0x57c   : > { %v5349_v22 = vmax.f32 %v5021_v60, %v5029_v26  ;;  %v5356_v11 = vmax.f32 %v5022_v3, %v5030_v48  ;;  %v2192_v55 = vpop.f32.mrf.mxu1 }
 0x57d   : > { %v3952_v19 = vunpack.c.l.b16 %v3614_v30  ;;  %v3425_v0 = vmax.f32 %v3423_v58, %v3424_v6  ;;  %v2720_v15 = vunpack.c.l.bf16 %v2592_v40  ;;  %v2193_v44 = vadd.f32 %v11651_v28, %v2192_v55 }
 0x57e   : > { %v5350_v25 = vrot.slane %v5349_v22, 4  ;;  %v5357_v17 = vrot.slane %v5356_v11, 4 }
 0x57f   : > { %v4072_v27 = vsel %vm3968_vm4, %v3952_v19, %v4071_v4  ;;  %v3426_v47 = vrot.slane %v3425_v0, 1  ;;  %v3428_v1 = vrot.slane %v2720_v15, 4  ;;  %v2337_v8 = vmul.f32 0.2, %v2193_v44 }
 0x580   : > { %v5351_v32 = vmax.f32 %v5349_v22, %v5350_v25  ;;  %v5358_v23 = vmax.f32 %v5356_v11, %v5357_v17 }
 0x581   : > { %v3427_v7 = vmax.f32 %v3425_v0, %v3426_v47  ;;  %v3429_v36 = vmax.f32 %v2720_v15, %v3428_v1  ;;  %v2465_v41 = vmax.f32 %v2193_v44, %v2337_v8 }
 0x582   : > { %v5352_v34 = vrot.slane %v5351_v32, 2  ;;  %v5359_v29 = vrot.slane %v5358_v23, 2 }
 0x583   : > { %v3615_v33 = vpack.c.bf16 %v3427_v7, %v3427_v7  ;;  %v3430_v37 = vrot.slane %v3429_v36, 2  ;;  %v2593_v38 = vpack.c.bf16 %v2465_v41, %v2465_v41 }
 0x584   : > { %v5353_v13 = vmax.f32 %v5351_v32, %v5352_v34  ;;  %v5360_v35 = vmax.f32 %v5358_v23, %v5359_v29  ;;  %v2195_v42 = vpop.f32.mrf.mxu1 }
 0x585   : > { %v3953_v20 = vunpack.c.l.b16 %v3615_v33  ;;  %v3431_v56 = vmax.f32 %v3429_v36, %v3430_v37  ;;  %v2721_v54 = vunpack.c.l.bf16 %v2593_v38  ;;  %v2196_v46 = vadd.f32 %v11651_v28, %v2195_v42 }
 0x586   : > { %v5354_v31 = vrot.slane %v5353_v13, 1  ;;  %v5361_v2 = vrot.slane %v5360_v35, 1 }
 0x587   : > { %v4073_v53 = vsel %vm3970_vm5, %v3953_v20, %v4072_v27  ;;  %v3432_v62 = vrot.slane %v3431_v56, 1  ;;  %v3434_v59 = vrot.slane %v2721_v54, 4  ;;  %v2338_v61 = vmul.f32 0.2, %v2196_v46 }
 0x588   : > { %v5355_v4 = vmax.f32 %v5353_v13, %v5354_v31  ;;  %v5362_v9 = vmax.f32 %v5360_v35, %v5361_v2 }
 0x589   : > { %v3433_v50 = vmax.f32 %v3431_v56, %v3432_v62  ;;  %v3435_v12 = vmax.f32 %v2721_v54, %v3434_v59  ;;  %v2466_v45 = vmax.f32 %v2196_v46, %v2338_v61 }
 0x58a   : > { %v11681_v43 = vsel %vm3974_vm7, %v5355_v4, %v11610_v5  ;;  %v11685_v10 = vsel %vm3974_vm7, %v5362_v9, %v11614_v18 }
 0x58b   : > { %v3616_v58 = vpack.c.bf16 %v3433_v50, %v3433_v50  ;;  %v3436_v16 = vrot.slane %v3435_v12, 2  ;;  %v2594_v60 = vpack.c.bf16 %v2466_v45, %v2466_v45 }
 0x58c   : > { %v2197_v3 = vpop.f32.mrf.mxu1 }
 0x58d   : > { %v3954_v26 = vunpack.c.l.b16 %v3616_v58  ;;  %v3437_v48 = vmax.f32 %v3435_v12, %v3436_v16  ;;  %v2722_v30 = vunpack.c.l.bf16 %v2594_v60  ;;  %v2198_v6 = vadd.f32 %v11651_v28, %v2197_v3 }
 0x58f   : > { %v4074_v40 = vsel %vm3972_vm6, %v3954_v26, %v4073_v53  ;;  %v3438_v22 = vrot.slane %v3437_v48, 1  ;;  %v3440_v11 = vrot.slane %v2722_v30, 4  ;;  %v2339_v55 = vmul.f32 0.2, %v2198_v6 }
 0x591   : > { %v3439_v5 = vmax.f32 %v3437_v48, %v3438_v22  ;;  %v3441_v19 = vmax.f32 %v2722_v30, %v3440_v11  ;;  %v2467_v0 = vmax.f32 %v2198_v6, %v2339_v55  ;;  %v8774_v48 = vld [vmem:[#allocation3 + $0x1c8] sm:$0xf]  ;;  %v10203_v6 = vld [vmem:[#allocation3 + $0x1cc] sm:$0xf] }
 0x592   : > { %v10207_v30 = vld [vmem:[#allocation3 + $0x1e4] sm:$0xf0]  ;;  %v8776_v55 = vld [vmem:[#allocation3 + $0x1e8] sm:$0xf0] }
 0x593   : > { %v3617_v15 = vpack.c.bf16 %v3439_v5, %v3439_v5  ;;  %v3442_v18 = vrot.slane %v3441_v19, 2  ;;  %v2595_v44 = vpack.c.bf16 %v2467_v0, %v2467_v0  ;;  %v8775_v11 = vor.u32 %v10207_v30, %v8774_v48 }
 0x594   : > { %v2200_v25 = vpop.f32.mrf.mxu1  ;;  %v8779_v0 = vor.u32 %v10203_v6, %v8776_v55  ;;  %v9878_v6 = vld [vmem:[#allocation5 + $0x70] sm:$0xf] }
 0x595   : > { %v3955_v17 = vunpack.c.l.b16 %v3617_v15  ;;  %v3443_v27 = vmax.f32 %v3441_v19, %v3442_v18  ;;  %v2723_v47 = vunpack.c.l.bf16 %v2595_v44  ;;  %v2201_v31 = vadd.f32 %v11651_v28, %v2200_v25  ;;  %4519 = vmatpush.bf16.msrb.mxu2 %v8775_v11  ;;  %v8742_v25 = vld [vmem:[#allocation3 + $0x188] sm:$0xf] }
 0x596   : > { %4568 = vmatpush.bf16.msrb.mxu3 %v8779_v0  ;;  %v10497_v0 = vld [vmem:[#allocation5 + $0xf4] sm:$0xf0] }
 0x597   : > { %v4075_v1 = vsel %vm3974_vm7, %v3955_v17, %v4074_v40  ;;  %v3444_v8 = vrot.slane %v3443_v27, 1  ;;  %v3446_v32 = vrot.slane %v2723_v47, 4  ;;  %v2340_v59 = vmul.f32 0.2, %v2201_v31  ;;  %v10199_v17 = vld [vmem:[#allocation3 + $0x1a4] sm:$0xf0] }
 0x599   : > { %v3445_v23 = vmax.f32 %v3443_v27, %v3444_v8  ;;  %v3447_v7 = vmax.f32 %v2723_v47, %v3446_v32  ;;  %v2468_v45 = vmax.f32 %v2201_v31, %v2340_v59  ;;  %v10195_v27 = vld [vmem:[#allocation3 + $0x18c] sm:$0xf]  ;;  %v8743_v8 = vor.u32 %v10199_v17, %v8742_v25 }
 0x59a   : > { %v8744_v32 = vld [vmem:[#allocation3 + $0x1a8] sm:$0xf0] }
 0x59b   : > { %v3618_v36 = vpack.c.bf16 %v3445_v23, %v3445_v23  ;;  %v3448_v41 = vrot.slane %v3447_v7, 2  ;;  %v2596_v40 = vpack.c.bf16 %v2468_v45, %v2468_v45  ;;  %4520 = vmatpush.bf16.msrb.mxu2 %v8743_v8 }
 0x59c   : > { %v2202_v34 = vpop.f32.mrf.mxu1 }
 0x59d   : > { %v3956_v29 = vunpack.c.l.b16 %v3618_v36  ;;  %v3449_v33 = vmax.f32 %v3447_v7, %v3448_v41  ;;  %v2203_v54 = vadd.f32 %v11651_v28, %v2202_v34  ;;  %v2724_v47 = vunpack.c.l.bf16 %v2596_v40  ;;  %v10481_v40 = vld [vmem:[#allocation5 + $0x74] sm:$0xf0] }
 0x59e   : > { %v8747_v34 = vor.u32 %v10195_v27, %v8744_v32 }
 0x59f   : > { %v4076_v37 = vsel %vm3976_vm8, %v3956_v29, %v4075_v1  ;;  %v3450_v38 = vrot.slane %v3449_v33, 1  ;;  %v2341_v53 = vmul.f32 0.2, %v2203_v54 }
 0x5a0   : > { %4569 = vmatpush.bf16.msrb.mxu3 %v8747_v34 }
 0x5a1   : > { %v3451_v13 = vmax.f32 %v3449_v33, %v3450_v38  ;;  %v2469_v4 = vmax.f32 %v2203_v54, %v2341_v53  ;;  %v8710_v33 = vld [vmem:[#allocation3 + $0x148] sm:$0xf]  ;;  %v10187_v38 = vld [vmem:[#allocation3 + $0x14c] sm:$0xf] }
 0x5a3   : > { %v3619_v35 = vpack.c.bf16 %v3451_v13, %v3451_v13  ;;  %v2597_v16 = vpack.c.bf16 %v2469_v4, %v2469_v4  ;;  %v3452_v13 = vrot.slane %v2724_v47, 4  ;;  %v8678_v4 = vld [vmem:[#allocation3 + $0x108] sm:$0xf] }
 0x5a4   : > { %v2205_v42 = vpop.f32.mrf.mxu1 }
 0x5a5   : > { %v3957_v20 = vunpack.c.l.b16 %v3619_v35  ;;  %v2206_v2 = vadd.f32 %v11651_v28, %v2205_v42  ;;  %v2725_v5 = vunpack.c.l.bf16 %v2597_v16  ;;  %v8680_v16 = vld [vmem:[#allocation3 + $0x128] sm:$0xf0] }
 0x5a7   : > { %v11692_v56 = vsel %vm3978_vm9, %v3957_v20, %v4076_v37  ;;  %v2342_v61 = vmul.f32 0.2, %v2206_v2  ;;  %v3458_v23 = vrot.slane %v2725_v5, 4  ;;  %v10191_v37 = vld [vmem:[#allocation3 + $0x164] sm:$0xf0] }
 0x5a8   : > { %v8711_v42 = vor.u32 %v10191_v37, %v8710_v33  ;;  %v8712_v20 = vld [vmem:[#allocation3 + $0x168] sm:$0xf0]  ;;  %v8614_v37 = vld [vmem:[#allocation3 + $0x88] sm:$0xf] }
 0x5a9   : > { %v2470_v58 = vmax.f32 %v2206_v2, %v2342_v61  ;;  %v3459_v54 = vmax.f32 %v2725_v5, %v3458_v23  ;;  %v8715_v2 = vor.u32 %v10187_v38, %v8712_v20  ;;  %v10167_v38 = vld [vmem:[#allocation3 + $0xa4] sm:$0xf0] }
 0x5aa   : > { %4521 = vmatpush.bf16.msrb.mxu2 %v8711_v42  ;;  %v8615_v20 = vor.u32 %v10167_v38, %v8614_v37 }
 0x5ab   : > { %v2598_v22 = vpack.c.bf16 %v2470_v58, %v2470_v58  ;;  %4570 = vmatpush.bf16.msrb.mxu3 %v8715_v2 }
 0x5ac   : > { %v2207_v46 = vpop.f32.mrf.mxu1 }
 0x5ad   : > { %v2208_v62 = vadd.f32 %v11651_v28, %v2207_v46  ;;  %v2726_v1 = vunpack.c.l.bf16 %v2598_v22  ;;  %v9942_v22 = vld [vmem:[#allocation5 + $0xf0] sm:$0xf] }
 0x5ae   : > { %v9943_v17 = vor.u32 %v10497_v0, %v9942_v22  ;;  %v10147_v0 = vld [vmem:[#allocation3 + $0xc] sm:$0xf] }
 0x5af   : > { %v2343_v9 = vmul.f32 0.2, %v2208_v62  ;;  %v3464_v35 = vrot.slane %v2726_v1, 4 }
 0x5b0   : > { %8046 = vmatpush.bf16.msrb.mxu1 %v9943_v17 }
 0x5b1   : > { %v2471_v60 = vmax.f32 %v2208_v62, %v2343_v9  ;;  %v10183_v9 = vld [vmem:[#allocation3 + $0x124] sm:$0xf0]  ;;  %v3465_v45 = vmax.f32 %v2726_v1, %v3464_v35  ;;  %v8648_v1 = vld [vmem:[#allocation3 + $0xe8] sm:$0xf0] }
 0x5b2   : > { %v8679_v58 = vor.u32 %v10183_v9, %v8678_v4 }
 0x5b3   : > { %v2599_v19 = vpack.c.bf16 %v2471_v60, %v2471_v60  ;;  %v3460_v60 = vrot.slane %v3459_v54, 2  ;;  %v3466_v25 = vrot.slane %v3465_v45, 2 }
 0x5b4   : > { %v2210_v50 = vpop.f32.mrf.mxu1  ;;  %4522 = vmatpush.bf16.msrb.mxu2 %v8679_v58  ;;  %v10155_v58 = vld [vmem:[#allocation3 + $0x4c] sm:$0xf] }
 0x5b5   : > { %v2211_v12 = vadd.f32 %v11651_v28, %v2210_v50  ;;  %v2727_v7 = vunpack.c.l.bf16 %v2599_v19  ;;  %v10179_v50 = vld [vmem:[#allocation3 + $0x10c] sm:$0xf]  ;;  %v9879_v19 = vor.u32 %v10481_v40, %v9878_v6  ;;  %v3467_v42 = vmax.f32 %v3465_v45, %v3466_v25 }
 0x5b6   : > { %v8683_v11 = vor.u32 %v10179_v50, %v8680_v16  ;;  %v8582_v50 = vld [vmem:[#allocation3 + $0x48] sm:$0xf]  ;;  %v8584_v45 = vld [vmem:[#allocation3 + $0x68] sm:$0xf0] }
 0x5b7   : > { %v2344_v3 = vmul.f32 0.2, %v2211_v12  ;;  %v3470_v46 = vrot.slane %v2727_v7, 4  ;;  %8033 = vmatpush.bf16.msrb.mxu0 %v9879_v19  ;;  %v8587_v6 = vor.u32 %v10155_v58, %v8584_v45  ;;  %v10151_v19 = vld [vmem:[#allocation3 + $0x24] sm:$0xf0] }
 0x5b8   : > { %4571 = vmatpush.bf16.msrb.mxu3 %v8683_v11  ;;  %v8552_v25 = vld [vmem:[#allocation3 + $0x28] sm:$0xf0] }
 0x5b9   : > { %v2472_v26 = vmax.f32 %v2211_v12, %v2344_v3  ;;  %v3453_v12 = vmax.f32 %v2724_v47, %v3452_v13  ;;  %v3471_v3 = vmax.f32 %v2727_v7, %v3470_v46  ;;  %v10171_v47 = vld [vmem:[#allocation3 + $0xcc] sm:$0xf]  ;;  %v3461_v7 = vmax.f32 %v3459_v54, %v3460_v60 }
 0x5ba   : > { %v8651_v23 = vor.u32 %v10171_v47, %v8648_v1  ;;  %v10163_v13 = vld [vmem:[#allocation3 + $0x8c] sm:$0xf]  ;;  %v3468_v60 = vrot.slane %v3467_v42, 1  ;;  %v8555_v1 = vor.u32 %v10147_v0, %v8552_v25 }
 0x5bb   : > { %v2600_v15 = vpack.c.bf16 %v2472_v26, %v2472_v26  ;;  %v3472_v8 = vrot.slane %v3471_v3, 2  ;;  %v8616_v46 = vld [vmem:[#allocation3 + $0xa8] sm:$0xf0]  ;;  %v3462_v54 = vrot.slane %v3461_v7, 1 }
 0x5bc   : > { %v2212_v18 = vpop.f32.mrf.mxu1  ;;  %4572 = vmatpush.bf16.msrb.mxu3 %v8651_v23 }
 0x5bd   : > { %v2213_v44 = vadd.f32 %v11651_v28, %v2212_v18  ;;  %v2728_v41 = vunpack.c.l.bf16 %v2600_v15  ;;  %v8646_v15 = vld [vmem:[#allocation3 + $0xc8] sm:$0xf] }
 0x5be   : > { %v10175_v18 = vld [vmem:[#allocation3 + $0xe4] sm:$0xf0] }
 0x5bf   : > { %v2345_v36 = vmul.f32 0.2, %v2213_v44  ;;  %v3476_v53 = vrot.slane %v2728_v41, 4  ;;  %v8647_v27 = vor.u32 %v10175_v18, %v8646_v15  ;;  %v3469_v18 = vmax.f32 %v3467_v42, %v3468_v60 }
 0x5c1   : > { %v2473_v29 = vmax.f32 %v2213_v44, %v2345_v36  ;;  %v3477_v30 = vmax.f32 %v2728_v41, %v3476_v53  ;;  %v3454_v44 = vrot.slane %v3453_v12, 2  ;;  %4523 = vmatpush.bf16.msrb.mxu2 %v8647_v27 }
 0x5c3   : > { %v2601_v31 = vpack.c.bf16 %v2473_v29, %v2473_v29  ;;  %v3478_v36 = vrot.slane %v3477_v30, 2  ;;  %v3455_v35 = vmax.f32 %v3453_v12, %v3454_v44 }
 0x5c4   : > { %v2215_v62 = vpop.f32.mrf.mxu1 }
 0x5c5   : > { %v2729_v59 = vunpack.c.l.bf16 %v2601_v31  ;;  %v2216_v61 = vadd.f32 %v11651_v28, %v2215_v62  ;;  %v3473_v31 = vmax.f32 %v3471_v3, %v3472_v8  ;;  %v3479_v62 = vmax.f32 %v3477_v30, %v3478_v36  ;;  %4524 = vmatpush.bf16.msrb.mxu2 %v8615_v20 }
 0x5c6   : > { %v3456_v16 = vrot.slane %v3455_v35, 1  ;;  %v3463_v30 = vmax.f32 %v3461_v7, %v3462_v54  ;;  %v3622_v7 = vpack.c.bf16 %v3469_v18, %v3469_v18 }
 0x5c7   : > { %v3482_v26 = vrot.slane %v2729_v59, 4  ;;  %v2346_v48 = vmul.f32 0.2, %v2216_v61  ;;  %v3480_v40 = vrot.slane %v3479_v62, 1 }
 0x5c8   : > { %v3457_v15 = vmax.f32 %v3455_v35, %v3456_v16  ;;  %v3960_v42 = vunpack.c.l.b16 %v3622_v7 }
 0x5c9   : > { %v3483_v55 = vmax.f32 %v2729_v59, %v3482_v26  ;;  %v2474_v5 = vmax.f32 %v2216_v61, %v2346_v48  ;;  %v8619_v61 = vor.u32 %v10163_v13, %v8616_v46  ;;  %v3474_v26 = vrot.slane %v3473_v31, 1 }
 0x5ca   : > { %v3481_v8 = vmax.f32 %v3479_v62, %v3480_v40 }
 0x5cb   : > { %v2602_v32 = vpack.c.bf16 %v2474_v5, %v2474_v5  ;;  %v3484_v41 = vrot.slane %v3483_v55, 2  ;;  %4573 = vmatpush.bf16.msrb.mxu3 %v8619_v61  ;;  %v8550_v5 = vld [vmem:[#allocation3 + $0x8] sm:$0xf]  ;;  %v3475_v17 = vmax.f32 %v3473_v31, %v3474_v26 }
 0x5cc   : > { %v2217_v34 = vpop.f32.mrf.mxu1  ;;  %v8551_v44 = vor.u32 %v10151_v19, %v8550_v5  ;;  %v3624_v37 = vpack.c.bf16 %v3481_v8, %v3481_v8 }
 0x5cd   : > { %v2730_v29 = vunpack.c.l.bf16 %v2602_v32  ;;  %v2218_v33 = vadd.f32 %v11651_v28, %v2217_v34  ;;  %v3485_v59 = vmax.f32 %v3483_v55, %v3484_v41  ;;  %v10159_v28 = vld [vmem:[#allocation3 + $0x64] sm:$0xf0]  ;;  %v3621_v32 = vpack.c.bf16 %v3463_v30, %v3463_v30 }
 0x5ce   : > { %v8583_v12 = vor.u32 %v10159_v28, %v8582_v50  ;;  %v3620_v34 = vpack.c.bf16 %v3457_v15, %v3457_v15 }
 0x5cf   : > { %v3488_v2 = vrot.slane %v2730_v29, 4  ;;  %v2347_v53 = vmul.f32 0.2, %v2218_v33  ;;  %v3486_v22 = vrot.slane %v3485_v59, 1  ;;  %4574 = vmatpush.bf16.msrb.mxu3 %v8587_v6  ;;  %v3959_v38 = vunpack.c.l.b16 %v3621_v32 }
 0x5d0   : > { %4525 = vmatpush.bf16.msrb.mxu2 %v8583_v12  ;;  %v3958_v46 = vunpack.c.l.b16 %v3620_v34 }
 0x5d1   : > { %v3489_v4 = vmax.f32 %v2730_v29, %v3488_v2  ;;  %v2475_v9 = vmax.f32 %v2218_v33, %v2347_v53  ;;  %v3487_v23 = vmax.f32 %v3485_v59, %v3486_v22  ;;  %v3623_v29 = vpack.c.bf16 %v3475_v17, %v3475_v17 }
 0x5d2   : > { %v3962_v53 = vunpack.c.l.b16 %v3624_v37  ;;  %v4078_v54 = vsel %vm3966_vm3, %v3959_v38, %v3958_v46  ;;  %v9870_v46 = vld [vmem:[#allocation5 + $0x60] sm:$0xf] }
 0x5d3   : > { %v3490_v48 = vrot.slane %v3489_v4, 2  ;;  %v2603_v3 = vpack.c.bf16 %v2475_v9, %v2475_v9  ;;  %4575 = vmatpush.bf16.msrb.mxu3 %v8555_v1  ;;  %v3625_v13 = vpack.c.bf16 %v3487_v23, %v3487_v23  ;;  %v3961_v31 = vunpack.c.l.b16 %v3623_v29 }
 0x5d4   : > { %4526 = vmatpush.bf16.msrb.mxu2 %v8551_v44  ;;  %v4079_v61 = vsel %vm3968_vm4, %v3960_v42, %v4078_v54  ;;  %v10204_v42 = vld [vmem:[#allocation3 + $0x1d4] sm:$0xf]  ;;  %v10495_v54 = vld [vmem:[#allocation5 + $0xe4] sm:$0xf0] }
 0x5d5   : > { %v3491_v11 = vmax.f32 %v3489_v4, %v3490_v48  ;;  %v2731_v55 = vunpack.c.l.bf16 %v2603_v3  ;;  %v3963_v62 = vunpack.c.l.b16 %v3625_v13  ;;  %v4080_v9 = vsel %vm3970_vm5, %v3961_v31, %v4079_v61  ;;  %v8782_v13 = vld [vmem:[#allocation3 + $0x1d0] sm:$0xf] }
 0x5d6   : > { %v4081_v28 = vsel %vm3972_vm6, %v3962_v53, %v4080_v9  ;;  %v9934_v53 = vld [vmem:[#allocation5 + $0xe0] sm:$0xf]  ;;  %v10200_v61 = vld [vmem:[#allocation3 + $0x1ac] sm:$0xf0]  ;;  %v8752_v9 = vld [vmem:[#allocation3 + $0x1b0] sm:$0xf0] }
 0x5d7   : > { %v3492_v27 = vrot.slane %v3491_v11, 1  ;;  %v3494_v47 = vrot.slane %v2731_v55, 4  ;;  %v4082_v58 = vsel %vm3974_vm7, %v3963_v62, %v4081_v28  ;;  %v8750_v62 = vld [vmem:[#allocation3 + $0x190] sm:$0xf] }
 0x5d9   : > { %v3495_v36 = vmax.f32 %v2731_v55, %v3494_v47  ;;  %v3493_v41 = vmax.f32 %v3491_v11, %v3492_v27 }
 0x5db   : > { %v3496_v33 = vrot.slane %v3495_v36, 2  ;;  %v3626_v20 = vpack.c.bf16 %v3493_v41, %v3493_v41 }
 0x5dd   : > { %v3497_v35 = vmax.f32 %v3495_v36, %v3496_v33  ;;  %v3964_v4 = vunpack.c.l.b16 %v3626_v20  ;;  %v8784_v20 = vld [vmem:[#allocation3 + $0x1f0] sm:$0xf0] }
 0x5de   : > { %v8787_v31 = vor.u32 %v10204_v42, %v8784_v20 }
 0x5df   : > { %v3498_v2 = vrot.slane %v3497_v35, 1  ;;  %v4083_v60 = vsel %vm3976_vm8, %v3964_v4, %v4082_v58  ;;  %v10196_v4 = vld [vmem:[#allocation3 + $0x194] sm:$0xf]  ;;  %v8718_v58 = vld [vmem:[#allocation3 + $0x150] sm:$0xf] }
 0x5e0   : > { %4666 = vmatpush.bf16.msra.mxu3 %v8787_v31  ;;  %v8755_v28 = vor.u32 %v10196_v4, %v8752_v9 }
 0x5e1   : > { %v3499_v59 = vmax.f32 %v3497_v35, %v3498_v2  ;;  %v10208_v35 = vld [vmem:[#allocation3 + $0x1ec] sm:$0xf0] }
 0x5e3   : > { %v3627_v50 = vpack.c.bf16 %v3499_v59, %v3499_v59  ;;  %v9935_v59 = vor.u32 %v10495_v54, %v9934_v53 }
 0x5e4   : > { %4667 = vmatpush.bf16.msra.mxu3 %v8755_v28 }
 0x5e5   : > { %v3965_v16 = vunpack.c.l.b16 %v3627_v50  ;;  %v8751_v50 = vor.u32 %v10200_v61, %v8750_v62  ;;  %8047 = vmatpush.bf16.msrb.mxu1 %v9935_v59 }
 0x5e7   : > { %v4084_v12 = vsel %vm3978_vm9, %v3965_v16, %v4083_v60  ;;  %v10192_v16 = vld [vmem:[#allocation3 + $0x16c] sm:$0xf0]  ;;  %v10188_v60 = vld [vmem:[#allocation3 + $0x154] sm:$0xf] }
 0x5e8   : > { %v11710_v45 = vpack.c.b16 %v4084_v12, %v11692_v56  ;;  %v8720_v12 = vld [vmem:[#allocation3 + $0x170] sm:$0xf0] }
 0x5ea   : > { %4464 = vmatmul.bf16.gmra.mxu2 %v11710_v45  ;;  %4513 = vmatmul.bf16.gmra.mxu3 %v11710_v45 }
 0x5ed   : > { %v4460_v26 = vpop.f32.mrf.mxu2  ;;  %v4509_v48 = vpop.f32.mrf.mxu3 }
 0x5ee   : > { %v4461_v3 = vadd.f32 %v4460_v26, %v11208_v49  ;;  %v4510_v6 = vadd.f32 %v4509_v48, %v11218_v63  ;;  %v8719_v26 = vor.u32 %v10192_v16, %v8718_v58  ;;  %v8723_v48 = vor.u32 %v10188_v60, %v8720_v12  ;;  %v11751_v60 = vld [vmem:[%s13729_s6] sm:$0xff] }
 0x5ef   : > { %v11757_v12 = vperm.slane %v11751_v60, 3 }
 0x5f0   : > { %v4909_v40 = vmul.f32 0.2, %v4461_v3  ;;  %v4910_v11 = vmul.f32 0.2, %v4510_v6  ;;  %4668 = vmatpush.bf16.msra.mxu3 %v8723_v48 }
 0x5f2   : > { %v5037_v0 = vmax.f32 %v4461_v3, %v4909_v40  ;;  %v5038_v15 = vmax.f32 %v4510_v6, %v4910_v11  ;;  %v8686_v3 = vld [vmem:[#allocation3 + $0x110] sm:$0xf]  ;;  %v10180_v40 = vld [vmem:[#allocation3 + $0x114] sm:$0xf] }
 0x5f3   : > { %v10184_v6 = vld [vmem:[#allocation3 + $0x12c] sm:$0xf0] }
 0x5f5   : > { %v4462_v22 = vpop.f32.mrf.mxu2  ;;  %v4511_v30 = vpop.f32.mrf.mxu3 }
 0x5f6   : > { %v4463_v55 = vadd.f32 %v4462_v22, %v11208_v49  ;;  %v4512_v5 = vadd.f32 %v4511_v30, %v11218_v63  ;;  %v8688_v22 = vld [vmem:[#allocation3 + $0x130] sm:$0xf0]  ;;  %v8687_v30 = vor.u32 %v10184_v6, %v8686_v3 }
 0x5f7   : > { %v8691_v11 = vor.u32 %v10180_v40, %v8688_v22 }
 0x5f8   : > { %v4917_v56 = vmul.f32 0.2, %v4463_v55  ;;  %v4918_v19 = vmul.f32 0.2, %v4512_v5 }
 0x5f9   : > { %4669 = vmatpush.bf16.msra.mxu3 %v8691_v11 }
 0x5fa   : > { %v5045_v18 = vmax.f32 %v4463_v55, %v4917_v56  ;;  %v5046_v44 = vmax.f32 %v4512_v5, %v4918_v19  ;;  %4527 = vmatmul.bf16.vlgmr.msrb.gmra.mxu2 %v10994_v24  ;;  %4576 = vmatmul.bf16.vlgmr.msrb.gmra.mxu3 %v10994_v24  ;;  %v8654_v55 = vld [vmem:[#allocation3 + $0xd0] sm:$0xf]  ;;  %v10172_v56 = vld [vmem:[#allocation3 + $0xd4] sm:$0xf] }
 0x5fb   : > { %v10176_v5 = vld [vmem:[#allocation3 + $0xec] sm:$0xf0] }
 0x5fc   : > { %v5405_v25 = vmax.f32 %v5037_v0, %v5045_v18  ;;  %v5412_v17 = vmax.f32 %v5038_v15, %v5046_v44  ;;  %v8655_v19 = vor.u32 %v10176_v5, %v8654_v55  ;;  %v8656_v0 = vld [vmem:[#allocation3 + $0xf0] sm:$0xf0]  ;;  %v8622_v18 = vld [vmem:[#allocation3 + $0x90] sm:$0xf] }
 0x5fd   : > { %v8659_v15 = vor.u32 %v10172_v56, %v8656_v0  ;;  %v10168_v44 = vld [vmem:[#allocation3 + $0xac] sm:$0xf0] }
 0x5fe   : > { %v5406_v27 = vrot.slane %v5405_v25, 4  ;;  %v5413_v47 = vrot.slane %v5412_v17, 4 }
 0x5ff   : > { %4670 = vmatpush.bf16.msra.mxu3 %v8659_v15 }
 0x600   : > { %v5407_v1 = vmax.f32 %v5405_v25, %v5406_v27  ;;  %v5414_v8 = vmax.f32 %v5412_v17, %v5413_v47  ;;  %v10164_v25 = vld [vmem:[#allocation3 + $0x94] sm:$0xf]  ;;  %v8623_v17 = vor.u32 %v10168_v44, %v8622_v18 }
 0x601   : > { %v8624_v27 = vld [vmem:[#allocation3 + $0xb0] sm:$0xf0] }
 0x602   : > { %v5408_v32 = vrot.slane %v5407_v1, 2  ;;  %v5415_v23 = vrot.slane %v5414_v8, 2  ;;  %v8627_v47 = vor.u32 %v10164_v25, %v8624_v27 }
 0x604   : > { %v5409_v36 = vmax.f32 %v5407_v1, %v5408_v32  ;;  %v5416_v7 = vmax.f32 %v5414_v8, %v5415_v23  ;;  %4671 = vmatpush.bf16.msra.mxu3 %v8627_v47  ;;  %v8590_v1 = vld [vmem:[#allocation3 + $0x50] sm:$0xf]  ;;  %v10156_v32 = vld [vmem:[#allocation3 + $0x54] sm:$0xf] }
 0x605   : > { %v10160_v8 = vld [vmem:[#allocation3 + $0x6c] sm:$0xf0] }
 0x606   : > { %v5410_v41 = vrot.slane %v5409_v36, 1  ;;  %v5417_v34 = vrot.slane %v5416_v7, 1  ;;  %v8591_v23 = vor.u32 %v10160_v8, %v8590_v1 }
 0x608   : > { %v5411_v29 = vmax.f32 %v5409_v36, %v5410_v41  ;;  %v5418_v33 = vmax.f32 %v5416_v7, %v5417_v34  ;;  %v8592_v36 = vld [vmem:[#allocation3 + $0x70] sm:$0xf0]  ;;  %v8558_v41 = vld [vmem:[#allocation3 + $0x10] sm:$0xf] }
 0x609   : > { %v8595_v7 = vor.u32 %v10156_v32, %v8592_v36  ;;  %v10152_v34 = vld [vmem:[#allocation3 + $0x2c] sm:$0xf0] }
 0x60a   : > { %4532 = vmatmul.bf16.gmra.mxu2 %v11106_v14  ;;  %4581 = vmatmul.bf16.gmra.mxu3 %v11106_v14  ;;  %v11724_v37 = vsel %vm3976_vm8, %v5411_v29, %v11681_v43  ;;  %v11728_v38 = vsel %vm3976_vm8, %v5418_v33, %v11685_v10  ;;  %v8783_v43 = vor.u32 %v10208_v35, %v8782_v13  ;;  %v10479_v10 = vld [vmem:[#allocation5 + $0x64] sm:$0xf0]  ;;  %v10148_v29 = vld [vmem:[#allocation3 + $0x14] sm:$0xf] }
 0x60b   : > { %v9871_v2 = vor.u32 %v10479_v10, %v9870_v46  ;;  %4672 = vmatpush.bf16.msra.mxu3 %v8595_v7  ;;  %v8559_v33 = vor.u32 %v10152_v34, %v8558_v41  ;;  %v8560_v13 = vld [vmem:[#allocation3 + $0x30] sm:$0xf0] }
 0x60c   : > { %4617 = vmatpush.bf16.msra.mxu2 %v8783_v43  ;;  %v8563_v35 = vor.u32 %v10148_v29, %v8560_v13 }
 0x60d   : > { %8034 = vmatpush.bf16.msrb.mxu0 %v9871_v2 }
 0x60f   : > { %4673 = vmatpush.bf16.msra.mxu3 %v8563_v35 }
 0x610   : > { %4618 = vmatpush.bf16.msra.mxu2 %v8751_v50 }
 0x614   : > { %4619 = vmatpush.bf16.msra.mxu2 %v8719_v26 }
 0x618   : > { %4620 = vmatpush.bf16.msra.mxu2 %v8687_v30 }
 0x61a   : > { %4537 = vmatmul.bf16.gmra.mxu2 %v11250_v51  ;;  %4586 = vmatmul.bf16.gmra.mxu3 %v11250_v51 }
 0x61c   : > { %4621 = vmatpush.bf16.msra.mxu2 %v8655_v19 }
 0x620   : > { %4622 = vmatpush.bf16.msra.mxu2 %v8623_v17 }
 0x624   : > { %4623 = vmatpush.bf16.msra.mxu2 %v8591_v23 }
 0x628   : > { %4624 = vmatpush.bf16.msra.mxu2 %v8559_v33 }
 0x62a   : > { %4542 = vmatmul.bf16.gmra.mxu2 %v11373_v52  ;;  %4591 = vmatmul.bf16.gmra.mxu3 %v11373_v52 }
 0x63a   : > { %4547 = vmatmul.bf16.gmra.mxu2 %v11487_v57  ;;  %4596 = vmatmul.bf16.gmra.mxu3 %v11487_v57 }
 0x64a   : > { %4552 = vmatmul.bf16.gmra.mxu2 %v11587_v21  ;;  %4601 = vmatmul.bf16.gmra.mxu3 %v11587_v21 }
 0x65a   : > { %4557 = vmatmul.bf16.gmra.mxu2 %v11664_v39  ;;  %4606 = vmatmul.bf16.gmra.mxu3 %v11664_v39 }
 0x66a   : > { %4562 = vmatmul.bf16.gmra.mxu2 %v11710_v45  ;;  %4611 = vmatmul.bf16.gmra.mxu3 %v11710_v45 }
 0x66d   : > { %v4465_v42 = vpop.f32.mrf.mxu2  ;;  %v4514_v43 = vpop.f32.mrf.mxu3 }
 0x66e   : > { %v4466_v20 = vadd.f32 %v4465_v42, %v11208_v49  ;;  %v4515_v46 = vadd.f32 %v4514_v43, %v11218_v63 }
 0x670   : > { %v4925_v10 = vmul.f32 0.2, %v4466_v20  ;;  %v4926_v53 = vmul.f32 0.2, %v4515_v46 }
 0x672   : > { %v5053_v4 = vmax.f32 %v4466_v20, %v4925_v10  ;;  %v5054_v9 = vmax.f32 %v4515_v46, %v4926_v53 }
 0x675   : > { %v4467_v31 = vpop.f32.mrf.mxu2  ;;  %v4516_v2 = vpop.f32.mrf.mxu3 }
 0x676   : > { %v4468_v54 = vadd.f32 %v4467_v31, %v11208_v49  ;;  %v4517_v62 = vadd.f32 %v4516_v2, %v11218_v63  ;;  %v11754_v49 = vperm.slane %v11751_v60, 2 }
 0x678   : > { %v4933_v59 = vmul.f32 0.2, %v4468_v54  ;;  %v4934_v61 = vmul.f32 0.2, %v4517_v62 }
 0x67a   : > { %v5061_v50 = vmax.f32 %v4468_v54, %v4933_v59  ;;  %v5062_v28 = vmax.f32 %v4517_v62, %v4934_v61  ;;  %4625 = vmatmul.bf16.vlgmr.msra.gmra.mxu2 %v10994_v24  ;;  %4674 = vmatmul.bf16.vlgmr.msra.gmra.mxu3 %v10994_v24 }
 0x67c   : > { %v5461_v58 = vmax.f32 %v5053_v4, %v5061_v50  ;;  %v5468_v16 = vmax.f32 %v5054_v9, %v5062_v28 }
 0x67d   : > { %v4528_v63 = vpop.f32.mrf.mxu2  ;;  %v4577_v26 = vpop.f32.mrf.mxu3 }
 0x67e   : > { %v5462_v48 = vrot.slane %v5461_v58, 4  ;;  %v5469_v3 = vrot.slane %v5468_v16, 4  ;;  %v4529_v22 = vadd.f32 %v4528_v63, %v11754_v49  ;;  %v4578_v30 = vadd.f32 %v4577_v26, %v11757_v12 }
 0x680   : > { %v5463_v6 = vmax.f32 %v5461_v58, %v5462_v48  ;;  %v5470_v40 = vmax.f32 %v5468_v16, %v5469_v3  ;;  %v4815_v19 = vmul.f32 0.2, %v4529_v22  ;;  %v4816_v0 = vmul.f32 0.2, %v4578_v30 }
 0x682   : > { %v5464_v11 = vrot.slane %v5463_v6, 2  ;;  %v5471_v55 = vrot.slane %v5470_v40, 2  ;;  %v4943_v23 = vmax.f32 %v4529_v22, %v4815_v19  ;;  %v4944_v36 = vmax.f32 %v4578_v30, %v4816_v0 }
 0x684   : > { %v5465_v5 = vmax.f32 %v5463_v6, %v5464_v11  ;;  %v5472_v56 = vmax.f32 %v5470_v40, %v5471_v55 }
 0x685   : > { %v4530_v15 = vpop.f32.mrf.mxu2  ;;  %v4579_v18 = vpop.f32.mrf.mxu3 }
 0x686   : > { %v5466_v44 = vrot.slane %v5465_v5, 1  ;;  %v5473_v25 = vrot.slane %v5472_v56, 1  ;;  %v4531_v17 = vadd.f32 %v4530_v15, %v11754_v49  ;;  %v4580_v27 = vadd.f32 %v4579_v18, %v11757_v12 }
 0x688   : > { %v5467_v47 = vmax.f32 %v5465_v5, %v5466_v44  ;;  %v5474_v1 = vmax.f32 %v5472_v56, %v5473_v25  ;;  %v4823_v8 = vmul.f32 0.2, %v4531_v17  ;;  %v4824_v32 = vmul.f32 0.2, %v4580_v27 }
 0x68a   : > { %v4951_v7 = vmax.f32 %v4531_v17, %v4823_v8  ;;  %v4952_v41 = vmax.f32 %v4580_v27, %v4824_v32  ;;  %4630 = vmatmul.bf16.gmra.mxu2 %v11106_v14  ;;  %4679 = vmatmul.bf16.gmra.mxu3 %v11106_v14  ;;  %v11767_v34 = vsel %vm3978_vm9, %v5467_v47, %v11724_v37 }
 0x68b   : > { %v11771_v29 = vsel %vm3978_vm9, %v5474_v1, %v11728_v38 }
 0x68c   : > { %v5083_v33 = vmax.f32 %v4943_v23, %v4951_v7  ;;  %v5090_v13 = vmax.f32 %v4944_v36, %v4952_v41 }
 0x68d   : > { %v4533_v35 = vpop.f32.mrf.mxu2  ;;  %v4582_v42 = vpop.f32.mrf.mxu3 }
 0x68e   : > { %v4534_v43 = vadd.f32 %v4533_v35, %v11754_v49  ;;  %v4583_v20 = vadd.f32 %v4582_v42, %v11757_v12  ;;  %v5084_v46 = vrot.slane %v5083_v33, 4  ;;  %v5091_v10 = vrot.slane %v5090_v13, 4 }
 0x690   : > { %v4831_v31 = vmul.f32 0.2, %v4534_v43  ;;  %v4832_v54 = vmul.f32 0.2, %v4583_v20  ;;  %v5085_v38 = vmax.f32 %v5083_v33, %v5084_v46  ;;  %v5092_v59 = vmax.f32 %v5090_v13, %v5091_v10 }
 0x692   : > { %v4959_v9 = vmax.f32 %v4534_v43, %v4831_v31  ;;  %v4960_v50 = vmax.f32 %v4583_v20, %v4832_v54  ;;  %v5086_v16 = vrot.slane %v5085_v38, 2  ;;  %v5093_v63 = vrot.slane %v5092_v59, 2 }
 0x694   : > { %v5087_v30 = vmax.f32 %v5085_v38, %v5086_v16  ;;  %v5094_v11 = vmax.f32 %v5092_v59, %v5093_v63 }
 0x695   : > { %v4535_v2 = vpop.f32.mrf.mxu2  ;;  %v4584_v53 = vpop.f32.mrf.mxu3 }
 0x696   : > { %v4536_v37 = vadd.f32 %v4535_v2, %v11754_v49  ;;  %v4585_v62 = vadd.f32 %v4584_v53, %v11757_v12  ;;  %v5088_v18 = vrot.slane %v5087_v30, 1  ;;  %v5095_v44 = vrot.slane %v5094_v11, 1 }
 0x698   : > { %v4839_v61 = vmul.f32 0.2, %v4536_v37  ;;  %v4840_v4 = vmul.f32 0.2, %v4585_v62  ;;  %v5089_v41 = vmax.f32 %v5087_v30, %v5088_v18  ;;  %v5096_v33 = vmax.f32 %v5094_v11, %v5095_v44  ;;  %v8790_v44 = vld [vmem:[#allocation3 + $0x1d8] sm:$0xf] }
 0x69a   : > { %v4967_v28 = vmax.f32 %v4536_v37, %v4839_v61  ;;  %v4968_v58 = vmax.f32 %v4585_v62, %v4840_v4  ;;  %4635 = vmatmul.bf16.gmra.mxu2 %v11250_v51  ;;  %4684 = vmatmul.bf16.gmra.mxu3 %v11250_v51 }
 0x69c   : > { %v5139_v26 = vmax.f32 %v4959_v9, %v4967_v28  ;;  %v5146_v48 = vmax.f32 %v4960_v50, %v4968_v58 }
 0x69d   : > { %v4538_v3 = vpop.f32.mrf.mxu2  ;;  %v4587_v6 = vpop.f32.mrf.mxu3 }
 0x69e   : > { %v5140_v40 = vrot.slane %v5139_v26, 4  ;;  %v5147_v22 = vrot.slane %v5146_v48, 4  ;;  %v4539_v56 = vadd.f32 %v4538_v3, %v11754_v49  ;;  %v4588_v19 = vadd.f32 %v4587_v6, %v11757_v12 }
 0x6a0   : > { %v5141_v55 = vmax.f32 %v5139_v26, %v5140_v40  ;;  %v5148_v5 = vmax.f32 %v5146_v48, %v5147_v22  ;;  %v4847_v27 = vmul.f32 0.2, %v4539_v56  ;;  %v4848_v47 = vmul.f32 0.2, %v4588_v19 }
 0x6a2   : > { %v5142_v0 = vrot.slane %v5141_v55, 2  ;;  %v5149_v15 = vrot.slane %v5148_v5, 2  ;;  %v4975_v20 = vmax.f32 %v4539_v56, %v4847_v27  ;;  %v4976_v46 = vmax.f32 %v4588_v19, %v4848_v47 }
 0x6a4   : > { %v5143_v25 = vmax.f32 %v5141_v55, %v5142_v0  ;;  %v5150_v17 = vmax.f32 %v5148_v5, %v5149_v15 }
 0x6a5   : > { %v4540_v1 = vpop.f32.mrf.mxu2  ;;  %v4589_v8 = vpop.f32.mrf.mxu3 }
 0x6a6   : > { %v5144_v32 = vrot.slane %v5143_v25, 1  ;;  %v5151_v23 = vrot.slane %v5150_v17, 1  ;;  %v4541_v36 = vadd.f32 %v4540_v1, %v11754_v49  ;;  %v4590_v7 = vadd.f32 %v4589_v8, %v11757_v12 }
 0x6a8   : > { %v5145_v13 = vmax.f32 %v5143_v25, %v5144_v32  ;;  %v5152_v35 = vmax.f32 %v5150_v17, %v5151_v23  ;;  %v4855_v42 = vmul.f32 0.2, %v4541_v36  ;;  %v4856_v43 = vmul.f32 0.2, %v4590_v7  ;;  %v10209_v25 = vld [vmem:[#allocation3 + $0x1f4] sm:$0xf0] }
 0x6a9   : > { %v10205_v17 = vld [vmem:[#allocation3 + $0x1dc] sm:$0xf]  ;;  %v8791_v23 = vor.u32 %v10209_v25, %v8790_v44 }
 0x6aa   : > { %v5595_v10 = vsel %vm3966_vm3, %v5145_v13, %v5089_v41  ;;  %v5602_v31 = vsel %vm3966_vm3, %v5152_v35, %v5096_v33  ;;  %v4983_v2 = vmax.f32 %v4541_v36, %v4855_v42  ;;  %v4984_v53 = vmax.f32 %v4590_v7, %v4856_v43  ;;  %4640 = vmatmul.bf16.gmra.mxu2 %v11373_v52  ;;  %v8792_v32 = vld [vmem:[#allocation3 + $0x1f8] sm:$0xf0]  ;;  %v8758_v35 = vld [vmem:[#allocation3 + $0x198] sm:$0xf] }
 0x6ab   : > { %4689 = vmatmul.bf16.gmra.mxu3 %v11373_v52  ;;  %v8795_v36 = vor.u32 %v10205_v17, %v8792_v32  ;;  %4715 = vmatpush.bf16.msrb.mxu2 %v8791_v23  ;;  %v10201_v42 = vld [vmem:[#allocation3 + $0x1b4] sm:$0xf0]  ;;  %v10197_v43 = vld [vmem:[#allocation3 + $0x19c] sm:$0xf] }
 0x6ac   : > { %v5195_v54 = vmax.f32 %v4975_v20, %v4983_v2  ;;  %v5202_v37 = vmax.f32 %v4976_v46, %v4984_v53  ;;  %v8662_v32 = vld [vmem:[#allocation3 + $0xd8] sm:$0xf] }
 0x6ad   : > { %v4543_v62 = vpop.f32.mrf.mxu2  ;;  %v4592_v38 = vpop.f32.mrf.mxu3  ;;  %4764 = vmatpush.bf16.msrb.mxu3 %v8795_v36  ;;  %v10177_v23 = vld [vmem:[#allocation3 + $0xf4] sm:$0xf0]  ;;  %v10173_v36 = vld [vmem:[#allocation3 + $0xdc] sm:$0xf] }
 0x6ae   : > { %v5196_v59 = vrot.slane %v5195_v54, 4  ;;  %v5203_v61 = vrot.slane %v5202_v37, 4  ;;  %v4544_v50 = vadd.f32 %v4543_v62, %v11754_v49  ;;  %v4593_v28 = vadd.f32 %v4592_v38, %v11757_v12  ;;  %v8726_v38 = vld [vmem:[#allocation3 + $0x158] sm:$0xf] }
 0x6b0   : > { %v5197_v4 = vmax.f32 %v5195_v54, %v5196_v59  ;;  %v5204_v9 = vmax.f32 %v5202_v37, %v5203_v61  ;;  %v4863_v48 = vmul.f32 0.2, %v4544_v50  ;;  %v4864_v3 = vmul.f32 0.2, %v4593_v28  ;;  %v10193_v59 = vld [vmem:[#allocation3 + $0x174] sm:$0xf0] }
 0x6b1   : > { %v10189_v61 = vld [vmem:[#allocation3 + $0x15c] sm:$0xf] }
 0x6b2   : > { %v5198_v58 = vrot.slane %v5197_v4, 2  ;;  %v5205_v16 = vrot.slane %v5204_v9, 2  ;;  %v4991_v15 = vmax.f32 %v4544_v50, %v4863_v48  ;;  %v4992_v18 = vmax.f32 %v4593_v28, %v4864_v3  ;;  %v8728_v50 = vld [vmem:[#allocation3 + $0x178] sm:$0xf0] }
 0x6b3   : > { %v8727_v28 = vor.u32 %v10193_v59, %v8726_v38  ;;  %v10169_v38 = vld [vmem:[#allocation3 + $0xb4] sm:$0xf0]  ;;  %v10165_v59 = vld [vmem:[#allocation3 + $0x9c] sm:$0xf] }
 0x6b4   : > { %v5199_v63 = vmax.f32 %v5197_v4, %v5198_v58  ;;  %v5206_v26 = vmax.f32 %v5204_v9, %v5205_v16  ;;  %v8731_v58 = vor.u32 %v10189_v61, %v8728_v50 }
 0x6b5   : > { %v4545_v6 = vpop.f32.mrf.mxu2  ;;  %v4594_v40 = vpop.f32.mrf.mxu3 }
 0x6b6   : > { %v5200_v22 = vrot.slane %v5199_v63, 1  ;;  %v5207_v30 = vrot.slane %v5206_v26, 1  ;;  %v4546_v11 = vadd.f32 %v4545_v6, %v11754_v49  ;;  %v4595_v55 = vadd.f32 %v4594_v40, %v11757_v12  ;;  %v8694_v40 = vld [vmem:[#allocation3 + $0x118] sm:$0xf] }
 0x6b8   : > { %v5201_v5 = vmax.f32 %v5199_v63, %v5200_v22  ;;  %v5208_v56 = vmax.f32 %v5206_v26, %v5207_v30  ;;  %v4871_v19 = vmul.f32 0.2, %v4546_v11  ;;  %v4872_v0 = vmul.f32 0.2, %v4595_v55  ;;  %v10185_v22 = vld [vmem:[#allocation3 + $0x134] sm:$0xf0] }
 0x6b9   : > { %v10181_v30 = vld [vmem:[#allocation3 + $0x11c] sm:$0xf] }
 0x6ba   : > { %v11792_v27 = vsel %vm3968_vm4, %v5201_v5, %v5595_v10  ;;  %v11795_v47 = vsel %vm3968_vm4, %v5208_v56, %v5602_v31  ;;  %v4999_v1 = vmax.f32 %v4546_v11, %v4871_v19  ;;  %v5000_v8 = vmax.f32 %v4595_v55, %v4872_v0  ;;  %4645 = vmatmul.bf16.gmra.mxu2 %v11487_v57  ;;  %v8760_v10 = vld [vmem:[#allocation3 + $0x1b8] sm:$0xf0] }
 0x6bb   : > { %4694 = vmatmul.bf16.gmra.mxu3 %v11487_v57  ;;  %v8759_v31 = vor.u32 %v10201_v42, %v8758_v35  ;;  %v8763_v2 = vor.u32 %v10197_v43, %v8760_v10  ;;  %v8696_v19 = vld [vmem:[#allocation3 + $0x138] sm:$0xf0]  ;;  %v8695_v0 = vor.u32 %v10185_v22, %v8694_v40  ;;  %v9862_v35 = vld [vmem:[#allocation5 + $0x50] sm:$0xf]  ;;  %v10477_v42 = vld [vmem:[#allocation5 + $0x54] sm:$0xf0]  ;;  %v8663_v10 = vor.u32 %v10177_v23, %v8662_v32 }
 0x6bc   : > { %v5251_v7 = vmax.f32 %v4991_v15, %v4999_v1  ;;  %v5258_v41 = vmax.f32 %v4992_v18, %v5000_v8  ;;  %v8699_v15 = vor.u32 %v10181_v30, %v8696_v19  ;;  %v9926_v43 = vld [vmem:[#allocation5 + $0xd0] sm:$0xf]  ;;  %v8600_v30 = vld [vmem:[#allocation3 + $0x78] sm:$0xf0] }
 0x6bd   : > { %v4548_v33 = vpop.f32.mrf.mxu2  ;;  %v4597_v13 = vpop.f32.mrf.mxu3  ;;  %4716 = vmatpush.bf16.msrb.mxu2 %v8759_v31  ;;  %4765 = vmatpush.bf16.msrb.mxu3 %v8763_v2  ;;  %v8664_v31 = vld [vmem:[#allocation3 + $0xf8] sm:$0xf0] }
 0x6be   : > { %v5252_v20 = vrot.slane %v5251_v7, 4  ;;  %v5259_v46 = vrot.slane %v5258_v41, 4  ;;  %v4549_v37 = vadd.f32 %v4548_v33, %v11754_v49  ;;  %v4598_v62 = vadd.f32 %v4597_v13, %v11757_v12 }
 0x6c0   : > { %v5253_v53 = vmax.f32 %v5251_v7, %v5252_v20  ;;  %v5260_v54 = vmax.f32 %v5258_v41, %v5259_v46  ;;  %v4879_v26 = vmul.f32 0.2, %v4549_v37  ;;  %v4880_v48 = vmul.f32 0.2, %v4598_v62  ;;  %v10493_v46 = vld [vmem:[#allocation5 + $0xd4] sm:$0xf0] }
 0x6c1   : > { %4717 = vmatpush.bf16.msrb.mxu2 %v8727_v28  ;;  %4766 = vmatpush.bf16.msrb.mxu3 %v8731_v58  ;;  %v9863_v20 = vor.u32 %v10477_v42, %v9862_v35 }
 0x6c2   : > { %v5254_v4 = vrot.slane %v5253_v53, 2  ;;  %v5261_v9 = vrot.slane %v5260_v54, 2  ;;  %v5007_v1 = vmax.f32 %v4549_v37, %v4879_v26  ;;  %v5008_v8 = vmax.f32 %v4598_v62, %v4880_v48  ;;  %v8630_v62 = vld [vmem:[#allocation3 + $0x98] sm:$0xf] }
 0x6c3   : > { %8035 = vmatpush.bf16.msrb.mxu0 %v9863_v20  ;;  %v8631_v50 = vor.u32 %v10169_v38, %v8630_v62  ;;  %v8598_v48 = vld [vmem:[#allocation3 + $0x58] sm:$0xf] }
 0x6c4   : > { %v5255_v16 = vmax.f32 %v5253_v53, %v5254_v4  ;;  %v5262_v63 = vmax.f32 %v5260_v54, %v5261_v9  ;;  %v9927_v53 = vor.u32 %v10493_v46, %v9926_v43  ;;  %v8667_v54 = vor.u32 %v10173_v36, %v8664_v31  ;;  %v8632_v9 = vld [vmem:[#allocation3 + $0xb8] sm:$0xf0] }
 0x6c5   : > { %v4550_v3 = vpop.f32.mrf.mxu2  ;;  %v4599_v6 = vpop.f32.mrf.mxu3  ;;  %4718 = vmatpush.bf16.msrb.mxu2 %v8695_v0  ;;  %4767 = vmatpush.bf16.msrb.mxu3 %v8699_v15  ;;  %v8635_v28 = vor.u32 %v10165_v59, %v8632_v9  ;;  %v8568_v36 = vld [vmem:[#allocation3 + $0x38] sm:$0xf0] }
 0x6c6   : > { %v5256_v11 = vrot.slane %v5255_v16, 1  ;;  %v5263_v55 = vrot.slane %v5262_v63, 1  ;;  %v4551_v5 = vadd.f32 %v4550_v3, %v11754_v49  ;;  %v4600_v56 = vadd.f32 %v4599_v6, %v11757_v12  ;;  %8048 = vmatpush.bf16.msrb.mxu1 %v9927_v53  ;;  %v10161_v3 = vld [vmem:[#allocation3 + $0x74] sm:$0xf0]  ;;  %v10157_v6 = vld [vmem:[#allocation3 + $0x5c] sm:$0xf] }
 0x6c8   : > { %v5257_v18 = vmax.f32 %v5255_v16, %v5256_v11  ;;  %v5264_v44 = vmax.f32 %v5262_v63, %v5263_v55  ;;  %v4887_v25 = vmul.f32 0.2, %v4551_v5  ;;  %v4888_v17 = vmul.f32 0.2, %v4600_v56 }
 0x6c9   : > { %4719 = vmatpush.bf16.msrb.mxu2 %v8663_v10  ;;  %4768 = vmatpush.bf16.msrb.mxu3 %v8667_v54  ;;  %v8599_v11 = vor.u32 %v10161_v3, %v8598_v48  ;;  %v8603_v55 = vor.u32 %v10157_v6, %v8600_v30 }
 0x6ca   : > { %v11805_v7 = vsel %vm3970_vm5, %v5257_v18, %v11792_v27  ;;  %v11809_v41 = vsel %vm3970_vm5, %v5264_v44, %v11795_v47  ;;  %v5015_v33 = vmax.f32 %v4551_v5, %v4887_v25  ;;  %v5016_v13 = vmax.f32 %v4600_v56, %v4888_v17  ;;  %4650 = vmatmul.bf16.gmra.mxu2 %v11587_v21  ;;  %v8566_v44 = vld [vmem:[#allocation3 + $0x18] sm:$0xf]  ;;  %v10149_v17 = vld [vmem:[#allocation3 + $0x1c] sm:$0xf] }
 0x6cb   : > { %4699 = vmatmul.bf16.gmra.mxu3 %v11587_v21  ;;  %v10153_v25 = vld [vmem:[#allocation3 + $0x34] sm:$0xf0] }
 0x6cc   : > { %v5307_v2 = vmax.f32 %v5007_v1, %v5015_v33  ;;  %v5314_v27 = vmax.f32 %v5008_v8, %v5016_v13  ;;  %v8567_v33 = vor.u32 %v10153_v25, %v8566_v44  ;;  %v8571_v13 = vor.u32 %v10149_v17, %v8568_v36 }
 0x6cd   : > { %v4553_v37 = vpop.f32.mrf.mxu2  ;;  %v4602_v47 = vpop.f32.mrf.mxu3  ;;  %4720 = vmatpush.bf16.msrb.mxu2 %v8631_v50  ;;  %4769 = vmatpush.bf16.msrb.mxu3 %v8635_v28 }
 0x6ce   : > { %v5308_v61 = vrot.slane %v5307_v2, 4  ;;  %v5315_v4 = vrot.slane %v5314_v27, 4  ;;  %v4554_v63 = vadd.f32 %v4553_v37, %v11754_v49  ;;  %v4603_v26 = vadd.f32 %v4602_v47, %v11757_v12 }
 0x6d0   : > { %v5309_v58 = vmax.f32 %v5307_v2, %v5308_v61  ;;  %v5316_v16 = vmax.f32 %v5314_v27, %v5315_v4  ;;  %v4895_v19 = vmul.f32 0.2, %v4554_v63  ;;  %v4896_v0 = vmul.f32 0.2, %v4603_v26 }
 0x6d1   : > { %4721 = vmatpush.bf16.msrb.mxu2 %v8599_v11  ;;  %4770 = vmatpush.bf16.msrb.mxu3 %v8603_v55 }
 0x6d2   : > { %v5310_v40 = vrot.slane %v5309_v58, 2  ;;  %v5317_v22 = vrot.slane %v5316_v16, 2  ;;  %v5023_v46 = vmax.f32 %v4554_v63, %v4895_v19  ;;  %v5024_v10 = vmax.f32 %v4603_v26, %v4896_v0 }
 0x6d4   : > { %v5311_v5 = vmax.f32 %v5309_v58, %v5310_v40  ;;  %v5318_v56 = vmax.f32 %v5316_v16, %v5317_v22 }
 0x6d5   : > { %v4555_v15 = vpop.f32.mrf.mxu2  ;;  %v4604_v18 = vpop.f32.mrf.mxu3  ;;  %4722 = vmatpush.bf16.msrb.mxu2 %v8567_v33  ;;  %4771 = vmatpush.bf16.msrb.mxu3 %v8571_v13 }
 0x6d6   : > { %v5312_v1 = vrot.slane %v5311_v5, 1  ;;  %v5319_v8 = vrot.slane %v5318_v56, 1  ;;  %v4556_v32 = vadd.f32 %v4555_v15, %v11754_v49  ;;  %v4605_v23 = vadd.f32 %v4604_v18, %v11757_v12 }
 0x6d8   : > { %v5313_v35 = vmax.f32 %v5311_v5, %v5312_v1  ;;  %v5320_v42 = vmax.f32 %v5318_v56, %v5319_v8  ;;  %v4903_v43 = vmul.f32 0.2, %v4556_v32  ;;  %v4904_v20 = vmul.f32 0.2, %v4605_v23 }
 0x6da   : > { %v5598_v31 = vsel %vm3972_vm6, %v5313_v35, %v11805_v7  ;;  %v5605_v2 = vsel %vm3972_vm6, %v5320_v42, %v11809_v41  ;;  %v5031_v27 = vmax.f32 %v4556_v32, %v4903_v43  ;;  %v5032_v53 = vmax.f32 %v4605_v23, %v4904_v20  ;;  %4655 = vmatmul.bf16.gmra.mxu2 %v11664_v39 }
 0x6db   : > { %4704 = vmatmul.bf16.gmra.mxu3 %v11664_v39 }
 0x6dc   : > { %v5363_v54 = vmax.f32 %v5023_v46, %v5031_v27  ;;  %v5370_v37 = vmax.f32 %v5024_v10, %v5032_v53 }
 0x6dd   : > { %v4558_v47 = vpop.f32.mrf.mxu2  ;;  %v4607_v62 = vpop.f32.mrf.mxu3 }
 0x6de   : > { %v5364_v38 = vrot.slane %v5363_v54, 4  ;;  %v5371_v59 = vrot.slane %v5370_v37, 4  ;;  %v4559_v7 = vadd.f32 %v4558_v47, %v11754_v49  ;;  %v4608_v9 = vadd.f32 %v4607_v62, %v11757_v12 }
 0x6e0   : > { %v5365_v61 = vmax.f32 %v5363_v54, %v5364_v38  ;;  %v5372_v4 = vmax.f32 %v5370_v37, %v5371_v59  ;;  %v4911_v16 = vmul.f32 0.2, %v4559_v7  ;;  %v4912_v63 = vmul.f32 0.2, %v4608_v9 }
 0x6e2   : > { %v5366_v41 = vrot.slane %v5365_v61, 2  ;;  %v5373_v50 = vrot.slane %v5372_v4, 2  ;;  %v5039_v56 = vmax.f32 %v4559_v7, %v4911_v16  ;;  %v5040_v19 = vmax.f32 %v4608_v9, %v4912_v63 }
 0x6e3   : > { %v11843_v63 = vperm.slane %v11751_v60, 5 }
 0x6e4   : > { %v5367_v28 = vmax.f32 %v5365_v61, %v5366_v41  ;;  %v5374_v58 = vmax.f32 %v5372_v4, %v5373_v50 }
 0x6e5   : > { %v4560_v26 = vpop.f32.mrf.mxu2  ;;  %v4609_v48 = vpop.f32.mrf.mxu3 }
 0x6e6   : > { %v5368_v3 = vrot.slane %v5367_v28, 1  ;;  %v5375_v6 = vrot.slane %v5374_v58, 1  ;;  %v4561_v40 = vadd.f32 %v4560_v26, %v11754_v49  ;;  %v4610_v22 = vadd.f32 %v4609_v48, %v11757_v12 }
 0x6e8   : > { %v5369_v30 = vmax.f32 %v5367_v28, %v5368_v3  ;;  %v5376_v11 = vmax.f32 %v5374_v58, %v5375_v6  ;;  %v4919_v55 = vmul.f32 0.2, %v4561_v40  ;;  %v4920_v5 = vmul.f32 0.2, %v4610_v22 }
 0x6ea   : > { %v5599_v0 = vsel %vm3974_vm7, %v5369_v30, %v5598_v31  ;;  %v5606_v15 = vsel %vm3974_vm7, %v5376_v11, %v5605_v2  ;;  %v5047_v18 = vmax.f32 %v4561_v40, %v4919_v55  ;;  %v5048_v44 = vmax.f32 %v4610_v22, %v4920_v5  ;;  %4660 = vmatmul.bf16.gmra.mxu2 %v11710_v45 }
 0x6eb   : > { %4709 = vmatmul.bf16.gmra.mxu3 %v11710_v45 }
 0x6ec   : > { %v5419_v25 = vmax.f32 %v5039_v56, %v5047_v18  ;;  %v5426_v17 = vmax.f32 %v5040_v19, %v5048_v44 }
 0x6ed   : > { %v4563_v1 = vpop.f32.mrf.mxu2  ;;  %v4612_v8 = vpop.f32.mrf.mxu3 }
 0x6ee   : > { %v5420_v32 = vrot.slane %v5419_v25, 4  ;;  %v5427_v23 = vrot.slane %v5426_v17, 4  ;;  %v4564_v13 = vadd.f32 %v4563_v1, %v11754_v49  ;;  %v4613_v35 = vadd.f32 %v4612_v8, %v11757_v12 }
 0x6f0   : > { %v5421_v36 = vmax.f32 %v5419_v25, %v5420_v32  ;;  %v5428_v33 = vmax.f32 %v5426_v17, %v5427_v23  ;;  %v4927_v10 = vmul.f32 0.2, %v4564_v13  ;;  %v4928_v31 = vmul.f32 0.2, %v4613_v35 }
 0x6f2   : > { %v5422_v42 = vrot.slane %v5421_v36, 2  ;;  %v5429_v43 = vrot.slane %v5428_v33, 2  ;;  %v5055_v4 = vmax.f32 %v4564_v13, %v4927_v10  ;;  %v5056_v7 = vmax.f32 %v4613_v35, %v4928_v31 }
 0x6f4   : > { %v5423_v20 = vmax.f32 %v5421_v36, %v5422_v42  ;;  %v5430_v46 = vmax.f32 %v5428_v33, %v5429_v43 }
 0x6f5   : > { %v4565_v2 = vpop.f32.mrf.mxu2  ;;  %v4614_v27 = vpop.f32.mrf.mxu3 }
 0x6f6   : > { %v5424_v53 = vrot.slane %v5423_v20, 1  ;;  %v5431_v54 = vrot.slane %v5430_v46, 1  ;;  %v4566_v37 = vadd.f32 %v4565_v2, %v11754_v49  ;;  %v4615_v47 = vadd.f32 %v4614_v27, %v11757_v12 }
 0x6f7   : > { %v11840_v12 = vperm.slane %v11751_v60, 4 }
 0x6f8   : > { %v5425_v62 = vmax.f32 %v5423_v20, %v5424_v53  ;;  %v5432_v38 = vmax.f32 %v5430_v46, %v5431_v54  ;;  %v4935_v59 = vmul.f32 0.2, %v4566_v37  ;;  %v4936_v61 = vmul.f32 0.2, %v4615_v47 }
 0x6fa   : > { %v5063_v9 = vmax.f32 %v4566_v37, %v4935_v59  ;;  %v5064_v41 = vmax.f32 %v4615_v47, %v4936_v61  ;;  %4723 = vmatmul.bf16.vlgmr.msrb.gmra.mxu2 %v10994_v24  ;;  %v5600_v50 = vsel %vm3976_vm8, %v5425_v62, %v5599_v0  ;;  %v5607_v28 = vsel %vm3976_vm8, %v5432_v38, %v5606_v15 }
 0x6fb   : > { %4772 = vmatmul.bf16.vlgmr.msrb.gmra.mxu3 %v10994_v24 }
 0x6fc   : > { %v5475_v58 = vmax.f32 %v5055_v4, %v5063_v9  ;;  %v5482_v49 = vmax.f32 %v5056_v7, %v5064_v41 }
 0x6fd   : > { %v4626_v16 = vpop.f32.mrf.mxu2  ;;  %v4675_v26 = vpop.f32.mrf.mxu3 }
 0x6fe   : > { %v5476_v48 = vrot.slane %v5475_v58, 4  ;;  %v5483_v3 = vrot.slane %v5482_v49, 4  ;;  %v4627_v22 = vadd.f32 %v4626_v16, %v11840_v12  ;;  %v4676_v30 = vadd.f32 %v4675_v26, %v11843_v63 }
 0x700   : > { %v5477_v6 = vmax.f32 %v5475_v58, %v5476_v48  ;;  %v5484_v40 = vmax.f32 %v5482_v49, %v5483_v3  ;;  %v4817_v56 = vmul.f32 0.2, %v4627_v22  ;;  %v4818_v19 = vmul.f32 0.2, %v4676_v30 }
 0x702   : > { %v5478_v11 = vrot.slane %v5477_v6, 2  ;;  %v5485_v24 = vrot.slane %v5484_v40, 2  ;;  %v4945_v23 = vmax.f32 %v4627_v22, %v4817_v56  ;;  %v4946_v36 = vmax.f32 %v4676_v30, %v4818_v19  ;;  %v10272_v56 = vld [vmem:[%s13730_s7 + $0x1ec] sm:$0xf0] }
 0x704   : > { %v5479_v55 = vmax.f32 %v5477_v6, %v5478_v11  ;;  %v5486_v5 = vmax.f32 %v5484_v40, %v5485_v24  ;;  %v8910_v11 = vld [vmem:[%s13730_s7 + $0xe0] sm:$0xf]  ;;  %v10240_v24 = vld [vmem:[%s13730_s7 + $0xec] sm:$0xf0] }
 0x705   : > { %v4628_v0 = vpop.f32.mrf.mxu2  ;;  %v4677_v15 = vpop.f32.mrf.mxu3 }
 0x706   : > { %v5480_v18 = vrot.slane %v5479_v55, 1  ;;  %v5487_v60 = vrot.slane %v5486_v5, 1  ;;  %v4629_v44 = vadd.f32 %v4628_v0, %v11840_v12  ;;  %v4678_v25 = vadd.f32 %v4677_v15, %v11843_v63 }
 0x707   : > { %v8911_v15 = vor.u32 %v10240_v24, %v8910_v11 }
 0x708   : > { %v5481_v17 = vmax.f32 %v5479_v55, %v5480_v18  ;;  %v5488_v1 = vmax.f32 %v5486_v5, %v5487_v60  ;;  %v4825_v8 = vmul.f32 0.2, %v4629_v44  ;;  %v4826_v32 = vmul.f32 0.2, %v4678_v25 }
 0x709   : > { %7215 = vmatpush.bf16.msra.mxu2 %v8911_v15  ;;  %v8974_v15 = vld [vmem:[%s13730_s7 + $0x160] sm:$0xf] }
 0x70a   : > { %v4953_v33 = vmax.f32 %v4629_v44, %v4825_v8  ;;  %v4954_v13 = vmax.f32 %v4678_v25, %v4826_v32  ;;  %4728 = vmatmul.bf16.gmra.mxu2 %v11106_v14  ;;  %v11851_v35 = vsel %vm3978_vm9, %v5481_v17, %v5600_v50  ;;  %v11854_v42 = vsel %vm3978_vm9, %v5488_v1, %v5607_v28  ;;  %v8894_v1 = vld [vmem:[%s13730_s7 + $0xc0] sm:$0xf]  ;;  %v10236_v8 = vld [vmem:[%s13730_s7 + $0xcc] sm:$0xf0] }
 0x70b   : > { %4777 = vmatmul.bf16.gmra.mxu3 %v11106_v14  ;;  %v9022_v32 = vld [vmem:[%s13730_s7 + $0x1c0] sm:$0xf] }
 0x70c   : > { %v5097_v43 = vmax.f32 %v4945_v23, %v4953_v33  ;;  %v5104_v20 = vmax.f32 %v4946_v36, %v4954_v13  ;;  %v8895_v33 = vor.u32 %v10236_v8, %v8894_v1  ;;  %v10268_v13 = vld [vmem:[%s13730_s7 + $0x1cc] sm:$0xf0] }
 0x70d   : > { %v4631_v46 = vpop.f32.mrf.mxu2  ;;  %v4680_v10 = vpop.f32.mrf.mxu3 }
 0x70e   : > { %v5098_v31 = vrot.slane %v5097_v43, 4  ;;  %v5105_v2 = vrot.slane %v5104_v20, 4  ;;  %v4632_v27 = vadd.f32 %v4631_v46, %v11840_v12  ;;  %v4681_v53 = vadd.f32 %v4680_v10, %v11843_v63  ;;  %7216 = vmatpush.bf16.msra.mxu2 %v8895_v33  ;;  %v10220_v33 = vld [vmem:[%s13730_s7 + $0x4c] sm:$0xf0] }
 0x710   : > { %v5099_v54 = vmax.f32 %v5097_v43, %v5098_v31  ;;  %v5106_v37 = vmax.f32 %v5104_v20, %v5105_v2  ;;  %v4833_v38 = vmul.f32 0.2, %v4632_v27  ;;  %v4834_v59 = vmul.f32 0.2, %v4681_v53 }
 0x711   : > { %v9023_v31 = vor.u32 %v10268_v13, %v9022_v32  ;;  %v8958_v13 = vld [vmem:[%s13730_s7 + $0x140] sm:$0xf] }
 0x712   : > { %v5100_v9 = vrot.slane %v5099_v54, 2  ;;  %v5107_v41 = vrot.slane %v5106_v37, 2  ;;  %v4961_v50 = vmax.f32 %v4632_v27, %v4833_v38  ;;  %v4962_v28 = vmax.f32 %v4681_v53, %v4834_v59  ;;  %v10232_v38 = vld [vmem:[%s13730_s7 + $0xac] sm:$0xf0]  ;;  %v9006_v59 = vld [vmem:[%s13730_s7 + $0x1a0] sm:$0xf] }
 0x714   : > { %v5101_v6 = vmax.f32 %v5099_v54, %v5100_v9  ;;  %v5108_v40 = vmax.f32 %v5106_v37, %v5107_v41  ;;  %v10264_v9 = vld [vmem:[%s13730_s7 + $0x1ac] sm:$0xf0] }
 0x715   : > { %v4633_v47 = vpop.f32.mrf.mxu2  ;;  %v4682_v62 = vpop.f32.mrf.mxu3 }
 0x716   : > { %v4634_v61 = vadd.f32 %v4633_v47, %v11840_v12  ;;  %v4683_v14 = vadd.f32 %v4682_v62, %v11843_v63  ;;  %v5102_v60 = vrot.slane %v5101_v6, 1  ;;  %v5109_v44 = vrot.slane %v5108_v40, 1  ;;  %v8878_v62 = vld [vmem:[%s13730_s7 + $0xa0] sm:$0xf] }
 0x718   : > { %v4841_v4 = vmul.f32 0.2, %v4634_v61  ;;  %v4842_v7 = vmul.f32 0.2, %v4683_v14  ;;  %v5103_v37 = vmax.f32 %v5101_v6, %v5102_v60  ;;  %v5110_v47 = vmax.f32 %v5108_v40, %v5109_v44  ;;  %v10228_v6 = vld [vmem:[%s13730_s7 + $0x8c] sm:$0xf0] }
 0x719   : > { %v8990_v40 = vld [vmem:[%s13730_s7 + $0x180] sm:$0xf] }
 0x71a   : > { %v4969_v58 = vmax.f32 %v4634_v61, %v4841_v4  ;;  %v4970_v49 = vmax.f32 %v4683_v14, %v4842_v7  ;;  %4733 = vmatmul.bf16.gmra.mxu2 %v11250_v51 }
 0x71b   : > { %4782 = vmatmul.bf16.gmra.mxu3 %v11250_v51  ;;  %v9038_v51 = vld [vmem:[%s13730_s7 + $0x1e0] sm:$0xf] }
 0x71c   : > { %v5153_v16 = vmax.f32 %v4961_v50, %v4969_v58  ;;  %v5160_v26 = vmax.f32 %v4962_v28, %v4970_v49  ;;  %v9039_v18 = vor.u32 %v10272_v56, %v9038_v51  ;;  %v8879_v28 = vor.u32 %v10232_v38, %v8878_v62 }
 0x71d   : > { %v4636_v48 = vpop.f32.mrf.mxu2  ;;  %v4685_v3 = vpop.f32.mrf.mxu3  ;;  %v9007_v58 = vor.u32 %v10264_v9, %v9006_v59  ;;  %v8814_v59 = vld [vmem:[%s13730_s7 + $0x20] sm:$0xf] }
 0x71e   : > { %v5154_v22 = vrot.slane %v5153_v16, 4  ;;  %v5161_v30 = vrot.slane %v5160_v26, 4  ;;  %v4637_v19 = vadd.f32 %v4636_v48, %v11840_v12  ;;  %v4686_v0 = vadd.f32 %v4685_v3, %v11843_v63  ;;  %7228 = vmatpush.bf16.msra.mxu3 %v9039_v18  ;;  %7217 = vmatpush.bf16.msra.mxu2 %v8879_v28  ;;  %v8862_v3 = vld [vmem:[%s13730_s7 + $0x80] sm:$0xf] }
 0x71f   : > { %v8863_v11 = vor.u32 %v10228_v6, %v8862_v3 }
 0x720   : > { %v5155_v55 = vmax.f32 %v5153_v16, %v5154_v22  ;;  %v5162_v5 = vmax.f32 %v5160_v26, %v5161_v30  ;;  %v4849_v43 = vmul.f32 0.2, %v4637_v19  ;;  %v4850_v20 = vmul.f32 0.2, %v4686_v0 }
 0x722   : > { %v5156_v25 = vrot.slane %v5155_v55, 2  ;;  %v5163_v17 = vrot.slane %v5162_v5, 2  ;;  %7229 = vmatpush.bf16.msra.mxu3 %v9023_v31  ;;  %v4977_v41 = vmax.f32 %v4637_v19, %v4849_v43  ;;  %v4978_v50 = vmax.f32 %v4686_v0, %v4850_v20  ;;  %7218 = vmatpush.bf16.msra.mxu2 %v8863_v11  ;;  %v8846_v19 = vld [vmem:[%s13730_s7 + $0x60] sm:$0xf]  ;;  %v10224_v0 = vld [vmem:[%s13730_s7 + $0x6c] sm:$0xf0] }
 0x723   : > { %v8847_v44 = vor.u32 %v10224_v0, %v8846_v19  ;;  %v9294_v0 = vld [vmem:[%s13730_s7 + $0x3e0] sm:$0xf] }
 0x724   : > { %v5157_v23 = vmax.f32 %v5155_v55, %v5156_v25  ;;  %v5164_v36 = vmax.f32 %v5162_v5, %v5163_v17  ;;  %v10256_v25 = vld [vmem:[%s13730_s7 + $0x16c] sm:$0xf0] }
 0x725   : > { %v4638_v46 = vpop.f32.mrf.mxu2  ;;  %v4687_v10 = vpop.f32.mrf.mxu3  ;;  %v8975_v1 = vor.u32 %v10256_v25, %v8974_v15  ;;  %v10336_v15 = vld [vmem:[%s13730_s7 + $0x3ec] sm:$0xf0] }
 0x726   : > { %v5158_v2 = vrot.slane %v5157_v23, 1  ;;  %v5165_v27 = vrot.slane %v5164_v36, 1  ;;  %v4639_v53 = vadd.f32 %v4638_v46, %v11840_v12  ;;  %v4688_v54 = vadd.f32 %v4687_v10, %v11843_v63  ;;  %7230 = vmatpush.bf16.msra.mxu3 %v9007_v58  ;;  %7219 = vmatpush.bf16.msra.mxu2 %v8847_v44  ;;  %v10252_v10 = vld [vmem:[%s13730_s7 + $0x14c] sm:$0xf0] }
 0x727   : > { %v9295_v44 = vor.u32 %v10336_v15, %v9294_v0 }
 0x728   : > { %v5159_v61 = vmax.f32 %v5157_v23, %v5158_v2  ;;  %v5166_v14 = vmax.f32 %v5164_v36, %v5165_v27  ;;  %v4857_v4 = vmul.f32 0.2, %v4639_v53  ;;  %v4858_v7 = vmul.f32 0.2, %v4688_v54  ;;  %v8830_v36 = vld [vmem:[%s13730_s7 + $0x40] sm:$0xf] }
 0x729   : > { %v8831_v46 = vor.u32 %v10220_v33, %v8830_v36  ;;  %v8959_v27 = vor.u32 %v10252_v10, %v8958_v13  ;;  %v9278_v36 = vld [vmem:[%s13730_s7 + $0x3c0] sm:$0xf]  ;;  %v10332_v33 = vld [vmem:[%s13730_s7 + $0x3cc] sm:$0xf0] }
 0x72a   : > { %v11904_v49 = vsel %vm3966_vm3, %v5159_v61, %v5103_v37  ;;  %v11907_v16 = vsel %vm3966_vm3, %v5166_v14, %v5110_v47  ;;  %v4985_v26 = vmax.f32 %v4639_v53, %v4857_v4  ;;  %v4986_v48 = vmax.f32 %v4688_v54, %v4858_v7  ;;  %4738 = vmatmul.bf16.gmra.mxu2 %v11373_v52  ;;  %v10216_v61 = vld [vmem:[%s13730_s7 + $0x2c] sm:$0xf0]  ;;  %v8942_v14 = vld [vmem:[%s13730_s7 + $0x120] sm:$0xf] }
 0x72b   : > { %4787 = vmatmul.bf16.gmra.mxu3 %v11373_v52  ;;  %v10260_v52 = vld [vmem:[%s13730_s7 + $0x18c] sm:$0xf0]  ;;  %7220 = vmatpush.bf16.msra.mxu2 %v8831_v46 }
 0x72c   : > { %v5209_v22 = vmax.f32 %v4977_v41, %v4985_v26  ;;  %v5216_v30 = vmax.f32 %v4978_v50, %v4986_v48  ;;  %v8991_v51 = vor.u32 %v10260_v52, %v8990_v40  ;;  %v8815_v41 = vor.u32 %v10216_v61, %v8814_v59  ;;  %v10248_v50 = vld [vmem:[%s13730_s7 + $0x12c] sm:$0xf0] }
 0x72d   : > { %v4641_v24 = vpop.f32.mrf.mxu2  ;;  %v8943_v58 = vor.u32 %v10248_v50, %v8942_v14 }
 0x72e   : > { %v5210_v55 = vrot.slane %v5209_v22, 4  ;;  %v5217_v5 = vrot.slane %v5216_v30, 4  ;;  %v4690_v56 = vpop.f32.mrf.mxu3  ;;  %7231 = vmatpush.bf16.msra.mxu3 %v8991_v51  ;;  %v4642_v17 = vadd.f32 %v4641_v24, %v11840_v12  ;;  %v9166_v24 = vld [vmem:[%s13730_s7 + $0x2e0] sm:$0xf]  ;;  %v10304_v51 = vld [vmem:[%s13730_s7 + $0x2ec] sm:$0xf0] }
 0x72f   : > { %v4691_v23 = vadd.f32 %v4690_v56, %v11843_v63  ;;  %7221 = vmatpush.bf16.msra.mxu2 %v8815_v41  ;;  %v9167_v19 = vor.u32 %v10304_v51, %v9166_v24 }
 0x730   : > { %v5211_v18 = vmax.f32 %v5209_v22, %v5210_v55  ;;  %v5218_v60 = vmax.f32 %v5216_v30, %v5217_v5  ;;  %v4865_v31 = vmul.f32 0.2, %v4642_v17  ;;  %v8798_v30 = vld [vmem:[%s13730_s7] sm:$0xf] }
 0x731   : > { %v4866_v37 = vmul.f32 0.2, %v4691_v23 }
 0x732   : > { %v5212_v8 = vrot.slane %v5211_v18, 2  ;;  %v5219_v32 = vrot.slane %v5218_v60, 2  ;;  %7232 = vmatpush.bf16.msra.mxu3 %v8975_v1  ;;  %v4993_v3 = vmax.f32 %v4642_v17, %v4865_v31  ;;  %v9150_v1 = vld [vmem:[%s13730_s7 + $0x2c0] sm:$0xf] }
 0x733   : > { %v4994_v40 = vmax.f32 %v4691_v23, %v4866_v37 }
 0x734   : > { %v5213_v43 = vmax.f32 %v5211_v18, %v5212_v8  ;;  %v5220_v20 = vmax.f32 %v5218_v60, %v5219_v32  ;;  %v10300_v8 = vld [vmem:[%s13730_s7 + $0x2cc] sm:$0xf0] }
 0x735   : > { %v4643_v2 = vpop.f32.mrf.mxu2  ;;  %v9151_v23 = vor.u32 %v10300_v8, %v9150_v1  ;;  %v10320_v1 = vld [vmem:[%s13730_s7 + $0x36c] sm:$0xf0] }
 0x736   : > { %v5214_v53 = vrot.slane %v5213_v43, 1  ;;  %v5221_v54 = vrot.slane %v5220_v20, 1  ;;  %v4644_v47 = vadd.f32 %v4643_v2, %v11840_v12  ;;  %v4692_v62 = vpop.f32.mrf.mxu3  ;;  %7233 = vmatpush.bf16.msra.mxu3 %v8959_v27  ;;  %v9134_v2 = vld [vmem:[%s13730_s7 + $0x2a0] sm:$0xf]  ;;  %v10296_v27 = vld [vmem:[%s13730_s7 + $0x2ac] sm:$0xf0] }
 0x737   : > { %v4693_v38 = vadd.f32 %v4692_v62, %v11843_v63  ;;  %v10328_v62 = vld [vmem:[%s13730_s7 + $0x3ac] sm:$0xf0] }
 0x738   : > { %v5215_v4 = vmax.f32 %v5213_v43, %v5214_v53  ;;  %v5222_v7 = vmax.f32 %v5220_v20, %v5221_v54  ;;  %v4873_v9 = vmul.f32 0.2, %v4644_v47  ;;  %v9279_v20 = vor.u32 %v10332_v33, %v9278_v36  ;;  %v9262_v53 = vld [vmem:[%s13730_s7 + $0x3a0] sm:$0xf] }
 0x739   : > { %v4874_v28 = vmul.f32 0.2, %v4693_v38 }
 0x73a   : > { %v11965_v26 = vsel %vm3968_vm4, %v5215_v4, %v11904_v49  ;;  %v11969_v48 = vsel %vm3968_vm4, %v5222_v7, %v11907_v16  ;;  %v5001_v6 = vmax.f32 %v4644_v47, %v4873_v9  ;;  %4743 = vmatmul.bf16.gmra.mxu2 %v11487_v57  ;;  %v10212_v49 = vld [vmem:[%s13730_s7 + $0xc] sm:$0xf0]  ;;  %v8926_v16 = vld [vmem:[%s13730_s7 + $0x100] sm:$0xf]  ;;  %7234 = vmatpush.bf16.msra.mxu3 %v8943_v58 }
 0x73b   : > { %v5002_v22 = vmax.f32 %v4693_v38, %v4874_v28  ;;  %4792 = vmatmul.bf16.gmra.mxu3 %v11487_v57  ;;  %v8799_v52 = vor.u32 %v10212_v49, %v8798_v30  ;;  %v10244_v57 = vld [vmem:[%s13730_s7 + $0x10c] sm:$0xf0]  ;;  %v9135_v47 = vor.u32 %v10296_v27, %v9134_v2  ;;  %v9263_v4 = vor.u32 %v10328_v62, %v9262_v53  ;;  %v9118_v58 = vld [vmem:[%s13730_s7 + $0x280] sm:$0xf] }
 0x73c   : > { %v5265_v11 = vmax.f32 %v4993_v3, %v5001_v6  ;;  %v8927_v56 = vor.u32 %v10244_v57, %v8926_v16  ;;  %v10292_v3 = vld [vmem:[%s13730_s7 + $0x28c] sm:$0xf0]  ;;  %v9246_v30 = vld [vmem:[%s13730_s7 + $0x380] sm:$0xf] }
 0x73d   : > { %v5272_v55 = vmax.f32 %v4994_v40, %v5002_v22  ;;  %v4646_v5 = vpop.f32.mrf.mxu2  ;;  %7222 = vmatpush.bf16.msra.mxu2 %v8799_v52  ;;  %v9119_v22 = vor.u32 %v10292_v3, %v9118_v58  ;;  %v10324_v49 = vld [vmem:[%s13730_s7 + $0x38c] sm:$0xf0]  ;;  %v9198_v62 = vld [vmem:[%s13730_s7 + $0x320] sm:$0xf] }
 0x73e   : > { %v5266_v18 = vrot.slane %v5265_v11, 4  ;;  %v4695_v60 = vpop.f32.mrf.mxu3  ;;  %7235 = vmatpush.bf16.msra.mxu3 %v8927_v56  ;;  %v4647_v43 = vadd.f32 %v4646_v5, %v11840_v12  ;;  %v9247_v57 = vor.u32 %v10324_v49, %v9246_v30  ;;  %v9854_v5 = vld [vmem:[#allocation5 + $0x40] sm:$0xf]  ;;  %v10475_v56 = vld [vmem:[#allocation5 + $0x44] sm:$0xf0] }
 0x73f   : > { %v5273_v25 = vrot.slane %v5272_v55, 4  ;;  %v4696_v10 = vadd.f32 %v4695_v60, %v11843_v63  ;;  %v9855_v15 = vor.u32 %v10475_v56, %v9854_v5  ;;  %v10276_v58 = vld [vmem:[%s13730_s7 + $0x20c] sm:$0xf0] }
 0x740   : > { %v5267_v17 = vmax.f32 %v5265_v11, %v5266_v18  ;;  %v4881_v59 = vmul.f32 0.2, %v4647_v43  ;;  %v9102_v18 = vld [vmem:[%s13730_s7 + $0x260] sm:$0xf] }
 0x741   : > { %7241 = vmatpush.bf16.msrb.mxu2 %v9167_v19  ;;  %v5274_v32 = vmax.f32 %v5272_v55, %v5273_v25  ;;  %v4882_v9 = vmul.f32 0.2, %v4696_v10  ;;  %v9918_v19 = vld [vmem:[#allocation5 + $0xc0] sm:$0xf]  ;;  %8036 = vmatpush.bf16.msrb.mxu0 %v9855_v15 }
 0x742   : > { %7254 = vmatpush.bf16.msrb.mxu3 %v9295_v44  ;;  %v5268_v13 = vrot.slane %v5267_v17, 2  ;;  %v5009_v11 = vmax.f32 %v4647_v43, %v4881_v59  ;;  %v10284_v43 = vld [vmem:[%s13730_s7 + $0x24c] sm:$0xf0] }
 0x743   : > { %v5275_v46 = vrot.slane %v5274_v32, 2  ;;  %v5010_v51 = vmax.f32 %v4696_v10, %v4882_v9  ;;  %v9214_v10 = vld [vmem:[%s13730_s7 + $0x340] sm:$0xf] }
 0x744   : > { %v5269_v31 = vmax.f32 %v5267_v17, %v5268_v13  ;;  %v9230_v17 = vld [vmem:[%s13730_s7 + $0x360] sm:$0xf] }
 0x745   : > { %7242 = vmatpush.bf16.msrb.mxu2 %v9151_v23  ;;  %v5276_v54 = vmax.f32 %v5274_v32, %v5275_v46  ;;  %v4648_v37 = vpop.f32.mrf.mxu2  ;;  %v9231_v23 = vor.u32 %v10320_v1, %v9230_v17  ;;  %v9086_v13 = vld [vmem:[%s13730_s7 + $0x240] sm:$0xf] }
 0x746   : > { %7255 = vmatpush.bf16.msrb.mxu3 %v9279_v20  ;;  %v5270_v38 = vrot.slane %v5269_v31, 1  ;;  %v4649_v61 = vadd.f32 %v4648_v37, %v11840_v12  ;;  %v4697_v14 = vpop.f32.mrf.mxu3  ;;  %v9087_v46 = vor.u32 %v10284_v43, %v9086_v13  ;;  %v9070_v37 = vld [vmem:[%s13730_s7 + $0x220] sm:$0xf] }
 0x747   : > { %v5277_v7 = vrot.slane %v5276_v54, 1  ;;  %v4698_v41 = vadd.f32 %v4697_v14, %v11843_v63  ;;  %v10312_v14 = vld [vmem:[%s13730_s7 + $0x32c] sm:$0xf0] }
 0x748   : > { %v5271_v50 = vmax.f32 %v5269_v31, %v5270_v38  ;;  %v4889_v28 = vmul.f32 0.2, %v4649_v61  ;;  %v10316_v31 = vld [vmem:[%s13730_s7 + $0x34c] sm:$0xf0]  ;;  %v9199_v9 = vor.u32 %v10312_v14, %v9198_v62 }
 0x749   : > { %7243 = vmatpush.bf16.msrb.mxu2 %v9135_v47  ;;  %v5278_v6 = vmax.f32 %v5276_v54, %v5277_v7  ;;  %v4890_v40 = vmul.f32 0.2, %v4698_v41  ;;  %v9215_v27 = vor.u32 %v10316_v31, %v9214_v10  ;;  %v10280_v47 = vld [vmem:[%s13730_s7 + $0x22c] sm:$0xf0] }
 0x74a   : > { %7256 = vmatpush.bf16.msrb.mxu3 %v9263_v4  ;;  %v12039_v16 = vsel %vm3970_vm5, %v5271_v50, %v11965_v26  ;;  %v5017_v52 = vmax.f32 %v4649_v61, %v4889_v28  ;;  %4748 = vmatmul.bf16.gmra.mxu2 %v11587_v21  ;;  %v10491_v26 = vld [vmem:[#allocation5 + $0xc4] sm:$0xf0]  ;;  %v9071_v61 = vor.u32 %v10280_v47, %v9070_v37  ;;  %v9054_v28 = vld [vmem:[%s13730_s7 + $0x200] sm:$0xf] }
 0x74b   : > { %v12044_v24 = vsel %vm3970_vm5, %v5278_v6, %v11969_v48  ;;  %v5018_v55 = vmax.f32 %v4698_v41, %v4890_v40  ;;  %4797 = vmatmul.bf16.gmra.mxu3 %v11587_v21  ;;  %v10288_v48 = vld [vmem:[%s13730_s7 + $0x26c] sm:$0xf0]  ;;  %v9919_v25 = vor.u32 %v10491_v26, %v9918_v19  ;;  %v9055_v6 = vor.u32 %v10276_v58, %v9054_v28  ;;  %v9182_v40 = vld [vmem:[%s13730_s7 + $0x300] sm:$0xf] }
 0x74c   : > { %v5321_v0 = vmax.f32 %v5009_v11, %v5017_v52  ;;  %v9103_v21 = vor.u32 %v10288_v48, %v9102_v18  ;;  %v10364_v28 = vld [vmem:[%s13730_s7 + $0x4cc] sm:$0xf0] }
 0x74d   : > { %7244 = vmatpush.bf16.msrb.mxu2 %v9119_v22  ;;  %v5328_v60 = vmax.f32 %v5010_v51, %v5018_v55  ;;  %v12053_v44 = vpop.f32.mrf.mxu2  ;;  %8049 = vmatpush.bf16.msrb.mxu1 %v9919_v25  ;;  %v10308_v22 = vld [vmem:[%s13730_s7 + $0x30c] sm:$0xf0] }
 0x74e   : > { %7257 = vmatpush.bf16.msrb.mxu3 %v9247_v57  ;;  %v5322_v8 = vrot.slane %v5321_v0, 4  ;;  %v4700_v32 = vpop.f32.mrf.mxu3  ;;  %v9183_v49 = vor.u32 %v10308_v22, %v9182_v40 }
 0x74f   : > { %v5329_v36 = vrot.slane %v5328_v60, 4 }
 0x750   : > { %v5323_v33 = vmax.f32 %v5321_v0, %v5322_v8 }
 0x751   : > { %7245 = vmatpush.bf16.msrb.mxu2 %v9103_v21  ;;  %v5330_v20 = vmax.f32 %v5328_v60, %v5329_v36  ;;  %v9422_v36 = vld [vmem:[%s13730_s7 + $0x4e0] sm:$0xf] }
 0x752   : > { %7258 = vmatpush.bf16.msrb.mxu3 %v9231_v23  ;;  %v5324_v2 = vrot.slane %v5323_v33, 2 }
 0x753   : > { %v5331_v53 = vrot.slane %v5330_v20, 2 }
 0x754   : > { %v5325_v54 = vmax.f32 %v5323_v33, %v5324_v2  ;;  %v10368_v33 = vld [vmem:[%s13730_s7 + $0x4ec] sm:$0xf0]  ;;  %v12128_v2 = vpack.c.bf16 %v11767_v34, %v11767_v34 }
 0x755   : > { %7246 = vmatpush.bf16.msrb.mxu2 %v9087_v46  ;;  %v5332_v38 = vmax.f32 %v5330_v20, %v5331_v53  ;;  %v4653_v59 = vpop.f32.mrf.mxu2  ;;  %v10400_v53 = vld [vmem:[%s13730_s7 + $0x5ec] sm:$0xf0] }
 0x756   : > { %7259 = vmatpush.bf16.msrb.mxu3 %v9215_v27  ;;  %v5326_v4 = vrot.slane %v5325_v54, 1  ;;  %v4702_v7 = vpop.f32.mrf.mxu3  ;;  %v9550_v27 = vld [vmem:[%s13730_s7 + $0x5e0] sm:$0xf] }
 0x757   : > { %v5333_v41 = vrot.slane %v5332_v38, 1  ;;  %v4703_v5 = vadd.f32 %v4702_v7, %v11843_v63 }
 0x758   : > { %v5327_v50 = vmax.f32 %v5325_v54, %v5326_v4 }
 0x759   : > { %7247 = vmatpush.bf16.msrb.mxu2 %v9071_v61  ;;  %v5334_v3 = vmax.f32 %v5332_v38, %v5333_v41  ;;  %v4906_v60 = vmul.f32 0.2, %v4703_v5  ;;  %v9423_v38 = vor.u32 %v10368_v33, %v9422_v36  ;;  %v9551_v41 = vor.u32 %v10400_v53, %v9550_v27  ;;  %v9502_v36 = vld [vmem:[%s13730_s7 + $0x580] sm:$0xf]  ;;  %v10388_v33 = vld [vmem:[%s13730_s7 + $0x58c] sm:$0xf0] }
 0x75a   : > { %7260 = vmatpush.bf16.msrb.mxu3 %v9199_v9  ;;  %v12099_v30 = vsel %vm3972_vm6, %v5327_v50, %v12039_v16  ;;  %4753 = vmatmul.bf16.gmra.mxu2 %v11664_v39  ;;  %v4654_v16 = vadd.f32 %v4653_v59, %v11840_v12  ;;  %v9406_v50 = vld [vmem:[%s13730_s7 + $0x4c0] sm:$0xf] }
 0x75b   : > { %v12104_v11 = vsel %vm3972_vm6, %v5334_v3, %v12044_v24  ;;  %4802 = vmatmul.bf16.gmra.mxu3 %v11664_v39  ;;  %v4652_v24 = vadd.f32 %v12053_v44, %v11840_v12  ;;  %v4701_v39 = vadd.f32 %v4700_v32, %v11843_v63  ;;  %v5034_v13 = vmax.f32 %v4703_v5, %v4906_v60 }
 0x75c   : > { %v4905_v18 = vmul.f32 0.2, %v4654_v16  ;;  %v12146_v3 = vpack.c.bf16 %v11771_v29, %v11771_v29  ;;  %v9407_v29 = vor.u32 %v10364_v28, %v9406_v50 }
 0x75d   : > { %7248 = vmatpush.bf16.msrb.mxu2 %v9055_v6  ;;  %v4656_v52 = vpop.f32.mrf.mxu2  ;;  %v4897_v25 = vmul.f32 0.2, %v4652_v24  ;;  %v4898_v21 = vmul.f32 0.2, %v4701_v39  ;;  %v10396_v6 = vld [vmem:[%s13730_s7 + $0x5cc] sm:$0xf0] }
 0x75e   : > { %7261 = vmatpush.bf16.msrb.mxu3 %v9183_v49  ;;  %v4705_v57 = vpop.f32.mrf.mxu3  ;;  %v4657_v15 = vadd.f32 %v4656_v52, %v11840_v12  ;;  %v5033_v44 = vmax.f32 %v4654_v16, %v4905_v18 }
 0x75f   : > { %v4706_v48 = vadd.f32 %v4705_v57, %v11843_v63  ;;  %v5025_v20 = vmax.f32 %v4652_v24, %v4897_v25  ;;  %v5026_v46 = vmax.f32 %v4701_v39, %v4898_v21  ;;  %v10360_v24 = vld [vmem:[%s13730_s7 + $0x4ac] sm:$0xf0] }
 0x760   : > { %v4913_v1 = vmul.f32 0.2, %v4657_v15 }
 0x761   : > { %v4914_v23 = vmul.f32 0.2, %v4706_v48  ;;  %v5377_v59 = vmax.f32 %v5025_v20, %v5033_v44  ;;  %v5384_v4 = vmax.f32 %v5026_v46, %v5034_v13  ;;  %v10356_v44 = vld [vmem:[%s13730_s7 + $0x48c] sm:$0xf0] }
 0x762   : > { %v5041_v54 = vmax.f32 %v4657_v15, %v4913_v1  ;;  %v9518_v15 = vld [vmem:[%s13730_s7 + $0x5a0] sm:$0xf] }
 0x763   : > { %v5042_v61 = vmax.f32 %v4706_v48, %v4914_v23  ;;  %v5378_v49 = vrot.slane %v5377_v59, 4 }
 0x765   : > { %v4658_v51 = vpop.f32.mrf.mxu2  ;;  %v5379_v60 = vmax.f32 %v5377_v59, %v5378_v49  ;;  %v9342_v49 = vld [vmem:[%s13730_s7 + $0x440] sm:$0xf] }
 0x766   : > { %v4707_v55 = vpop.f32.mrf.mxu3  ;;  %v4659_v56 = vadd.f32 %v4658_v51, %v11840_v12  ;;  %v5385_v51 = vrot.slane %v5384_v4, 4 }
 0x767   : > { %v4708_v19 = vadd.f32 %v4707_v55, %v11843_v63  ;;  %v5380_v46 = vrot.slane %v5379_v60, 2 }
 0x768   : > { %v5386_v21 = vmax.f32 %v5384_v4, %v5385_v51  ;;  %v12215_v51 = vpack.c.bf16 %v11854_v42, %v11854_v42 }
 0x769   : > { %v4922_v17 = vmul.f32 0.2, %v4708_v19  ;;  %v5381_v50 = vmax.f32 %v5379_v60, %v5380_v46 }
 0x76a   : > { %4758 = vmatmul.bf16.gmra.mxu2 %v11710_v45  ;;  %v5387_v27 = vrot.slane %v5386_v21, 2 }
 0x76b   : > { %4807 = vmatmul.bf16.gmra.mxu3 %v11710_v45  ;;  %v4921_v45 = vmul.f32 0.2, %v4659_v56  ;;  %v5050_v10 = vmax.f32 %v4708_v19, %v4922_v17 }
 0x76d   : > { %v4661_v0 = vpop.f32.mrf.mxu2  ;;  %v5049_v43 = vmax.f32 %v4659_v56, %v4921_v45  ;;  %v9390_v56 = vld [vmem:[%s13730_s7 + $0x4a0] sm:$0xf] }
 0x76e   : > { %v4710_v26 = vpop.f32.mrf.mxu3  ;;  %v4662_v8 = vadd.f32 %v4661_v0, %v11840_v12  ;;  %v9391_v25 = vor.u32 %v10360_v24, %v9390_v56  ;;  %v5382_v24 = vrot.slane %v5381_v50, 1 }
 0x76f   : > { %v4711_v32 = vadd.f32 %v4710_v26, %v11843_v63  ;;  %v5433_v7 = vmax.f32 %v5041_v54, %v5049_v43  ;;  %v10392_v26 = vld [vmem:[%s13730_s7 + $0x5ac] sm:$0xf0]  ;;  %v10594_v43 = vld [vmem:[%s13729_s6] sm:$0xff]  ;;  %v9503_v54 = vor.u32 %v10388_v33, %v9502_v36 }
 0x770   : > { %v4929_v37 = vmul.f32 0.2, %v4662_v8  ;;  %v9519_v1 = vor.u32 %v10392_v26, %v9518_v15  ;;  %v12183_v20 = vperm.slane %v10594_v43, 6 }
 0x771   : > { %v4930_v14 = vmul.f32 0.2, %v4711_v32  ;;  %v5434_v55 = vrot.slane %v5433_v7, 4 }
 0x772   : > { %v5057_v40 = vmax.f32 %v4662_v8, %v4929_v37  ;;  %v9374_v8 = vld [vmem:[%s13730_s7 + $0x480] sm:$0xf] }
 0x773   : > { %v5058_v52 = vmax.f32 %v4711_v32, %v4930_v14  ;;  %v5435_v17 = vmax.f32 %v5433_v7, %v5434_v55  ;;  %v9358_v37 = vld [vmem:[%s13730_s7 + $0x460] sm:$0xf]  ;;  %v10384_v14 = vld [vmem:[%s13730_s7 + $0x56c] sm:$0xf0] }
 0x774   : > { %v9470_v55 = vld [vmem:[%s13730_s7 + $0x540] sm:$0xf] }
 0x775   : > { %v4663_v31 = vpop.f32.mrf.mxu2  ;;  %v5436_v53 = vrot.slane %v5435_v17, 2 }
 0x776   : > { %v4664_v47 = vadd.f32 %v4663_v31, %v11840_v12  ;;  %v4712_v62 = vpop.f32.mrf.mxu3  ;;  %v5440_v12 = vmax.f32 %v5042_v61, %v5050_v10  ;;  %v12185_v10 = vperm.slane %v10594_v43, 7  ;;  %v9375_v31 = vor.u32 %v10356_v44, %v9374_v8  ;;  %v9486_v61 = vld [vmem:[%s13730_s7 + $0x560] sm:$0xf] }
 0x777   : > { %v4713_v34 = vadd.f32 %v4712_v62, %v11843_v63  ;;  %v9534_v63 = vld [vmem:[%s13730_s7 + $0x5c0] sm:$0xf] }
 0x778   : > { %v4937_v9 = vmul.f32 0.2, %v4664_v47  ;;  %v9535_v5 = vor.u32 %v10396_v6, %v9534_v63  ;;  %v5441_v39 = vrot.slane %v5440_v12, 4  ;;  %v5388_v63 = vmax.f32 %v5386_v21, %v5387_v27  ;;  %v9310_v27 = vld [vmem:[%s13730_s7 + $0x400] sm:$0xf] }
 0x779   : > { %v4938_v58 = vmul.f32 0.2, %v4713_v34  ;;  %v5437_v6 = vmax.f32 %v5435_v17, %v5436_v53  ;;  %v9454_v17 = vld [vmem:[%s13730_s7 + $0x520] sm:$0xf]  ;;  %v10340_v53 = vld [vmem:[%s13730_s7 + $0x40c] sm:$0xf0] }
 0x77a   : > { %v5065_v22 = vmax.f32 %v4664_v47, %v4937_v9  ;;  %7223 = vmatmul.bf16.vlgmr.msra.gmra.mxu2 %v12128_v2  ;;  %v5442_v23 = vmax.f32 %v5440_v12, %v5441_v39  ;;  %v10352_v47 = vld [vmem:[%s13730_s7 + $0x46c] sm:$0xf0]  ;;  %v5389_v42 = vrot.slane %v5388_v63, 1 }
 0x77b   : > { %v5066_v57 = vmax.f32 %v4713_v34, %v4938_v58  ;;  %7236 = vmatmul.bf16.vlgmr.msra.gmra.mxu3 %v12146_v3  ;;  %7267 = vmatpush.bf16.msra.mxu2 %v9423_v38  ;;  %v9359_v58 = vor.u32 %v10352_v47, %v9358_v37 }
 0x77c   : > { %v5489_v16 = vmax.f32 %v5057_v40, %v5065_v22  ;;  %7280 = vmatpush.bf16.msra.mxu3 %v9551_v41  ;;  %v5443_v62 = vrot.slane %v5442_v23, 2  ;;  %v12203_v41 = vpack.c.bf16 %v11851_v35, %v11851_v35  ;;  %v9487_v22 = vor.u32 %v10384_v14, %v9486_v61  ;;  %v10348_v35 = vld [vmem:[%s13730_s7 + $0x44c] sm:$0xf0] }
 0x77d   : > { %v5496_v19 = vmax.f32 %v5058_v52, %v5066_v57  ;;  %v4724_v0 = vpop.f32.mrf.mxu2 }
 0x77e   : > { %v5490_v18 = vrot.slane %v5489_v16, 4  ;;  %v4773_v48 = vpop.f32.mrf.mxu3  ;;  %v4725_v4 = vadd.f32 %v4724_v0, %v12183_v20  ;;  %v5444_v52 = vmax.f32 %v5442_v23, %v5443_v62  ;;  %v5438_v0 = vrot.slane %v5437_v6, 1  ;;  %v9438_v62 = vld [vmem:[%s13730_s7 + $0x500] sm:$0xf] }
 0x77f   : > { %v5497_v45 = vrot.slane %v5496_v19, 4  ;;  %7268 = vmatpush.bf16.msra.mxu2 %v9407_v29  ;;  %v4774_v28 = vadd.f32 %v4773_v48, %v12185_v10  ;;  %v10344_v48 = vld [vmem:[%s13730_s7 + $0x42c] sm:$0xf0] }
 0x780   : > { %7281 = vmatpush.bf16.msra.mxu3 %v9535_v5  ;;  %v5491_v32 = vmax.f32 %v5489_v16, %v5490_v18  ;;  %v10380_v16 = vld [vmem:[%s13730_s7 + $0x54c] sm:$0xf0]  ;;  %v4819_v56 = vmul.f32 0.2, %v4725_v4  ;;  %v9326_v18 = vld [vmem:[%s13730_s7 + $0x420] sm:$0xf]  ;;  %v5439_v43 = vmax.f32 %v5437_v6, %v5438_v0 }
 0x781   : > { %v5498_v13 = vmax.f32 %v5496_v19, %v5497_v45  ;;  %v4820_v39 = vmul.f32 0.2, %v4774_v28  ;;  %v9343_v19 = vor.u32 %v10348_v35, %v9342_v49  ;;  %v9471_v26 = vor.u32 %v10380_v16, %v9470_v55 }
 0x782   : > { %v5492_v38 = vrot.slane %v5491_v32, 2  ;;  %v5445_v60 = vrot.slane %v5444_v52, 1  ;;  %v4947_v44 = vmax.f32 %v4725_v4, %v4819_v56  ;;  %v9327_v33 = vor.u32 %v10344_v48, %v9326_v18 }
 0x783   : > { %7269 = vmatpush.bf16.msra.mxu2 %v9391_v25  ;;  %v5499_v34 = vrot.slane %v5498_v13, 2  ;;  %v4948_v36 = vmax.f32 %v4774_v28, %v4820_v39  ;;  %v9311_v4 = vor.u32 %v10340_v53, %v9310_v27 }
 0x784   : > { %7282 = vmatpush.bf16.msra.mxu3 %v9519_v1  ;;  %v5493_v57 = vmax.f32 %v5491_v32, %v5492_v38  ;;  %v10376_v1 = vld [vmem:[%s13730_s7 + $0x52c] sm:$0xf0]  ;;  %v5383_v32 = vmax.f32 %v5381_v50, %v5382_v24 }
 0x785   : > { %v4726_v59 = vpop.f32.mrf.mxu2  ;;  %v5500_v5 = vmax.f32 %v5498_v13, %v5499_v34  ;;  %v5390_v13 = vmax.f32 %v5388_v63, %v5389_v42  ;;  %v10372_v38 = vld [vmem:[%s13730_s7 + $0x50c] sm:$0xf0] }
 0x786   : > { %v4727_v7 = vadd.f32 %v4726_v59, %v12183_v20  ;;  %v4775_v9 = vpop.f32.mrf.mxu3  ;;  %v5494_v45 = vrot.slane %v5493_v57, 1  ;;  %v5613_v14 = vsel %vm3974_vm7, %v5383_v32, %v12099_v30  ;;  %v9439_v50 = vor.u32 %v10372_v38, %v9438_v62 }
 0x787   : > { %v4776_v12 = vadd.f32 %v4775_v9, %v12185_v10  ;;  %7270 = vmatpush.bf16.msra.mxu2 %v9375_v31  ;;  %v5501_v8 = vrot.slane %v5500_v5, 1  ;;  %v9455_v31 = vor.u32 %v10376_v1, %v9454_v17  ;;  %v5614_v28 = vsel %vm3976_vm8, %v5439_v43, %v5613_v14 }
 0x788   : > { %v4827_v40 = vmul.f32 0.2, %v4727_v7  ;;  %7283 = vmatpush.bf16.msra.mxu3 %v9503_v54  ;;  %v5446_v54 = vmax.f32 %v5444_v52, %v5445_v60  ;;  %v5495_v37 = vmax.f32 %v5493_v57, %v5494_v45 }
 0x789   : > { %v4828_v29 = vmul.f32 0.2, %v4776_v12  ;;  %v5502_v59 = vmax.f32 %v5500_v5, %v5501_v8 }
 0x78a   : > { %7249 = vmatmul.bf16.vlgmr.msrb.gmra.mxu2 %v12203_v41  ;;  %v4955_v15 = vmax.f32 %v4727_v7, %v4827_v40  ;;  %v5620_v7 = vsel %vm3974_vm7, %v5390_v13, %v12104_v11  ;;  %v5615_v63 = vsel %vm3978_vm9, %v5495_v37, %v5614_v28 }
 0x78b   : > { %7262 = vmatmul.bf16.vlgmr.msrb.gmra.mxu3 %v12215_v51  ;;  %7271 = vmatpush.bf16.msra.mxu2 %v9359_v58  ;;  %v4956_v25 = vmax.f32 %v4776_v12, %v4828_v29  ;;  %v5621_v6 = vsel %vm3976_vm8, %v5446_v54, %v5620_v7  ;;  %v12261_v29 = vpack.c.bf16 %v5615_v63, %v5615_v63 }
 0x78c   : > { %7284 = vmatpush.bf16.msra.mxu3 %v9487_v22  ;;  %v5111_v46 = vmax.f32 %v4947_v44, %v4955_v15  ;;  %v5622_v49 = vsel %vm3978_vm9, %v5502_v59, %v5621_v6 }
 0x78d   : > { %v4729_v21 = vpop.f32.mrf.mxu2  ;;  %v5118_v47 = vmax.f32 %v4948_v36, %v4956_v25  ;;  %v12263_v5 = vpack.c.bf16 %v5622_v49, %v5622_v49 }
 0x78e   : > { %v4778_v23 = vpop.f32.mrf.mxu3  ;;  %v4730_v61 = vadd.f32 %v4729_v21, %v12183_v20  ;;  %v5112_v9 = vrot.slane %v5111_v46, 4 }
 0x78f   : > { %7272 = vmatpush.bf16.msra.mxu2 %v9343_v19  ;;  %v4779_v34 = vadd.f32 %v4778_v23, %v12185_v10  ;;  %v5119_v12 = vrot.slane %v5118_v47, 4 }
 0x790   : > { %7285 = vmatpush.bf16.msra.mxu3 %v9471_v26  ;;  %v4835_v40 = vmul.f32 0.2, %v4730_v61  ;;  %v5113_v52 = vmax.f32 %v5111_v46, %v5112_v9 }
 0x791   : > { %v4836_v35 = vmul.f32 0.2, %v4779_v34  ;;  %v5120_v55 = vmax.f32 %v5118_v47, %v5119_v12 }
 0x792   : > { %v4963_v56 = vmax.f32 %v4730_v61, %v4835_v40  ;;  %v5114_v42 = vrot.slane %v5113_v52, 2 }
 0x793   : > { %7273 = vmatpush.bf16.msra.mxu2 %v9327_v33  ;;  %v4964_v39 = vmax.f32 %v4779_v34, %v4836_v35  ;;  %v5121_v15 = vrot.slane %v5120_v55, 2 }
 0x794   : > { %7286 = vmatpush.bf16.msra.mxu3 %v9455_v31  ;;  %v5115_v25 = vmax.f32 %v5113_v52, %v5114_v42  ;;  %v9678_v52 = vld [vmem:[%s13730_s7 + $0x6e0] sm:$0xf] }
 0x795   : > { %v4731_v58 = vpop.f32.mrf.mxu2  ;;  %v5122_v17 = vmax.f32 %v5120_v55, %v5121_v15 }
 0x796   : > { %v4732_v30 = vadd.f32 %v4731_v58, %v12183_v20  ;;  %v4780_v22 = vpop.f32.mrf.mxu3  ;;  %v5116_v36 = vrot.slane %v5115_v25, 1 }
 0x797   : > { %v4781_v11 = vadd.f32 %v4780_v22, %v12185_v10  ;;  %7274 = vmatpush.bf16.msra.mxu2 %v9311_v4  ;;  %v5123_v13 = vrot.slane %v5122_v17, 1 }
 0x798   : > { %v4843_v57 = vmul.f32 0.2, %v4732_v30  ;;  %7287 = vmatpush.bf16.msra.mxu3 %v9439_v50  ;;  %v5117_v38 = vmax.f32 %v5115_v25, %v5116_v36 }
 0x799   : > { %v4844_v16 = vmul.f32 0.2, %v4781_v11  ;;  %v5124_v14 = vmax.f32 %v5122_v17, %v5123_v13 }
 0x79a   : > { %v4971_v24 = vmax.f32 %v4732_v30, %v4843_v57  ;;  %7275 = vmatmul.bf16.vlgmr.msra.gmra.mxu2 %v12261_v29  ;;  %v10432_v57 = vld [vmem:[%s13730_s7 + $0x6ec] sm:$0xf0] }
 0x79b   : > { %v4972_v19 = vmax.f32 %v4781_v11, %v4844_v16  ;;  %7288 = vmatmul.bf16.vlgmr.msra.gmra.mxu3 %v12263_v5 }
 0x79c   : > { %v5167_v0 = vmax.f32 %v4963_v56, %v4971_v24  ;;  %v9679_v56 = vor.u32 %v10432_v57, %v9678_v52  ;;  %v9806_v24 = vld [vmem:[%s13730_s7 + $0x7e0] sm:$0xf]  ;;  %v10416_v57 = vld [vmem:[%s13730_s7 + $0x66c] sm:$0xf0] }
 0x79d   : > { %v5174_v26 = vmax.f32 %v4964_v39, %v4972_v19  ;;  %v4734_v18 = vpop.f32.mrf.mxu2  ;;  %v10464_v39 = vld [vmem:[%s13730_s7 + $0x7ec] sm:$0xf0]  ;;  %v9614_v52 = vld [vmem:[%s13730_s7 + $0x660] sm:$0xf] }
 0x79e   : > { %v5168_v48 = vrot.slane %v5167_v0, 4  ;;  %v4783_v60 = vpop.f32.mrf.mxu3  ;;  %v4735_v44 = vadd.f32 %v4734_v18, %v12183_v20  ;;  %7293 = vmatpush.bf16.msrb.mxu2 %v9679_v56  ;;  %v9742_v56 = vld [vmem:[%s13730_s7 + $0x760] sm:$0xf] }
 0x79f   : > { %v5175_v45 = vrot.slane %v5174_v26, 4  ;;  %v4784_v32 = vadd.f32 %v4783_v60, %v12185_v10  ;;  %v10428_v60 = vld [vmem:[%s13730_s7 + $0x6cc] sm:$0xf0] }
 0x7a0   : > { %v5169_v21 = vmax.f32 %v5167_v0, %v5168_v48  ;;  %v4851_v27 = vmul.f32 0.2, %v4735_v44  ;;  %v9807_v0 = vor.u32 %v10464_v39, %v9806_v24  ;;  %v9662_v48 = vld [vmem:[%s13730_s7 + $0x6c0] sm:$0xf]  ;;  %v10448_v24 = vld [vmem:[%s13730_s7 + $0x76c] sm:$0xf0] }
 0x7a1   : > { %v5176_v1 = vmax.f32 %v5174_v26, %v5175_v45  ;;  %v4852_v47 = vmul.f32 0.2, %v4784_v32  ;;  %v9790_v45 = vld [vmem:[%s13730_s7 + $0x7c0] sm:$0xf] }
 0x7a2   : > { %v5170_v8 = vrot.slane %v5169_v21, 2  ;;  %v4979_v9 = vmax.f32 %v4735_v44, %v4851_v27  ;;  %7306 = vmatpush.bf16.msrb.mxu3 %v9807_v0  ;;  %v10460_v44 = vld [vmem:[%s13730_s7 + $0x7cc] sm:$0xf0]  ;;  %v9646_v27 = vld [vmem:[%s13730_s7 + $0x6a0] sm:$0xf] }
 0x7a3   : > { %v5177_v23 = vrot.slane %v5176_v1, 2  ;;  %v4980_v12 = vmax.f32 %v4784_v32, %v4852_v47 }
 0x7a4   : > { %v5171_v33 = vmax.f32 %v5169_v21, %v5170_v8  ;;  %v9663_v8 = vor.u32 %v10428_v60, %v9662_v48  ;;  %v9726_v48 = vld [vmem:[%s13730_s7 + $0x740] sm:$0xf] }
 0x7a5   : > { %v5178_v43 = vmax.f32 %v5176_v1, %v5177_v23  ;;  %v4736_v46 = vpop.f32.mrf.mxu2 }
 0x7a6   : > { %v5172_v31 = vrot.slane %v5171_v33, 1  ;;  %v4737_v53 = vadd.f32 %v4736_v46, %v12183_v20  ;;  %v4785_v54 = vpop.f32.mrf.mxu3  ;;  %7294 = vmatpush.bf16.msrb.mxu2 %v9663_v8 }
 0x7a7   : > { %v5179_v37 = vrot.slane %v5178_v43, 1  ;;  %v4786_v62 = vadd.f32 %v4785_v54, %v12185_v10 }
 0x7a8   : > { %v5173_v59 = vmax.f32 %v5171_v33, %v5172_v31  ;;  %v4859_v61 = vmul.f32 0.2, %v4737_v53  ;;  %v9791_v33 = vor.u32 %v10460_v44, %v9790_v45 }
 0x7a9   : > { %v5180_v34 = vmax.f32 %v5178_v43, %v5179_v37  ;;  %v4860_v4 = vmul.f32 0.2, %v4786_v62 }
 0x7aa   : > { %v5623_v7 = vsel %vm3966_vm3, %v5173_v59, %v5117_v38  ;;  %v4987_v50 = vmax.f32 %v4737_v53, %v4859_v61  ;;  %7307 = vmatpush.bf16.msrb.mxu3 %v9791_v33  ;;  %v10424_v53 = vld [vmem:[%s13730_s7 + $0x6ac] sm:$0xf0]  ;;  %v9774_v38 = vld [vmem:[%s13730_s7 + $0x7a0] sm:$0xf] }
 0x7ab   : > { %v5630_v28 = vsel %vm3966_vm3, %v5180_v34, %v5124_v14  ;;  %v4988_v58 = vmax.f32 %v4786_v62, %v4860_v4  ;;  %v9647_v62 = vor.u32 %v10424_v53, %v9646_v27  ;;  %v10456_v59 = vld [vmem:[%s13730_s7 + $0x7ac] sm:$0xf0]  ;;  %v10473_v27 = vld [vmem:[#allocation5 + $0x34] sm:$0xf0] }
 0x7ac   : > { %v5223_v63 = vmax.f32 %v4979_v9, %v4987_v50  ;;  %v9775_v4 = vor.u32 %v10456_v59, %v9774_v38  ;;  %v9910_v53 = vld [vmem:[#allocation5 + $0xb0] sm:$0xf]  ;;  %v9566_v59 = vld [vmem:[%s13730_s7 + $0x600] sm:$0xf] }
 0x7ad   : > { %v5230_v6 = vmax.f32 %v4980_v12, %v4988_v58  ;;  %v4739_v40 = vpop.f32.mrf.mxu2  ;;  %7295 = vmatpush.bf16.msrb.mxu2 %v9647_v62  ;;  %v9630_v12 = vld [vmem:[%s13730_s7 + $0x680] sm:$0xf]  ;;  %v10420_v58 = vld [vmem:[%s13730_s7 + $0x68c] sm:$0xf0]  ;;  %v10489_v62 = vld [vmem:[#allocation5 + $0xb4] sm:$0xf0] }
 0x7ae   : > { %v5224_v30 = vrot.slane %v5223_v63, 4  ;;  %v4788_v22 = vpop.f32.mrf.mxu3  ;;  %v4740_v16 = vadd.f32 %v4739_v40, %v12183_v20  ;;  %7308 = vmatpush.bf16.msrb.mxu3 %v9775_v4  ;;  %v9631_v40 = vor.u32 %v10420_v58, %v9630_v12  ;;  %v9911_v38 = vor.u32 %v10489_v62, %v9910_v53  ;;  %v8912_v58 = vld [vmem:[%s13730_s7 + $0xf0] sm:$0xf0] }
 0x7af   : > { %v5231_v49 = vrot.slane %v5230_v6, 4  ;;  %v4789_v42 = vadd.f32 %v4788_v22, %v12185_v10 }
 0x7b0   : > { %v5225_v35 = vmax.f32 %v5223_v63, %v5224_v30  ;;  %v4867_v21 = vmul.f32 0.2, %v4740_v16  ;;  %v10452_v30 = vld [vmem:[%s13730_s7 + $0x78c] sm:$0xf0]  ;;  %8050 = vmatpush.bf16.msrb.mxu1 %v9911_v38  ;;  %v10218_v38 = vld [vmem:[%s13730_s7 + $0x44] sm:$0xf] }
 0x7b1   : > { %v5232_v11 = vmax.f32 %v5230_v6, %v5231_v49  ;;  %v4868_v32 = vmul.f32 0.2, %v4789_v42  ;;  %7296 = vmatpush.bf16.msrb.mxu2 %v9631_v40  ;;  %v9040_v40 = vld [vmem:[%s13730_s7 + $0x1f0] sm:$0xf0] }
 0x7b2   : > { %v5226_v55 = vrot.slane %v5225_v35, 2  ;;  %v4995_v37 = vmax.f32 %v4740_v16, %v4867_v21  ;;  %v9615_v16 = vor.u32 %v10416_v57, %v9614_v52  ;;  %v10444_v21 = vld [vmem:[%s13730_s7 + $0x74c] sm:$0xf0]  ;;  %v9024_v52 = vld [vmem:[%s13730_s7 + $0x1d0] sm:$0xf0] }
 0x7b3   : > { %v5233_v19 = vrot.slane %v5232_v11, 2  ;;  %v4996_v14 = vmax.f32 %v4789_v42, %v4868_v32  ;;  %v10408_v32 = vld [vmem:[%s13730_s7 + $0x62c] sm:$0xf0] }
 0x7b4   : > { %v5227_v15 = vmax.f32 %v5225_v35, %v5226_v55 }
 0x7b5   : > { %v5234_v26 = vmax.f32 %v5232_v11, %v5233_v19  ;;  %v4741_v18 = vpop.f32.mrf.mxu2  ;;  %v9743_v19 = vor.u32 %v10448_v24, %v9742_v56  ;;  %7297 = vmatpush.bf16.msrb.mxu2 %v9615_v16  ;;  %v10230_v56 = vld [vmem:[%s13730_s7 + $0xa4] sm:$0xf]  ;;  %v8880_v24 = vld [vmem:[%s13730_s7 + $0xb0] sm:$0xf0] }
 0x7b6   : > { %v5228_v25 = vrot.slane %v5227_v15, 1  ;;  %v4742_v17 = vadd.f32 %v4741_v18, %v12183_v20  ;;  %v4790_v1 = vpop.f32.mrf.mxu3  ;;  %v10412_v18 = vld [vmem:[%s13730_s7 + $0x64c] sm:$0xf0] }
 0x7b7   : > { %v5235_v23 = vrot.slane %v5234_v26, 1  ;;  %v4791_v36 = vadd.f32 %v4790_v1, %v12185_v10  ;;  %v9727_v1 = vor.u32 %v10444_v21, %v9726_v48  ;;  %v10258_v48 = vld [vmem:[%s13730_s7 + $0x184] sm:$0xf] }
 0x7b8   : > { %v5229_v13 = vmax.f32 %v5227_v15, %v5228_v25  ;;  %v4875_v43 = vmul.f32 0.2, %v4742_v17 }
 0x7b9   : > { %v5236_v46 = vmax.f32 %v5234_v26, %v5235_v23  ;;  %v4876_v31 = vmul.f32 0.2, %v4791_v36  ;;  %v9598_v26 = vld [vmem:[%s13730_s7 + $0x640] sm:$0xf] }
 0x7ba   : > { %v5624_v54 = vsel %vm3968_vm4, %v5229_v13, %v5623_v7  ;;  %v5003_v47 = vmax.f32 %v4742_v17, %v4875_v43  ;;  %v9599_v25 = vor.u32 %v10412_v18, %v9598_v26  ;;  %v9582_v23 = vld [vmem:[%s13730_s7 + $0x620] sm:$0xf]  ;;  %v10440_v43 = vld [vmem:[%s13730_s7 + $0x72c] sm:$0xf0]  ;;  %v10226_v26 = vld [vmem:[%s13730_s7 + $0x84] sm:$0xf] }
 0x7bb   : > { %v5631_v61 = vsel %vm3968_vm4, %v5236_v46, %v5630_v28  ;;  %v5004_v34 = vmax.f32 %v4791_v36, %v4876_v31  ;;  %v9758_v28 = vld [vmem:[%s13730_s7 + $0x780] sm:$0xf]  ;;  %v9583_v33 = vor.u32 %v10408_v32, %v9582_v23  ;;  %v9846_v31 = vld [vmem:[#allocation5 + $0x30] sm:$0xf]  ;;  %v8864_v18 = vld [vmem:[%s13730_s7 + $0x90] sm:$0xf0] }
 0x7bc   : > { %v5279_v9 = vmax.f32 %v4995_v37, %v5003_v47  ;;  %v9759_v49 = vor.u32 %v10452_v30, %v9758_v28  ;;  %7298 = vmatpush.bf16.msrb.mxu2 %v9599_v25  ;;  %v9710_v13 = vld [vmem:[%s13730_s7 + $0x720] sm:$0xf]  ;;  %v9847_v47 = vor.u32 %v10473_v27, %v9846_v31  ;;  %v10270_v28 = vld [vmem:[%s13730_s7 + $0x1e4] sm:$0xf]  ;;  %v8992_v25 = vld [vmem:[%s13730_s7 + $0x190] sm:$0xf0] }
 0x7bd   : > { %v5286_v50 = vmax.f32 %v4996_v14, %v5004_v34  ;;  %v12315_v7 = vpop.f32.mrf.mxu2  ;;  %v9711_v37 = vor.u32 %v10440_v43, %v9710_v13  ;;  %v10404_v14 = vld [vmem:[%s13730_s7 + $0x60c] sm:$0xf0]  ;;  %v9043_v30 = vor.u32 %v10270_v28, %v9040_v40  ;;  %v8995_v21 = vor.u32 %v10258_v48, %v8992_v25  ;;  %v10222_v23 = vld [vmem:[%s13730_s7 + $0x64] sm:$0xf]  ;;  %v8848_v32 = vld [vmem:[%s13730_s7 + $0x70] sm:$0xf0] }
 0x7be   : > { %v5280_v63 = vrot.slane %v5279_v9, 4  ;;  %v12326_v6 = vpop.f32.mrf.mxu3  ;;  %7309 = vmatpush.bf16.msrb.mxu3 %v9759_v49  ;;  %8037 = vmatpush.bf16.msrb.mxu0 %v9847_v47  ;;  %v9567_v4 = vor.u32 %v10404_v14, %v9566_v59  ;;  %v8896_v49 = vld [vmem:[%s13730_s7 + $0xd0] sm:$0xf0]  ;;  %v10210_v25 = vld [vmem:[%s13730_s7 + $0x4] sm:$0xf] }
 0x7bf   : > { %v5287_v22 = vrot.slane %v5286_v50, 4  ;;  %v8976_v13 = vld [vmem:[%s13730_s7 + $0x170] sm:$0xf0]  ;;  %v4794_v53 = vadd.f32 %v12326_v6, %v12185_v10 }
 0x7c0   : > { %v5281_v35 = vmax.f32 %v5279_v9, %v5280_v63  ;;  %7299 = vmatpush.bf16.msrb.mxu2 %v9583_v33  ;;  %v10436_v9 = vld [vmem:[%s13730_s7 + $0x70c] sm:$0xf0]  ;;  %v8832_v59 = vld [vmem:[%s13730_s7 + $0x50] sm:$0xf0] }
 0x7c1   : > { %v5288_v11 = vmax.f32 %v5286_v50, %v5287_v22  ;;  %v10238_v50 = vld [vmem:[%s13730_s7 + $0xe4] sm:$0xf] }
 0x7c2   : > { %v5282_v55 = vrot.slane %v5281_v35, 2  ;;  %7310 = vmatpush.bf16.msrb.mxu3 %v9743_v19  ;;  %v8915_v63 = vor.u32 %v10238_v50, %v8912_v58  ;;  %v10234_v22 = vld [vmem:[%s13730_s7 + $0xc4] sm:$0xf] }
 0x7c3   : > { %v5289_v39 = vrot.slane %v5288_v11, 2  ;;  %v10262_v19 = vld [vmem:[%s13730_s7 + $0x1a4] sm:$0xf] }
 0x7c4   : > { %v5283_v42 = vmax.f32 %v5281_v35, %v5282_v55  ;;  %7300 = vmatpush.bf16.msrb.mxu2 %v9567_v4  ;;  %v8899_v35 = vor.u32 %v10234_v22, %v8896_v49 }
 0x7c5   : > { %v5290_v0 = vmax.f32 %v5288_v11, %v5289_v39  ;;  %v12343_v15 = vpop.f32.mrf.mxu2  ;;  %v10266_v11 = vld [vmem:[%s13730_s7 + $0x1c4] sm:$0xf]  ;;  %v8883_v39 = vor.u32 %v10230_v56, %v8880_v24 }
 0x7c6   : > { %v5284_v60 = vrot.slane %v5283_v42, 1  ;;  %v12354_v45 = vpop.f32.mrf.mxu3  ;;  %7311 = vmatpush.bf16.msrb.mxu3 %v9727_v1  ;;  %v9027_v57 = vor.u32 %v10266_v11, %v9024_v52  ;;  %v10214_v11 = vld [vmem:[%s13730_s7 + $0x24] sm:$0xf]  ;;  %v8816_v52 = vld [vmem:[%s13730_s7 + $0x30] sm:$0xf0] }
 0x7c7   : > { %v5291_v17 = vrot.slane %v5290_v0, 1  ;;  %v12449_v33 = vadd.f32 %v12354_v45, %v12185_v10  ;;  %v8819_v56 = vor.u32 %v10214_v11, %v8816_v52  ;;  %v10246_v24 = vld [vmem:[%s13730_s7 + $0x124] sm:$0xf] }
 0x7c8   : > { %v5285_v8 = vmax.f32 %v5283_v42, %v5284_v60  ;;  %7319 = vmatpush.bf16.msra.mxu2 %v8915_v63  ;;  %v9008_v42 = vld [vmem:[%s13730_s7 + $0x1b0] sm:$0xf0]  ;;  %v8867_v60 = vor.u32 %v10226_v26, %v8864_v18 }
 0x7c9   : > { %v5292_v44 = vmax.f32 %v5290_v0, %v5291_v17  ;;  %v9011_v0 = vor.u32 %v10262_v19, %v9008_v42  ;;  %v4745_v17 = vadd.f32 %v12315_v7, %v12183_v20  ;;  %v8851_v7 = vor.u32 %v10222_v23, %v8848_v32  ;;  %v10242_v23 = vld [vmem:[%s13730_s7 + $0x104] sm:$0xf]  ;;  %v8928_v32 = vld [vmem:[%s13730_s7 + $0x110] sm:$0xf0] }
 0x7ca   : > { %v12366_v36 = vsel %vm3970_vm5, %v5285_v8, %v5624_v54  ;;  %7312 = vmatpush.bf16.msrb.mxu3 %v9711_v37  ;;  %v4747_v8 = vadd.f32 %v12343_v15, %v12183_v20  ;;  %v10254_v15 = vld [vmem:[%s13730_s7 + $0x164] sm:$0xf]  ;;  %v4892_v14 = vmul.f32 0.2, %v12449_v33 }
 0x7cb   : > { %v12375_v46 = vsel %vm3970_vm5, %v5292_v44, %v5631_v61  ;;  %v9694_v61 = vld [vmem:[%s13730_s7 + $0x700] sm:$0xf]  ;;  %v8979_v31 = vor.u32 %v10254_v15, %v8976_v13  ;;  %v4883_v27 = vmul.f32 0.2, %v4745_v17  ;;  %v8931_v13 = vor.u32 %v10242_v23, %v8928_v32 }
 0x7cc   : > { %v9695_v12 = vor.u32 %v10436_v9, %v9694_v61  ;;  %7320 = vmatpush.bf16.msra.mxu2 %v8899_v35  ;;  %v4891_v47 = vmul.f32 0.2, %v4747_v8  ;;  %v10250_v61 = vld [vmem:[%s13730_s7 + $0x144] sm:$0xf] }
 0x7cd   : > { %v4749_v54 = vpop.f32.mrf.mxu2  ;;  %v5011_v40 = vmax.f32 %v4745_v17, %v4883_v27 }
 0x7ce   : > { %v4798_v34 = vpop.f32.mrf.mxu3  ;;  %7313 = vmatpush.bf16.msrb.mxu3 %v9695_v12  ;;  %v4750_v45 = vadd.f32 %v4749_v54, %v12183_v20  ;;  %v8835_v54 = vor.u32 %v10218_v38, %v8832_v59  ;;  %v4884_v12 = vmul.f32 0.2, %v4794_v53 }
 0x7cf   : > { %v4799_v62 = vadd.f32 %v4798_v34, %v12185_v10  ;;  %v8960_v34 = vld [vmem:[%s13730_s7 + $0x150] sm:$0xf0] }
 0x7d0   : > { %7321 = vmatpush.bf16.msra.mxu2 %v8883_v39  ;;  %v8963_v50 = vor.u32 %v10250_v61, %v8960_v34  ;;  %v4899_v58 = vmul.f32 0.2, %v4750_v45  ;;  %v8944_v39 = vld [vmem:[%s13730_s7 + $0x130] sm:$0xf0]  ;;  %v5012_v18 = vmax.f32 %v4794_v53, %v4884_v12 }
 0x7d1   : > { %v4900_v22 = vmul.f32 0.2, %v4799_v62  ;;  %v8947_v26 = vor.u32 %v10246_v24, %v8944_v39 }
 0x7d2   : > { %7332 = vmatpush.bf16.msra.mxu3 %v9043_v30  ;;  %v5019_v30 = vmax.f32 %v4747_v8, %v4891_v47 }
 0x7d4   : > { %7322 = vmatpush.bf16.msra.mxu2 %v8867_v60  ;;  %v5335_v17 = vmax.f32 %v5011_v40, %v5019_v30 }
 0x7d5   : > { %v4751_v55 = vpop.f32.mrf.mxu2 }
 0x7d6   : > { %v4800_v16 = vpop.f32.mrf.mxu3  ;;  %7333 = vmatpush.bf16.msra.mxu3 %v9027_v57  ;;  %v4752_v43 = vadd.f32 %v4751_v55, %v12183_v20  ;;  %v5020_v57 = vmax.f32 %v12449_v33, %v4892_v14  ;;  %v5028_v33 = vmax.f32 %v4799_v62, %v4900_v22  ;;  %v5336_v59 = vrot.slane %v5335_v17, 4 }
 0x7d7   : > { %v4801_v37 = vadd.f32 %v4800_v16, %v12185_v10 }
 0x7d8   : > { %7323 = vmatpush.bf16.msra.mxu2 %v8851_v7  ;;  %v4907_v4 = vmul.f32 0.2, %v4752_v43 }
 0x7d9   : > { %v4908_v28 = vmul.f32 0.2, %v4801_v37 }
 0x7da   : > { %7334 = vmatpush.bf16.msra.mxu3 %v9011_v0  ;;  %v5035_v19 = vmax.f32 %v4752_v43, %v4907_v4  ;;  %v5342_v43 = vmax.f32 %v5012_v18, %v5020_v57  ;;  %v5337_v4 = vmax.f32 %v5335_v17, %v5336_v59  ;;  %v5925_v57 = vld [vmem:[%s13731_s8] sm:$0xf] }
 0x7db   : > { %v5036_v48 = vmax.f32 %v4801_v37, %v4908_v28  ;;  %v5927_v18 = vperm.slane %v5925_v57, 0 }
 0x7dc   : > { %7324 = vmatpush.bf16.msra.mxu2 %v8835_v54  ;;  %v5343_v14 = vrot.slane %v5342_v43, 4 }
 0x7dd   : > { %v4754_v1 = vpop.f32.mrf.mxu2  ;;  %v5398_v53 = vmax.f32 %v5028_v33, %v5036_v48 }
 0x7de   : > { %v4803_v44 = vpop.f32.mrf.mxu3  ;;  %7335 = vmatpush.bf16.msra.mxu3 %v8995_v21  ;;  %v4755_v6 = vadd.f32 %v4754_v1, %v12183_v20  ;;  %v8800_v21 = vld [vmem:[%s13730_s7 + $0x10] sm:$0xf0]  ;;  %v5027_v1 = vmax.f32 %v4750_v45, %v4899_v58  ;;  %v5344_v12 = vmax.f32 %v5342_v43, %v5343_v14 }
 0x7df   : > { %v4804_v9 = vadd.f32 %v4803_v44, %v12185_v10  ;;  %v8803_v44 = vor.u32 %v10210_v25, %v8800_v21  ;;  %v5399_v61 = vrot.slane %v5398_v53, 4 }
 0x7e0   : > { %v4915_v55 = vmul.f32 0.2, %v4755_v6  ;;  %7325 = vmatpush.bf16.msra.mxu2 %v8819_v56 }
 0x7e1   : > { %v4916_v42 = vmul.f32 0.2, %v4804_v9  ;;  %v5400_v58 = vmax.f32 %v5398_v53, %v5399_v61 }
 0x7e2   : > { %7336 = vmatpush.bf16.msra.mxu3 %v8979_v31  ;;  %v5043_v7 = vmax.f32 %v4755_v6, %v4915_v55  ;;  %v5391_v31 = vmax.f32 %v5027_v1, %v5035_v19  ;;  %v5345_v55 = vrot.slane %v5344_v12, 2 }
 0x7e3   : > { %v5044_v27 = vmax.f32 %v4804_v9, %v4916_v42  ;;  %v5401_v24 = vrot.slane %v5400_v58, 2 }
 0x7e4   : > { %7326 = vmatpush.bf16.msra.mxu2 %v8803_v44  ;;  %v5392_v54 = vrot.slane %v5391_v31, 4  ;;  %v5346_v25 = vmax.f32 %v5344_v12, %v5345_v55 }
 0x7e5   : > { %v4756_v63 = vpop.f32.mrf.mxu2  ;;  %v5402_v17 = vmax.f32 %v5400_v58, %v5401_v24 }
 0x7e6   : > { %v4757_v49 = vadd.f32 %v4756_v63, %v12183_v20  ;;  %v4805_v35 = vpop.f32.mrf.mxu3  ;;  %7337 = vmatpush.bf16.msra.mxu3 %v8963_v50  ;;  %v5393_v9 = vmax.f32 %v5391_v31, %v5392_v54  ;;  %v5347_v43 = vrot.slane %v5346_v25, 1 }
 0x7e7   : > { %v4806_v16 = vadd.f32 %v4805_v35, %v12185_v10  ;;  %v5338_v35 = vrot.slane %v5337_v4, 2 }
 0x7e8   : > { %v4923_v0 = vmul.f32 0.2, %v4757_v49  ;;  %v5348_v61 = vmax.f32 %v5346_v25, %v5347_v43  ;;  %v10322_v43 = vld [vmem:[%s13730_s7 + $0x384] sm:$0xf] }
 0x7e9   : > { %v4924_v60 = vmul.f32 0.2, %v4806_v16 }
 0x7ea   : > { %v5051_v8 = vmax.f32 %v4757_v49, %v4923_v0  ;;  %7338 = vmatpush.bf16.msra.mxu3 %v8947_v26 }
 0x7eb   : > { %v5052_v15 = vmax.f32 %v4806_v16, %v4924_v60  ;;  %v5394_v16 = vrot.slane %v5393_v9, 2 }
 0x7ec   : > { %v5447_v45 = vmax.f32 %v5043_v7, %v5051_v8 }
 0x7ed   : > { %v4759_v37 = vpop.f32.mrf.mxu2  ;;  %v5454_v47 = vmax.f32 %v5044_v27, %v5052_v15  ;;  %v5395_v21 = vmax.f32 %v5393_v9, %v5394_v16 }
 0x7ee   : > { %v4808_v38 = vpop.f32.mrf.mxu3  ;;  %7339 = vmatpush.bf16.msra.mxu3 %v8931_v13  ;;  %v5448_v34 = vrot.slane %v5447_v45, 4  ;;  %v4760_v6 = vadd.f32 %v4759_v37, %v12183_v20 }
 0x7ef   : > { %v5455_v62 = vrot.slane %v5454_v47, 4  ;;  %v4809_v50 = vadd.f32 %v4808_v38, %v12185_v10  ;;  %v5396_v31 = vrot.slane %v5395_v21, 1 }
 0x7f0   : > { %v5449_v28 = vmax.f32 %v5447_v45, %v5448_v34  ;;  %v4931_v30 = vmul.f32 0.2, %v4760_v6  ;;  %v5403_v45 = vrot.slane %v5402_v17, 1 }
 0x7f1   : > { %v5456_v40 = vmax.f32 %v5454_v47, %v5455_v62  ;;  %v4932_v11 = vmul.f32 0.2, %v4809_v50  ;;  %v5397_v34 = vmax.f32 %v5395_v21, %v5396_v31  ;;  %v9248_v31 = vld [vmem:[%s13730_s7 + $0x390] sm:$0xf0] }
 0x7f2   : > { %v5450_v39 = vrot.slane %v5449_v28, 2  ;;  %v5059_v0 = vmax.f32 %v4760_v6, %v4931_v30  ;;  %v5404_v6 = vmax.f32 %v5402_v17, %v5403_v45  ;;  %v10302_v30 = vld [vmem:[%s13730_s7 + $0x2e4] sm:$0xf] }
 0x7f3   : > { %v5457_v42 = vrot.slane %v5456_v40, 2  ;;  %v5060_v48 = vmax.f32 %v4809_v50, %v4932_v11 }
 0x7f4   : > { %v5451_v1 = vmax.f32 %v5449_v28, %v5450_v39 }
 0x7f5   : > { %v4761_v63 = vpop.f32.mrf.mxu2  ;;  %v5458_v23 = vmax.f32 %v5456_v40, %v5457_v42 }
 0x7f6   : > { %v4762_v22 = vadd.f32 %v4761_v63, %v12183_v20  ;;  %v4810_v49 = vpop.f32.mrf.mxu3  ;;  %v5339_v20 = vmax.f32 %v5337_v4, %v5338_v35  ;;  %v5452_v37 = vrot.slane %v5451_v1, 1 }
 0x7f7   : > { %v4811_v52 = vadd.f32 %v4810_v49, %v12185_v10  ;;  %v5459_v38 = vrot.slane %v5458_v23, 1  ;;  %v5633_v49 = vsel %vm3972_vm6, %v5348_v61, %v12375_v46 }
 0x7f8   : > { %v4939_v56 = vmul.f32 0.2, %v4762_v22  ;;  %v5340_v15 = vrot.slane %v5339_v20, 1  ;;  %v5453_v4 = vmax.f32 %v5451_v1, %v5452_v37  ;;  %v5634_v57 = vsel %vm3974_vm7, %v5404_v6, %v5633_v49  ;;  %v10294_v1 = vld [vmem:[%s13730_s7 + $0x2a4] sm:$0xf] }
 0x7f9   : > { %v4940_v19 = vmul.f32 0.2, %v4811_v52  ;;  %v5460_v9 = vmax.f32 %v5458_v23, %v5459_v38  ;;  %v10326_v23 = vld [vmem:[%s13730_s7 + $0x3a4] sm:$0xf]  ;;  %v9251_v37 = vor.u32 %v10322_v43, %v9248_v31  ;;  %v9104_v38 = vld [vmem:[%s13730_s7 + $0x270] sm:$0xf0] }
 0x7fa   : > { %v5067_v26 = vmax.f32 %v4762_v22, %v4939_v56  ;;  %v5341_v14 = vmax.f32 %v5339_v20, %v5340_v15  ;;  %v9168_v22 = vld [vmem:[%s13730_s7 + $0x2f0] sm:$0xf0]  ;;  %v10330_v20 = vld [vmem:[%s13730_s7 + $0x3c4] sm:$0xf] }
 0x7fb   : > { %v5068_v60 = vmax.f32 %v4811_v52, %v4940_v19  ;;  %v10334_v52 = vld [vmem:[%s13730_s7 + $0x3e4] sm:$0xf]  ;;  %v5635_v46 = vsel %vm3976_vm8, %v5460_v9, %v5634_v57  ;;  %v9171_v24 = vor.u32 %v10302_v30, %v9168_v22  ;;  %v9200_v49 = vld [vmem:[%s13730_s7 + $0x330] sm:$0xf0] }
 0x7fc   : > { %v5503_v10 = vmax.f32 %v5059_v0, %v5067_v26  ;;  %v5626_v63 = vsel %vm3972_vm6, %v5341_v14, %v12366_v36  ;;  %v9296_v36 = vld [vmem:[%s13730_s7 + $0x3f0] sm:$0xf0]  ;;  %v10298_v0 = vld [vmem:[%s13730_s7 + $0x2c4] sm:$0xf] }
 0x7fd   : > { %v5510_v8 = vmax.f32 %v5060_v48, %v5068_v60  ;;  %v7224_v44 = vpop.f32.mrf.mxu2  ;;  %v5627_v35 = vsel %vm3974_vm7, %v5397_v34, %v5626_v63  ;;  %v9299_v42 = vor.u32 %v10334_v52, %v9296_v36  ;;  %v9152_v26 = vld [vmem:[%s13730_s7 + $0x2d0] sm:$0xf0]  ;;  %v10290_v15 = vld [vmem:[%s13730_s7 + $0x284] sm:$0xf] }
 0x7fe   : > { %v5504_v32 = vrot.slane %v5503_v10, 4  ;;  %v7225_v33 = vadd.f32 %v7224_v44, %v5927_v18  ;;  %v7237_v7 = vpop.f32.mrf.mxu3  ;;  %v5628_v16 = vsel %vm3976_vm8, %v5453_v4, %v5627_v35  ;;  %v9280_v48 = vld [vmem:[%s13730_s7 + $0x3d0] sm:$0xf0]  ;;  %v10282_v34 = vld [vmem:[%s13730_s7 + $0x244] sm:$0xf] }
 0x7ff   : > { %v5511_v13 = vrot.slane %v5510_v8, 4  ;;  %v9283_v17 = vor.u32 %v10330_v20, %v9280_v48  ;;  %v9232_v14 = vld [vmem:[%s13730_s7 + $0x370] sm:$0xf0]  ;;  %v10314_v6 = vld [vmem:[%s13730_s7 + $0x344] sm:$0xf] }
 0x800   : > { %v5505_v27 = vmax.f32 %v5503_v10, %v5504_v32  ;;  %v7238_v53 = vadd.f32 %v7237_v7, %v7225_v33  ;;  %v9155_v10 = vor.u32 %v10298_v0, %v9152_v26  ;;  %v9264_v32 = vld [vmem:[%s13730_s7 + $0x3b0] sm:$0xf0]  ;;  %v10278_v63 = vld [vmem:[%s13730_s7 + $0x224] sm:$0xf] }
 0x801   : > { %v5512_v47 = vmax.f32 %v5510_v8, %v5511_v13  ;;  %v9136_v8 = vld [vmem:[%s13730_s7 + $0x2b0] sm:$0xf0]  ;;  %v9267_v7 = vor.u32 %v10326_v23, %v9264_v32  ;;  %v10310_v22 = vld [vmem:[%s13730_s7 + $0x324] sm:$0xf] }
 0x802   : > { %v5506_v59 = vrot.slane %v5505_v27, 2  ;;  %v9139_v33 = vor.u32 %v10294_v1, %v9136_v8  ;;  %v9120_v13 = vld [vmem:[%s13730_s7 + $0x290] sm:$0xf0]  ;;  %v10274_v52 = vld [vmem:[%s13730_s7 + $0x204] sm:$0xf] }
 0x803   : > { %v5513_v54 = vrot.slane %v5512_v47, 2  ;;  %v9123_v45 = vor.u32 %v10290_v15, %v9120_v13  ;;  %v9216_v4 = vld [vmem:[%s13730_s7 + $0x350] sm:$0xf0]  ;;  %v10306_v57 = vld [vmem:[%s13730_s7 + $0x304] sm:$0xf] }
 0x804   : > { %v5507_v62 = vmax.f32 %v5505_v27, %v5506_v59  ;;  %v10318_v59 = vld [vmem:[%s13730_s7 + $0x364] sm:$0xf]  ;;  %v9056_v36 = vld [vmem:[%s13730_s7 + $0x210] sm:$0xf0] }
 0x805   : > { %v5514_v50 = vmax.f32 %v5512_v47, %v5513_v54  ;;  %v7226_v12 = vpop.f32.mrf.mxu2  ;;  %v10286_v47 = vld [vmem:[%s13730_s7 + $0x264] sm:$0xf]  ;;  %v9235_v61 = vor.u32 %v10318_v59, %v9232_v14  ;;  %v9059_v0 = vor.u32 %v10274_v52, %v9056_v36  ;;  %v9520_v32 = vld [vmem:[%s13730_s7 + $0x5b0] sm:$0xf0] }
 0x806   : > { %v5508_v58 = vrot.slane %v5507_v62, 1  ;;  %v7239_v28 = vpop.f32.mrf.mxu3  ;;  %v9107_v54 = vor.u32 %v10286_v47, %v9104_v38  ;;  %v10358_v8 = vld [vmem:[%s13730_s7 + $0x4a4] sm:$0xf]  ;;  %v9376_v13 = vld [vmem:[%s13730_s7 + $0x490] sm:$0xf0] }
 0x807   : > { %v5515_v40 = vrot.slane %v5514_v50, 1  ;;  %v9219_v28 = vor.u32 %v10314_v6, %v9216_v4  ;;  %v10390_v23 = vld [vmem:[%s13730_s7 + $0x5a4] sm:$0xf]  ;;  %v9504_v31 = vld [vmem:[%s13730_s7 + $0x590] sm:$0xf0] }
 0x808   : > { %v5509_v11 = vmax.f32 %v5507_v62, %v5508_v58  ;;  %v9088_v62 = vld [vmem:[%s13730_s7 + $0x250] sm:$0xf0]  ;;  %v10354_v15 = vld [vmem:[%s13730_s7 + $0x484] sm:$0xf] }
 0x809   : > { %v5516_v55 = vmax.f32 %v5514_v50, %v5515_v40  ;;  %v9091_v58 = vor.u32 %v10282_v34, %v9088_v62  ;;  %v9072_v40 = vld [vmem:[%s13730_s7 + $0x230] sm:$0xf0]  ;;  %v10386_v43 = vld [vmem:[%s13730_s7 + $0x584] sm:$0xf] }
 0x80a   : > { %v5629_v56 = vsel %vm3978_vm9, %v5509_v11, %v5628_v16  ;;  %v9075_v35 = vor.u32 %v10278_v63, %v9072_v40  ;;  %v9203_v11 = vor.u32 %v10310_v22, %v9200_v49  ;;  %v10366_v16 = vld [vmem:[%s13730_s7 + $0x4e4] sm:$0xf]  ;;  %v9488_v38 = vld [vmem:[%s13730_s7 + $0x570] sm:$0xf0]  ;;  %v10471_v63 = vld [vmem:[#allocation5 + $0x24] sm:$0xf0] }
 0x80b   : > { %v12533_v39 = vpack.c.bf16 %v5629_v56, %v5629_v56  ;;  %v5636_v19 = vsel %vm3978_vm9, %v5516_v55, %v5635_v46  ;;  %v9184_v55 = vld [vmem:[%s13730_s7 + $0x310] sm:$0xf0]  ;;  %v10382_v47 = vld [vmem:[%s13730_s7 + $0x564] sm:$0xf]  ;;  %v9902_v40 = vld [vmem:[#allocation5 + $0xa0] sm:$0xf] }
 0x80c   : > { %v12542_v18 = vpack.c.bf16 %v5636_v19, %v5636_v19  ;;  %v9424_v56 = vld [vmem:[%s13730_s7 + $0x4f0] sm:$0xf0]  ;;  %v9187_v26 = vor.u32 %v10306_v57, %v9184_v55  ;;  %v9491_v14 = vor.u32 %v10382_v47, %v9488_v38  ;;  %v10378_v34 = vld [vmem:[%s13730_s7 + $0x544] sm:$0xf]  ;;  %v10487_v49 = vld [vmem:[#allocation5 + $0xa4] sm:$0xf0] }
 0x80d   : > { %v7250_v60 = vpop.f32.mrf.mxu2  ;;  %7301 = vmatmul.bf16.vlgmr.msrb.gmra.mxu2 %v12533_v39  ;;  %v9552_v19 = vld [vmem:[%s13730_s7 + $0x5f0] sm:$0xf0]  ;;  %v9427_v20 = vor.u32 %v10366_v16, %v9424_v56  ;;  %v10342_v4 = vld [vmem:[%s13730_s7 + $0x424] sm:$0xf] }
 0x80e   : > { %v7251_v25 = vadd.f32 %v7250_v60, %v7238_v53  ;;  %v7263_v21 = vpop.f32.mrf.mxu3  ;;  %7314 = vmatmul.bf16.vlgmr.msrb.gmra.mxu3 %v12542_v18  ;;  %7345 = vmatpush.bf16.msrb.mxu2 %v9171_v24  ;;  %v10398_v24 = vld [vmem:[%s13730_s7 + $0x5e4] sm:$0xf]  ;;  %v9472_v62 = vld [vmem:[%s13730_s7 + $0x550] sm:$0xf0] }
 0x80f   : > { %7358 = vmatpush.bf16.msrb.mxu3 %v9299_v42  ;;  %v9555_v48 = vor.u32 %v10398_v24, %v9552_v19  ;;  %v10362_v60 = vld [vmem:[%s13730_s7 + $0x4c4] sm:$0xf]  ;;  %v9312_v57 = vld [vmem:[%s13730_s7 + $0x410] sm:$0xf0] }
 0x810   : > { %v7264_v44 = vadd.f32 %v7263_v21, %v7251_v25  ;;  %v9408_v25 = vld [vmem:[%s13730_s7 + $0x4d0] sm:$0xf0]  ;;  %v10394_v21 = vld [vmem:[%s13730_s7 + $0x5c4] sm:$0xf] }
 0x811   : > { %v10338_v36 = vld [vmem:[%s13730_s7 + $0x404] sm:$0xf]  ;;  %v9440_v16 = vld [vmem:[%s13730_s7 + $0x510] sm:$0xf0] }
 0x812   : > { %7346 = vmatpush.bf16.msrb.mxu2 %v9155_v10  ;;  %v9536_v10 = vld [vmem:[%s13730_s7 + $0x5d0] sm:$0xf0]  ;;  %v10370_v55 = vld [vmem:[%s13730_s7 + $0x504] sm:$0xf] }
 0x813   : > { %7359 = vmatpush.bf16.msrb.mxu3 %v9283_v17  ;;  %v9411_v17 = vor.u32 %v10362_v60, %v9408_v25  ;;  %v9539_v1 = vor.u32 %v10394_v21, %v9536_v10  ;;  %v10430_v56 = vld [vmem:[%s13730_s7 + $0x6e4] sm:$0xf]  ;;  %v9808_v19 = vld [vmem:[%s13730_s7 + $0x7f0] sm:$0xf0] }
 0x814   : > { %v10462_v24 = vld [vmem:[%s13730_s7 + $0x7e4] sm:$0xf]  ;;  %v9664_v60 = vld [vmem:[%s13730_s7 + $0x6d0] sm:$0xf0] }
 0x815   : > { %v7252_v27 = vpop.f32.mrf.mxu2  ;;  %v10458_v25 = vld [vmem:[%s13730_s7 + $0x7c4] sm:$0xf]  ;;  %v9792_v21 = vld [vmem:[%s13730_s7 + $0x7d0] sm:$0xf0] }
 0x816   : > { %v7265_v53 = vpop.f32.mrf.mxu3  ;;  %7347 = vmatpush.bf16.msrb.mxu2 %v9139_v33  ;;  %v9379_v27 = vor.u32 %v10354_v15, %v9376_v13  ;;  %v9632_v15 = vld [vmem:[%s13730_s7 + $0x690] sm:$0xf0]  ;;  %v10450_v13 = vld [vmem:[%s13730_s7 + $0x784] sm:$0xf] }
 0x817   : > { %7360 = vmatpush.bf16.msrb.mxu3 %v9267_v7  ;;  %v9523_v7 = vor.u32 %v10390_v23, %v9520_v32  ;;  %v9507_v53 = vor.u32 %v10386_v43, %v9504_v31  ;;  %v9776_v23 = vld [vmem:[%s13730_s7 + $0x7b0] sm:$0xf0] }
 0x818   : > { %v9760_v43 = vld [vmem:[%s13730_s7 + $0x790] sm:$0xf0] }
 0x819   : > { %v9744_v47 = vld [vmem:[%s13730_s7 + $0x770] sm:$0xf0] }
 0x81a   : > { %7348 = vmatpush.bf16.msrb.mxu2 %v9123_v45  ;;  %v10350_v45 = vld [vmem:[%s13730_s7 + $0x464] sm:$0xf] }
 0x81b   : > { %7361 = vmatpush.bf16.msrb.mxu3 %v9251_v37  ;;  %v9360_v37 = vld [vmem:[%s13730_s7 + $0x470] sm:$0xf0] }
 0x81c   : > { %v9363_v59 = vor.u32 %v10350_v45, %v9360_v37  ;;  %v9616_v45 = vld [vmem:[%s13730_s7 + $0x670] sm:$0xf0]  ;;  %v10446_v37 = vld [vmem:[%s13730_s7 + $0x764] sm:$0xf] }
 0x81d   : > { %v7276_v50 = vpop.f32.mrf.mxu2  ;;  %7327 = vmatmul.bf16.vlgmr.msra.gmra.mxu2 %v12128_v2 }
 0x81e   : > { %v7277_v12 = vadd.f32 %v7276_v50, %v7264_v44  ;;  %v7289_v9 = vpop.f32.mrf.mxu3  ;;  %7340 = vmatmul.bf16.vlgmr.msra.gmra.mxu3 %v12146_v3  ;;  %7349 = vmatpush.bf16.msrb.mxu2 %v9107_v54  ;;  %v9392_v44 = vld [vmem:[%s13730_s7 + $0x4b0] sm:$0xf0]  ;;  %v10346_v54 = vld [vmem:[%s13730_s7 + $0x444] sm:$0xf]  ;;  %v9475_v50 = vor.u32 %v10378_v34, %v9472_v62 }
 0x81f   : > { %7362 = vmatpush.bf16.msrb.mxu3 %v9235_v61  ;;  %v9395_v33 = vor.u32 %v10358_v8, %v9392_v44  ;;  %v9344_v61 = vld [vmem:[%s13730_s7 + $0x450] sm:$0xf0]  ;;  %v10454_v44 = vld [vmem:[%s13730_s7 + $0x7a4] sm:$0xf] }
 0x820   : > { %v12608_v30 = vadd.f32 %v7289_v9, %v7277_v12  ;;  %v9347_v6 = vor.u32 %v10346_v54, %v9344_v61  ;;  %v9328_v12 = vld [vmem:[%s13730_s7 + $0x430] sm:$0xf0]  ;;  %v10374_v9 = vld [vmem:[%s13730_s7 + $0x524] sm:$0xf] }
 0x821   : > { %v9648_v8 = vld [vmem:[%s13730_s7 + $0x6b0] sm:$0xf0]  ;;  %v10442_v61 = vld [vmem:[%s13730_s7 + $0x744] sm:$0xf] }
 0x822   : > { %7350 = vmatpush.bf16.msrb.mxu2 %v9091_v58  ;;  %v9456_v58 = vld [vmem:[%s13730_s7 + $0x530] sm:$0xf0] }
 0x823   : > { %7363 = vmatpush.bf16.msrb.mxu3 %v9219_v28  ;;  %v9838_v28 = vld [vmem:[#allocation5 + $0x20] sm:$0xf]  ;;  %v9459_v52 = vor.u32 %v10374_v9, %v9456_v58  ;;  %v9600_v54 = vld [vmem:[%s13730_s7 + $0x650] sm:$0xf0] }
 0x824   : > { %v9839_v22 = vor.u32 %v10471_v63, %v9838_v28  ;;  %v9728_v34 = vld [vmem:[%s13730_s7 + $0x750] sm:$0xf0]  ;;  %v10402_v63 = vld [vmem:[%s13730_s7 + $0x604] sm:$0xf] }
 0x825   : > { %v7278_v46 = vpop.f32.mrf.mxu2  ;;  %v9712_v9 = vld [vmem:[%s13730_s7 + $0x730] sm:$0xf0] }
 0x826   : > { %v7291_v42 = vpop.f32.mrf.mxu3  ;;  %7351 = vmatpush.bf16.msrb.mxu2 %v9075_v35  ;;  %v9331_v35 = vor.u32 %v10342_v4, %v9328_v12  ;;  %8038 = vmatpush.bf16.msrb.mxu0 %v9839_v22  ;;  %v9680_v46 = vld [vmem:[%s13730_s7 + $0x6f0] sm:$0xf0]  ;;  %v10406_v4 = vld [vmem:[%s13730_s7 + $0x624] sm:$0xf] }
 0x827   : > { %7364 = vmatpush.bf16.msrb.mxu3 %v9203_v11  ;;  %v9903_v11 = vor.u32 %v10487_v49, %v9902_v40  ;;  %v9315_v42 = vor.u32 %v10338_v36, %v9312_v57  ;;  %v10438_v12 = vld [vmem:[%s13730_s7 + $0x724] sm:$0xf]  ;;  %v9568_v40 = vld [vmem:[%s13730_s7 + $0x610] sm:$0xf0]  ;;  %v10273_v36 = vld [vmem:[%s13730_s7 + $0x1f4] sm:$0xf0] }
 0x828   : > { %v9715_v28 = vor.u32 %v10438_v12, %v9712_v9  ;;  %v10434_v22 = vld [vmem:[%s13730_s7 + $0x704] sm:$0xf]  ;;  %v9696_v49 = vld [vmem:[%s13730_s7 + $0x710] sm:$0xf0]  ;;  %v9571_v57 = vor.u32 %v10402_v63, %v9568_v40  ;;  %v10253_v12 = vld [vmem:[%s13730_s7 + $0x154] sm:$0xf0] }
 0x829   : > { %8051 = vmatpush.bf16.msrb.mxu1 %v9903_v11  ;;  %v10241_v11 = vld [vmem:[%s13730_s7 + $0xf4] sm:$0xf0]  ;;  %v10476_v9 = vld [vmem:[#allocation5 + $0x54] sm:$0xf] }
 0x82a   : > { %7352 = vmatpush.bf16.msrb.mxu2 %v9059_v0  ;;  %v9443_v0 = vor.u32 %v10370_v55, %v9440_v16  ;;  %v9699_v55 = vor.u32 %v10434_v22, %v9696_v49  ;;  %v8822_v22 = vld [vmem:[%s13730_s7 + $0x28] sm:$0xf]  ;;  %v10217_v49 = vld [vmem:[%s13730_s7 + $0x34] sm:$0xf0] }
 0x82b   : > { %7365 = vmatpush.bf16.msrb.mxu3 %v9187_v26  ;;  %v9683_v26 = vor.u32 %v10430_v56, %v9680_v46  ;;  %v8902_v46 = vld [vmem:[%s13730_s7 + $0xc8] sm:$0xf] }
 0x82d   : > { %7353 = vmatmul.bf16.vlgmr.msrb.gmra.mxu2 %v12203_v41 }
 0x82e   : > { %7371 = vmatpush.bf16.msra.mxu2 %v9427_v20  ;;  %7366 = vmatmul.bf16.vlgmr.msrb.gmra.mxu3 %v12215_v51  ;;  %v9811_v20 = vor.u32 %v10462_v24, %v9808_v19  ;;  %v10237_v24 = vld [vmem:[%s13730_s7 + $0xd4] sm:$0xf0]  ;;  %v9030_v19 = vld [vmem:[%s13730_s7 + $0x1c8] sm:$0xf] }
 0x82f   : > { %7384 = vmatpush.bf16.msra.mxu3 %v9555_v48  ;;  %v10426_v48 = vld [vmem:[%s13730_s7 + $0x6c4] sm:$0xf] }
 0x830   : > { %v9667_v10 = vor.u32 %v10426_v48, %v9664_v60  ;;  %v10233_v48 = vld [vmem:[%s13730_s7 + $0xb4] sm:$0xf0]  ;;  %v9830_v60 = vld [vmem:[#allocation5 + $0x10] sm:$0xf] }
 0x832   : > { %7372 = vmatpush.bf16.msra.mxu2 %v9411_v17  ;;  %v9795_v17 = vor.u32 %v10458_v25, %v9792_v21  ;;  %v10469_v25 = vld [vmem:[#allocation5 + $0x14] sm:$0xf0]  ;;  %v9014_v21 = vld [vmem:[%s13730_s7 + $0x1a8] sm:$0xf] }
 0x833   : > { %7385 = vmatpush.bf16.msra.mxu3 %v9539_v1  ;;  %v10422_v1 = vld [vmem:[%s13730_s7 + $0x6a4] sm:$0xf] }
 0x834   : > { %v9651_v32 = vor.u32 %v10422_v1, %v9648_v8  ;;  %v8870_v8 = vld [vmem:[%s13730_s7 + $0x88] sm:$0xf] }
 0x836   : > { %7373 = vmatpush.bf16.msra.mxu2 %v9395_v33  ;;  %v9779_v33 = vor.u32 %v10454_v44, %v9776_v23  ;;  %v10229_v44 = vld [vmem:[%s13730_s7 + $0x94] sm:$0xf0] }
 0x837   : > { %7386 = vmatpush.bf16.msra.mxu3 %v9523_v7  ;;  %v10418_v7 = vld [vmem:[%s13730_s7 + $0x684] sm:$0xf] }
 0x838   : > { %v9635_v31 = vor.u32 %v10418_v7, %v9632_v15  ;;  %v10467_v7 = vld [vmem:[#allocation5 + $0x4] sm:$0xf0]  ;;  %v10261_v15 = vld [vmem:[%s13730_s7 + $0x194] sm:$0xf0] }
 0x83a   : > { %7374 = vmatpush.bf16.msra.mxu2 %v9379_v27  ;;  %v9763_v27 = vor.u32 %v10450_v13, %v9760_v43  ;;  %v10480_v43 = vld [vmem:[#allocation5 + $0x74] sm:$0xf] }
 0x83b   : > { %7387 = vmatpush.bf16.msra.mxu3 %v9507_v53  ;;  %v10414_v53 = vld [vmem:[%s13730_s7 + $0x664] sm:$0xf] }
 0x83c   : > { %v9619_v38 = vor.u32 %v10414_v53, %v9616_v45  ;;  %v8871_v53 = vor.u32 %v10229_v44, %v8870_v8  ;;  %v10301_v44 = vld [vmem:[%s13730_s7 + $0x2d4] sm:$0xf0] }
 0x83e   : > { %7375 = vmatpush.bf16.msra.mxu2 %v9363_v59  ;;  %v9747_v59 = vor.u32 %v10446_v37, %v9744_v47  ;;  %v8854_v37 = vld [vmem:[%s13730_s7 + $0x68] sm:$0xf]  ;;  %v10225_v47 = vld [vmem:[%s13730_s7 + $0x74] sm:$0xf0] }
 0x83f   : > { %7388 = vmatpush.bf16.msra.mxu3 %v9491_v14  ;;  %v10410_v14 = vld [vmem:[%s13730_s7 + $0x644] sm:$0xf] }
 0x840   : > { %v9603_v62 = vor.u32 %v10410_v14, %v9600_v54  ;;  %v10478_v14 = vld [vmem:[#allocation5 + $0x64] sm:$0xf]  ;;  %v9872_v54 = vld [vmem:[#allocation5 + $0x68] sm:$0xf0] }
 0x842   : > { %7376 = vmatpush.bf16.msra.mxu2 %v9347_v6  ;;  %v9731_v6 = vor.u32 %v10442_v61, %v9728_v34  ;;  %v9875_v61 = vor.u32 %v10478_v14, %v9872_v54  ;;  %v8855_v34 = vor.u32 %v10225_v47, %v8854_v37  ;;  %v9270_v37 = vld [vmem:[%s13730_s7 + $0x3a8] sm:$0xf]  ;;  %v10329_v47 = vld [vmem:[%s13730_s7 + $0x3b4] sm:$0xf0] }
 0x843   : > { %7389 = vmatpush.bf16.msra.mxu3 %v9475_v50  ;;  %v9584_v50 = vld [vmem:[%s13730_s7 + $0x630] sm:$0xf0]  ;;  %v9126_v14 = vld [vmem:[%s13730_s7 + $0x288] sm:$0xf]  ;;  %v9271_v54 = vor.u32 %v10329_v47, %v9270_v37  ;;  %v10397_v37 = vld [vmem:[%s13730_s7 + $0x5d4] sm:$0xf0] }
 0x844   : > { %v9587_v58 = vor.u32 %v10406_v4, %v9584_v50  ;;  %v10221_v4 = vld [vmem:[%s13730_s7 + $0x54] sm:$0xf0]  ;;  %v8966_v50 = vld [vmem:[%s13730_s7 + $0x148] sm:$0xf] }
 0x845   : > { %v8967_v40 = vor.u32 %v10253_v12, %v8966_v50 }
 0x846   : > { %7377 = vmatpush.bf16.msra.mxu2 %v9331_v35  ;;  %v8918_v35 = vld [vmem:[%s13730_s7 + $0xe8] sm:$0xf] }
 0x847   : > { %7390 = vmatpush.bf16.msra.mxu3 %v9459_v52  ;;  %v9046_v52 = vld [vmem:[%s13730_s7 + $0x1e8] sm:$0xf]  ;;  %v8919_v16 = vor.u32 %v10241_v11, %v8918_v35  ;;  %v10249_v11 = vld [vmem:[%s13730_s7 + $0x134] sm:$0xf0] }
 0x848   : > { %v9047_v56 = vor.u32 %v10273_v36, %v9046_v52  ;;  %v8950_v35 = vld [vmem:[%s13730_s7 + $0x128] sm:$0xf]  ;;  %v10474_v52 = vld [vmem:[#allocation5 + $0x44] sm:$0xf]  ;;  %v9856_v36 = vld [vmem:[#allocation5 + $0x48] sm:$0xf0] }
 0x84a   : > { %7378 = vmatpush.bf16.msra.mxu2 %v9315_v42  ;;  %v10269_v42 = vld [vmem:[%s13730_s7 + $0x1d4] sm:$0xf0] }
 0x84b   : > { %7391 = vmatpush.bf16.msra.mxu3 %v9443_v0  ;;  %v8903_v0 = vor.u32 %v10237_v24, %v8902_v46  ;;  %v8951_v46 = vor.u32 %v10249_v11, %v8950_v35  ;;  %v8934_v24 = vld [vmem:[%s13730_s7 + $0x108] sm:$0xf]  ;;  %v10285_v11 = vld [vmem:[%s13730_s7 + $0x254] sm:$0xf0] }
 0x84c   : > { %v9094_v35 = vld [vmem:[%s13730_s7 + $0x248] sm:$0xf] }
 0x84d   : > { %7379 = vmatmul.bf16.vlgmr.msra.gmra.mxu2 %v12261_v29 }
 0x84e   : > { %7397 = vmatpush.bf16.msrb.mxu2 %v9683_v26  ;;  %7392 = vmatmul.bf16.vlgmr.msra.gmra.mxu3 %v12263_v5  ;;  %v8886_v26 = vld [vmem:[%s13730_s7 + $0xa8] sm:$0xf] }
 0x84f   : > { %7410 = vmatpush.bf16.msrb.mxu3 %v9811_v20  ;;  %v9031_v20 = vor.u32 %v10269_v42, %v9030_v19  ;;  %v8887_v1 = vor.u32 %v10233_v48, %v8886_v26  ;;  %v10245_v19 = vld [vmem:[%s13730_s7 + $0x114] sm:$0xf0]  ;;  %v9174_v42 = vld [vmem:[%s13730_s7 + $0x2e8] sm:$0xf]  ;;  %v10472_v26 = vld [vmem:[#allocation5 + $0x34] sm:$0xf] }
 0x850   : > { %v9302_v48 = vld [vmem:[%s13730_s7 + $0x3e8] sm:$0xf] }
 0x852   : > { %7398 = vmatpush.bf16.msrb.mxu2 %v9667_v10  ;;  %v10265_v10 = vld [vmem:[%s13730_s7 + $0x1b4] sm:$0xf0] }
 0x853   : > { %7411 = vmatpush.bf16.msrb.mxu3 %v9795_v17  ;;  %v9831_v17 = vor.u32 %v10469_v25, %v9830_v60  ;;  %v9015_v23 = vor.u32 %v10265_v10, %v9014_v21  ;;  %v10337_v60 = vld [vmem:[%s13730_s7 + $0x3f4] sm:$0xf0]  ;;  %v8935_v10 = vor.u32 %v10245_v19, %v8934_v24  ;;  %v9078_v19 = vld [vmem:[%s13730_s7 + $0x228] sm:$0xf] }
 0x854   : > { %v9303_v8 = vor.u32 %v10337_v60, %v9302_v48 }
 0x855   : > { %8039 = vmatpush.bf16.msrb.mxu0 %v9831_v17 }
 0x856   : > { %7399 = vmatpush.bf16.msrb.mxu2 %v9651_v32  ;;  %v8998_v32 = vld [vmem:[%s13730_s7 + $0x188] sm:$0xf] }
 0x857   : > { %7412 = vmatpush.bf16.msrb.mxu3 %v9779_v33  ;;  %v9822_v33 = vld [vmem:[#allocation5] sm:$0xf]  ;;  %v8999_v45 = vor.u32 %v10261_v15, %v8998_v32  ;;  %v9840_v32 = vld [vmem:[#allocation5 + $0x28] sm:$0xf0] }
 0x858   : > { %v9823_v13 = vor.u32 %v10467_v7, %v9822_v33  ;;  %v9286_v33 = vld [vmem:[%s13730_s7 + $0x3c8] sm:$0xf]  ;;  %v10333_v7 = vld [vmem:[%s13730_s7 + $0x3d4] sm:$0xf0] }
 0x85a   : > { %7400 = vmatpush.bf16.msrb.mxu2 %v9635_v31  ;;  %v9880_v31 = vld [vmem:[#allocation5 + $0x78] sm:$0xf0]  ;;  %8040 = vmatpush.bf16.msrb.mxu0 %v9823_v13 }
 0x85b   : > { %7413 = vmatpush.bf16.msrb.mxu3 %v9763_v27  ;;  %v9883_v27 = vor.u32 %v10480_v43, %v9880_v31  ;;  %v9142_v43 = vld [vmem:[%s13730_s7 + $0x2a8] sm:$0xf]  ;;  %v9287_v31 = vor.u32 %v10333_v7, %v9286_v33  ;;  %v10401_v7 = vld [vmem:[%s13730_s7 + $0x5f4] sm:$0xf0] }
 0x85c   : > { %v9558_v33 = vld [vmem:[%s13730_s7 + $0x5e8] sm:$0xf] }
 0x85e   : > { %7401 = vmatpush.bf16.msrb.mxu2 %v9619_v38  ;;  %v8982_v38 = vld [vmem:[%s13730_s7 + $0x168] sm:$0xf]  ;;  %8085 = vmatpush.bf16.msra.mxu0 %v9883_v27  ;;  %v10297_v27 = vld [vmem:[%s13730_s7 + $0x2b4] sm:$0xf0] }
 0x85f   : > { %7414 = vmatpush.bf16.msrb.mxu3 %v9747_v59  ;;  %v10257_v59 = vld [vmem:[%s13730_s7 + $0x174] sm:$0xf0] }
 0x862   : > { %7402 = vmatpush.bf16.msrb.mxu2 %v9603_v62  ;;  %v8983_v62 = vor.u32 %v10257_v59, %v8982_v38  ;;  %8086 = vmatpush.bf16.msra.mxu0 %v9875_v61  ;;  %v9143_v59 = vor.u32 %v10297_v27, %v9142_v43  ;;  %v10293_v61 = vld [vmem:[%s13730_s7 + $0x294] sm:$0xf0]  ;;  %v9414_v27 = vld [vmem:[%s13730_s7 + $0x4c8] sm:$0xf] }
 0x863   : > { %7415 = vmatpush.bf16.msrb.mxu3 %v9731_v6  ;;  %v8838_v6 = vld [vmem:[%s13730_s7 + $0x48] sm:$0xf]  ;;  %v9127_v12 = vor.u32 %v10293_v61, %v9126_v14 }
 0x864   : > { %v8839_v63 = vor.u32 %v10221_v4, %v8838_v6  ;;  %v9254_v6 = vld [vmem:[%s13730_s7 + $0x388] sm:$0xf]  ;;  %v10325_v4 = vld [vmem:[%s13730_s7 + $0x394] sm:$0xf0] }
 0x865   : > { %v9398_v14 = vld [vmem:[%s13730_s7 + $0x4a8] sm:$0xf] }
 0x866   : > { %7403 = vmatpush.bf16.msrb.mxu2 %v9587_v58  ;;  %v9864_v58 = vld [vmem:[#allocation5 + $0x58] sm:$0xf0] }
 0x867   : > { %7416 = vmatpush.bf16.msrb.mxu3 %v9715_v28  ;;  %v9867_v28 = vor.u32 %v10476_v9, %v9864_v58  ;;  %v9255_v9 = vor.u32 %v10325_v4, %v9254_v6  ;;  %v9110_v58 = vld [vmem:[%s13730_s7 + $0x268] sm:$0xf] }
 0x869   : > { %8087 = vmatpush.bf16.msra.mxu0 %v9867_v28  ;;  %v10289_v28 = vld [vmem:[%s13730_s7 + $0x274] sm:$0xf0] }
 0x86a   : > { %7404 = vmatpush.bf16.msrb.mxu2 %v9571_v57  ;;  %v9859_v57 = vor.u32 %v10474_v52, %v9856_v36  ;;  %v9222_v36 = vld [vmem:[%s13730_s7 + $0x348] sm:$0xf] }
 0x86b   : > { %7417 = vmatpush.bf16.msrb.mxu3 %v9699_v55  ;;  %v8823_v55 = vor.u32 %v10217_v49, %v8822_v22  ;;  %v9111_v22 = vor.u32 %v10289_v28, %v9110_v58  ;;  %v10389_v58 = vld [vmem:[%s13730_s7 + $0x594] sm:$0xf0] }
 0x86d   : > { %7405 = vmatmul.bf16.vlgmr.msrb.gmra.mxu2 %v12533_v39  ;;  %8088 = vmatpush.bf16.msra.mxu0 %v9859_v57  ;;  %v10317_v57 = vld [vmem:[%s13730_s7 + $0x354] sm:$0xf0] }
 0x86e   : > { %7423 = vmatpush.bf16.msra.mxu2 %v8919_v16  ;;  %7418 = vmatmul.bf16.vlgmr.msrb.gmra.mxu3 %v12542_v18  ;;  %v8806_v16 = vld [vmem:[%s13730_s7 + $0x8] sm:$0xf]  ;;  %v9223_v24 = vor.u32 %v10317_v57, %v9222_v36 }
 0x86f   : > { %7436 = vmatpush.bf16.msra.mxu3 %v9047_v56  ;;  %v10213_v56 = vld [vmem:[%s13730_s7 + $0x14] sm:$0xf0] }
 0x870   : > { %v8807_v21 = vor.u32 %v10213_v56, %v8806_v16  ;;  %v9095_v56 = vor.u32 %v10285_v11, %v9094_v35  ;;  %v9494_v11 = vld [vmem:[%s13730_s7 + $0x568] sm:$0xf] }
 0x872   : > { %7424 = vmatpush.bf16.msra.mxu2 %v8903_v0  ;;  %v10305_v0 = vld [vmem:[%s13730_s7 + $0x2f4] sm:$0xf0] }
 0x873   : > { %7437 = vmatpush.bf16.msra.mxu3 %v9031_v20  ;;  %v9848_v20 = vld [vmem:[#allocation5 + $0x38] sm:$0xf0]  ;;  %v9175_v17 = vor.u32 %v10305_v0, %v9174_v42  ;;  %v10281_v42 = vld [vmem:[%s13730_s7 + $0x234] sm:$0xf0]  ;;  %v9206_v0 = vld [vmem:[%s13730_s7 + $0x328] sm:$0xf] }
 0x874   : > { %v9851_v25 = vor.u32 %v10472_v26, %v9848_v20  ;;  %v9079_v20 = vor.u32 %v10281_v42, %v9078_v19 }
 0x876   : > { %7425 = vmatpush.bf16.msra.mxu2 %v8887_v1  ;;  %v9158_v1 = vld [vmem:[%s13730_s7 + $0x2c8] sm:$0xf]  ;;  %8089 = vmatpush.bf16.msra.mxu0 %v9851_v25 }
 0x877   : > { %7438 = vmatpush.bf16.msra.mxu3 %v9015_v23  ;;  %v10470_v23 = vld [vmem:[#allocation5 + $0x24] sm:$0xf]  ;;  %v9159_v13 = vor.u32 %v10301_v44, %v9158_v1  ;;  %v9062_v25 = vld [vmem:[%s13730_s7 + $0x208] sm:$0xf]  ;;  %v10309_v1 = vld [vmem:[%s13730_s7 + $0x314] sm:$0xf0] }
 0x878   : > { %v9843_v15 = vor.u32 %v10470_v23, %v9840_v32  ;;  %v10369_v44 = vld [vmem:[%s13730_s7 + $0x4f4] sm:$0xf0] }
 0x87a   : > { %7426 = vmatpush.bf16.msra.mxu2 %v8871_v53  ;;  %8090 = vmatpush.bf16.msra.mxu0 %v9843_v15  ;;  %v10468_v53 = vld [vmem:[#allocation5 + $0x14] sm:$0xf] }
 0x87b   : > { %7439 = vmatpush.bf16.msra.mxu3 %v8999_v45  ;;  %v9832_v45 = vld [vmem:[#allocation5 + $0x18] sm:$0xf0] }
 0x87c   : > { %v9835_v38 = vor.u32 %v10468_v53, %v9832_v45  ;;  %v10365_v53 = vld [vmem:[%s13730_s7 + $0x4d4] sm:$0xf0]  ;;  %v9542_v45 = vld [vmem:[%s13730_s7 + $0x5c8] sm:$0xf] }
 0x87d   : > { %v9415_v47 = vor.u32 %v10365_v53, %v9414_v27  ;;  %v9670_v27 = vld [vmem:[%s13730_s7 + $0x6c8] sm:$0xf]  ;;  %v10429_v53 = vld [vmem:[%s13730_s7 + $0x6d4] sm:$0xf0] }
 0x87e   : > { %7427 = vmatpush.bf16.msra.mxu2 %v8855_v34  ;;  %8091 = vmatpush.bf16.msra.mxu0 %v9835_v38  ;;  %v10466_v34 = vld [vmem:[#allocation5 + $0x4] sm:$0xf] }
 0x87f   : > { %7440 = vmatpush.bf16.msra.mxu3 %v8983_v62  ;;  %v9824_v62 = vld [vmem:[#allocation5 + $0x8] sm:$0xf0] }
 0x880   : > { %v9827_v50 = vor.u32 %v10466_v34, %v9824_v62  ;;  %v9526_v34 = vld [vmem:[%s13730_s7 + $0x5a8] sm:$0xf]  ;;  %v10393_v62 = vld [vmem:[%s13730_s7 + $0x5b4] sm:$0xf0] }
 0x881   : > { %v9527_v4 = vor.u32 %v10393_v62, %v9526_v34  ;;  %v9782_v34 = vld [vmem:[%s13730_s7 + $0x7a8] sm:$0xf]  ;;  %v10457_v62 = vld [vmem:[%s13730_s7 + $0x7b4] sm:$0xf0] }
 0x882   : > { %7428 = vmatpush.bf16.msra.mxu2 %v8839_v63  ;;  %8092 = vmatpush.bf16.msra.mxu0 %v9827_v50  ;;  %v9238_v63 = vld [vmem:[%s13730_s7 + $0x368] sm:$0xf] }
 0x883   : > { %7441 = vmatpush.bf16.msra.mxu3 %v8967_v40  ;;  %v10321_v40 = vld [vmem:[%s13730_s7 + $0x374] sm:$0xf0]  ;;  %v9382_v50 = vld [vmem:[%s13730_s7 + $0x488] sm:$0xf] }
 0x884   : > { %v9239_v49 = vor.u32 %v10321_v40, %v9238_v63 }
 0x886   : > { %7429 = vmatpush.bf16.msra.mxu2 %v8823_v55 }
 0x887   : > { %7442 = vmatpush.bf16.msra.mxu3 %v8951_v46 }
 0x88a   : > { %7430 = vmatpush.bf16.msra.mxu2 %v8807_v21  ;;  %v10277_v21 = vld [vmem:[%s13730_s7 + $0x214] sm:$0xf0] }
 0x88b   : > { %7443 = vmatpush.bf16.msra.mxu3 %v8935_v10  ;;  %v9190_v10 = vld [vmem:[%s13730_s7 + $0x308] sm:$0xf]  ;;  %v9063_v15 = vor.u32 %v10277_v21, %v9062_v25 }
 0x88c   : > { %v9318_v21 = vld [vmem:[%s13730_s7 + $0x408] sm:$0xf] }
 0x88d   : > { %7431 = vmatmul.bf16.vlgmr.msra.gmra.mxu2 %v12128_v2 }
 0x88e   : > { %7449 = vmatpush.bf16.msrb.mxu2 %v9175_v17  ;;  %7444 = vmatmul.bf16.vlgmr.msra.gmra.mxu3 %v12146_v3 }
 0x88f   : > { %7462 = vmatpush.bf16.msrb.mxu3 %v9303_v8  ;;  %v9430_v8 = vld [vmem:[%s13730_s7 + $0x4e8] sm:$0xf] }
 0x890   : > { %v7302_v52 = vpop.f32.mrf.mxu2  ;;  %v9431_v43 = vor.u32 %v10369_v44, %v9430_v8  ;;  %v9686_v8 = vld [vmem:[%s13730_s7 + $0x6e8] sm:$0xf]  ;;  %v10433_v44 = vld [vmem:[%s13730_s7 + $0x6f4] sm:$0xf0] }
 0x891   : > { %v7303_v55 = vadd.f32 %v7302_v52, %v12608_v30  ;;  %v7315_v16 = vpop.f32.mrf.mxu3  ;;  %v10313_v30 = vld [vmem:[%s13730_s7 + $0x334] sm:$0xf0] }
 0x892   : > { %7450 = vmatpush.bf16.msrb.mxu2 %v9159_v13  ;;  %v9207_v60 = vor.u32 %v10313_v30, %v9206_v0  ;;  %v9191_v13 = vor.u32 %v10309_v1, %v9190_v10  ;;  %v10385_v52 = vld [vmem:[%s13730_s7 + $0x574] sm:$0xf0]  ;;  %v9334_v0 = vld [vmem:[%s13730_s7 + $0x428] sm:$0xf] }
 0x893   : > { %7463 = vmatpush.bf16.msrb.mxu3 %v9287_v31  ;;  %v7316_v46 = vadd.f32 %v7315_v16, %v7303_v55  ;;  %v9559_v31 = vor.u32 %v10401_v7, %v9558_v33  ;;  %v9495_v57 = vor.u32 %v10385_v52, %v9494_v11  ;;  %v9350_v55 = vld [vmem:[%s13730_s7 + $0x448] sm:$0xf]  ;;  %v10349_v16 = vld [vmem:[%s13730_s7 + $0x454] sm:$0xf0]  ;;  %v10496_v11 = vld [vmem:[#allocation5 + $0xf4] sm:$0xf] }
 0x894   : > { %v10345_v30 = vld [vmem:[%s13730_s7 + $0x434] sm:$0xf0]  ;;  %v9944_v52 = vld [vmem:[#allocation5 + $0xf8] sm:$0xf0] }
 0x895   : > { %v7631_v26 = vmul.f32 0.2, %v7316_v46  ;;  %v10341_v10 = vld [vmem:[%s13730_s7 + $0x414] sm:$0xf0] }
 0x896   : > { %7451 = vmatpush.bf16.msrb.mxu2 %v9143_v59  ;;  %v9543_v59 = vor.u32 %v10397_v37, %v9542_v45  ;;  %v10373_v1 = vld [vmem:[%s13730_s7 + $0x514] sm:$0xf0]  ;;  %v9319_v33 = vor.u32 %v10341_v10, %v9318_v21  ;;  %v9798_v45 = vld [vmem:[%s13730_s7 + $0x7c8] sm:$0xf] }
 0x897   : > { %7464 = vmatpush.bf16.msrb.mxu3 %v9271_v54  ;;  %v7635_v48 = vmax.f32 %v7316_v46, %v7631_v26  ;;  %v10361_v54 = vld [vmem:[%s13730_s7 + $0x4b4] sm:$0xf0]  ;;  %v9734_v21 = vld [vmem:[%s13730_s7 + $0x748] sm:$0xf] }
 0x898   : > { %v7304_v17 = vpop.f32.mrf.mxu2  ;;  %v9399_v6 = vor.u32 %v10361_v54, %v9398_v14  ;;  %v10381_v46 = vld [vmem:[%s13730_s7 + $0x554] sm:$0xf0]  ;;  %v9654_v14 = vld [vmem:[%s13730_s7 + $0x6a8] sm:$0xf] }
 0x899   : > { %v7639_v23 = vpack.c.bf16 %v7635_v48, %v7635_v48  ;;  %v7317_v32 = vpop.f32.mrf.mxu3  ;;  %v10377_v48 = vld [vmem:[%s13730_s7 + $0x534] sm:$0xf0]  ;;  %v9446_v17 = vld [vmem:[%s13730_s7 + $0x508] sm:$0xf] }
 0x89a   : > { %7452 = vmatpush.bf16.msrb.mxu2 %v9127_v12  ;;  %v10357_v12 = vld [vmem:[%s13730_s7 + $0x494] sm:$0xf0] }
 0x89b   : > { %7465 = vmatpush.bf16.msrb.mxu3 %v9255_v9  ;;  %8041 = vmatmul.bf16.vlgmr.msrb.gmra.mxu0 %v7639_v23  ;;  %v9510_v9 = vld [vmem:[%s13730_s7 + $0x588] sm:$0xf]  ;;  %v9383_v28 = vor.u32 %v10357_v12, %v9382_v50  ;;  %v10465_v32 = vld [vmem:[%s13730_s7 + $0x7f4] sm:$0xf0] }
 0x89c   : > { %v9511_v40 = vor.u32 %v10389_v58, %v9510_v9  ;;  %v10461_v37 = vld [vmem:[%s13730_s7 + $0x7d4] sm:$0xf0]  ;;  %v9783_v9 = vor.u32 %v10457_v62, %v9782_v34  ;;  %v9638_v58 = vld [vmem:[%s13730_s7 + $0x688] sm:$0xf]  ;;  %v10239_v34 = vld [vmem:[%s13730_s7 + $0xec] sm:$0xf] }
 0x89d   : > { %v10425_v54 = vld [vmem:[%s13730_s7 + $0x6b4] sm:$0xf0]  ;;  %v8920_v62 = vld [vmem:[%s13730_s7 + $0xf8] sm:$0xf0] }
 0x89e   : > { %7453 = vmatpush.bf16.msrb.mxu2 %v9111_v22  ;;  %v9366_v22 = vld [vmem:[%s13730_s7 + $0x468] sm:$0xf]  ;;  %v9655_v12 = vor.u32 %v10425_v54, %v9654_v14  ;;  %v10445_v10 = vld [vmem:[%s13730_s7 + $0x754] sm:$0xf0] }
 0x89f   : > { %7466 = vmatpush.bf16.msrb.mxu3 %v9239_v49  ;;  %v10353_v49 = vld [vmem:[%s13730_s7 + $0x474] sm:$0xf0] }
 0x8a0   : > { %v13045_v38 = vpop.f32.mrf.mxu2  ;;  %v9367_v36 = vor.u32 %v10353_v49, %v9366_v22  ;;  %v9886_v22 = vld [vmem:[#allocation5 + $0x80] sm:$0xf]  ;;  %v10437_v54 = vld [vmem:[%s13730_s7 + $0x714] sm:$0xf0] }
 0x8a1   : > { %v13053_v61 = vpop.f32.mrf.mxu3 }
 0x8a2   : > { %7454 = vmatpush.bf16.msrb.mxu2 %v9095_v56  ;;  %v9478_v56 = vld [vmem:[%s13730_s7 + $0x548] sm:$0xf] }
 0x8a3   : > { %7467 = vmatpush.bf16.msrb.mxu3 %v9223_v24  ;;  %v9351_v24 = vor.u32 %v10349_v16, %v9350_v55  ;;  %v9479_v42 = vor.u32 %v10381_v46, %v9478_v56  ;;  %v10417_v55 = vld [vmem:[%s13730_s7 + $0x674] sm:$0xf0]  ;;  %v9947_v56 = vor.u32 %v10496_v11, %v9944_v52  ;;  %v9750_v46 = vld [vmem:[%s13730_s7 + $0x768] sm:$0xf]  ;;  %v8904_v11 = vld [vmem:[%s13730_s7 + $0xd8] sm:$0xf0] }
 0x8a4   : > { %v9912_v52 = vld [vmem:[#allocation5 + $0xb8] sm:$0xf0] }
 0x8a6   : > { %7455 = vmatpush.bf16.msrb.mxu2 %v9079_v20  ;;  %v9462_v20 = vld [vmem:[%s13730_s7 + $0x528] sm:$0xf] }
 0x8a7   : > { %7468 = vmatpush.bf16.msrb.mxu3 %v9207_v60  ;;  %v9335_v60 = vor.u32 %v10345_v30, %v9334_v0  ;;  %v9463_v25 = vor.u32 %v10377_v48, %v9462_v20  ;;  %v10494_v0 = vld [vmem:[#allocation5 + $0xe4] sm:$0xf]  ;;  %v9936_v30 = vld [vmem:[#allocation5 + $0xe8] sm:$0xf0]  ;;  %v9606_v48 = vld [vmem:[%s13730_s7 + $0x648] sm:$0xf] }
 0x8a8   : > { %v7330_v63 = vpop.f32.mrf.mxu2 }
 0x8a9   : > { %v7343_v35 = vpop.f32.mrf.mxu3  ;;  %v9766_v63 = vld [vmem:[%s13730_s7 + $0x788] sm:$0xf] }
 0x8aa   : > { %7456 = vmatpush.bf16.msrb.mxu2 %v9063_v15  ;;  %v9447_v15 = vor.u32 %v10373_v1, %v9446_v17  ;;  %v10483_v35 = vld [vmem:[#allocation5 + $0x84] sm:$0xf0]  ;;  %v10492_v1 = vld [vmem:[#allocation5 + $0xd4] sm:$0xf] }
 0x8ab   : > { %7469 = vmatpush.bf16.msrb.mxu3 %v9191_v13  ;;  %8093 = vmatmul.bf16.vlgmr.msra.gmra.mxu0 %v7639_v23  ;;  %v9814_v23 = vld [vmem:[%s13730_s7 + $0x7e8] sm:$0xf]  ;;  %v9687_v13 = vor.u32 %v10433_v44, %v9686_v8  ;;  %v9887_v16 = vor.u32 %v10483_v35, %v9886_v22  ;;  %v9928_v8 = vld [vmem:[#allocation5 + $0xd8] sm:$0xf0]  ;;  %v10235_v35 = vld [vmem:[%s13730_s7 + $0xcc] sm:$0xf] }
 0x8ad   : > { %7457 = vmatmul.bf16.vlgmr.msrb.gmra.mxu2 %v12203_v41 }
 0x8ae   : > { %7475 = vmatpush.bf16.msra.mxu2 %v9431_v43  ;;  %7470 = vmatmul.bf16.vlgmr.msrb.gmra.mxu3 %v12215_v51 }
 0x8af   : > { %7488 = vmatpush.bf16.msra.mxu3 %v9559_v31  ;;  %v9815_v31 = vor.u32 %v10465_v32, %v9814_v23  ;;  %v9735_v23 = vor.u32 %v10445_v10, %v9734_v21  ;;  %v9590_v32 = vld [vmem:[%s13730_s7 + $0x628] sm:$0xf]  ;;  %v9896_v10 = vld [vmem:[#allocation5 + $0x98] sm:$0xf0] }
 0x8b0   : > { %v13099_v19 = vpop.f32.mrf.mxu2 }
 0x8b1   : > { %v13107_v26 = vpop.f32.mrf.mxu3 }
 0x8b2   : > { %7476 = vmatpush.bf16.msra.mxu2 %v9415_v47  ;;  %v9671_v47 = vor.u32 %v10429_v53, %v9670_v27  ;;  %v10490_v27 = vld [vmem:[#allocation5 + $0xc4] sm:$0xf]  ;;  %v9920_v53 = vld [vmem:[#allocation5 + $0xc8] sm:$0xf0] }
 0x8b3   : > { %7489 = vmatpush.bf16.msra.mxu3 %v9543_v59  ;;  %v9799_v59 = vor.u32 %v10461_v37, %v9798_v45  ;;  %v9574_v37 = vld [vmem:[%s13730_s7 + $0x608] sm:$0xf]  ;;  %v9923_v14 = vor.u32 %v10490_v27, %v9920_v53  ;;  %v10223_v27 = vld [vmem:[%s13730_s7 + $0x6c] sm:$0xf] }
 0x8b6   : > { %7477 = vmatpush.bf16.msra.mxu2 %v9399_v6  ;;  %v9894_v6 = vld [vmem:[#allocation5 + $0x90] sm:$0xf] }
 0x8b7   : > { %7490 = vmatpush.bf16.msra.mxu3 %v9527_v4  ;;  %v10485_v4 = vld [vmem:[#allocation5 + $0x94] sm:$0xf0] }
 0x8b8   : > { %v7356_v7 = vpop.f32.mrf.mxu2  ;;  %v9895_v50 = vor.u32 %v10485_v4, %v9894_v6  ;;  %v10271_v6 = vld [vmem:[%s13730_s7 + $0x1ec] sm:$0xf]  ;;  %v9048_v4 = vld [vmem:[%s13730_s7 + $0x1f8] sm:$0xf0] }
 0x8b9   : > { %v7369_v43 = vpop.f32.mrf.mxu3  ;;  %v9931_v7 = vor.u32 %v10492_v1, %v9928_v8  ;;  %v10227_v1 = vld [vmem:[%s13730_s7 + $0x8c] sm:$0xf]  ;;  %v8872_v8 = vld [vmem:[%s13730_s7 + $0x98] sm:$0xf0] }
 0x8ba   : > { %7478 = vmatpush.bf16.msra.mxu2 %v9383_v28  ;;  %v10421_v28 = vld [vmem:[%s13730_s7 + $0x694] sm:$0xf0]  ;;  %8052 = vmatpush.bf16.msrb.mxu1 %v9895_v50 }
 0x8bb   : > { %7491 = vmatpush.bf16.msra.mxu3 %v9511_v40  ;;  %v10453_v40 = vld [vmem:[%s13730_s7 + $0x794] sm:$0xf0]  ;;  %v9639_v49 = vor.u32 %v10421_v28, %v9638_v58 }
 0x8bc   : > { %v10441_v43 = vld [vmem:[%s13730_s7 + $0x734] sm:$0xf0] }
 0x8be   : > { %7479 = vmatpush.bf16.msra.mxu2 %v9367_v36  ;;  %v9767_v36 = vor.u32 %v10453_v40, %v9766_v63  ;;  %8053 = vmatpush.bf16.msrb.mxu1 %v9887_v16  ;;  %v8923_v63 = vor.u32 %v10239_v34, %v8920_v62  ;;  %v10488_v40 = vld [vmem:[#allocation5 + $0xb4] sm:$0xf]  ;;  %v10219_v34 = vld [vmem:[%s13730_s7 + $0x4c] sm:$0xf] }
 0x8bf   : > { %7492 = vmatpush.bf16.msra.mxu3 %v9495_v57  ;;  %v9622_v57 = vld [vmem:[%s13730_s7 + $0x668] sm:$0xf]  ;;  %v10251_v62 = vld [vmem:[%s13730_s7 + $0x14c] sm:$0xf] }
 0x8c2   : > { %7480 = vmatpush.bf16.msra.mxu2 %v9351_v24  ;;  %v10449_v24 = vld [vmem:[%s13730_s7 + $0x774] sm:$0xf0]  ;;  %8098 = vmatpush.bf16.msra.mxu1 %v9947_v56  ;;  %v8907_v56 = vor.u32 %v10235_v35, %v8904_v11  ;;  %v10211_v11 = vld [vmem:[%s13730_s7 + $0xc] sm:$0xf] }
 0x8c3   : > { %7493 = vmatpush.bf16.msra.mxu3 %v9479_v42  ;;  %v9623_v42 = vor.u32 %v10417_v55, %v9622_v57  ;;  %v9751_v20 = vor.u32 %v10449_v24, %v9750_v46  ;;  %v9032_v57 = vld [vmem:[%s13730_s7 + $0x1d8] sm:$0xf0]  ;;  %v9915_v55 = vor.u32 %v10488_v40, %v9912_v52  ;;  %v10486_v46 = vld [vmem:[#allocation5 + $0xa4] sm:$0xf]  ;;  %v9904_v24 = vld [vmem:[#allocation5 + $0xa8] sm:$0xf0] }
 0x8c6   : > { %7481 = vmatpush.bf16.msra.mxu2 %v9335_v60  ;;  %v10413_v60 = vld [vmem:[%s13730_s7 + $0x654] sm:$0xf0] }
 0x8c7   : > { %7494 = vmatpush.bf16.msra.mxu3 %v9463_v25  ;;  %v9939_v25 = vor.u32 %v10494_v0, %v9936_v30  ;;  %v9607_v17 = vor.u32 %v10413_v60, %v9606_v48  ;;  %v10231_v0 = vld [vmem:[%s13730_s7 + $0xac] sm:$0xf]  ;;  %v8888_v30 = vld [vmem:[%s13730_s7 + $0xb8] sm:$0xf0]  ;;  %v10484_v60 = vld [vmem:[#allocation5 + $0x94] sm:$0xf] }
 0x8c8   : > { %v9016_v48 = vld [vmem:[%s13730_s7 + $0x1b8] sm:$0xf0]  ;;  %v8891_v21 = vor.u32 %v10231_v0, %v8888_v30 }
 0x8c9   : > { %8099 = vmatpush.bf16.msra.mxu1 %v9939_v25 }
 0x8ca   : > { %7482 = vmatpush.bf16.msra.mxu2 %v9319_v33  ;;  %v10409_v33 = vld [vmem:[%s13730_s7 + $0x634] sm:$0xf0] }
 0x8cb   : > { %7495 = vmatpush.bf16.msra.mxu3 %v9447_v15 }
 0x8cd   : > { %7483 = vmatmul.bf16.vlgmr.msra.gmra.mxu2 %v12261_v29  ;;  %8100 = vmatpush.bf16.msra.mxu1 %v9931_v7  ;;  %v10482_v7 = vld [vmem:[#allocation5 + $0x84] sm:$0xf] }
 0x8ce   : > { %7501 = vmatpush.bf16.msrb.mxu2 %v9687_v13  ;;  %7496 = vmatmul.bf16.vlgmr.msra.gmra.mxu3 %v12263_v5  ;;  %v9718_v13 = vld [vmem:[%s13730_s7 + $0x728] sm:$0xf] }
 0x8cf   : > { %7514 = vmatpush.bf16.msrb.mxu3 %v9815_v31  ;;  %v9591_v31 = vor.u32 %v10409_v33, %v9590_v32  ;;  %v9719_v45 = vor.u32 %v10441_v43, %v9718_v13  ;;  %v9000_v33 = vld [vmem:[%s13730_s7 + $0x198] sm:$0xf0]  ;;  %v8875_v13 = vor.u32 %v10227_v1, %v8872_v8  ;;  %v9888_v43 = vld [vmem:[#allocation5 + $0x88] sm:$0xf0] }
 0x8d0   : > { %v13201_v44 = vpop.f32.mrf.mxu2  ;;  %v9891_v53 = vor.u32 %v10482_v7, %v9888_v43  ;;  %v10331_v1 = vld [vmem:[%s13730_s7 + $0x3cc] sm:$0xf]  ;;  %v9288_v8 = vld [vmem:[%s13730_s7 + $0x3d8] sm:$0xf0] }
 0x8d1   : > { %v13209_v15 = vpop.f32.mrf.mxu3  ;;  %8101 = vmatpush.bf16.msra.mxu1 %v9923_v14  ;;  %v10327_v7 = vld [vmem:[%s13730_s7 + $0x3ac] sm:$0xf] }
 0x8d2   : > { %7502 = vmatpush.bf16.msrb.mxu2 %v9671_v47  ;;  %v10405_v47 = vld [vmem:[%s13730_s7 + $0x614] sm:$0xf0] }
 0x8d3   : > { %7515 = vmatpush.bf16.msrb.mxu3 %v9799_v59  ;;  %v9702_v59 = vld [vmem:[%s13730_s7 + $0x708] sm:$0xf]  ;;  %v9575_v50 = vor.u32 %v10405_v47, %v9574_v37  ;;  %v10255_v37 = vld [vmem:[%s13730_s7 + $0x16c] sm:$0xf]  ;;  %v8984_v47 = vld [vmem:[%s13730_s7 + $0x178] sm:$0xf0] }
 0x8d4   : > { %v9703_v28 = vor.u32 %v10437_v54, %v9702_v59  ;;  %v8987_v54 = vor.u32 %v10255_v37, %v8984_v47  ;;  %v10287_v37 = vld [vmem:[%s13730_s7 + $0x26c] sm:$0xf]  ;;  %v9112_v47 = vld [vmem:[%s13730_s7 + $0x278] sm:$0xf0] }
 0x8d5   : > { %8102 = vmatpush.bf16.msra.mxu1 %v9915_v55  ;;  %v8936_v55 = vld [vmem:[%s13730_s7 + $0x118] sm:$0xf0] }
 0x8d6   : > { %7503 = vmatpush.bf16.msrb.mxu2 %v9655_v12  ;;  %v13244_v12 = vld [vmem:[%s13731_s8] sm:$0xf] }
 0x8d7   : > { %7516 = vmatpush.bf16.msrb.mxu3 %v9783_v9  ;;  %v5928_v9 = vperm.slane %v13244_v12, 1 }
 0x8d8   : > { %v7382_v58 = vpop.f32.mrf.mxu2 }
 0x8d9   : > { %v7395_v22 = vpop.f32.mrf.mxu3  ;;  %v7329_v16 = vadd.f32 %v13045_v38, %v5928_v9  ;;  %v10263_v38 = vld [vmem:[%s13730_s7 + $0x1ac] sm:$0xf] }
 0x8da   : > { %7504 = vmatpush.bf16.msrb.mxu2 %v9639_v49  ;;  %v9051_v49 = vor.u32 %v10271_v6, %v9048_v4  ;;  %v10215_v58 = vld [vmem:[%s13730_s7 + $0x2c] sm:$0xf] }
 0x8db   : > { %7517 = vmatpush.bf16.msrb.mxu3 %v9767_v36  ;;  %v10267_v36 = vld [vmem:[%s13730_s7 + $0x1cc] sm:$0xf]  ;;  %v7342_v25 = vadd.f32 %v13053_v61, %v7329_v16 }
 0x8dc   : > { %v10259_v61 = vld [vmem:[%s13730_s7 + $0x18c] sm:$0xf] }
 0x8dd   : > { %v7355_v32 = vadd.f32 %v13099_v19, %v7342_v25  ;;  %v8856_v19 = vld [vmem:[%s13730_s7 + $0x78] sm:$0xf0]  ;;  %v10247_v22 = vld [vmem:[%s13730_s7 + $0x12c] sm:$0xf] }
 0x8de   : > { %7505 = vmatpush.bf16.msrb.mxu2 %v9623_v42  ;;  %v9035_v42 = vor.u32 %v10267_v36, %v9032_v57  ;;  %v8859_v14 = vor.u32 %v10223_v27, %v8856_v19  ;;  %v8808_v36 = vld [vmem:[%s13730_s7 + $0x18] sm:$0xf0]  ;;  %v10243_v57 = vld [vmem:[%s13730_s7 + $0x10c] sm:$0xf] }
 0x8df   : > { %7518 = vmatpush.bf16.msrb.mxu3 %v9751_v20  ;;  %v9907_v20 = vor.u32 %v10486_v46, %v9904_v24  ;;  %v9176_v46 = vld [vmem:[%s13730_s7 + $0x2f8] sm:$0xf0]  ;;  %v10335_v24 = vld [vmem:[%s13730_s7 + $0x3ec] sm:$0xf]  ;;  %v8811_v30 = vor.u32 %v10211_v11, %v8808_v36 }
 0x8e0   : > { %v10291_v27 = vld [vmem:[%s13730_s7 + $0x28c] sm:$0xf] }
 0x8e1   : > { %8103 = vmatpush.bf16.msra.mxu1 %v9907_v20  ;;  %v10323_v19 = vld [vmem:[%s13730_s7 + $0x38c] sm:$0xf] }
 0x8e2   : > { %7506 = vmatpush.bf16.msrb.mxu2 %v9607_v17  ;;  %v9019_v17 = vor.u32 %v10263_v38, %v9016_v48  ;;  %v8939_v38 = vor.u32 %v10243_v57, %v8936_v55  ;;  %v10275_v36 = vld [vmem:[%s13730_s7 + $0x20c] sm:$0xf]  ;;  %v9064_v57 = vld [vmem:[%s13730_s7 + $0x218] sm:$0xf0] }
 0x8e3   : > { %7519 = vmatpush.bf16.msrb.mxu3 %v9735_v23  ;;  %v9899_v23 = vor.u32 %v10484_v60, %v9896_v10  ;;  %v10299_v10 = vld [vmem:[%s13730_s7 + $0x2cc] sm:$0xf] }
 0x8e4   : > { %v10307_v55 = vld [vmem:[%s13730_s7 + $0x30c] sm:$0xf] }
 0x8e5   : > { %8104 = vmatpush.bf16.msra.mxu1 %v9899_v23 }
 0x8e6   : > { %7507 = vmatpush.bf16.msrb.mxu2 %v9591_v31  ;;  %v9003_v31 = vor.u32 %v10259_v61, %v9000_v33  ;;  %v10295_v61 = vld [vmem:[%s13730_s7 + $0x2ac] sm:$0xf]  ;;  %v9144_v33 = vld [vmem:[%s13730_s7 + $0x2b8] sm:$0xf0] }
 0x8e7   : > { %7520 = vmatpush.bf16.msrb.mxu3 %v9719_v45  ;;  %v7368_v45 = vadd.f32 %v13107_v26, %v7355_v32  ;;  %v8840_v26 = vld [vmem:[%s13730_s7 + $0x58] sm:$0xf0]  ;;  %v9291_v32 = vor.u32 %v10331_v1, %v9288_v8  ;;  %v9147_v43 = vor.u32 %v10295_v61, %v9144_v33  ;;  %v10391_v61 = vld [vmem:[%s13730_s7 + $0x5ac] sm:$0xf] }
 0x8e8   : > { %v8843_v4 = vor.u32 %v10219_v34, %v8840_v26  ;;  %v10283_v26 = vld [vmem:[%s13730_s7 + $0x24c] sm:$0xf]  ;;  %v9528_v33 = vld [vmem:[%s13730_s7 + $0x5b8] sm:$0xf0] }
 0x8e9   : > { %v7381_v59 = vadd.f32 %v13201_v44, %v7368_v45  ;;  %8105 = vmatpush.bf16.msra.mxu1 %v9891_v53  ;;  %v8968_v44 = vld [vmem:[%s13730_s7 + $0x158] sm:$0xf0] }
 0x8ea   : > { %7508 = vmatpush.bf16.msrb.mxu2 %v9575_v50  ;;  %v8971_v9 = vor.u32 %v10251_v62, %v8968_v44  ;;  %v9096_v62 = vld [vmem:[%s13730_s7 + $0x258] sm:$0xf0]  ;;  %v5929_v44 = vperm.slane %v13244_v12, 2 }
 0x8eb   : > { %7521 = vmatpush.bf16.msrb.mxu3 %v9703_v28  ;;  %v7394_v6 = vadd.f32 %v13209_v15, %v7381_v59  ;;  %v8824_v28 = vld [vmem:[%s13730_s7 + $0x38] sm:$0xf0]  ;;  %v10319_v59 = vld [vmem:[%s13730_s7 + $0x36c] sm:$0xf] }
 0x8ec   : > { %v8952_v15 = vld [vmem:[%s13730_s7 + $0x138] sm:$0xf0]  ;;  %v8827_v35 = vor.u32 %v10215_v58, %v8824_v28  ;;  %v10279_v28 = vld [vmem:[%s13730_s7 + $0x22c] sm:$0xf] }
 0x8ed   : > { %7509 = vmatmul.bf16.vlgmr.msrb.gmra.mxu2 %v12533_v39  ;;  %v8955_v52 = vor.u32 %v10247_v22, %v8952_v15  ;;  %v10311_v15 = vld [vmem:[%s13730_s7 + $0x32c] sm:$0xf] }
 0x8ee   : > { %7527 = vmatpush.bf16.msra.mxu2 %v8923_v63  ;;  %7522 = vmatmul.bf16.vlgmr.msrb.gmra.mxu3 %v12542_v18 }
 0x8ef   : > { %7540 = vmatpush.bf16.msra.mxu3 %v9051_v49 }
 0x8f0   : > { %v7406_v50 = vpop.f32.mrf.mxu2 }
 0x8f1   : > { %v7407_v63 = vadd.f32 %v7406_v50, %v7394_v6  ;;  %v7419_v40 = vpop.f32.mrf.mxu3  ;;  %v10315_v6 = vld [vmem:[%s13730_s7 + $0x34c] sm:$0xf]  ;;  %v9099_v50 = vor.u32 %v10283_v26, %v9096_v62  ;;  %v9480_v62 = vld [vmem:[%s13730_s7 + $0x558] sm:$0xf0] }
 0x8f2   : > { %7528 = vmatpush.bf16.msra.mxu2 %v8907_v56  ;;  %v10303_v56 = vld [vmem:[%s13730_s7 + $0x2ec] sm:$0xf] }
 0x8f3   : > { %7541 = vmatpush.bf16.msra.mxu3 %v9035_v42  ;;  %v7420_v49 = vadd.f32 %v7419_v40, %v7407_v63  ;;  %v9304_v42 = vld [vmem:[%s13730_s7 + $0x3f8] sm:$0xf0]  ;;  %v9179_v48 = vor.u32 %v10303_v56, %v9176_v46  ;;  %v10367_v56 = vld [vmem:[%s13730_s7 + $0x4ec] sm:$0xf] }
 0x8f4   : > { %v9080_v63 = vld [vmem:[%s13730_s7 + $0x238] sm:$0xf0]  ;;  %v10379_v26 = vld [vmem:[%s13730_s7 + $0x54c] sm:$0xf] }
 0x8f5   : > { %v7632_v16 = vmul.f32 0.2, %v7420_v49  ;;  %v9083_v11 = vor.u32 %v10279_v28, %v9080_v63  ;;  %v9432_v46 = vld [vmem:[%s13730_s7 + $0x4f8] sm:$0xf0]  ;;  %v10375_v28 = vld [vmem:[%s13730_s7 + $0x52c] sm:$0xf] }
 0x8f6   : > { %7529 = vmatpush.bf16.msra.mxu2 %v8891_v21  ;;  %v9307_v21 = vor.u32 %v10335_v24, %v9304_v42  ;;  %v10399_v24 = vld [vmem:[%s13730_s7 + $0x5ec] sm:$0xf]  ;;  %v9560_v42 = vld [vmem:[%s13730_s7 + $0x5f8] sm:$0xf0] }
 0x8f7   : > { %7542 = vmatpush.bf16.msra.mxu3 %v9019_v17  ;;  %v7636_v0 = vmax.f32 %v7420_v49, %v7632_v16  ;;  %v9160_v17 = vld [vmem:[%s13730_s7 + $0x2d8] sm:$0xf0] }
 0x8f8   : > { %v7408_v20 = vpop.f32.mrf.mxu2  ;;  %v9163_v23 = vor.u32 %v10299_v10, %v9160_v17  ;;  %v9208_v49 = vld [vmem:[%s13730_s7 + $0x338] sm:$0xf0]  ;;  %v10395_v10 = vld [vmem:[%s13730_s7 + $0x5cc] sm:$0xf] }
 0x8f9   : > { %v7640_v60 = vpack.c.bf16 %v7636_v0, %v7636_v0  ;;  %v7421_v25 = vpop.f32.mrf.mxu3  ;;  %v9192_v16 = vld [vmem:[%s13730_s7 + $0x318] sm:$0xf0]  ;;  %v9067_v0 = vor.u32 %v10275_v36, %v9064_v57  ;;  %v10431_v57 = vld [vmem:[%s13730_s7 + $0x6ec] sm:$0xf] }
 0x8fa   : > { %7530 = vmatpush.bf16.msra.mxu2 %v8875_v13  ;;  %v9272_v13 = vld [vmem:[%s13730_s7 + $0x3b8] sm:$0xf0]  ;;  %v9195_v20 = vor.u32 %v10307_v55, %v9192_v16  ;;  %v10363_v25 = vld [vmem:[%s13730_s7 + $0x4cc] sm:$0xf] }
 0x8fb   : > { %7543 = vmatpush.bf16.msra.mxu3 %v9003_v31  ;;  %8054 = vmatmul.bf16.vlgmr.msrb.gmra.mxu1 %v7640_v60  ;;  %v9275_v31 = vor.u32 %v10327_v7, %v9272_v13  ;;  %v9544_v17 = vld [vmem:[%s13730_s7 + $0x5d8] sm:$0xf0]  ;;  %v10463_v16 = vld [vmem:[%s13730_s7 + $0x7ec] sm:$0xf] }
 0x8fc   : > { %v9547_v8 = vor.u32 %v10395_v10, %v9544_v17  ;;  %v9464_v63 = vld [vmem:[%s13730_s7 + $0x538] sm:$0xf0] }
 0x8fd   : > { %v9448_v36 = vld [vmem:[%s13730_s7 + $0x518] sm:$0xf0] }
 0x8fe   : > { %7531 = vmatpush.bf16.msra.mxu2 %v8859_v14  ;;  %v9240_v14 = vld [vmem:[%s13730_s7 + $0x378] sm:$0xf0] }
 0x8ff   : > { %7544 = vmatpush.bf16.msra.mxu3 %v8987_v54  ;;  %v9115_v54 = vor.u32 %v10287_v37, %v9112_v47  ;;  %v9243_v34 = vor.u32 %v10319_v59, %v9240_v14  ;;  %v9496_v37 = vld [vmem:[%s13730_s7 + $0x578] sm:$0xf0] }
 0x900   : > { %v9688_v55 = vld [vmem:[%s13730_s7 + $0x6f8] sm:$0xf0] }
 0x902   : > { %7532 = vmatpush.bf16.msra.mxu2 %v8843_v4  ;;  %v9224_v4 = vld [vmem:[%s13730_s7 + $0x358] sm:$0xf0] }
 0x903   : > { %7545 = vmatpush.bf16.msra.mxu3 %v8971_v9  ;;  %v9227_v58 = vor.u32 %v10315_v6, %v9224_v4  ;;  %v9483_v4 = vor.u32 %v10379_v26, %v9480_v62  ;;  %v10407_v26 = vld [vmem:[%s13730_s7 + $0x62c] sm:$0xf]  ;;  %v9592_v62 = vld [vmem:[%s13730_s7 + $0x638] sm:$0xf0] }
 0x906   : > { %7533 = vmatpush.bf16.msra.mxu2 %v8827_v35 }
 0x907   : > { %7546 = vmatpush.bf16.msra.mxu3 %v8955_v52  ;;  %v9211_v52 = vor.u32 %v10311_v15, %v9208_v49  ;;  %v9467_v15 = vor.u32 %v10375_v28, %v9464_v63  ;;  %v10339_v49 = vld [vmem:[%s13730_s7 + $0x40c] sm:$0xf] }
 0x908   : > { %v10403_v63 = vld [vmem:[%s13730_s7 + $0x60c] sm:$0xf] }
 0x90a   : > { %7534 = vmatpush.bf16.msra.mxu2 %v8811_v30 }
 0x90b   : > { %7547 = vmatpush.bf16.msra.mxu3 %v8939_v38  ;;  %8106 = vmatmul.bf16.vlgmr.msra.gmra.mxu1 %v7640_v60  ;;  %v9435_v38 = vor.u32 %v10367_v56, %v9432_v46  ;;  %v9563_v60 = vor.u32 %v10399_v24, %v9560_v42  ;;  %v9816_v56 = vld [vmem:[%s13730_s7 + $0x7f8] sm:$0xf0] }
 0x90d   : > { %7535 = vmatmul.bf16.vlgmr.msra.gmra.mxu2 %v12128_v2  ;;  %v9128_v2 = vld [vmem:[%s13730_s7 + $0x298] sm:$0xf0] }
 0x90e   : > { %7553 = vmatpush.bf16.msrb.mxu2 %v9179_v48  ;;  %7548 = vmatmul.bf16.vlgmr.msra.gmra.mxu3 %v12146_v3  ;;  %v9256_v3 = vld [vmem:[%s13730_s7 + $0x398] sm:$0xf0]  ;;  %v9131_v53 = vor.u32 %v10291_v27, %v9128_v2  ;;  %v10387_v27 = vld [vmem:[%s13730_s7 + $0x58c] sm:$0xf] }
 0x90f   : > { %7566 = vmatpush.bf16.msrb.mxu3 %v9307_v21  ;;  %v9259_v45 = vor.u32 %v10323_v19, %v9256_v3  ;;  %v9416_v21 = vld [vmem:[%s13730_s7 + $0x4d8] sm:$0xf0]  ;;  %v10351_v3 = vld [vmem:[%s13730_s7 + $0x46c] sm:$0xf] }
 0x910   : > { %v7432_v9 = vpop.f32.mrf.mxu2  ;;  %v9419_v1 = vor.u32 %v10363_v25, %v9416_v21  ;;  %v9800_v25 = vld [vmem:[%s13730_s7 + $0x7d8] sm:$0xf0] }
 0x911   : > { %v7433_v40 = vadd.f32 %v7432_v9, %v5929_v44  ;;  %v7445_v22 = vpop.f32.mrf.mxu3  ;;  %v9336_v9 = vld [vmem:[%s13730_s7 + $0x438] sm:$0xf0] }
 0x912   : > { %7554 = vmatpush.bf16.msrb.mxu2 %v9163_v23  ;;  %v10359_v23 = vld [vmem:[%s13730_s7 + $0x4ac] sm:$0xf] }
 0x913   : > { %7567 = vmatpush.bf16.msrb.mxu3 %v9291_v32  ;;  %v13426_v35 = vadd.f32 %v7445_v22, %v7433_v40  ;;  %v9400_v32 = vld [vmem:[%s13730_s7 + $0x4b8] sm:$0xf0] }
 0x914   : > { %v9403_v7 = vor.u32 %v10359_v23, %v9400_v32  ;;  %v10455_v23 = vld [vmem:[%s13730_s7 + $0x7ac] sm:$0xf]  ;;  %v9784_v32 = vld [vmem:[%s13730_s7 + $0x7b8] sm:$0xf0] }
 0x916   : > { %7555 = vmatpush.bf16.msrb.mxu2 %v9147_v43  ;;  %v9531_v43 = vor.u32 %v10391_v61, %v9528_v33  ;;  %v9787_v33 = vor.u32 %v10455_v23, %v9784_v32  ;;  %v9966_v23 = vld [vmem:[#allocation5 + $0x120] sm:$0xf] }
 0x917   : > { %7568 = vmatpush.bf16.msrb.mxu3 %v9275_v31  ;;  %v9384_v31 = vld [vmem:[%s13730_s7 + $0x498] sm:$0xf0] }
 0x918   : > { %v7434_v30 = vpop.f32.mrf.mxu2  ;;  %v13478_v13 = vpop.f32.mrf.mxu0 }
 0x919   : > { %v7447_v48 = vpop.f32.mrf.mxu3 }
 0x91a   : > { %7556 = vmatpush.bf16.msrb.mxu2 %v9131_v53  ;;  %v9368_v53 = vld [vmem:[%s13730_s7 + $0x478] sm:$0xf0] }
 0x91b   : > { %7569 = vmatpush.bf16.msrb.mxu3 %v9259_v45  ;;  %v10383_v45 = vld [vmem:[%s13730_s7 + $0x56c] sm:$0xf]  ;;  %v9371_v47 = vor.u32 %v10351_v3, %v9368_v53  ;;  %v9672_v48 = vld [vmem:[%s13730_s7 + $0x6d8] sm:$0xf0] }
 0x91c   : > { %v9499_v14 = vor.u32 %v10383_v45, %v9496_v37  ;;  %v10411_v45 = vld [vmem:[%s13730_s7 + $0x64c] sm:$0xf]  ;;  %v9608_v37 = vld [vmem:[%s13730_s7 + $0x658] sm:$0xf0] }
 0x91e   : > { %7557 = vmatpush.bf16.msrb.mxu2 %v9115_v54  ;;  %v10347_v54 = vld [vmem:[%s13730_s7 + $0x44c] sm:$0xf] }
 0x91f   : > { %7570 = vmatpush.bf16.msrb.mxu3 %v9243_v34  ;;  %v9352_v34 = vld [vmem:[%s13730_s7 + $0x458] sm:$0xf0] }
 0x920   : > { %v8044_v59 = vpop.f32.mrf.mxu0  ;;  %v9355_v44 = vor.u32 %v10347_v54, %v9352_v34 }
 0x921   : > { %v9736_v59 = vld [vmem:[%s13730_s7 + $0x758] sm:$0xf0] }
 0x922   : > { %7558 = vmatpush.bf16.msrb.mxu2 %v9099_v50  ;;  %v10343_v50 = vld [vmem:[%s13730_s7 + $0x42c] sm:$0xf] }
 0x923   : > { %7571 = vmatpush.bf16.msrb.mxu3 %v9227_v58  ;;  %v9339_v40 = vor.u32 %v10343_v50, %v9336_v9  ;;  %v9720_v50 = vld [vmem:[%s13730_s7 + $0x738] sm:$0xf0]  ;;  %v9595_v9 = vor.u32 %v10407_v26, %v9592_v62 }
 0x926   : > { %7559 = vmatpush.bf16.msrb.mxu2 %v9083_v11  ;;  %v9320_v11 = vld [vmem:[%s13730_s7 + $0x418] sm:$0xf0] }
 0x927   : > { %7572 = vmatpush.bf16.msrb.mxu3 %v9211_v52  ;;  %v10371_v52 = vld [vmem:[%s13730_s7 + $0x50c] sm:$0xf]  ;;  %v9323_v46 = vor.u32 %v10339_v49, %v9320_v11  ;;  %v9704_v49 = vld [vmem:[%s13730_s7 + $0x718] sm:$0xf0]  ;;  %v10006_v11 = vld [vmem:[#allocation5 + $0x170] sm:$0xf] }
 0x928   : > { %v13532_v22 = vpop.f32.mrf.mxu0  ;;  %v9451_v42 = vor.u32 %v10371_v52, %v9448_v36  ;;  %v10513_v52 = vld [vmem:[#allocation5 + $0x174] sm:$0xf0] }
 0x92a   : > { %7560 = vmatpush.bf16.msrb.mxu2 %v9067_v0  ;;  %v9691_v0 = vor.u32 %v10431_v57, %v9688_v55 }
 0x92b   : > { %7573 = vmatpush.bf16.msrb.mxu3 %v9195_v20  ;;  %v9819_v20 = vor.u32 %v10463_v16, %v9816_v56  ;;  %v10007_v16 = vor.u32 %v10513_v52, %v10006_v11  ;;  %v10502_v11 = vld [vmem:[#allocation5 + $0x124] sm:$0xf]  ;;  %v9968_v52 = vld [vmem:[#allocation5 + $0x128] sm:$0xf0] }
 0x92d   : > { %7561 = vmatmul.bf16.vlgmr.msrb.gmra.mxu2 %v12203_v41  ;;  %v10355_v41 = vld [vmem:[%s13730_s7 + $0x48c] sm:$0xf] }
 0x92e   : > { %7579 = vmatpush.bf16.msra.mxu2 %v9435_v38  ;;  %7574 = vmatmul.bf16.vlgmr.msrb.gmra.mxu3 %v12215_v51  ;;  %v9512_v51 = vld [vmem:[%s13730_s7 + $0x598] sm:$0xf0]  ;;  %v9387_v2 = vor.u32 %v10355_v41, %v9384_v31  ;;  %v10427_v38 = vld [vmem:[%s13730_s7 + $0x6cc] sm:$0xf] }
 0x92f   : > { %7592 = vmatpush.bf16.msra.mxu3 %v9563_v60  ;;  %v9515_v19 = vor.u32 %v10387_v27, %v9512_v51  ;;  %v10459_v60 = vld [vmem:[%s13730_s7 + $0x7cc] sm:$0xf]  ;;  %v9675_v10 = vor.u32 %v10427_v38, %v9672_v48  ;;  %v9624_v51 = vld [vmem:[%s13730_s7 + $0x678] sm:$0xf0]  ;;  %v9982_v38 = vld [vmem:[#allocation5 + $0x140] sm:$0xf] }
 0x930   : > { %v13516_v6 = vpop.f32.mrf.mxu2  ;;  %v8096_v21 = vpop.f32.mrf.mxu0  ;;  %v9803_v17 = vor.u32 %v10459_v60, %v9800_v25  ;;  %v10415_v27 = vld [vmem:[%s13730_s7 + $0x66c] sm:$0xf]  ;;  %v10507_v48 = vld [vmem:[#allocation5 + $0x144] sm:$0xf0] }
 0x931   : > { %v13524_v58 = vpop.f32.mrf.mxu3  ;;  %v9627_v3 = vor.u32 %v10415_v27, %v9624_v51  ;;  %v7459_v60 = vadd.f32 %v13516_v6, %v13426_v35  ;;  %v9983_v25 = vor.u32 %v10507_v48, %v9982_v38  ;;  %v9974_v21 = vld [vmem:[#allocation5 + $0x130] sm:$0xf]  ;;  %v10008_v27 = vld [vmem:[#allocation5 + $0x178] sm:$0xf0]  ;;  %v9952_v38 = vld [vmem:[#allocation5 + $0x108] sm:$0xf0] }
 0x932   : > { %7580 = vmatpush.bf16.msra.mxu2 %v9419_v1  ;;  %v10423_v1 = vld [vmem:[%s13730_s7 + $0x6ac] sm:$0xf] }
 0x933   : > { %7593 = vmatpush.bf16.msra.mxu3 %v9547_v8  ;;  %v9656_v8 = vld [vmem:[%s13730_s7 + $0x6b8] sm:$0xf0] }
 0x934   : > { %v9659_v61 = vor.u32 %v10423_v1, %v9656_v8 }
 0x936   : > { %7581 = vmatpush.bf16.msra.mxu2 %v9403_v7  ;;  %v10419_v7 = vld [vmem:[%s13730_s7 + $0x68c] sm:$0xf] }
 0x937   : > { %7594 = vmatpush.bf16.msra.mxu3 %v9531_v43  ;;  %v10451_v43 = vld [vmem:[%s13730_s7 + $0x78c] sm:$0xf] }
 0x938   : > { %v7460_v24 = vpop.f32.mrf.mxu2 }
 0x939   : > { %v7473_v30 = vpop.f32.mrf.mxu3  ;;  %v10511_v24 = vld [vmem:[#allocation5 + $0x164] sm:$0xf0] }
 0x93a   : > { %7582 = vmatpush.bf16.msra.mxu2 %v9387_v2  ;;  %v10447_v2 = vld [vmem:[%s13730_s7 + $0x76c] sm:$0xf]  ;;  %v10509_v30 = vld [vmem:[#allocation5 + $0x154] sm:$0xf0] }
 0x93b   : > { %7595 = vmatpush.bf16.msra.mxu3 %v9515_v19  ;;  %v9752_v19 = vld [vmem:[%s13730_s7 + $0x778] sm:$0xf0] }
 0x93c   : > { %v9755_v53 = vor.u32 %v10447_v2, %v9752_v19 }
 0x93e   : > { %7583 = vmatpush.bf16.msra.mxu2 %v9371_v47  ;;  %v10443_v47 = vld [vmem:[%s13730_s7 + $0x74c] sm:$0xf] }
 0x93f   : > { %7596 = vmatpush.bf16.msra.mxu3 %v9499_v14  ;;  %v9611_v14 = vor.u32 %v10411_v45, %v9608_v37  ;;  %v9739_v34 = vor.u32 %v10443_v47, %v9736_v59  ;;  %v10510_v45 = vld [vmem:[#allocation5 + $0x164] sm:$0xf]  ;;  %v10000_v37 = vld [vmem:[#allocation5 + $0x168] sm:$0xf0]  ;;  %v7707_v47 = vld [vmem:[%s13733_s10] sm:$0x3] }
 0x940   : > { %v7709_v26 = vperm.slane %v7707_v47, 0 }
 0x942   : > { %7584 = vmatpush.bf16.msra.mxu2 %v9355_v44 }
 0x943   : > { %7597 = vmatpush.bf16.msra.mxu3 %v9483_v4  ;;  %v10439_v4 = vld [vmem:[%s13730_s7 + $0x72c] sm:$0xf] }
 0x944   : > { %v9723_v28 = vor.u32 %v10439_v4, %v9720_v50  ;;  %v9984_v4 = vld [vmem:[#allocation5 + $0x148] sm:$0xf0]  ;;  %v8043_v50 = vadd.f32 %v13478_v13, %v7709_v26  ;;  %v10526_v26 = vld [vmem:[#allocation5 + $0x1e4] sm:$0xf] }
 0x946   : > { %7585 = vmatpush.bf16.msra.mxu2 %v9339_v40  ;;  %v9576_v40 = vld [vmem:[%s13730_s7 + $0x618] sm:$0xf0] }
 0x947   : > { %7598 = vmatpush.bf16.msra.mxu3 %v9467_v15  ;;  %v10435_v15 = vld [vmem:[%s13730_s7 + $0x70c] sm:$0xf]  ;;  %v9579_v36 = vor.u32 %v10403_v63, %v9576_v40  ;;  %v10504_v40 = vld [vmem:[#allocation5 + $0x134] sm:$0xf] }
 0x948   : > { %v9707_v55 = vor.u32 %v10435_v15, %v9704_v49  ;;  %v9976_v15 = vld [vmem:[#allocation5 + $0x138] sm:$0xf0] }
 0x949   : > { %v9979_v49 = vor.u32 %v10504_v40, %v9976_v15  ;;  %v10522_v15 = vld [vmem:[#allocation5 + $0x1c4] sm:$0xf] }
 0x94a   : > { %7586 = vmatpush.bf16.msra.mxu2 %v9323_v46  ;;  %v9998_v46 = vld [vmem:[#allocation5 + $0x160] sm:$0xf] }
 0x94b   : > { %7599 = vmatpush.bf16.msra.mxu3 %v9451_v42  ;;  %v9999_v42 = vor.u32 %v10511_v24, %v9998_v46  ;;  %v9960_v46 = vld [vmem:[#allocation5 + $0x118] sm:$0xf0] }
 0x94d   : > { %7587 = vmatmul.bf16.vlgmr.msra.gmra.mxu2 %v12261_v29  ;;  %v9640_v29 = vld [vmem:[%s13730_s7 + $0x698] sm:$0xf0] }
 0x94e   : > { %7605 = vmatpush.bf16.msrb.mxu2 %v9691_v0  ;;  %7600 = vmatmul.bf16.vlgmr.msra.gmra.mxu3 %v12263_v5  ;;  %v9768_v5 = vld [vmem:[%s13730_s7 + $0x798] sm:$0xf0]  ;;  %v9643_v41 = vor.u32 %v10419_v7, %v9640_v29  ;;  %v9990_v0 = vld [vmem:[#allocation5 + $0x150] sm:$0xf]  ;;  %v10501_v7 = vld [vmem:[#allocation5 + $0x114] sm:$0xf0] }
 0x94f   : > { %7618 = vmatpush.bf16.msrb.mxu3 %v9819_v20  ;;  %v9771_v31 = vor.u32 %v10451_v43, %v9768_v5  ;;  %v9991_v20 = vor.u32 %v10509_v30, %v9990_v0  ;;  %v9950_v5 = vld [vmem:[#allocation5 + $0x100] sm:$0xf] }
 0x950   : > { %v7484_v54 = vpop.f32.mrf.mxu2 }
 0x951   : > { %v7497_v44 = vpop.f32.mrf.mxu3 }
 0x952   : > { %7606 = vmatpush.bf16.msrb.mxu2 %v9675_v10  ;;  %v10505_v10 = vld [vmem:[#allocation5 + $0x134] sm:$0xf0] }
 0x953   : > { %7619 = vmatpush.bf16.msrb.mxu3 %v9803_v17  ;;  %v7472_v17 = vadd.f32 %v13524_v58, %v7459_v60  ;;  %v9975_v8 = vor.u32 %v10505_v10, %v9974_v21  ;;  %v10512_v58 = vld [vmem:[#allocation5 + $0x174] sm:$0xf]  ;;  %v10070_v60 = vld [vmem:[#allocation5 + $0x1f0] sm:$0xf] }
 0x955   : > { %v7485_v1 = vadd.f32 %v7484_v54, %v7472_v17  ;;  %v10508_v54 = vld [vmem:[#allocation5 + $0x154] sm:$0xf] }
 0x956   : > { %7607 = vmatpush.bf16.msrb.mxu2 %v9659_v61 }
 0x957   : > { %7620 = vmatpush.bf16.msrb.mxu3 %v9787_v33  ;;  %v7498_v32 = vadd.f32 %v7497_v44, %v7485_v1  ;;  %v9958_v33 = vld [vmem:[#allocation5 + $0x110] sm:$0xf]  ;;  %v10506_v44 = vld [vmem:[#allocation5 + $0x144] sm:$0xf] }
 0x958   : > { %v7486_v57 = vpop.f32.mrf.mxu2  ;;  %v9959_v6 = vor.u32 %v10501_v7, %v9958_v33 }
 0x959   : > { %v7499_v56 = vpop.f32.mrf.mxu3 }
 0x95a   : > { %7608 = vmatpush.bf16.msrb.mxu2 %v9643_v41  ;;  %v10499_v41 = vld [vmem:[#allocation5 + $0x104] sm:$0xf0]  ;;  %v10500_v56 = vld [vmem:[#allocation5 + $0x114] sm:$0xf] }
 0x95b   : > { %7621 = vmatpush.bf16.msrb.mxu3 %v9771_v31  ;;  %v9951_v51 = vor.u32 %v10499_v41, %v9950_v5  ;;  %v9963_v30 = vor.u32 %v10500_v56, %v9960_v46  ;;  %v10038_v5 = vld [vmem:[#allocation5 + $0x1b0] sm:$0xf]  ;;  %v10521_v41 = vld [vmem:[#allocation5 + $0x1b4] sm:$0xf0]  ;;  %v10032_v56 = vld [vmem:[#allocation5 + $0x1a8] sm:$0xf0] }
 0x95e   : > { %7609 = vmatpush.bf16.msrb.mxu2 %v9627_v3  ;;  %v10011_v3 = vor.u32 %v10512_v58, %v10008_v27  ;;  %v10030_v58 = vld [vmem:[#allocation5 + $0x1a0] sm:$0xf]  ;;  %v10519_v27 = vld [vmem:[#allocation5 + $0x1a4] sm:$0xf0] }
 0x95f   : > { %7622 = vmatpush.bf16.msrb.mxu3 %v9755_v53 }
 0x962   : > { %7610 = vmatpush.bf16.msrb.mxu2 %v9611_v14  ;;  %v10003_v14 = vor.u32 %v10510_v45, %v10000_v37  ;;  %v10014_v37 = vld [vmem:[#allocation5 + $0x180] sm:$0xf] }
 0x963   : > { %7623 = vmatpush.bf16.msrb.mxu3 %v9739_v34  ;;  %v9992_v34 = vld [vmem:[#allocation5 + $0x158] sm:$0xf0] }
 0x964   : > { %v9995_v62 = vor.u32 %v10508_v54, %v9992_v34 }
 0x966   : > { %7611 = vmatpush.bf16.msrb.mxu2 %v9595_v9 }
 0x967   : > { %7624 = vmatpush.bf16.msrb.mxu3 %v9723_v28  ;;  %v9987_v28 = vor.u32 %v10506_v44, %v9984_v4  ;;  %v10524_v4 = vld [vmem:[#allocation5 + $0x1d4] sm:$0xf] }
 0x96a   : > { %7612 = vmatpush.bf16.msrb.mxu2 %v9579_v36  ;;  %v5930_v36 = vperm.slane %v13244_v12, 3 }
 0x96b   : > { %7625 = vmatpush.bf16.msrb.mxu3 %v9707_v55  ;;  %v9971_v55 = vor.u32 %v10502_v11, %v9968_v52  ;;  %v10520_v52 = vld [vmem:[#allocation5 + $0x1b4] sm:$0xf] }
 0x96d   : > { %7613 = vmatmul.bf16.vlgmr.msrb.gmra.mxu2 %v12533_v39  ;;  %v10503_v39 = vld [vmem:[#allocation5 + $0x124] sm:$0xf0] }
 0x96e   : > { %8059 = vmatpush.bf16.msra.mxu2 %v10007_v16  ;;  %7626 = vmatmul.bf16.vlgmr.msrb.gmra.mxu3 %v12542_v18  ;;  %v9967_v18 = vor.u32 %v10503_v39, %v9966_v23  ;;  %v10062_v39 = vld [vmem:[#allocation5 + $0x1e0] sm:$0xf] }
 0x970   : > { %v7510_v61 = vpop.f32.mrf.mxu2 }
 0x971   : > { %v7511_v29 = vadd.f32 %v7510_v61, %v7498_v32  ;;  %v7523_v43 = vpop.f32.mrf.mxu3  ;;  %v10527_v32 = vld [vmem:[#allocation5 + $0x1e4] sm:$0xf0]  ;;  %v10054_v61 = vld [vmem:[#allocation5 + $0x1d0] sm:$0xf] }
 0x972   : > { %8060 = vmatpush.bf16.msra.mxu2 %v9999_v42  ;;  %v7710_v42 = vperm.slane %v7707_v47, 1  ;;  %v10515_v47 = vld [vmem:[#allocation5 + $0x184] sm:$0xf0] }
 0x973   : > { %v7524_v35 = vadd.f32 %v7523_v43, %v7511_v29  ;;  %v10046_v43 = vld [vmem:[#allocation5 + $0x1c0] sm:$0xf]  ;;  %v10015_v54 = vor.u32 %v10515_v47, %v10014_v37  ;;  %v10539_v37 = vld [vmem:[%s13734_s11 + $0x48] sm:$0xff] }
 0x974   : > { %v8095_v48 = vadd.f32 %v13532_v22, %v7710_v42  ;;  %v10525_v22 = vld [vmem:[#allocation5 + $0x1d4] sm:$0xf0]  ;;  %v10024_v42 = vld [vmem:[#allocation5 + $0x198] sm:$0xf0]  ;;  %v10538_v47 = vld [vmem:[%s13734_s11 + $0x40] sm:$0xff] }
 0x975   : > { %v7633_v31 = vmul.f32 0.2, %v7524_v35  ;;  %v10055_v7 = vor.u32 %v10525_v22, %v10054_v61 }
 0x976   : > { %8061 = vmatpush.bf16.msra.mxu2 %v9991_v20  ;;  %v10498_v20 = vld [vmem:[#allocation5 + $0x104] sm:$0xf] }
 0x977   : > { %v7637_v2 = vmax.f32 %v7524_v35, %v7633_v31  ;;  %v9955_v21 = vor.u32 %v10498_v20, %v9952_v38  ;;  %v10523_v35 = vld [vmem:[#allocation5 + $0x1c4] sm:$0xf0]  ;;  %v10039_v31 = vor.u32 %v10521_v41, %v10038_v5  ;;  %v10514_v20 = vld [vmem:[#allocation5 + $0x184] sm:$0xf]  ;;  %v10016_v38 = vld [vmem:[#allocation5 + $0x188] sm:$0xf0] }
 0x978   : > { %v7512_v19 = vpop.f32.mrf.mxu2  ;;  %v8055_v9 = vpop.f32.mrf.mxu1  ;;  %v10534_v5 = vld [vmem:[%s13734_s11 + $0x20] sm:$0xff]  ;;  %v10533_v41 = vld [vmem:[%s13734_s11 + $0x18] sm:$0xff] }
 0x979   : > { %v7525_v53 = vpop.f32.mrf.mxu3  ;;  %v7641_v59 = vpack.c.bf16 %v7637_v2, %v7637_v2  ;;  %v13653_v63 = vadd.f32 %v8055_v9, %v8043_v50  ;;  %v10031_v19 = vor.u32 %v10519_v27, %v10030_v58  ;;  %v10056_v50 = vld [vmem:[#allocation5 + $0x1d8] sm:$0xf0] }
 0x97a   : > { %8062 = vmatpush.bf16.msra.mxu2 %v9983_v25  ;;  %v10529_v25 = vld [vmem:[#allocation5 + $0x1f4] sm:$0xf0] }
 0x97b   : > { %v10071_v10 = vor.u32 %v10529_v25, %v10070_v60  ;;  %v10517_v53 = vld [vmem:[#allocation5 + $0x194] sm:$0xf0]  ;;  %v10019_v60 = vor.u32 %v10514_v20, %v10016_v38 }
 0x97d   : > { %8072 = vmatpush.bf16.msra.mxu3 %v10071_v10 }
 0x97e   : > { %8063 = vmatpush.bf16.msra.mxu2 %v9975_v8 }
 0x980   : > { %v8057_v57 = vpop.f32.mrf.mxu1 }
 0x982   : > { %8064 = vmatpush.bf16.msra.mxu2 %v9967_v18  ;;  %v10063_v18 = vor.u32 %v10527_v32, %v10062_v39 }
 0x984   : > { %8073 = vmatpush.bf16.msra.mxu3 %v10063_v18 }
 0x986   : > { %8065 = vmatpush.bf16.msra.mxu2 %v9959_v6  ;;  %v10047_v6 = vor.u32 %v10523_v35, %v10046_v43  ;;  %v10536_v43 = vld [vmem:[%s13734_s11 + $0x30] sm:$0xff] }
 0x988   : > { %v8107_v12 = vpop.f32.mrf.mxu1  ;;  %8074 = vmatpush.bf16.msra.mxu3 %v10055_v7 }
 0x989   : > { %v13659_v17 = vadd.f32 %v8107_v12, %v8095_v48 }
 0x98a   : > { %8066 = vmatpush.bf16.msra.mxu2 %v9951_v51 }
 0x98c   : > { %8075 = vmatpush.bf16.msra.mxu3 %v10047_v6  ;;  %v10544_v6 = vld [vmem:[%s13734_s11 + $0x70] sm:$0xff] }
 0x98d   : > { %8067 = vmatmul.bf16.vlgmr.msra.gmra.mxu2 %v7641_v59 }
 0x98e   : > { %8111 = vmatpush.bf16.msrb.mxu2 %v10011_v3  ;;  %v10022_v3 = vld [vmem:[#allocation5 + $0x190] sm:$0xf] }
 0x98f   : > { %v10023_v45 = vor.u32 %v10517_v53, %v10022_v3  ;;  %v10530_v3 = vld [vmem:[%s13734_s11] sm:$0xff] }
 0x990   : > { %v7536_v16 = vpop.f32.mrf.mxu2  ;;  %v8109_v23 = vpop.f32.mrf.mxu1  ;;  %8076 = vmatpush.bf16.msra.mxu3 %v10039_v31  ;;  %v10532_v31 = vld [vmem:[%s13734_s11 + $0x10] sm:$0xff]  ;;  %v10542_v53 = vld [vmem:[%s13734_s11 + $0x60] sm:$0xff] }
 0x991   : > { %v7537_v13 = vadd.f32 %v7536_v16, %v5930_v36  ;;  %v7549_v24 = vpop.f32.mrf.mxu3  ;;  %v10040_v36 = vld [vmem:[#allocation5 + $0x1b8] sm:$0xf0]  ;;  %v10518_v16 = vld [vmem:[#allocation5 + $0x1a4] sm:$0xf] }
 0x992   : > { %8112 = vmatpush.bf16.msrb.mxu2 %v10003_v14  ;;  %v10072_v14 = vld [vmem:[#allocation5 + $0x1f8] sm:$0xf0] }
 0x993   : > { %v13656_v0 = vadd.f32 %v7549_v24, %v7537_v13  ;;  %v10035_v13 = vor.u32 %v10518_v16, %v10032_v56  ;;  %v10516_v24 = vld [vmem:[#allocation5 + $0x194] sm:$0xf] }
 0x994   : > { %8077 = vmatpush.bf16.msra.mxu3 %v10031_v19  ;;  %v10543_v19 = vld [vmem:[%s13734_s11 + $0x68] sm:$0xff] }
 0x996   : > { %8113 = vmatpush.bf16.msrb.mxu2 %v9995_v62  ;;  %v10064_v62 = vld [vmem:[#allocation5 + $0x1e8] sm:$0xf0] }
 0x997   : > { %v10067_v44 = vor.u32 %v10526_v26, %v10064_v62 }
 0x998   : > { %v7538_v1 = vpop.f32.mrf.mxu2  ;;  %8078 = vmatpush.bf16.msra.mxu3 %v10023_v45  ;;  %v10540_v45 = vld [vmem:[%s13734_s11 + $0x50] sm:$0xff] }
 0x999   : > { %v7551_v8 = vpop.f32.mrf.mxu3 }
 0x99a   : > { %8114 = vmatpush.bf16.msrb.mxu2 %v9987_v28  ;;  %v10059_v28 = vor.u32 %v10524_v4, %v10056_v50 }
 0x99c   : > { %8079 = vmatpush.bf16.msra.mxu3 %v10015_v54 }
 0x99e   : > { %8115 = vmatpush.bf16.msrb.mxu2 %v9979_v49  ;;  %v10048_v49 = vld [vmem:[#allocation5 + $0x1c8] sm:$0xf0] }
 0x99f   : > { %v10051_v11 = vor.u32 %v10522_v15, %v10048_v49 }
 0x9a2   : > { %8116 = vmatpush.bf16.msrb.mxu2 %v9971_v55  ;;  %v10043_v55 = vor.u32 %v10520_v52, %v10040_v36 }
 0x9a6   : > { %8117 = vmatpush.bf16.msrb.mxu2 %v9963_v30  ;;  %v10027_v30 = vor.u32 %v10516_v24, %v10024_v42 }
 0x9aa   : > { %8118 = vmatpush.bf16.msrb.mxu2 %v9955_v21 }
 0x9ad   : > { %8119 = vmatmul.bf16.vlgmr.msrb.gmra.mxu2 %v7641_v59  ;;  %v10528_v59 = vld [vmem:[#allocation5 + $0x1f4] sm:$0xf] }
 0x9ae   : > { %v10075_v34 = vor.u32 %v10528_v59, %v10072_v14 }
 0x9b0   : > { %v7562_v33 = vpop.f32.mrf.mxu2  ;;  %8124 = vmatpush.bf16.msrb.mxu3 %v10075_v34 }
 0x9b1   : > { %v7575_v29 = vpop.f32.mrf.mxu3  ;;  %v7563_v48 = vadd.f32 %v7562_v33, %v13656_v0  ;;  %v10537_v33 = vld [vmem:[%s13734_s11 + $0x38] sm:$0xff] }
 0x9b2   : > { %8275 = vmatpush.bf16.msrb.mxu0 %v10537_v33 }
 0x9b3   : > { %v7576_v25 = vadd.f32 %v7575_v29, %v7563_v48  ;;  %v10545_v29 = vld [vmem:[%s13734_s11 + $0x78] sm:$0xff] }
 0x9b4   : > { %8125 = vmatpush.bf16.msrb.mxu3 %v10067_v44  ;;  %8288 = vmatpush.bf16.msrb.mxu1 %v10545_v29 }
 0x9b6   : > { %8276 = vmatpush.bf16.msrb.mxu0 %v10536_v43 }
 0x9b8   : > { %v7564_v51 = vpop.f32.mrf.mxu2  ;;  %8126 = vmatpush.bf16.msrb.mxu3 %v10059_v28  ;;  %8289 = vmatpush.bf16.msrb.mxu1 %v10544_v6 }
 0x9b9   : > { %v7577_v2 = vpop.f32.mrf.mxu3 }
 0x9ba   : > { %v10531_v2 = vld [vmem:[%s13734_s11 + $0x8] sm:$0xff] }
 0x9bc   : > { %8127 = vmatpush.bf16.msrb.mxu3 %v10051_v11  ;;  %8290 = vmatpush.bf16.msrb.mxu1 %v10543_v19  ;;  %v10582_v11 = vld [vmem:[%s13735_s12] ss:$0 sm:$0xff] }
 0x9c0   : > { %8128 = vmatpush.bf16.msrb.mxu3 %v10043_v55  ;;  %8291 = vmatpush.bf16.msrb.mxu1 %v10542_v53 }
 0x9c4   : > { %8129 = vmatpush.bf16.msrb.mxu3 %v10035_v13 }
 0x9c8   : > { %8130 = vmatpush.bf16.msrb.mxu3 %v10027_v30 }
 0x9cc   : > { %8131 = vmatpush.bf16.msrb.mxu3 %v10019_v60 }
 0x9d0   : > { %v7588_v9 = vpop.f32.mrf.mxu2 }
 0x9d1   : > { %v7601_v40 = vpop.f32.mrf.mxu3  ;;  %v7589_v12 = vadd.f32 %v7588_v9, %v7576_v25 }
 0x9d3   : > { %v7602_v21 = vadd.f32 %v7601_v40, %v7589_v12 }
 0x9d8   : > { %v7590_v57 = vpop.f32.mrf.mxu2 }
 0x9d9   : > { %v7603_v46 = vpop.f32.mrf.mxu3 }
 0x9f0   : > { %v7614_v10 = vpop.f32.mrf.mxu2 }
 0x9f1   : > { %v7615_v1 = vadd.f32 %v7614_v10, %v7602_v21  ;;  %v7627_v8 = vpop.f32.mrf.mxu3 }
 0x9f3   : > { %v7628_v23 = vadd.f32 %v7627_v8, %v7615_v1 }
 0x9f5   : > { %v7634_v39 = vmul.f32 0.2, %v7628_v23 }
 0x9f7   : > { %v7638_v32 = vmax.f32 %v7628_v23, %v7634_v39 }
 0x9f8   : > { %v7616_v18 = vpop.f32.mrf.mxu2 }
 0x9f9   : > { %v7642_v61 = vpack.c.bf16 %v7638_v32, %v7638_v32  ;;  %v7629_v22 = vpop.f32.mrf.mxu3 }
 0x9fb   : > { %8080 = vmatmul.bf16.vlgmr.msra.gmra.mxu3 %v7642_v61 }
 0xa0b   : > { %8132 = vmatmul.bf16.vlgmr.msrb.gmra.mxu3 %v7642_v61 }
 0xa10   : > { %v8068_v7 = vpop.f32.mrf.mxu2 }
 0xa11   : > { %v8069_v0 = vadd.f32 %v8068_v7, %v13653_v63  ;;  %v10535_v63 = vld [vmem:[%s13734_s11 + $0x28] sm:$0xff] }
 0xa12   : > { %8277 = vmatpush.bf16.msrb.mxu0 %v10535_v63 }
 0xa16   : > { %8278 = vmatpush.bf16.msrb.mxu0 %v10534_v5 }
 0xa18   : > { %v8070_v35 = vpop.f32.mrf.mxu2 }
 0xa1a   : > { %8279 = vmatpush.bf16.msrb.mxu0 %v10533_v41 }
 0xa1e   : > { %8280 = vmatpush.bf16.msrb.mxu0 %v10532_v31 }
 0xa22   : > { %8281 = vmatpush.bf16.msrb.mxu0 %v10531_v2 }
 0xa26   : > { %8282 = vmatpush.bf16.msrb.mxu0 %v10530_v3 }
 0xa30   : > { %v8120_v58 = vpop.f32.mrf.mxu2 }
 0xa31   : > { %v8121_v27 = vadd.f32 %v8120_v58, %v13659_v17  ;;  %v10541_v17 = vld [vmem:[%s13734_s11 + $0x58] sm:$0xff] }
 0xa32   : > { %8292 = vmatpush.bf16.msrb.mxu1 %v10541_v17 }
 0xa36   : > { %8293 = vmatpush.bf16.msrb.mxu1 %v10540_v45 }
 0xa38   : > { %v8122_v51 = vpop.f32.mrf.mxu2 }
 0xa3a   : > { %8294 = vmatpush.bf16.msrb.mxu1 %v10539_v37 }
 0xa3e   : > { %8295 = vmatpush.bf16.msrb.mxu1 %v10538_v47 }
 0xa7e   : > { %v8081_v59 = vpop.f32.mrf.mxu3 }
 0xa7f   : > { %v8082_v14 = vadd.f32 %v8081_v59, %v8069_v0 }
 0xa81   : > { %v8137_v54 = vmul.f32 0.2, %v8082_v14 }
 0xa83   : > { %v8139_v34 = vmax.f32 %v8082_v14, %v8137_v54 }
 0xa85   : > { %v8141_v26 = vpack.c.bf16 %v8139_v34, %v8139_v34 }
 0xa86   : > { %v8083_v62 = vpop.f32.mrf.mxu3 }
 0xa87   : > { %8283 = vmatmul.bf16.vlgmr.msrb.gmra.mxu0 %v8141_v26 }
 0xa8e   : > { %v8133_v44 = vpop.f32.mrf.mxu3 }
 0xa8f   : > { %v8134_v4 = vadd.f32 %v8133_v44, %v8121_v27 }
 0xa91   : > { %v8138_v50 = vmul.f32 0.2, %v8134_v4 }
 0xa93   : > { %v8140_v9 = vmax.f32 %v8134_v4, %v8138_v50 }
 0xa95   : > { %v8142_v28 = vpack.c.bf16 %v8140_v9, %v8140_v9 }
 0xa96   : > { %v8135_v40 = vpop.f32.mrf.mxu3 }
 0xa97   : > { %8296 = vmatmul.bf16.vlgmr.msrb.gmra.mxu1 %v8142_v28 }
 0xb04   : > { %v8284_v15 = vpop.f32.mrf.mxu0 }
 0xb05   : > { %v8285_v52 = vadd.f32 %v10582_v11, %v8284_v15 }
 0xb0c   : > { %v8286_v49 = vpop.f32.mrf.mxu0 }
 0xb14   : > { %v8297_v36 = vpop.f32.mrf.mxu1 }
 0xb15   : > { %v8298_v57 = vadd.f32 %v8297_v36, %v8285_v52 }
 0xb17   : > { %8301 = vst [vmem:[%s474_s28] sm:$0xff] %v8298_v57 }
 0xb1c   : > { %v8299_v55 = vpop.f32.mrf.mxu1 }
 0xb1d PF: > { %s25_s25 = sadd.s32 1, %s10670_s25  }
 0xb1e   : > { %p22_p8 = scmp.ge.s32.totalorder %s25_s25, 4  }
 0xb20   :  { %24 = sbr.rel (!%p22_p8) target bundleno = 2 (0x2), region = 118 }
 0xb25   :  { %8321 = vsyncpa [#allocation4], 1 }
 0xb26   :  { %8323 = vsyncpa [#allocation4 + $0x1], 1 }
 0xb27   :  { %8324 = vsyncpa [#allocation6], 1 }

</bundles_post_ra>
